<compile_context>
chip_gen: v6e
topology: v6e:2x2x1
jax: 0.10.0
libtpu: 0.0.40
codegen_flags: <defaults>
</compile_context>

<pallas_src>
import functools

import jax
import jax.numpy as jnp
from jax import lax
from jax.experimental import pallas as pl
from jax.experimental.pallas import tpu as pltpu


# ----------------------------------------------------------------------------
# Kernel 1: fused 1x1 qkv conv (MXU) + depthwise 3x3 conv (VPU), per batch image
# ----------------------------------------------------------------------------
def _qkv_dwconv_kernel(x_ref, wq_ref, bq_ref, wd_ref, bd_ref, o_ref, *,
                       matmul_dtype):
    # x: (1, H, W, Cin)   wq: (Cin, 3C)  bq: (1, 3C)
    # wd: (9, 3C)         bd: (1, 3C)    o: (1, H*W, 3C)
    _, H, W, Cin = x_ref.shape
    C3 = o_ref.shape[2]

    # --- 1x1 conv on the MXU: (H*W, Cin) @ (Cin, 3C), f32 accumulate ---------
    x2d = x_ref[0].reshape(H * W, Cin).astype(matmul_dtype)
    wq = wq_ref[...].astype(matmul_dtype)
    y = jnp.dot(x2d, wq, preferred_element_type=jnp.float32) + bq_ref[...]
    y3 = y.reshape(H, W, C3)                      # (H, W, 3C), f32

    # --- build a zero halo entirely in VMEM (no HBM pad) ---------------------
    # Rows pad on the untiled leading axis (trivial); columns pad with 8-wide
    # zero blocks so the sublane-dim concatenation stays tile-aligned.
    zrow = jnp.zeros((1, W, C3), jnp.float32)
    ypad = jnp.concatenate([zrow, y3, zrow], axis=0)          # (H+2, W, 3C)
    zcol = jnp.zeros((H + 2, 8, C3), jnp.float32)
    ypad = jnp.concatenate([zcol, ypad, zcol], axis=1)        # (H+2, W+16, 3C)

    # --- depthwise 3x3 conv on the VPU (f32) --------------------------------
    w_all = wd_ref[...]                                       # (9, 3C), loaded once
    acc = jnp.zeros((H, W, C3), jnp.float32) + bd_ref[...]    # bias-initialized
    for dy in range(3):
        for dx in range(3):
            k = 3 * dy + dx
            tap = w_all[k:k + 1, :]                           # (1, 3C) -> broadcast
            acc = acc + ypad[dy:dy + H, 7 + dx:7 + dx + W, :] * tap

    o_ref[0] = acc.reshape(H * W, C3)


def qkv_dwconv_fused(x_nhwc, w_qkv, b_qkv, w_dw, b_dw, *, matmul_dtype):
    # x_nhwc: (B, H, W, C) -> (B, H*W, 3C) channels-last "qkv rows"
    B, H, W, C = x_nhwc.shape
    C3 = w_qkv.shape[1]
    n = H * W
    assert W % 8 == 0, "fused dwconv path assumes W is a multiple of 8"
    kernel = functools.partial(_qkv_dwconv_kernel, matmul_dtype=matmul_dtype)
    return pl.pallas_call(
        kernel,
        out_shape=jax.ShapeDtypeStruct((B, n, C3), jnp.float32),
        grid=(B,),
        in_specs=[
            pl.BlockSpec((1, H, W, C), lambda b: (b, 0, 0, 0)),
            pl.BlockSpec((C, C3), lambda b: (0, 0)),
            pl.BlockSpec((1, C3), lambda b: (0, 0)),
            pl.BlockSpec((9, C3), lambda b: (0, 0)),
            pl.BlockSpec((1, C3), lambda b: (0, 0)),
        ],
        out_specs=pl.BlockSpec((1, n, C3), lambda b: (b, 0, 0)),
        compiler_params=pltpu.CompilerParams(dimension_semantics=("parallel",)),
    )(x_nhwc, w_qkv, b_qkv.reshape(1, C3), w_dw, b_dw.reshape(1, C3))


# ----------------------------------------------------------------------------
# Kernel 2: fused transposed attention (all heads) + project_out, per batch
# ----------------------------------------------------------------------------
def _attn_proj_kernel(t_ref, qkv_ref, wp_ref, bp_ref, o_ref, *,
                      num_heads, head_dim, matmul_dtype):
    # t: SMEM (heads,)  qkv: (1, n, 3C)  wp: (C, C)  bp: (1, C)  o: (1, n, C)
    n = qkv_ref.shape[1]
    C = num_heads * head_dim
    qkv = qkv_ref[0]                      # (n, 3C), f32
    wp = wp_ref[...]                      # (C, C),  f32
    eps2 = jnp.float32(1e-24)             # == (F.normalize eps 1e-12)**2

    # project_out folded per head: out @ Wp == sum_h out_h @ Wp[h*c:(h+1)*c, :]
    acc = jnp.zeros((n, C), jnp.float32) + bp_ref[...]

    for h in range(num_heads):
        c0 = h * head_dim
        q = qkv[:, c0:c0 + head_dim]                    # (n, c)
        k = qkv[:, C + c0:C + c0 + head_dim]            # (n, c)
        v = qkv[:, 2 * C + c0:2 * C + c0 + head_dim]    # (n, c)

        # L2-normalize along n (rows); rsqrt -> EUP, keep f32.
        qn = q * lax.rsqrt(jnp.maximum(jnp.sum(q * q, axis=0, keepdims=True), eps2))
        kn = k * lax.rsqrt(jnp.maximum(jnp.sum(k * k, axis=0, keepdims=True), eps2))

        # attn[i, j] = sum_n qn[n, i] * kn[n, j]  (contract over the row axis,
        # no explicit transpose materialized).
        attn = lax.dot_general(
            qn.astype(matmul_dtype), kn.astype(matmul_dtype),
            (((0,), (0,)), ((), ())),
            preferred_element_type=jnp.float32) * t_ref[h]

        attn = attn - jnp.max(attn, axis=-1, keepdims=True)
        p = jnp.exp(attn)
        p = p * pl.reciprocal(jnp.sum(p, axis=-1, keepdims=True), approx=True)

        # out_h[n, i] = sum_j p[i, j] * v[n, j]   (== v @ p^T), stays (n, c).
        out_h = lax.dot_general(
            v.astype(matmul_dtype), p.astype(matmul_dtype),
            (((1,), (1,)), ((), ())),
            preferred_element_type=jnp.float32)

        # fused project_out contribution of this head's channel block
        acc = acc + lax.dot_general(
            out_h.astype(matmul_dtype),
            wp[c0:c0 + head_dim, :].astype(matmul_dtype),
            (((1,), (0,)), ((), ())),
            preferred_element_type=jnp.float32)

    o_ref[0] = acc


def attention_project(qkv, w_proj, b_proj, temperature, num_heads, *,
                      matmul_dtype):
    # qkv: (B, n, 3C) -> (B, n, C)
    B, n, C3 = qkv.shape
    C = C3 // 3
    head_dim = C // num_heads
    kernel = functools.partial(_attn_proj_kernel, num_heads=num_heads,
                               head_dim=head_dim, matmul_dtype=matmul_dtype)
    return pl.pallas_call(
        kernel,
        out_shape=jax.ShapeDtypeStruct((B, n, C), jnp.float32),
        grid=(B,),
        in_specs=[
            pl.BlockSpec(memory_space=pltpu.MemorySpace.SMEM),   # temperature
            pl.BlockSpec((1, n, C3), lambda b: (b, 0, 0)),
            pl.BlockSpec((C, C), lambda b: (0, 0)),
            pl.BlockSpec((1, C), lambda b: (0, 0)),
        ],
        out_specs=pl.BlockSpec((1, n, C), lambda b: (b, 0, 0)),
        compiler_params=pltpu.CompilerParams(dimension_semantics=("parallel",)),
    )(temperature.reshape(num_heads).astype(jnp.float32), qkv, w_proj,
      b_proj.reshape(1, C))


# ----------------------------------------------------------------------------
# Full MDTA forward (wrapper: NCHW in / NCHW out, like the PyTorch module)
# ----------------------------------------------------------------------------
def mdta_forward(x_nchw, params, num_heads, *, matmul_dtype=jnp.bfloat16):
    B, C, H, W = x_nchw.shape
    assert C % num_heads == 0
    x = jnp.transpose(x_nchw, (0, 2, 3, 1))          # -> NHWC (lane = channels)

    # qkv = qkv_dwconv(qkv(x)), produced directly as (B, H*W, 3C) rows.
    qkv = qkv_dwconv_fused(x, params["w_qkv"], params["b_qkv"],
                           params["w_dw"], params["b_dw"],
                           matmul_dtype=matmul_dtype)

    # transposed attention over channels + project_out, output (B, H*W, C).
    out = attention_project(qkv, params["w_proj"], params["b_proj"],
                            params["temperature"], num_heads,
                            matmul_dtype=matmul_dtype)

    # (B, n, C) -> NCHW
    return jnp.transpose(out, (0, 2, 1)).reshape(B, C, H, W)


# ----------------------------------------------------------------------------
# Pure-JAX f32 reference (same math as the PyTorch module) for verification
# ----------------------------------------------------------------------------
def mdta_reference(x_nchw, params, num_heads):
    B, C, H, W = x_nchw.shape
    x = jnp.transpose(x_nchw, (0, 2, 3, 1))
    qkv = jnp.einsum("bhwc,cd->bhwd", x, params["w_qkv"]) + params["b_qkv"]
    xp = jnp.pad(qkv, ((0, 0), (1, 1), (1, 1), (0, 0)))
    acc = jnp.zeros_like(qkv)
    for dy in range(3):
        for dx in range(3):
            acc = acc + xp[:, dy:dy + H, dx:dx + W, :] * params["w_dw"][3 * dy + dx]
    qkv = acc + params["b_dw"]
    q, k, v = jnp.split(qkv, 3, axis=-1)

    def to_heads(t):
        return t.reshape(B, H * W, num_heads, C // num_heads).transpose(0, 2, 3, 1)

    q, k, v = to_heads(q), to_heads(k), to_heads(v)
    qn = q / jnp.maximum(jnp.sqrt(jnp.sum(q * q, -1, keepdims=True)), 1e-12)
    kn = k / jnp.maximum(jnp.sqrt(jnp.sum(k * k, -1, keepdims=True)), 1e-12)
    attn = jnp.einsum("bhcn,bhdn->bhcd", qn, kn) * params["temperature"][None]
    attn = jax.nn.softmax(attn, axis=-1)
    out = jnp.einsum("bhcd,bhdn->bhcn", attn, v)
    out = out.transpose(0, 3, 1, 2).reshape(B, H, W, C)
    out = jnp.einsum("bhwc,cd->bhwd", out, params["w_proj"]) + params["b_proj"]
    return jnp.transpose(out, (0, 3, 1, 2))


if __name__ == "__main__":
    # Small, module-consistent shapes: B=2, dim=16, H=W=16, num_heads=4 (bias=True).
    B, dim, H, W = 2, 16, 16, 16
    num_heads = 4

    key = jax.random.PRNGKey(0)
    ks = jax.random.split(key, 7)
    params = {
        # nn.Conv2d(dim, 3*dim, 1): weight (3*dim, dim, 1, 1) -> stored (dim, 3*dim)
        "w_qkv": 0.1 * jax.random.normal(ks[0], (dim, 3 * dim), jnp.float32),
        "b_qkv": 0.1 * jax.random.normal(ks[1], (3 * dim,), jnp.float32),
        # depthwise Conv2d(3*dim, 3*dim, 3, groups=3*dim): (3*dim,1,3,3) -> (9, 3*dim)
        "w_dw": 0.1 * jax.random.normal(ks[2], (9, 3 * dim), jnp.float32),
        "b_dw": 0.1 * jax.random.normal(ks[3], (3 * dim,), jnp.float32),
        # nn.Conv2d(dim, dim, 1): (dim, dim, 1, 1) -> (dim, dim)
        "w_proj": 0.1 * jax.random.normal(ks[4], (dim, dim), jnp.float32),
        "b_proj": 0.1 * jax.random.normal(ks[5], (dim,), jnp.float32),
        # nn.Parameter(torch.ones(num_heads, 1, 1))
        "temperature": jnp.ones((num_heads, 1, 1), jnp.float32),
    }

    x = jax.random.normal(ks[6], (B, dim, H, W), jnp.float32)  # NCHW like PyTorch

    ref = mdta_reference(x, params, num_heads)

    # Strict check: f32 MXU path.
    fwd_f32 = jax.jit(functools.partial(mdta_forward, num_heads=num_heads,
                                        matmul_dtype=jnp.float32))
    out_f32 = fwd_f32(x, params)
    jax.block_until_ready(out_f32)
    assert out_f32.shape == (B, dim, H, W)
    assert bool(jnp.all(jnp.isfinite(out_f32)))
    err_f32 = float(jnp.max(jnp.abs(out_f32 - ref)))
    assert bool(jnp.allclose(out_f32, ref, atol=3e-3, rtol=3e-3)), err_f32

    # Fast path: bf16 on the MXU (f32 accumulate; norm/softmax/dwconv stay f32).
    fwd_bf16 = jax.jit(functools.partial(mdta_forward, num_heads=num_heads,
                                         matmul_dtype=jnp.bfloat16))
    out_bf16 = fwd_bf16(x, params)
    jax.block_until_ready(out_bf16)
    assert out_bf16.shape == (B, dim, H, W)
    assert bool(jnp.all(jnp.isfinite(out_bf16)))
    err_bf16 = float(jnp.max(jnp.abs(out_bf16 - ref)))
    assert bool(jnp.allclose(out_bf16, ref, atol=2e-2, rtol=2e-2)), err_bf16

    print("KERNEL_OK")
</pallas_src>

<mosaic_0001>
module attributes {stable_mosaic.version = 11 : i64} {
  func.func @_attn_proj_kernel(%arg0: i32, %arg1: memref<4xf32, #tpu.memory_space<smem>>, %arg2: memref<1x256x48xf32, #tpu.memory_space<vmem>>, %arg3: memref<16x16xf32, #tpu.memory_space<vmem>>, %arg4: memref<1x16xf32, #tpu.memory_space<vmem>>, %arg5: memref<1x256x16xf32, #tpu.memory_space<vmem>>) attributes {dimension_semantics = [#tpu.dimension_semantics<parallel>], iteration_bounds = array<i64: 2>, scalar_prefetch = 0 : i64, scratch_operands = 0 : i64, tpu.core_type = #tpu.core_type<tc>, window_params = [{transform_indices = @transform_0, window_bounds = array<i64: 4>}, {transform_indices = @transform_1, window_bounds = array<i64: 1, 256, 48>}, {pipeline_mode = #tpu.pipeline_mode<synchronous>, transform_indices = @transform_2, window_bounds = array<i64: 16, 16>}, {pipeline_mode = #tpu.pipeline_mode<synchronous>, transform_indices = @transform_3, window_bounds = array<i64: 1, 16>}, {transform_indices = @transform_4, window_bounds = array<i64: 1, 256, 16>}]} {
    %c0 = arith.constant 0 : index
    %c0_0 = arith.constant 0 : index
    %c0_1 = arith.constant 0 : index
    %0 = vector.load %arg2[%c0, %c0_0, %c0_1] : memref<1x256x48xf32, #tpu.memory_space<vmem>>, vector<1x256x48xf32>
    %1 = vector.shape_cast %0 : vector<1x256x48xf32> to vector<256x48xf32>
    %c0_2 = arith.constant 0 : index
    %c0_3 = arith.constant 0 : index
    %2 = vector.load %arg3[%c0_2, %c0_3] : memref<16x16xf32, #tpu.memory_space<vmem>>, vector<16x16xf32>
    %cst = arith.constant 0.000000e+00 : f32
    %3 = vector.broadcast %cst : f32 to vector<256x16xf32>
    %c0_4 = arith.constant 0 : index
    %c0_5 = arith.constant 0 : index
    %4 = vector.load %arg4[%c0_4, %c0_5] : memref<1x16xf32, #tpu.memory_space<vmem>>, vector<1x16xf32>
    %5 = vector.broadcast %4 : vector<1x16xf32> to vector<256x16xf32>
    %6 = arith.addf %3, %5 : vector<256x16xf32>
    %7 = vector.extract_strided_slice %1 {offsets = [0, 0], sizes = [256, 4], strides = [1, 1]} : vector<256x48xf32> to vector<256x4xf32>
    %8 = vector.extract_strided_slice %1 {offsets = [0, 16], sizes = [256, 4], strides = [1, 1]} : vector<256x48xf32> to vector<256x4xf32>
    %9 = vector.extract_strided_slice %1 {offsets = [0, 32], sizes = [256, 4], strides = [1, 1]} : vector<256x48xf32> to vector<256x4xf32>
    %10 = arith.mulf %7, %7 : vector<256x4xf32>
    %cst_6 = arith.constant dense<0.000000e+00> : vector<4xf32>
    %11 = vector.multi_reduction <add>, %10, %cst_6 [0] : vector<256x4xf32> to vector<4xf32>
    %12 = vector.shape_cast %11 : vector<4xf32> to vector<1x4xf32>
    %cst_7 = arith.constant 1.000000e-24 : f32
    %13 = vector.broadcast %cst_7 : f32 to vector<1x4xf32>
    %14 = arith.maximumf %12, %13 : vector<1x4xf32>
    %15 = math.rsqrt %14 : vector<1x4xf32>
    %16 = vector.broadcast %15 : vector<1x4xf32> to vector<256x4xf32>
    %17 = arith.mulf %7, %16 : vector<256x4xf32>
    %18 = arith.mulf %8, %8 : vector<256x4xf32>
    %cst_8 = arith.constant dense<0.000000e+00> : vector<4xf32>
    %19 = vector.multi_reduction <add>, %18, %cst_8 [0] : vector<256x4xf32> to vector<4xf32>
    %20 = vector.shape_cast %19 : vector<4xf32> to vector<1x4xf32>
    %cst_9 = arith.constant 1.000000e-24 : f32
    %21 = vector.broadcast %cst_9 : f32 to vector<1x4xf32>
    %22 = arith.maximumf %20, %21 : vector<1x4xf32>
    %23 = math.rsqrt %22 : vector<1x4xf32>
    %24 = vector.broadcast %23 : vector<1x4xf32> to vector<256x4xf32>
    %25 = arith.mulf %8, %24 : vector<256x4xf32>
    %cst_10 = arith.constant dense<0.000000e+00> : vector<4x4xf32>
    %26 = tpu.matmul %17, %25, %cst_10 {dimension_numbers = #tpu.dot_dimension_numbers<[0], [0], [1], [1], [0, 1, 1, 1], [], []>} : vector<256x4xf32>, vector<256x4xf32>, vector<4x4xf32> -> vector<4x4xf32>
    %c0_11 = arith.constant 0 : index
    %27 = memref.load %arg1[%c0_11] : memref<4xf32, #tpu.memory_space<smem>>
    %28 = vector.broadcast %27 : f32 to vector<4x4xf32>
    %29 = arith.mulf %26, %28 : vector<4x4xf32>
    %cst_12 = arith.constant dense<0xFF800000> : vector<4xf32>
    %30 = vector.multi_reduction <maximumf>, %29, %cst_12 [1] : vector<4x4xf32> to vector<4xf32>
    %31 = vector.shape_cast %30 : vector<4xf32> to vector<4x1xf32>
    %32 = vector.broadcast %31 : vector<4x1xf32> to vector<4x4xf32>
    %33 = arith.subf %29, %32 : vector<4x4xf32>
    %34 = math.exp %33 : vector<4x4xf32>
    %cst_13 = arith.constant dense<0.000000e+00> : vector<4xf32>
    %35 = vector.multi_reduction <add>, %34, %cst_13 [1] : vector<4x4xf32> to vector<4xf32>
    %36 = vector.shape_cast %35 : vector<4xf32> to vector<4x1xf32>
    %37 = tpu.reciprocal %36 {approx = true} : vector<4x1xf32> -> vector<4x1xf32>
    %38 = vector.broadcast %37 : vector<4x1xf32> to vector<4x4xf32>
    %39 = arith.mulf %34, %38 : vector<4x4xf32>
    %cst_14 = arith.constant dense<0.000000e+00> : vector<256x4xf32>
    %40 = tpu.matmul %9, %39, %cst_14 {dimension_numbers = #tpu.dot_dimension_numbers<[1], [1], [0], [0], [0, 0, 1, 0], [], []>} : vector<256x4xf32>, vector<4x4xf32>, vector<256x4xf32> -> vector<256x4xf32>
    %41 = vector.extract_strided_slice %2 {offsets = [0, 0], sizes = [4, 16], strides = [1, 1]} : vector<16x16xf32> to vector<4x16xf32>
    %cst_15 = arith.constant dense<0.000000e+00> : vector<256x16xf32>
    %42 = tpu.matmul %40, %41, %cst_15 {dimension_numbers = #tpu.dot_dimension_numbers<[1], [0], [0], [1], [0, 0, 1, 1], [], []>} : vector<256x4xf32>, vector<4x16xf32>, vector<256x16xf32> -> vector<256x16xf32>
    %43 = arith.addf %6, %42 : vector<256x16xf32>
    %44 = vector.extract_strided_slice %1 {offsets = [0, 4], sizes = [256, 4], strides = [1, 1]} : vector<256x48xf32> to vector<256x4xf32>
    %45 = vector.extract_strided_slice %1 {offsets = [0, 20], sizes = [256, 4], strides = [1, 1]} : vector<256x48xf32> to vector<256x4xf32>
    %46 = vector.extract_strided_slice %1 {offsets = [0, 36], sizes = [256, 4], strides = [1, 1]} : vector<256x48xf32> to vector<256x4xf32>
    %47 = arith.mulf %44, %44 : vector<256x4xf32>
    %cst_16 = arith.constant dense<0.000000e+00> : vector<4xf32>
    %48 = vector.multi_reduction <add>, %47, %cst_16 [0] : vector<256x4xf32> to vector<4xf32>
    %49 = vector.shape_cast %48 : vector<4xf32> to vector<1x4xf32>
    %cst_17 = arith.constant 1.000000e-24 : f32
    %50 = vector.broadcast %cst_17 : f32 to vector<1x4xf32>
    %51 = arith.maximumf %49, %50 : vector<1x4xf32>
    %52 = math.rsqrt %51 : vector<1x4xf32>
    %53 = vector.broadcast %52 : vector<1x4xf32> to vector<256x4xf32>
    %54 = arith.mulf %44, %53 : vector<256x4xf32>
    %55 = arith.mulf %45, %45 : vector<256x4xf32>
    %cst_18 = arith.constant dense<0.000000e+00> : vector<4xf32>
    %56 = vector.multi_reduction <add>, %55, %cst_18 [0] : vector<256x4xf32> to vector<4xf32>
    %57 = vector.shape_cast %56 : vector<4xf32> to vector<1x4xf32>
    %cst_19 = arith.constant 1.000000e-24 : f32
    %58 = vector.broadcast %cst_19 : f32 to vector<1x4xf32>
    %59 = arith.maximumf %57, %58 : vector<1x4xf32>
    %60 = math.rsqrt %59 : vector<1x4xf32>
    %61 = vector.broadcast %60 : vector<1x4xf32> to vector<256x4xf32>
    %62 = arith.mulf %45, %61 : vector<256x4xf32>
    %cst_20 = arith.constant dense<0.000000e+00> : vector<4x4xf32>
    %63 = tpu.matmul %54, %62, %cst_20 {dimension_numbers = #tpu.dot_dimension_numbers<[0], [0], [1], [1], [0, 1, 1, 1], [], []>} : vector<256x4xf32>, vector<256x4xf32>, vector<4x4xf32> -> vector<4x4xf32>
    %c1 = arith.constant 1 : index
    %64 = memref.load %arg1[%c1] : memref<4xf32, #tpu.memory_space<smem>>
    %65 = vector.broadcast %64 : f32 to vector<4x4xf32>
    %66 = arith.mulf %63, %65 : vector<4x4xf32>
    %cst_21 = arith.constant dense<0xFF800000> : vector<4xf32>
    %67 = vector.multi_reduction <maximumf>, %66, %cst_21 [1] : vector<4x4xf32> to vector<4xf32>
    %68 = vector.shape_cast %67 : vector<4xf32> to vector<4x1xf32>
    %69 = vector.broadcast %68 : vector<4x1xf32> to vector<4x4xf32>
    %70 = arith.subf %66, %69 : vector<4x4xf32>
    %71 = math.exp %70 : vector<4x4xf32>
    %cst_22 = arith.constant dense<0.000000e+00> : vector<4xf32>
    %72 = vector.multi_reduction <add>, %71, %cst_22 [1] : vector<4x4xf32> to vector<4xf32>
    %73 = vector.shape_cast %72 : vector<4xf32> to vector<4x1xf32>
    %74 = tpu.reciprocal %73 {approx = true} : vector<4x1xf32> -> vector<4x1xf32>
    %75 = vector.broadcast %74 : vector<4x1xf32> to vector<4x4xf32>
    %76 = arith.mulf %71, %75 : vector<4x4xf32>
    %cst_23 = arith.constant dense<0.000000e+00> : vector<256x4xf32>
    %77 = tpu.matmul %46, %76, %cst_23 {dimension_numbers = #tpu.dot_dimension_numbers<[1], [1], [0], [0], [0, 0, 1, 0], [], []>} : vector<256x4xf32>, vector<4x4xf32>, vector<256x4xf32> -> vector<256x4xf32>
    %78 = vector.extract_strided_slice %2 {offsets = [4, 0], sizes = [4, 16], strides = [1, 1]} : vector<16x16xf32> to vector<4x16xf32>
    %cst_24 = arith.constant dense<0.000000e+00> : vector<256x16xf32>
    %79 = tpu.matmul %77, %78, %cst_24 {dimension_numbers = #tpu.dot_dimension_numbers<[1], [0], [0], [1], [0, 0, 1, 1], [], []>} : vector<256x4xf32>, vector<4x16xf32>, vector<256x16xf32> -> vector<256x16xf32>
    %80 = arith.addf %43, %79 : vector<256x16xf32>
    %81 = vector.extract_strided_slice %1 {offsets = [0, 8], sizes = [256, 4], strides = [1, 1]} : vector<256x48xf32> to vector<256x4xf32>
    %82 = vector.extract_strided_slice %1 {offsets = [0, 24], sizes = [256, 4], strides = [1, 1]} : vector<256x48xf32> to vector<256x4xf32>
    %83 = vector.extract_strided_slice %1 {offsets = [0, 40], sizes = [256, 4], strides = [1, 1]} : vector<256x48xf32> to vector<256x4xf32>
    %84 = arith.mulf %81, %81 : vector<256x4xf32>
    %cst_25 = arith.constant dense<0.000000e+00> : vector<4xf32>
    %85 = vector.multi_reduction <add>, %84, %cst_25 [0] : vector<256x4xf32> to vector<4xf32>
    %86 = vector.shape_cast %85 : vector<4xf32> to vector<1x4xf32>
    %cst_26 = arith.constant 1.000000e-24 : f32
    %87 = vector.broadcast %cst_26 : f32 to vector<1x4xf32>
    %88 = arith.maximumf %86, %87 : vector<1x4xf32>
    %89 = math.rsqrt %88 : vector<1x4xf32>
    %90 = vector.broadcast %89 : vector<1x4xf32> to vector<256x4xf32>
    %91 = arith.mulf %81, %90 : vector<256x4xf32>
    %92 = arith.mulf %82, %82 : vector<256x4xf32>
    %cst_27 = arith.constant dense<0.000000e+00> : vector<4xf32>
    %93 = vector.multi_reduction <add>, %92, %cst_27 [0] : vector<256x4xf32> to vector<4xf32>
    %94 = vector.shape_cast %93 : vector<4xf32> to vector<1x4xf32>
    %cst_28 = arith.constant 1.000000e-24 : f32
    %95 = vector.broadcast %cst_28 : f32 to vector<1x4xf32>
    %96 = arith.maximumf %94, %95 : vector<1x4xf32>
    %97 = math.rsqrt %96 : vector<1x4xf32>
    %98 = vector.broadcast %97 : vector<1x4xf32> to vector<256x4xf32>
    %99 = arith.mulf %82, %98 : vector<256x4xf32>
    %cst_29 = arith.constant dense<0.000000e+00> : vector<4x4xf32>
    %100 = tpu.matmul %91, %99, %cst_29 {dimension_numbers = #tpu.dot_dimension_numbers<[0], [0], [1], [1], [0, 1, 1, 1], [], []>} : vector<256x4xf32>, vector<256x4xf32>, vector<4x4xf32> -> vector<4x4xf32>
    %c2 = arith.constant 2 : index
    %101 = memref.load %arg1[%c2] : memref<4xf32, #tpu.memory_space<smem>>
    %102 = vector.broadcast %101 : f32 to vector<4x4xf32>
    %103 = arith.mulf %100, %102 : vector<4x4xf32>
    %cst_30 = arith.constant dense<0xFF800000> : vector<4xf32>
    %104 = vector.multi_reduction <maximumf>, %103, %cst_30 [1] : vector<4x4xf32> to vector<4xf32>
    %105 = vector.shape_cast %104 : vector<4xf32> to vector<4x1xf32>
    %106 = vector.broadcast %105 : vector<4x1xf32> to vector<4x4xf32>
    %107 = arith.subf %103, %106 : vector<4x4xf32>
    %108 = math.exp %107 : vector<4x4xf32>
    %cst_31 = arith.constant dense<0.000000e+00> : vector<4xf32>
    %109 = vector.multi_reduction <add>, %108, %cst_31 [1] : vector<4x4xf32> to vector<4xf32>
    %110 = vector.shape_cast %109 : vector<4xf32> to vector<4x1xf32>
    %111 = tpu.reciprocal %110 {approx = true} : vector<4x1xf32> -> vector<4x1xf32>
    %112 = vector.broadcast %111 : vector<4x1xf32> to vector<4x4xf32>
    %113 = arith.mulf %108, %112 : vector<4x4xf32>
    %cst_32 = arith.constant dense<0.000000e+00> : vector<256x4xf32>
    %114 = tpu.matmul %83, %113, %cst_32 {dimension_numbers = #tpu.dot_dimension_numbers<[1], [1], [0], [0], [0, 0, 1, 0], [], []>} : vector<256x4xf32>, vector<4x4xf32>, vector<256x4xf32> -> vector<256x4xf32>
    %115 = vector.extract_strided_slice %2 {offsets = [8, 0], sizes = [4, 16], strides = [1, 1]} : vector<16x16xf32> to vector<4x16xf32>
    %cst_33 = arith.constant dense<0.000000e+00> : vector<256x16xf32>
    %116 = tpu.matmul %114, %115, %cst_33 {dimension_numbers = #tpu.dot_dimension_numbers<[1], [0], [0], [1], [0, 0, 1, 1], [], []>} : vector<256x4xf32>, vector<4x16xf32>, vector<256x16xf32> -> vector<256x16xf32>
    %117 = arith.addf %80, %116 : vector<256x16xf32>
    %118 = vector.extract_strided_slice %1 {offsets = [0, 12], sizes = [256, 4], strides = [1, 1]} : vector<256x48xf32> to vector<256x4xf32>
    %119 = vector.extract_strided_slice %1 {offsets = [0, 28], sizes = [256, 4], strides = [1, 1]} : vector<256x48xf32> to vector<256x4xf32>
    %120 = vector.extract_strided_slice %1 {offsets = [0, 44], sizes = [256, 4], strides = [1, 1]} : vector<256x48xf32> to vector<256x4xf32>
    %121 = arith.mulf %118, %118 : vector<256x4xf32>
    %cst_34 = arith.constant dense<0.000000e+00> : vector<4xf32>
    %122 = vector.multi_reduction <add>, %121, %cst_34 [0] : vector<256x4xf32> to vector<4xf32>
    %123 = vector.shape_cast %122 : vector<4xf32> to vector<1x4xf32>
    %cst_35 = arith.constant 1.000000e-24 : f32
    %124 = vector.broadcast %cst_35 : f32 to vector<1x4xf32>
    %125 = arith.maximumf %123, %124 : vector<1x4xf32>
    %126 = math.rsqrt %125 : vector<1x4xf32>
    %127 = vector.broadcast %126 : vector<1x4xf32> to vector<256x4xf32>
    %128 = arith.mulf %118, %127 : vector<256x4xf32>
    %129 = arith.mulf %119, %119 : vector<256x4xf32>
    %cst_36 = arith.constant dense<0.000000e+00> : vector<4xf32>
    %130 = vector.multi_reduction <add>, %129, %cst_36 [0] : vector<256x4xf32> to vector<4xf32>
    %131 = vector.shape_cast %130 : vector<4xf32> to vector<1x4xf32>
    %cst_37 = arith.constant 1.000000e-24 : f32
    %132 = vector.broadcast %cst_37 : f32 to vector<1x4xf32>
    %133 = arith.maximumf %131, %132 : vector<1x4xf32>
    %134 = math.rsqrt %133 : vector<1x4xf32>
    %135 = vector.broadcast %134 : vector<1x4xf32> to vector<256x4xf32>
    %136 = arith.mulf %119, %135 : vector<256x4xf32>
    %cst_38 = arith.constant dense<0.000000e+00> : vector<4x4xf32>
    %137 = tpu.matmul %128, %136, %cst_38 {dimension_numbers = #tpu.dot_dimension_numbers<[0], [0], [1], [1], [0, 1, 1, 1], [], []>} : vector<256x4xf32>, vector<256x4xf32>, vector<4x4xf32> -> vector<4x4xf32>
    %c3 = arith.constant 3 : index
    %138 = memref.load %arg1[%c3] : memref<4xf32, #tpu.memory_space<smem>>
    %139 = vector.broadcast %138 : f32 to vector<4x4xf32>
    %140 = arith.mulf %137, %139 : vector<4x4xf32>
    %cst_39 = arith.constant dense<0xFF800000> : vector<4xf32>
    %141 = vector.multi_reduction <maximumf>, %140, %cst_39 [1] : vector<4x4xf32> to vector<4xf32>
    %142 = vector.shape_cast %141 : vector<4xf32> to vector<4x1xf32>
    %143 = vector.broadcast %142 : vector<4x1xf32> to vector<4x4xf32>
    %144 = arith.subf %140, %143 : vector<4x4xf32>
    %145 = math.exp %144 : vector<4x4xf32>
    %cst_40 = arith.constant dense<0.000000e+00> : vector<4xf32>
    %146 = vector.multi_reduction <add>, %145, %cst_40 [1] : vector<4x4xf32> to vector<4xf32>
    %147 = vector.shape_cast %146 : vector<4xf32> to vector<4x1xf32>
    %148 = tpu.reciprocal %147 {approx = true} : vector<4x1xf32> -> vector<4x1xf32>
    %149 = vector.broadcast %148 : vector<4x1xf32> to vector<4x4xf32>
    %150 = arith.mulf %145, %149 : vector<4x4xf32>
    %cst_41 = arith.constant dense<0.000000e+00> : vector<256x4xf32>
    %151 = tpu.matmul %120, %150, %cst_41 {dimension_numbers = #tpu.dot_dimension_numbers<[1], [1], [0], [0], [0, 0, 1, 0], [], []>} : vector<256x4xf32>, vector<4x4xf32>, vector<256x4xf32> -> vector<256x4xf32>
    %152 = vector.extract_strided_slice %2 {offsets = [12, 0], sizes = [4, 16], strides = [1, 1]} : vector<16x16xf32> to vector<4x16xf32>
    %cst_42 = arith.constant dense<0.000000e+00> : vector<256x16xf32>
    %153 = tpu.matmul %151, %152, %cst_42 {dimension_numbers = #tpu.dot_dimension_numbers<[1], [0], [0], [1], [0, 0, 1, 1], [], []>} : vector<256x4xf32>, vector<4x16xf32>, vector<256x16xf32> -> vector<256x16xf32>
    %154 = arith.addf %117, %153 : vector<256x16xf32>
    %c0_43 = arith.constant 0 : index
    %c0_44 = arith.constant 0 : index
    %c0_45 = arith.constant 0 : index
    %155 = vector.load %arg5[%c0_43, %c0_44, %c0_45] : memref<1x256x16xf32, #tpu.memory_space<vmem>>, vector<1x256x16xf32>
    %156 = vector.shape_cast %155 : vector<1x256x16xf32> to vector<256x16xf32>
    %157 = vector.shape_cast %154 : vector<256x16xf32> to vector<1x256x16xf32>
    tpu.vector_store %arg5[%c0_43, %c0_44, %c0_45], %157 {strides = array<i32>} : memref<1x256x16xf32, #tpu.memory_space<vmem>>, vector<1x256x16xf32>,
    return
  }
  func.func @transform_0(%arg0: i32) -> i32 {
    %c0_i32 = arith.constant 0 : i32
    %c0_i32_0 = arith.constant 0 : i32
    return %c0_i32 : i32
  }
  func.func @transform_1(%arg0: i32) -> (i32, i32, i32) {
    %c0_i32 = arith.constant 0 : i32
    %c0_i32_0 = arith.constant 0 : i32
    %c0_i32_1 = arith.constant 0 : i32
    return %arg0, %c0_i32, %c0_i32_0 : i32, i32, i32
  }
  func.func @transform_2(%arg0: i32) -> (i32, i32) {
    %c0_i32 = arith.constant 0 : i32
    %c0_i32_0 = arith.constant 0 : i32
    %c0_i32_1 = arith.constant 0 : i32
    return %c0_i32, %c0_i32_0 : i32, i32
  }
  func.func @transform_3(%arg0: i32) -> (i32, i32) {
    %c0_i32 = arith.constant 0 : i32
    %c0_i32_0 = arith.constant 0 : i32
    %c0_i32_1 = arith.constant 0 : i32
    return %c0_i32, %c0_i32_0 : i32, i32
  }
  func.func @transform_4(%arg0: i32) -> (i32, i32, i32) {
    %c0_i32 = arith.constant 0 : i32
    %c0_i32_0 = arith.constant 0 : i32
    %c0_i32_1 = arith.constant 0 : i32
    return %arg0, %c0_i32, %c0_i32_0 : i32, i32, i32
  }
}

module attributes {stable_mosaic.version = 11 : i64} {
  func.func @_qkv_dwconv_kernel(%arg0: i32, %arg1: memref<1x16x16x16xf32, #tpu.memory_space<vmem>>, %arg2: memref<16x48xf32, #tpu.memory_space<vmem>>, %arg3: memref<1x48xf32, #tpu.memory_space<vmem>>, %arg4: memref<9x48xf32, #tpu.memory_space<vmem>>, %arg5: memref<1x48xf32, #tpu.memory_space<vmem>>, %arg6: memref<1x256x48xf32, #tpu.memory_space<vmem>>) attributes {dimension_semantics = [#tpu.dimension_semantics<parallel>], iteration_bounds = array<i64: 2>, scalar_prefetch = 0 : i64, scratch_operands = 0 : i64, tpu.core_type = #tpu.core_type<tc>, window_params = [{transform_indices = @transform_0, window_bounds = array<i64: 1, 16, 16, 16>}, {pipeline_mode = #tpu.pipeline_mode<synchronous>, transform_indices = @transform_1, window_bounds = array<i64: 16, 48>}, {pipeline_mode = #tpu.pipeline_mode<synchronous>, transform_indices = @transform_2, window_bounds = array<i64: 1, 48>}, {pipeline_mode = #tpu.pipeline_mode<synchronous>, transform_indices = @transform_3, window_bounds = array<i64: 9, 48>}, {pipeline_mode = #tpu.pipeline_mode<synchronous>, transform_indices = @transform_4, window_bounds = array<i64: 1, 48>}, {transform_indices = @transform_5, window_bounds = array<i64: 1, 256, 48>}]} {
    %c0 = arith.constant 0 : index
    %c0_0 = arith.constant 0 : index
    %c0_1 = arith.constant 0 : index
    %c0_2 = arith.constant 0 : index
    %0 = vector.load %arg1[%c0, %c0_0, %c0_1, %c0_2] : memref<1x16x16x16xf32, #tpu.memory_space<vmem>>, vector<1x16x16x16xf32>
    %1 = vector.shape_cast %0 : vector<1x16x16x16xf32> to vector<16x16x16xf32>
    %2 = vector.shape_cast %1 : vector<16x16x16xf32> to vector<256x16xf32>
    %c0_3 = arith.constant 0 : index
    %c0_4 = arith.constant 0 : index
    %3 = vector.load %arg2[%c0_3, %c0_4] : memref<16x48xf32, #tpu.memory_space<vmem>>, vector<16x48xf32>
    %cst = arith.constant dense<0.000000e+00> : vector<256x48xf32>
    %4 = tpu.matmul %2, %3, %cst {dimension_numbers = #tpu.dot_dimension_numbers<[1], [0], [0], [1], [0, 0, 1, 1], [], []>} : vector<256x16xf32>, vector<16x48xf32>, vector<256x48xf32> -> vector<256x48xf32>
    %c0_5 = arith.constant 0 : index
    %c0_6 = arith.constant 0 : index
    %5 = vector.load %arg3[%c0_5, %c0_6] : memref<1x48xf32, #tpu.memory_space<vmem>>, vector<1x48xf32>
    %6 = vector.broadcast %5 : vector<1x48xf32> to vector<256x48xf32>
    %7 = arith.addf %4, %6 : vector<256x48xf32>
    %8 = vector.shape_cast %7 : vector<256x48xf32> to vector<16x16x48xf32>
    %cst_7 = arith.constant 0.000000e+00 : f32
    %9 = vector.broadcast %cst_7 : f32 to vector<1x16x48xf32>
    %10 = tpu.concatenate %9, %8, %9 in 0 : vector<1x16x48xf32>, vector<16x16x48xf32>, vector<1x16x48xf32> -> vector<18x16x48xf32>
    %cst_8 = arith.constant 0.000000e+00 : f32
    %11 = vector.broadcast %cst_8 : f32 to vector<18x8x48xf32>
    %12 = tpu.concatenate %11, %10, %11 in 1 : vector<18x8x48xf32>, vector<18x16x48xf32>, vector<18x8x48xf32> -> vector<18x32x48xf32>
    %c0_9 = arith.constant 0 : index
    %c0_10 = arith.constant 0 : index
    %13 = vector.load %arg4[%c0_9, %c0_10] : memref<9x48xf32, #tpu.memory_space<vmem>>, vector<9x48xf32>
    %cst_11 = arith.constant 0.000000e+00 : f32
    %14 = vector.broadcast %cst_11 : f32 to vector<16x16x48xf32>
    %c0_12 = arith.constant 0 : index
    %c0_13 = arith.constant 0 : index
    %15 = vector.load %arg5[%c0_12, %c0_13] : memref<1x48xf32, #tpu.memory_space<vmem>>, vector<1x48xf32>
    %16 = vector.shape_cast %15 : vector<1x48xf32> to vector<1x1x48xf32>
    %17 = vector.broadcast %16 : vector<1x1x48xf32> to vector<16x16x48xf32>
    %18 = arith.addf %14, %17 : vector<16x16x48xf32>
    %19 = vector.extract_strided_slice %13 {offsets = [0, 0], sizes = [1, 48], strides = [1, 1]} : vector<9x48xf32> to vector<1x48xf32>
    %20 = vector.extract_strided_slice %12 {offsets = [0, 7, 0], sizes = [16, 16, 48], strides = [1, 1, 1]} : vector<18x32x48xf32> to vector<16x16x48xf32>
    %21 = vector.shape_cast %19 : vector<1x48xf32> to vector<1x1x48xf32>
    %22 = vector.broadcast %21 : vector<1x1x48xf32> to vector<16x16x48xf32>
    %23 = arith.mulf %20, %22 : vector<16x16x48xf32>
    %24 = arith.addf %18, %23 : vector<16x16x48xf32>
    %25 = vector.extract_strided_slice %13 {offsets = [1, 0], sizes = [1, 48], strides = [1, 1]} : vector<9x48xf32> to vector<1x48xf32>
    %26 = vector.extract_strided_slice %12 {offsets = [0, 8, 0], sizes = [16, 16, 48], strides = [1, 1, 1]} : vector<18x32x48xf32> to vector<16x16x48xf32>
    %27 = vector.shape_cast %25 : vector<1x48xf32> to vector<1x1x48xf32>
    %28 = vector.broadcast %27 : vector<1x1x48xf32> to vector<16x16x48xf32>
    %29 = arith.mulf %26, %28 : vector<16x16x48xf32>
    %30 = arith.addf %24, %29 : vector<16x16x48xf32>
    %31 = vector.extract_strided_slice %13 {offsets = [2, 0], sizes = [1, 48], strides = [1, 1]} : vector<9x48xf32> to vector<1x48xf32>
    %32 = vector.extract_strided_slice %12 {offsets = [0, 9, 0], sizes = [16, 16, 48], strides = [1, 1, 1]} : vector<18x32x48xf32> to vector<16x16x48xf32>
    %33 = vector.shape_cast %31 : vector<1x48xf32> to vector<1x1x48xf32>
    %34 = vector.broadcast %33 : vector<1x1x48xf32> to vector<16x16x48xf32>
    %35 = arith.mulf %32, %34 : vector<16x16x48xf32>
    %36 = arith.addf %30, %35 : vector<16x16x48xf32>
    %37 = vector.extract_strided_slice %13 {offsets = [3, 0], sizes = [1, 48], strides = [1, 1]} : vector<9x48xf32> to vector<1x48xf32>
    %38 = vector.extract_strided_slice %12 {offsets = [1, 7, 0], sizes = [16, 16, 48], strides = [1, 1, 1]} : vector<18x32x48xf32> to vector<16x16x48xf32>
    %39 = vector.shape_cast %37 : vector<1x48xf32> to vector<1x1x48xf32>
    %40 = vector.broadcast %39 : vector<1x1x48xf32> to vector<16x16x48xf32>
    %41 = arith.mulf %38, %40 : vector<16x16x48xf32>
    %42 = arith.addf %36, %41 : vector<16x16x48xf32>
    %43 = vector.extract_strided_slice %13 {offsets = [4, 0], sizes = [1, 48], strides = [1, 1]} : vector<9x48xf32> to vector<1x48xf32>
    %44 = vector.extract_strided_slice %12 {offsets = [1, 8, 0], sizes = [16, 16, 48], strides = [1, 1, 1]} : vector<18x32x48xf32> to vector<16x16x48xf32>
    %45 = vector.shape_cast %43 : vector<1x48xf32> to vector<1x1x48xf32>
    %46 = vector.broadcast %45 : vector<1x1x48xf32> to vector<16x16x48xf32>
    %47 = arith.mulf %44, %46 : vector<16x16x48xf32>
    %48 = arith.addf %42, %47 : vector<16x16x48xf32>
    %49 = vector.extract_strided_slice %13 {offsets = [5, 0], sizes = [1, 48], strides = [1, 1]} : vector<9x48xf32> to vector<1x48xf32>
    %50 = vector.extract_strided_slice %12 {offsets = [1, 9, 0], sizes = [16, 16, 48], strides = [1, 1, 1]} : vector<18x32x48xf32> to vector<16x16x48xf32>
    %51 = vector.shape_cast %49 : vector<1x48xf32> to vector<1x1x48xf32>
    %52 = vector.broadcast %51 : vector<1x1x48xf32> to vector<16x16x48xf32>
    %53 = arith.mulf %50, %52 : vector<16x16x48xf32>
    %54 = arith.addf %48, %53 : vector<16x16x48xf32>
    %55 = vector.extract_strided_slice %13 {offsets = [6, 0], sizes = [1, 48], strides = [1, 1]} : vector<9x48xf32> to vector<1x48xf32>
    %56 = vector.extract_strided_slice %12 {offsets = [2, 7, 0], sizes = [16, 16, 48], strides = [1, 1, 1]} : vector<18x32x48xf32> to vector<16x16x48xf32>
    %57 = vector.shape_cast %55 : vector<1x48xf32> to vector<1x1x48xf32>
    %58 = vector.broadcast %57 : vector<1x1x48xf32> to vector<16x16x48xf32>
    %59 = arith.mulf %56, %58 : vector<16x16x48xf32>
    %60 = arith.addf %54, %59 : vector<16x16x48xf32>
    %61 = vector.extract_strided_slice %13 {offsets = [7, 0], sizes = [1, 48], strides = [1, 1]} : vector<9x48xf32> to vector<1x48xf32>
    %62 = vector.extract_strided_slice %12 {offsets = [2, 8, 0], sizes = [16, 16, 48], strides = [1, 1, 1]} : vector<18x32x48xf32> to vector<16x16x48xf32>
    %63 = vector.shape_cast %61 : vector<1x48xf32> to vector<1x1x48xf32>
    %64 = vector.broadcast %63 : vector<1x1x48xf32> to vector<16x16x48xf32>
    %65 = arith.mulf %62, %64 : vector<16x16x48xf32>
    %66 = arith.addf %60, %65 : vector<16x16x48xf32>
    %67 = vector.extract_strided_slice %13 {offsets = [8, 0], sizes = [1, 48], strides = [1, 1]} : vector<9x48xf32> to vector<1x48xf32>
    %68 = vector.extract_strided_slice %12 {offsets = [2, 9, 0], sizes = [16, 16, 48], strides = [1, 1, 1]} : vector<18x32x48xf32> to vector<16x16x48xf32>
    %69 = vector.shape_cast %67 : vector<1x48xf32> to vector<1x1x48xf32>
    %70 = vector.broadcast %69 : vector<1x1x48xf32> to vector<16x16x48xf32>
    %71 = arith.mulf %68, %70 : vector<16x16x48xf32>
    %72 = arith.addf %66, %71 : vector<16x16x48xf32>
    %73 = vector.shape_cast %72 : vector<16x16x48xf32> to vector<256x48xf32>
    %c0_14 = arith.constant 0 : index
    %c0_15 = arith.constant 0 : index
    %c0_16 = arith.constant 0 : index
    %74 = vector.load %arg6[%c0_14, %c0_15, %c0_16] : memref<1x256x48xf32, #tpu.memory_space<vmem>>, vector<1x256x48xf32>
    %75 = vector.shape_cast %74 : vector<1x256x48xf32> to vector<256x48xf32>
    %76 = vector.shape_cast %73 : vector<256x48xf32> to vector<1x256x48xf32>
    tpu.vector_store %arg6[%c0_14, %c0_15, %c0_16], %76 {strides = array<i32>} : memref<1x256x48xf32, #tpu.memory_space<vmem>>, vector<1x256x48xf32>,
    return
  }
  func.func @transform_0(%arg0: i32) -> (i32, i32, i32, i32) {
    %c0_i32 = arith.constant 0 : i32
    %c0_i32_0 = arith.constant 0 : i32
    %c0_i32_1 = arith.constant 0 : i32
    %c0_i32_2 = arith.constant 0 : i32
    return %arg0, %c0_i32, %c0_i32_0, %c0_i32_1 : i32, i32, i32, i32
  }
  func.func @transform_1(%arg0: i32) -> (i32, i32) {
    %c0_i32 = arith.constant 0 : i32
    %c0_i32_0 = arith.constant 0 : i32
    %c0_i32_1 = arith.constant 0 : i32
    return %c0_i32, %c0_i32_0 : i32, i32
  }
  func.func @transform_2(%arg0: i32) -> (i32, i32) {
    %c0_i32 = arith.constant 0 : i32
    %c0_i32_0 = arith.constant 0 : i32
    %c0_i32_1 = arith.constant 0 : i32
    return %c0_i32, %c0_i32_0 : i32, i32
  }
  func.func @transform_3(%arg0: i32) -> (i32, i32) {
    %c0_i32 = arith.constant 0 : i32
    %c0_i32_0 = arith.constant 0 : i32
    %c0_i32_1 = arith.constant 0 : i32
    return %c0_i32, %c0_i32_0 : i32, i32
  }
  func.func @transform_4(%arg0: i32) -> (i32, i32) {
    %c0_i32 = arith.constant 0 : i32
    %c0_i32_0 = arith.constant 0 : i32
    %c0_i32_1 = arith.constant 0 : i32
    return %c0_i32, %c0_i32_0 : i32, i32
  }
  func.func @transform_5(%arg0: i32) -> (i32, i32, i32) {
    %c0_i32 = arith.constant 0 : i32
    %c0_i32_0 = arith.constant 0 : i32
    %c0_i32_1 = arith.constant 0 : i32
    return %arg0, %c0_i32, %c0_i32_0 : i32, i32, i32
  }
}

</mosaic_0001>

<bundles_post_ra>
// kernel: mdta_forward.2
= control target key start
LH: loop header
LB: loop body
LE: loop exit
PB: predicated region body
PF: predicated region fallthrough
CT: control target
= control target key end

     0   :  { %s2577_s18 = smov 0   ;;  %s4609_s0 = inlined_call_operand.vmem [shape: f32[2,16,16,16], index: 0, kind: input, shape index: {}]   ;;  %s4610_s1 = inlined_call_operand.vmem [shape: f32[16,48], index: 1, kind: input, shape index: {}]   ;;  %s4611_s2 = inlined_call_operand.vmem [shape: f32[1,48], index: 2, kind: input, shape index: {}]   ;;  %s4612_s3 = inlined_call_operand.vmem [shape: f32[9,48], index: 3, kind: input, shape index: {}]   ;;  %s4613_s4 = inlined_call_operand.vmem [shape: f32[1,48], index: 4, kind: input, shape index: {}]   ;;  %s4614_s5 = inlined_call_operand.vmem [shape: f32[2,256,48], index: 5, kind: output, shape index: {}]  }
   0x1 LB: > { %s2387_s19 = sadd.s32 4294967295, %s2545_s18   ;;  %p2391_p0 = scmp.ge.s32.totalorder %s2545_s18, 1  ;;  %s2545_s18 = sphi %s2577_s18, %s15_s18  }
   0x2   : > { %p187_p1 = scmp.lt.s32.totalorder %s2545_s18, 3 }
   0x4   : > { %p188_p2 = pnand %p2391_p0, %p187_p1 }
   0x6   : > { %191 = sbr.rel (%p188_p2) target bundleno = 518 (0x206), region = 40 }
   0xb   : > { %v258_v0 = vld [vmem:[%s4610_s1 + $0x8] sm:$0xff]  ;;  %v257_v1 = vld [vmem:[%s4610_s1] sm:$0xff]  ;;  %p215_p3 = scmp.lt.s32.totalorder %s2387_s19, 1  ;;  %vm266_vm0 = vcmask 130048   ;;  %v598_v34 = vlaneseq  ;;  %vm938_vm1 = vcmask 1045504   ;;  %vm730_vm2 = vcmask 1046528  }
   0xc   : > { %2469 = vmatprep.subr.mxu0 %v258_v0  ;;  %2521 = vmatprep.subr.mxu1 %v258_v0  ;;  %v588_v38 = vld [vmem:[%s4612_s3] sm:$0xff]  ;;  %v2690_v53 = vld [vmem:[%s4612_s3 + $0x8] ss:$0 sm:$0xff]  ;;  %vm2186_vm3 = vcmask 1040384   ;;  %vm2299_vm4 = vcmask 392192  }
   0xd   : > { %2470 = vmatpush3.msra.mxu0 %v258_v0  ;;  %2523 = vmatpush3.msra.mxu1 %v258_v0  ;;  %s4875_s19 = smov (!%p215_p3, %s2387_s19), 1  ;;  %v599_v35 = vshrl.u32 %v598_v34, 7  ;;  %v2679_v45 = vld [vmem:[%s4613_s4] ss:$0 sm:$0xff]  ;;  %v1921_v61 = vmul.f32 0.0, %v2690_v53 }
   0xe   : > { %2471 = vmatprep.subr.mxu0 %v257_v1  ;;  %2522 = vmatprep.subr.mxu1 %v257_v1  ;;  %s2433_s24 = sshll.u32 %s4875_s19, 8  ;;  %v2701_v59 = vld [vmem:[%s4611_s2] ss:$0 sm:$0xff] }
   0xf   : > { %2472 = vmatpush3.msra.mxu0 %v257_v1  ;;  %2524 = vmatpush3.msra.mxu1 %v257_v1  ;;  %s2599_s27 = scalar_lea.vmem %s4609_s0, %s2433_s24  ;;  %v600_v36 = vsub.s32 0, %v599_v35  ;;  %v666_v37 = vsub.s32 1, %v599_v35  ;;  %v874_v41 = vsub.s32 2, %v599_v35  ;;  %v1395_v46 = vsub.s32 5, %v599_v35  ;;  %s3090_s13 = scalar_lea.vmem %s4614_s5, %s2433_s24 }
  0x10   : > { %v225_v2 = vld [vmem:[%s2599_s27] sm:$0xff]  ;;  %v226_v4 = vld [vmem:[%s2599_s27 + $0x8] sm:$0xff]  ;;  %v227_v6 = vld [vmem:[%s2599_s27 + $0x10] sm:$0xff]  ;;  %v1098_v50 = vsub.s32 3, %v599_v35  ;;  %v1183_v52 = vsub.s32 4, %v599_v35  ;;  %v1626_v57 = vsub.s32 6, %v599_v35 }
  0x11   : > { %v241_v3 = vld [vmem:[%s2599_s27 + $0x80] sm:$0xff]  ;;  %2473 = vmatprep.mubr.msk.f32.mxu0 %vm266_vm0, %v225_v2  ;;  %v242_v5 = vld [vmem:[%s2599_s27 + $0x88] sm:$0xff]  ;;  %v243_v7 = vld [vmem:[%s2599_s27 + $0x90] sm:$0xff]  ;;  %v2668_v39 = vrot.slane %v588_v38, %v600_v36  ;;  %v2670_v40 = vrot.slane %v588_v38, %v666_v37  ;;  %v2674_v44 = vrot.slane %v588_v38, %v874_v41  ;;  %v2685_v51 = vrot.slane %v588_v38, %v1395_v46 }
  0x12   : > { %2497 = vmatprep.mubr.msk.f32.mxu1 %vm266_vm0, %v241_v3  ;;  %2474 = vmatmul.mubr.msk.f32.vlgmr.msra.gmra.mxu0 %vm266_vm0, %v226_v4  ;;  %v228_v8 = vld [vmem:[%s2599_s27 + $0x18] sm:$0xff]  ;;  %v229_v10 = vld [vmem:[%s2599_s27 + $0x20] sm:$0xff]  ;;  %v230_v12 = vld [vmem:[%s2599_s27 + $0x28] sm:$0xff]  ;;  %v2695_v56 = vrot.slane %v588_v38, %v1098_v50  ;;  %v1709_v60 = vsub.s32 7, %v599_v35  ;;  %v2710_v1 = vrot.slane %v588_v38, %v1183_v52  ;;  %v2712_v3 = vrot.slane %v588_v38, %v1626_v57 }
  0x13   : > { %2498 = vmatmul.mubr.msk.f32.vlgmr.msra.gmra.mxu1 %vm266_vm0, %v242_v5  ;;  %2476 = vmatprep.mubr.msk.f32.mxu0 %vm266_vm0, %v227_v6  ;;  %v244_v9 = vld [vmem:[%s2599_s27 + $0x98] sm:$0xff]  ;;  %v245_v11 = vld [vmem:[%s2599_s27 + $0xa0] sm:$0xff]  ;;  %v246_v13 = vld [vmem:[%s2599_s27 + $0xa8] sm:$0xff]  ;;  %v602_v42 = vmul.f32 0.0, %v2668_v39  ;;  %v668_v43 = vmul.f32 0.0, %v2670_v40  ;;  %v876_v49 = vmul.f32 0.0, %v2674_v44 }
  0x14   : > { %2500 = vmatprep.mubr.msk.f32.mxu1 %vm266_vm0, %v243_v7  ;;  %v231_v14 = vld [vmem:[%s2599_s27 + $0x30] sm:$0xff]  ;;  %v232_v16 = vld [vmem:[%s2599_s27 + $0x38] sm:$0xff]  ;;  %v233_v18 = vld [vmem:[%s2599_s27 + $0x40] sm:$0xff]  ;;  %v1399_v58 = vmul.f32 0.0, %v2685_v51  ;;  %v2705_v62 = vmul.f32 0.0, %v2695_v56  ;;  %v2718_v7 = vrot.slane %v588_v38, %v1709_v60 }
  0x15   : > { %v247_v15 = vld [vmem:[%s2599_s27 + $0xb0] sm:$0xff]  ;;  %v248_v17 = vld [vmem:[%s2599_s27 + $0xb8] sm:$0xff]  ;;  %v249_v19 = vld [vmem:[%s2599_s27 + $0xc0] sm:$0xff]  ;;  %v2682_v47 = vadd.f32 %v2679_v45, %v602_v42  ;;  %v731_v48 = vrot.slane %v668_v43, 1  ;;  %v2693_v55 = vrot.slane %v876_v49, 2 }
  0x16   : > { %2477 = vmatmul.mubr.msk.f32.gmra.mxu0 %vm266_vm0, %v228_v8  ;;  %v234_v20 = vld [vmem:[%s2599_s27 + $0x48] sm:$0xff]  ;;  %v235_v22 = vld [vmem:[%s2599_s27 + $0x50] sm:$0xff]  ;;  %v236_v24 = vld [vmem:[%s2599_s27 + $0x58] sm:$0xff]  ;;  %v2715_v5 = vrot.slane %v1399_v58, 2  ;;  %v2720_v8 = vrot.slane %v1921_v61, 2 }
  0x17   : > { %2501 = vmatmul.mubr.msk.f32.gmra.mxu1 %vm266_vm0, %v244_v9  ;;  %2479 = vmatprep.mubr.msk.f32.mxu0 %vm266_vm0, %v229_v10  ;;  %v250_v21 = vld [vmem:[%s2599_s27 + $0xc8] sm:$0xff]  ;;  %v251_v23 = vld [vmem:[%s2599_s27 + $0xd0] sm:$0xff]  ;;  %v252_v25 = vld [vmem:[%s2599_s27 + $0xd8] sm:$0xff]  ;;  %v825_v54 = vadd.f32 %v731_v48, %v2682_v47  ;;  %v2727_v10 = vmul.f32 0.0, %v2712_v3 }
  0x18   : > { %2503 = vmatprep.mubr.msk.f32.mxu1 %vm266_vm0, %v245_v11  ;;  %v237_v26 = vld [vmem:[%s2599_s27 + $0x60] sm:$0xff]  ;;  %v238_v28 = vld [vmem:[%s2599_s27 + $0x68] sm:$0xff]  ;;  %v239_v30 = vld [vmem:[%s2599_s27 + $0x70] sm:$0xff]  ;;  %4687 = vst [vmem:[#allocation2_spill] sm:$0xff] %v2720_v8 }
  0x19   : > { %v253_v27 = vld [vmem:[%s2599_s27 + $0xe0] sm:$0xff]  ;;  %v254_v29 = vld [vmem:[%s2599_s27 + $0xe8] sm:$0xff]  ;;  %v255_v31 = vld [vmem:[%s2599_s27 + $0xf0] sm:$0xff]  ;;  %v2708_v0 = vadd.f32 %v2693_v55, %v825_v54 }
  0x1a   : > { %2480 = vmatmul.mubr.msk.f32.gmra.mxu0 %vm266_vm0, %v230_v12  ;;  %v240_v32 = vld [vmem:[%s2599_s27 + $0x78] sm:$0xff] }
  0x1b   : > { %2504 = vmatmul.mubr.msk.f32.gmra.mxu1 %vm266_vm0, %v246_v13  ;;  %2482 = vmatprep.mubr.msk.f32.mxu0 %vm266_vm0, %v231_v14  ;;  %v256_v33 = vld [vmem:[%s2599_s27 + $0xf8] sm:$0xff]  ;;  %v2724_v9 = vadd.f32 %v2705_v62, %v2708_v0 }
  0x1c   : > { %2506 = vmatprep.mubr.msk.f32.mxu1 %vm266_vm0, %v247_v15 }
  0x1e   : > { %2483 = vmatmul.mubr.msk.f32.gmra.mxu0 %vm266_vm0, %v232_v16 }
  0x1f   : > { %2507 = vmatmul.mubr.msk.f32.gmra.mxu1 %vm266_vm0, %v248_v17  ;;  %2485 = vmatprep.mubr.msk.f32.mxu0 %vm266_vm0, %v233_v18 }
  0x20   : > { %2509 = vmatprep.mubr.msk.f32.mxu1 %vm266_vm0, %v249_v19 }
  0x22   : > { %2486 = vmatmul.mubr.msk.f32.gmra.mxu0 %vm266_vm0, %v234_v20 }
  0x23   : > { %2510 = vmatmul.mubr.msk.f32.gmra.mxu1 %vm266_vm0, %v250_v21  ;;  %2488 = vmatprep.mubr.msk.f32.mxu0 %vm266_vm0, %v235_v22 }
  0x24   : > { %2512 = vmatprep.mubr.msk.f32.mxu1 %vm266_vm0, %v251_v23 }
  0x26   : > { %2489 = vmatmul.mubr.msk.f32.gmra.mxu0 %vm266_vm0, %v236_v24 }
  0x27   : > { %2513 = vmatmul.mubr.msk.f32.gmra.mxu1 %vm266_vm0, %v252_v25  ;;  %2491 = vmatprep.mubr.msk.f32.mxu0 %vm266_vm0, %v237_v26 }
  0x28   : > { %2515 = vmatprep.mubr.msk.f32.mxu1 %vm266_vm0, %v253_v27 }
  0x2a   : > { %2492 = vmatmul.mubr.msk.f32.gmra.mxu0 %vm266_vm0, %v238_v28 }
  0x2b   : > { %2516 = vmatmul.mubr.msk.f32.gmra.mxu1 %vm266_vm0, %v254_v29  ;;  %2494 = vmatprep.mubr.msk.f32.mxu0 %vm266_vm0, %v239_v30 }
  0x2c   : > { %2518 = vmatprep.mubr.msk.f32.mxu1 %vm266_vm0, %v255_v31 }
  0x2e   : > { %2495 = vmatmul.mubr.msk.f32.gmra.mxu0 %vm266_vm0, %v240_v32 }
  0x2f   : > { %2519 = vmatmul.mubr.msk.f32.gmra.mxu1 %vm266_vm0, %v256_v33 }
  0xd2   : > { %v2475_v63 = vpop.f32.mrf.mxu0 }
  0xd3   : > { %v2499_v2 = vpop.f32.mrf.mxu1  ;;  %v435_v4 = vadd.f32 %v2475_v63, %v2701_v59 }
  0xd4   : > { %v515_v6 = vadd.f32 %v2499_v2, %v2701_v59  ;;  %v429_v19 = vpop.f32.mrf.mxu0 }
  0xd5   : > { %v604_v11 = vmul.f32 %v2668_v39, %v435_v4  ;;  %v670_v12 = vmul.f32 %v2670_v40, %v435_v4  ;;  %v2732_v13 = vmul.f32 %v2674_v44, %v435_v4  ;;  %v1102_v14 = vmul.f32 %v2695_v56, %v435_v4  ;;  %v509_v24 = vpop.f32.mrf.mxu1 }
  0xd6   : > { %v2736_v15 = vmul.f32 %v2710_v1, %v435_v4  ;;  %v2739_v16 = vmul.f32 %v2685_v51, %v435_v4  ;;  %v620_v17 = vmul.f32 %v2668_v39, %v515_v6  ;;  %v2743_v18 = vmul.f32 %v2670_v40, %v515_v6  ;;  %v2478_v37 = vpop.f32.mrf.mxu0 }
  0xd7   : > { %v635_v20 = vadd.f32 %v2679_v45, %v604_v11  ;;  %v734_v21 = vrot.slane %v670_v12, 1  ;;  %v942_v22 = vrot.slane %v2732_v13, 2  ;;  %v1135_v23 = vadd.f32 %v1102_v14, %v2708_v0  ;;  %v2502_v46 = vpop.f32.mrf.mxu1 }
  0xd8   : > { %v1250_v25 = vrot.slane %v2736_v15, 1  ;;  %v1464_v26 = vrot.slane %v2739_v16, 2  ;;  %v651_v27 = vadd.f32 %v2679_v45, %v620_v17  ;;  %v758_v28 = vrot.slane %v2743_v18, 1 }
  0xd9   : > { %v829_v29 = vadd.f32 %v734_v21, %v635_v20  ;;  %v944_v30 = vsel %vm938_vm1, %v942_v22, %v2693_v55  ;;  %v2755_v31 = vmul.f32 %v2674_v44, %v515_v6  ;;  %v2758_v32 = vmul.f32 %v2695_v56, %v515_v6 }
  0xda   : > { %v1347_v33 = vadd.f32 %v1250_v25, %v1135_v23  ;;  %v1467_v34 = vsel %vm938_vm1, %v1464_v26, %v2715_v5  ;;  %v2764_v35 = vadd.f32 %v758_v28, %v651_v27  ;;  %v2767_v36 = vmul.f32 %v2710_v1, %v515_v6 }
  0xdb   : > { %4688 = vst [vmem:[#allocation3_spill] sm:$0xff] %v2758_v32  ;;  %v2769_v38 = vadd.f32 %v944_v30, %v829_v29  ;;  %v4622_v41 = vrot.slane %v2755_v31, 2  ;;  %v2773_v42 = vmul.f32 %v2685_v51, %v515_v6  ;;  %v2776_v43 = vmul.f32 %v2712_v3, %v515_v6 }
  0xdc   : > { %4689 = vst [vmem:[#allocation4_spill] sm:$0xff] %v2767_v36  ;;  %v2778_v48 = vadd.f32 %v1467_v34, %v1347_v33  ;;  %v4620_v49 = vrot.slane %v2767_v36, 1  ;;  %v2782_v50 = vmul.f32 %v2718_v7, %v515_v6  ;;  %v2785_v52 = vmul.f32 %v2690_v53, %v515_v6 }
  0xdd   : > { %4690 = vst [vmem:[#allocation5_spill] sm:$0xff] %v2776_v43  ;;  %v1497_v54 = vrot.slane %v2773_v42, 2  ;;  %v430_v57 = vadd.f32 %v2701_v59, %v429_v19  ;;  %v510_v58 = vadd.f32 %v2701_v59, %v509_v24  ;;  %v2791_v60 = vadd.f32 %v2478_v37, %v2701_v59 }
  0xde   : > { %4691 = vst [vmem:[#allocation6_spill] sm:$0xff] %v2782_v50  ;;  %v4619_v61 = vrot.slane %v2782_v50, 1  ;;  %v2011_v63 = vrot.slane %v2785_v52, 2  ;;  %v2796_v2 = vadd.f32 %v2502_v46, %v2701_v59  ;;  %v2802_v4 = vsel %vm938_vm1, %v4622_v41, %v2693_v55 }
  0xdf   : > { %v2808_v6 = vsel %vm938_vm1, %v1497_v54, %v2715_v5  ;;  %v603_v11 = vmul.f32 %v2668_v39, %v430_v57  ;;  %v669_v12 = vmul.f32 %v2670_v40, %v430_v57  ;;  %v877_v13 = vmul.f32 %v2674_v44, %v430_v57 }
  0xe0   : > { %4692 = vst [vmem:[#allocation7_spill] sm:$0xff] %v2808_v6  ;;  %v2815_v14 = vsel %vm938_vm1, %v2011_v63, %v2720_v8  ;;  %v1101_v15 = vmul.f32 %v2695_v56, %v430_v57  ;;  %v1185_v16 = vmul.f32 %v2710_v1, %v430_v57  ;;  %v1397_v17 = vmul.f32 %v2685_v51, %v430_v57 }
  0xe1   : > { %4693 = vst [vmem:[#allocation8_spill] sm:$0xff] %v2815_v14  ;;  %v634_v19 = vadd.f32 %v2679_v45, %v603_v11  ;;  %v733_v20 = vrot.slane %v669_v12, 1  ;;  %v941_v23 = vrot.slane %v877_v13, 2  ;;  %v619_v24 = vmul.f32 %v2668_v39, %v510_v58 }
  0xe2   : > { %v1134_v27 = vadd.f32 %v1101_v15, %v2708_v0  ;;  %v1249_v29 = vrot.slane %v1185_v16, 1  ;;  %v1463_v30 = vrot.slane %v1397_v17, 2  ;;  %v685_v33 = vmul.f32 %v2670_v40, %v510_v58 }
  0xe3   : > { %v735_v34 = vsel %vm730_vm2, %v733_v20, %v734_v21  ;;  %v827_v37 = vadd.f32 %v733_v20, %v2682_v47  ;;  %v943_v46 = vsel %vm938_vm1, %v941_v23, %v942_v22  ;;  %v650_v52 = vadd.f32 %v2679_v45, %v619_v24 }
  0xe4   : > { %v828_v57 = vadd.f32 %v735_v34, %v634_v19  ;;  %v1251_v11 = vsel %vm730_vm2, %v1249_v29, %v1250_v25  ;;  %v1345_v12 = vadd.f32 %v1249_v29, %v2724_v9  ;;  %v1465_v13 = vsel %vm938_vm1, %v1463_v30, %v1464_v26 }
  0xe5   : > { %v1051_v0 = vadd.f32 %v941_v23, %v827_v37  ;;  %v1346_v15 = vadd.f32 %v1251_v11, %v1134_v27  ;;  %v757_v16 = vrot.slane %v685_v33, 1  ;;  %v2832_v17 = vmul.f32 %v2674_v44, %v510_v58 }
  0xe6   : > { %v2834_v21 = vadd.f32 %v943_v46, %v828_v57  ;;  %v1576_v20 = vadd.f32 %v1463_v30, %v1345_v12  ;;  %v2837_v22 = vmul.f32 %v2695_v56, %v510_v58  ;;  %v2840_v19 = vmul.f32 %v2710_v1, %v510_v58 }
  0xe7   : > { %v2843_v25 = vadd.f32 %v2705_v62, %v1051_v0  ;;  %v2845_v9 = vadd.f32 %v1465_v13, %v1346_v15  ;;  %v759_v26 = vsel %vm730_vm2, %v757_v16, %v758_v28  ;;  %v851_v23 = vadd.f32 %v757_v16, %v2682_v47 }
  0xe8   : > { %4694 = vst [vmem:[#allocation9_spill] sm:$0xff] %v2837_v22  ;;  %4695 = vst [vmem:[#allocation10_spill] sm:$0xff] %v2840_v19  ;;  %v2852_v24 = vadd.f32 %v2727_v10, %v1576_v20  ;;  %v2854_v27 = vadd.f32 %v759_v26, %v650_v52  ;;  %v973_v29 = vrot.slane %v2832_v17, 2  ;;  %v4616_v30 = vrot.slane %v2840_v19, 1 }
  0xe9   : > { %v2859_v33 = vmul.f32 %v2685_v51, %v510_v58  ;;  %v2862_v34 = vmul.f32 %v2712_v3, %v510_v58  ;;  %v2865_v18 = vmul.f32 %v2718_v7, %v510_v58  ;;  %v2868_v28 = vmul.f32 %v2690_v53, %v510_v58 }
  0xea   : > { %v2870_v37 = vadd.f32 %v973_v29, %v851_v23  ;;  %v2877_v46 = vsel %vm730_vm2, %v4616_v30, %v4620_v49  ;;  %v606_v52 = vmul.f32 %v2668_v39, %v2791_v60  ;;  %v2883_v57 = vmul.f32 %v2670_v40, %v2791_v60 }
  0xeb   : > { %4696 = vst [vmem:[#allocation11_spill] sm:$0xff] %v2859_v33  ;;  %4697 = vst [vmem:[#allocation12_spill] sm:$0xff] %v2862_v34  ;;  %v4615_v11 = vrot.slane %v2859_v33, 2  ;;  %v4617_v58 = vrot.slane %v2865_v18, 1  ;;  %v4618_v12 = vrot.slane %v2868_v28, 2  ;;  %v2890_v13 = vmul.f32 %v2674_v44, %v2791_v60 }
  0xec   : > { %4698 = vst [vmem:[#allocation13_spill] sm:$0xff] %v2865_v18  ;;  %4699 = vst [vmem:[#allocation14_spill] sm:$0xff] %v2868_v28  ;;  %v637_v0 = vadd.f32 %v2679_v45, %v606_v52  ;;  %v4621_v15 = vrot.slane %v2883_v57, 1  ;;  %v1104_v16 = vmul.f32 %v2695_v56, %v2791_v60  ;;  %v2898_v17 = vmul.f32 %v2710_v1, %v2791_v60 }
  0xed   : > { %4700 = vst [vmem:[#allocation15_spill] sm:$0xff] %v2877_v46  ;;  %v2905_v20 = vsel %vm938_vm1, %v4615_v11, %v1497_v54  ;;  %v2912_v26 = vsel %vm730_vm2, %v4617_v58, %v4619_v61  ;;  %v2917_v23 = vsel %vm938_vm1, %v4618_v12, %v2011_v63  ;;  %v2928_v30 = vmul.f32 %v2685_v51, %v2791_v60 }
  0xee   : > { %4701 = vst [vmem:[#allocation16_spill] sm:$0xff] %v2905_v20  ;;  %4702 = vst [vmem:[#allocation17_spill] sm:$0xff] %v2912_v26  ;;  %v2922_v42 = vadd.f32 %v4621_v15, %v637_v0  ;;  %v1138_v54 = vadd.f32 %v1104_v16, %v2769_v38  ;;  %v4623_v11 = vrot.slane %v2898_v17, 1  ;;  %v1630_v58 = vmul.f32 %v2712_v3, %v2791_v60  ;;  %v519_v16 = vpop.f32.mrf.mxu1 }
  0xef   : > { %4703 = vst [vmem:[#allocation18_spill] sm:$0xff] %v2917_v23  ;;  %v2934_v63 = vmul.f32 %v2718_v7, %v2791_v60  ;;  %v2938_v12 = vmul.f32 %v2690_v53, %v2791_v60  ;;  %v622_v38 = vmul.f32 %v2668_v39, %v2796_v2  ;;  %v2949_v61 = vmul.f32 %v2670_v40, %v2796_v2 }
  0xf0   : > { %v2944_v0 = vadd.f32 %v4623_v11, %v1138_v54  ;;  %v2953_v49 = vmul.f32 %v2674_v44, %v2796_v2  ;;  %v1661_v60 = vadd.f32 %v1630_v58, %v2778_v48  ;;  %v1077_v11 = vadd.f32 %v2802_v4, %v2764_v35 }
  0xf1   : > { %v1774_v52 = vrot.slane %v2934_v63, 1  ;;  %v4625_v15 = vrot.slane %v2938_v12, 2  ;;  %v653_v41 = vadd.f32 %v2679_v45, %v622_v38  ;;  %v4627_v54 = vrot.slane %v2949_v61, 1  ;;  %v439_v38 = vpop.f32.mrf.mxu0 }
  0xf2   : > { %v1120_v23 = vmul.f32 %v2695_v56, %v2796_v2  ;;  %v2971_v58 = vmul.f32 %v2710_v1, %v2796_v2  ;;  %v2975_v63 = vmul.f32 %v2685_v51, %v2796_v2  ;;  %v2995_v20 = vmul.f32 %v2690_v53, %v2796_v2 }
  0xf3   : > { %v1869_v28 = vadd.f32 %v1774_v52, %v1661_v60  ;;  %v1985_v48 = vsel %vm938_vm1, %v4625_v15, %v2720_v8  ;;  %v2979_v35 = vadd.f32 %v4627_v54, %v653_v41  ;;  %v2983_v60 = vmul.f32 %v2712_v3, %v2796_v2 }
  0xf4   : > { %v1162_v4 = vadd.f32 %v1120_v23, %v1077_v11  ;;  %v2987_v15 = vmul.f32 %v2718_v7, %v2796_v2  ;;  %v4629_v18 = vrot.slane %v2971_v58, 1  ;;  %v440_v11 = vadd.f32 %v2701_v59, %v439_v38 }
  0xf5   : > { %4704 = vst [vmem:[#allocation19_spill] sm:$0xff] %v2983_v60  ;;  %v2989_v26 = vadd.f32 %v1985_v48, %v1869_v28  ;;  %v3000_v23 = vadd.f32 %v2701_v59, %v519_v16  ;;  %v4706_v54 = vrot.slane %v2755_v31, 2  ;;  %v4631_v2 = vrot.slane %v2995_v20, 2 }
  0xf6   : > { %4705 = vst [vmem:[#allocation20_spill] sm:$0xff] %v2987_v15  ;;  %v3008_v34 = vadd.f32 %v4629_v18, %v1162_v4  ;;  %v605_v41 = vmul.f32 %v2668_v39, %v440_v11  ;;  %v671_v38 = vmul.f32 %v2670_v40, %v440_v11  ;;  %v3015_v16 = vmul.f32 %v2674_v44, %v440_v11 }
  0xf7   : > { %v975_v28 = vsel %vm938_vm1, %v973_v29, %v4706_v54  ;;  %v1103_v31 = vmul.f32 %v2695_v56, %v440_v11  ;;  %v3022_v29 = vsel %vm938_vm1, %v4631_v2, %v2720_v8  ;;  %v1187_v54 = vmul.f32 %v2710_v1, %v440_v11 }
  0xf8   : > { %v1076_v33 = vadd.f32 %v975_v28, %v2854_v27  ;;  %4707 = vst [vmem:[#allocation21_spill] sm:$0xff] %v3022_v29  ;;  %v3026_v4 = vmul.f32 %v2685_v51, %v440_v11  ;;  %v1629_v27 = vmul.f32 %v2712_v3, %v440_v11  ;;  %v636_v28 = vadd.f32 %v2679_v45, %v605_v41 }
  0xf9   : > { %v736_v48 = vrot.slane %v671_v38, 1  ;;  %v4638_v18 = vrot.slane %v3015_v16, 2  ;;  %v1137_v46 = vadd.f32 %v1103_v31, %v2834_v21  ;;  %v1252_v19 = vrot.slane %v1187_v54, 1 }
  0xfa   : > { %v4633_v22 = vrot.slane %v3026_v4, 2  ;;  %v1660_v2 = vadd.f32 %v1629_v27, %v2845_v9  ;;  %v1711_v29 = vmul.f32 %v2718_v7, %v440_v11  ;;  %v4708_v14 = vrot.slane %v2883_v57, 1 }
  0xfb   : > { %v830_v60 = vadd.f32 %v736_v48, %v2682_v47  ;;  %v1919_v41 = vmul.f32 %v2690_v53, %v440_v11  ;;  %v621_v21 = vmul.f32 %v2668_v39, %v3000_v23  ;;  %v4709_v31 = vrot.slane %v2898_v17, 1 }
  0xfc   : > { %v738_v50 = vsel %vm730_vm2, %v736_v48, %v4708_v14  ;;  %v1348_v54 = vadd.f32 %v1252_v19, %v2843_v25  ;;  %v1773_v27 = vrot.slane %v1711_v29, 1  ;;  %v3068_v29 = vmul.f32 %v2674_v44, %v3000_v23 }
  0xfd   : > { %v3042_v38 = vadd.f32 %v738_v50, %v636_v28  ;;  %v1254_v9 = vsel %vm730_vm2, %v1252_v19, %v4709_v31  ;;  %v3050_v14 = vadd.f32 %v4638_v18, %v830_v60  ;;  %v1981_v11 = vrot.slane %v1919_v41, 2 }
  0xfe   : > { %v3052_v57 = vadd.f32 %v1254_v9, %v1137_v46  ;;  %v652_v48 = vadd.f32 %v2679_v45, %v621_v21  ;;  %v3057_v50 = vadd.f32 %v4633_v22, %v1348_v54  ;;  %v1775_v17 = vsel %vm730_vm2, %v1773_v27, %v1774_v52 }
  0xff   : > { %v1867_v28 = vadd.f32 %v1773_v27, %v2852_v24  ;;  %v687_v19 = vmul.f32 %v2670_v40, %v3000_v23  ;;  %v1868_v25 = vadd.f32 %v1775_v17, %v1660_v2  ;;  %v4710_v60 = vrot.slane %v2938_v12, 2 }
 0x100   : > { %v1119_v41 = vmul.f32 %v2695_v56, %v3000_v23  ;;  %v1160_v24 = vadd.f32 %v2705_v62, %v2870_v37  ;;  %v1203_v2 = vmul.f32 %v2710_v1, %v3000_v23  ;;  %v4636_v12 = vrot.slane %v3068_v29, 2 }
 0x101   : > { %v1983_v46 = vsel %vm938_vm1, %v1981_v11, %v4710_v60  ;;  %v2090_v21 = vadd.f32 %v1981_v11, %v1867_v28  ;;  %v760_v52 = vrot.slane %v687_v19, 1  ;;  %v3079_v54 = vmul.f32 %v2685_v51, %v3000_v23  ;;  %v2481_v60 = vpop.f32.mrf.mxu0 }
 0x102   : > { %v2091_v31 = vadd.f32 %v1983_v46, %v1868_v25  ;;  %v1161_v9 = vadd.f32 %v1119_v41, %v1076_v33  ;;  %v4711_v17 = vrot.slane %v2949_v61, 1  ;;  %v1276_v19 = vrot.slane %v1203_v2, 1  ;;  %v2505_v2 = vpop.f32.mrf.mxu1 }
 0x103   : > { %v2187_v27 = vrot.slane %v2090_v21, 7  ;;  %v854_v28 = vadd.f32 %v760_v52, %v2682_v47  ;;  %v4635_v25 = vrot.slane %v3079_v54, 2  ;;  %v3097_v61 = vmul.f32 %v2712_v3, %v3000_v23 }
 0x104   : > { %v762_v11 = vsel %vm730_vm2, %v760_v52, %v4711_v17  ;;  %v2188_v33 = vrot.slane %v2091_v31, 7  ;;  %v4713_v41 = vrot.slane %v2971_v58, 1  ;;  %v1372_v52 = vadd.f32 %v1276_v19, %v1160_v24 }
 0x105   : > { %v3092_v37 = vadd.f32 %v762_v11, %v652_v48  ;;  %4712 = vst [vmem:[#allocation22_spill] sm:$0xff] %v3097_v61  ;;  %v3101_v46 = vadd.f32 %v4636_v12, %v854_v28  ;;  %v3108_v48 = vmul.f32 %v2718_v7, %v3000_v23  ;;  %v4715_v17 = vrot.slane %v2989_v26, 7 }
 0x106   : > { %v1278_v21 = vsel %vm730_vm2, %v1276_v19, %v4713_v41  ;;  %v2189_v31 = vsel %vm2186_vm3, %v2187_v27, %v2188_v33  ;;  %v3118_v28 = vmul.f32 %v2690_v53, %v3000_v23  ;;  %v3126_v58 = vadd.f32 %v4635_v25, %v1372_v52 }
 0x107   : > { %4714 = vst [vmem:[#allocation23_spill] sm:$0xff] %v3108_v48  ;;  %v2191_v11 = vsel %vm2186_vm3, %v2188_v33, %v4715_v17  ;;  %v3114_v22 = vadd.f32 %v1278_v21, %v1161_v9  ;;  %2300 = vst.msk [vmem:[%s3090_s13] sm:$0xff] %vm2299_vm4, %v2189_v31  ;;  %v4634_v24 = vrot.slane %v3108_v48, 1  ;;  %v455_v26 = vadd.f32 %v2481_v60, %v2701_v59 }
 0x108   : > { %4716 = vst [vmem:[#allocation24_spill] sm:$0xff] %v3118_v28  ;;  %2301 = vst.msk [vmem:[%s3090_s13 + $0x8] sm:$0xff] %vm2299_vm4, %v2191_v11  ;;  %v4717_v9 = vrot.slane %v2890_v13, 2  ;;  %v4637_v23 = vrot.slane %v3118_v28, 2  ;;  %v4718_v33 = vrot.slane %v2928_v30, 2  ;;  %v535_v21 = vadd.f32 %v2505_v2, %v2701_v59 }
 0x109   : > { %v4719_v52 = vrot.slane %v2987_v15, 1  ;;  %v608_v31 = vmul.f32 %v2668_v39, %v455_v26  ;;  %v3150_v17 = vmul.f32 %v2670_v40, %v455_v26  ;;  %v4721_v11 = vrot.slane %v2995_v20, 2 }
 0x10a   : > { %v948_v27 = vsel %vm938_vm1, %v4717_v9, %v2693_v55  ;;  %v1471_v41 = vsel %vm938_vm1, %v4718_v33, %v2715_v5  ;;  %v1106_v9 = vmul.f32 %v2695_v56, %v455_v26  ;;  %v3167_v33 = vmul.f32 %v2685_v51, %v455_v26 }
 0x10b   : > { %v1056_v19 = vadd.f32 %v948_v27, %v2922_v42  ;;  %v3146_v60 = vsel %vm730_vm2, %v4634_v24, %v4719_v52  ;;  %v3153_v42 = vmul.f32 %v2674_v44, %v455_v26  ;;  %v3160_v2 = vsel %vm938_vm1, %v4637_v23, %v4721_v11 }
 0x10c   : > { %4720 = vst [vmem:[#allocation25_spill] sm:$0xff] %v3146_v60  ;;  %4722 = vst [vmem:[#allocation26_spill] sm:$0xff] %v3160_v2  ;;  %v3164_v27 = vmul.f32 %v2710_v1, %v455_v26  ;;  %v639_v52 = vadd.f32 %v2679_v45, %v608_v31  ;;  %v740_v24 = vrot.slane %v3150_v17, 1  ;;  %v1581_v20 = vadd.f32 %v1471_v41, %v2944_v0 }
 0x10d   : > { %v1141_v12 = vadd.f32 %v1106_v9, %v1056_v19  ;;  %v1632_v18 = vmul.f32 %v2712_v3, %v455_v26  ;;  %v3179_v28 = vmul.f32 %v2718_v7, %v455_v26  ;;  %v3182_v31 = vmul.f32 %v2690_v53, %v455_v26 }
 0x10e   : > { %v1256_v11 = vrot.slane %v3164_v27, 1  ;;  %v3176_v2 = vadd.f32 %v740_v24, %v639_v52  ;;  %v624_v17 = vmul.f32 %v2668_v39, %v535_v21  ;;  %v3188_v19 = vmul.f32 %v2670_v40, %v535_v21 }
 0x10f   : > { %v1664_v0 = vadd.f32 %v1632_v18, %v1581_v20  ;;  %v3191_v41 = vmul.f32 %v2674_v44, %v535_v21  ;;  %v4641_v9 = vrot.slane %v3179_v28, 1  ;;  %v4643_v27 = vrot.slane %v3182_v31, 2 }
 0x110   : > { %v3185_v25 = vadd.f32 %v1256_v11, %v1141_v12  ;;  %v655_v52 = vadd.f32 %v2679_v45, %v624_v17  ;;  %v4723_v26 = vrot.slane %v2953_v49, 2  ;;  %v1122_v60 = vmul.f32 %v2695_v56, %v535_v21  ;;  %v449_v12 = vpop.f32.mrf.mxu0 }
 0x111   : > { %v1872_v48 = vadd.f32 %v4641_v9, %v1664_v0  ;;  %v1989_v17 = vsel %vm938_vm1, %v4643_v27, %v2720_v8  ;;  %v3211_v61 = vmul.f32 %v2710_v1, %v535_v21  ;;  %v4725_v18 = vrot.slane %v3188_v19, 1 }
 0x112   : > { %v980_v23 = vsel %vm938_vm1, %v4723_v26, %v2693_v55  ;;  %v3214_v26 = vmul.f32 %v2685_v51, %v535_v21  ;;  %v4727_v0 = vrot.slane %v2975_v63, 2  ;;  %v1648_v15 = vmul.f32 %v2712_v3, %v535_v21 }
 0x113   : > { %v1080_v20 = vadd.f32 %v980_v23, %v2979_v35  ;;  %v3218_v35 = vadd.f32 %v4725_v18, %v655_v52  ;;  %v3225_v27 = vadd.f32 %v1989_v17, %v1872_v48  ;;  %v4645_v43 = vrot.slane %v3211_v61, 1  ;;  %v529_v17 = vpop.f32.mrf.mxu1 }
 0x114   : > { %4724 = vst [vmem:[#allocation27_spill] sm:$0xff] %v3214_v26  ;;  %v1503_v9 = vsel %vm938_vm1, %v4727_v0, %v2715_v5  ;;  %v3231_v32 = vmul.f32 %v2718_v7, %v535_v21  ;;  %v450_v52 = vadd.f32 %v2701_v59, %v449_v12  ;;  %v4728_v18 = vrot.slane %v2890_v13, 2 }
 0x115   : > { %4726 = vst [vmem:[#allocation28_spill] sm:$0xff] %v3218_v35  ;;  %v1165_v23 = vadd.f32 %v1122_v60, %v1080_v20  ;;  %v1605_v36 = vadd.f32 %v1503_v9, %v3008_v34  ;;  %v3234_v60 = vmul.f32 %v2690_v53, %v535_v21  ;;  %v4729_v20 = vrot.slane %v3015_v16, 2 }
 0x116   : > { %v4648_v21 = vrot.slane %v3231_v32, 1  ;;  %v607_v12 = vmul.f32 %v2668_v39, %v450_v52  ;;  %v673_v13 = vmul.f32 %v2670_v40, %v450_v52  ;;  %v3253_v16 = vmul.f32 %v2674_v44, %v450_v52 }
 0x117   : > { %v947_v48 = vsel %vm938_vm1, %v4729_v20, %v4728_v18  ;;  %v3245_v0 = vadd.f32 %v4645_v43, %v1165_v23  ;;  %v1688_v34 = vadd.f32 %v1648_v15, %v1605_v36  ;;  %v4649_v6 = vrot.slane %v3234_v60, 2 }
 0x118   : > { %v1055_v9 = vadd.f32 %v947_v48, %v3042_v38  ;;  %v1105_v18 = vmul.f32 %v2695_v56, %v450_v52  ;;  %v1139_v23 = vadd.f32 %v2705_v62, %v3050_v14  ;;  %v1189_v36 = vmul.f32 %v2710_v1, %v450_v52 }
 0x119   : > { %4730 = vst [vmem:[#allocation29_spill] sm:$0xff] %v3245_v0  ;;  %v1896_v15 = vadd.f32 %v4648_v21, %v1688_v34  ;;  %v2021_v38 = vsel %vm938_vm1, %v4649_v6, %v2720_v8  ;;  %v638_v20 = vadd.f32 %v2679_v45, %v607_v12  ;;  %v739_v48 = vrot.slane %v673_v13, 1 }
 0x11a   : > { %v1140_v43 = vadd.f32 %v1105_v18, %v1055_v9  ;;  %v1255_v0 = vrot.slane %v1189_v36, 1  ;;  %v3268_v26 = vmul.f32 %v2685_v51, %v450_v52  ;;  %v4731_v21 = vrot.slane %v2928_v30, 2 }
 0x11b   : > { %v3270_v14 = vadd.f32 %v2021_v38, %v1896_v15  ;;  %v741_v35 = vsel %vm730_vm2, %v739_v48, %v740_v24  ;;  %v833_v34 = vadd.f32 %v739_v48, %v2682_v47  ;;  %v4732_v6 = vrot.slane %v3026_v4, 2 }
 0x11c   : > { %v3279_v13 = vadd.f32 %v741_v35, %v638_v20  ;;  %v1257_v9 = vsel %vm730_vm2, %v1255_v0, %v1256_v11  ;;  %v1351_v18 = vadd.f32 %v1255_v0, %v1139_v23  ;;  %v4650_v36 = vrot.slane %v3268_v26, 2 }
 0x11d   : > { %v1470_v12 = vsel %vm938_vm1, %v4732_v6, %v4731_v21  ;;  %v2235_v15 = vrot.slane %v3270_v14, 7  ;;  %v4733_v24 = vrot.slane %v3253_v16, 2  ;;  %v3288_v48 = vadd.f32 %v1257_v9, %v1140_v43 }
 0x11e   : > { %v1580_v30 = vadd.f32 %v1470_v12, %v3052_v57  ;;  %v3293_v6 = vadd.f32 %v4650_v36, %v1351_v18  ;;  %v1631_v4 = vmul.f32 %v2712_v3, %v450_v52  ;;  %v1662_v11 = vadd.f32 %v2727_v10, %v3057_v50 }
 0x11f   : > { %v3286_v38 = vadd.f32 %v4733_v24, %v833_v34  ;;  %v1713_v35 = vmul.f32 %v2718_v7, %v450_v52  ;;  %v1922_v0 = vmul.f32 %v2690_v53, %v450_v52  ;;  %v530_v21 = vadd.f32 %v2701_v59, %v529_v17 }
 0x120   : > { %v4734_v43 = vrot.slane %v2953_v49, 2  ;;  %v4735_v23 = vrot.slane %v3068_v29, 2  ;;  %v1163_v20 = vadd.f32 %v2705_v62, %v3101_v46  ;;  %v1663_v34 = vadd.f32 %v1631_v4, %v1580_v30 }
 0x121   : > { %v1776_v12 = vrot.slane %v1713_v35, 1  ;;  %v4736_v50 = vrot.slane %v2975_v63, 2  ;;  %v4737_v18 = vrot.slane %v3079_v54, 2  ;;  %v1986_v17 = vrot.slane %v1922_v0, 2 }
 0x122   : > { %v979_v57 = vsel %vm938_vm1, %v4735_v23, %v4734_v43  ;;  %v623_v49 = vmul.f32 %v2668_v39, %v530_v21  ;;  %v689_v29 = vmul.f32 %v2670_v40, %v530_v21  ;;  %v3317_v24 = vmul.f32 %v2674_v44, %v530_v21 }
 0x123   : > { %v1079_v9 = vadd.f32 %v979_v57, %v3092_v37  ;;  %v1502_v52 = vsel %vm938_vm1, %v4737_v18, %v4736_v50  ;;  %v4738_v46 = vrot.slane %v3179_v28, 1  ;;  %v1870_v4 = vadd.f32 %v1776_v12, %v1662_v11 }
 0x124   : > { %v1121_v37 = vmul.f32 %v2695_v56, %v530_v21  ;;  %v1205_v63 = vmul.f32 %v2710_v1, %v530_v21  ;;  %v4739_v35 = vrot.slane %v3182_v31, 2  ;;  %v654_v43 = vadd.f32 %v2679_v45, %v623_v49 }
 0x125   : > { %v1778_v30 = vsel %vm730_vm2, %v1776_v12, %v4738_v46  ;;  %v763_v23 = vrot.slane %v689_v29, 1  ;;  %v2093_v57 = vadd.f32 %v1986_v17, %v1870_v4  ;;  %v4654_v50 = vrot.slane %v3317_v24, 2 }
 0x126   : > { %v1871_v54 = vadd.f32 %v1778_v30, %v1663_v34  ;;  %v1988_v0 = vsel %vm938_vm1, %v1986_v17, %v4739_v35  ;;  %v1164_v18 = vadd.f32 %v1121_v37, %v1079_v9  ;;  %v1279_v28 = vrot.slane %v1205_v63, 1  ;;  %v2484_v63 = vpop.f32.mrf.mxu0 }
 0x127   : > { %v4740_v11 = vrot.slane %v3188_v19, 1  ;;  %v857_v46 = vadd.f32 %v763_v23, %v2682_v47  ;;  %v3334_v34 = vmul.f32 %v2685_v51, %v530_v21  ;;  %v2192_v31 = vrot.slane %v2093_v57, 7 }
 0x128   : > { %v2094_v36 = vadd.f32 %v1988_v0, %v1871_v54  ;;  %v4741_v49 = vrot.slane %v3211_v61, 1  ;;  %v1375_v9 = vadd.f32 %v1279_v28, %v1163_v20  ;;  %v1604_v54 = vadd.f32 %v1502_v52, %v3114_v22  ;;  %v2508_v0 = vpop.f32.mrf.mxu1 }
 0x129   : > { %v765_v12 = vsel %vm730_vm2, %v763_v23, %v4740_v11  ;;  %v3343_v19 = vadd.f32 %v4654_v50, %v857_v46  ;;  %v4651_v37 = vrot.slane %v3334_v34, 2  ;;  %v1647_v35 = vmul.f32 %v2712_v3, %v530_v21 }
 0x12a   : > { %v3336_v30 = vadd.f32 %v765_v12, %v654_v43  ;;  %v1281_v17 = vsel %vm730_vm2, %v1279_v28, %v4741_v49  ;;  %v2193_v29 = vrot.slane %v2094_v36, 7  ;;  %v1686_v61 = vadd.f32 %v2727_v10, %v3126_v58 }
 0x12b   : > { %v3345_v4 = vadd.f32 %v1281_v17, %v1164_v18  ;;  %v1729_v20 = vmul.f32 %v2718_v7, %v530_v21  ;;  %v4742_v43 = vrot.slane %v3225_v27, 7  ;;  %v3359_v57 = vadd.f32 %v4651_v37, %v1375_v9  ;;  %v4750_v37 = vld [vmem:[#allocation27_spill] sm:$0xff] }
 0x12c   : > { %v2194_v36 = vsel %vm2186_vm3, %v2192_v31, %v2193_v29  ;;  %v1938_v22 = vmul.f32 %v2690_v53, %v530_v21  ;;  %v1687_v58 = vadd.f32 %v1647_v35, %v1604_v54  ;;  %v465_v18 = vadd.f32 %v2484_v63, %v2701_v59 }
 0x12d   : > { %v2196_v23 = vsel %vm2186_vm3, %v2193_v29, %v4742_v43  ;;  %2302 = vst.msk [vmem:[%s3090_s13 + $0x10] sm:$0xff] %vm2299_vm4, %v2194_v36  ;;  %v1800_v52 = vrot.slane %v1729_v20, 1  ;;  %v4743_v28 = vrot.slane %v3153_v42, 2  ;;  %v4744_v46 = vrot.slane %v3167_v33, 2 }
 0x12e   : > { %2303 = vst.msk [vmem:[%s3090_s13 + $0x18] sm:$0xff] %vm2299_vm4, %v2196_v23  ;;  %v2018_v11 = vrot.slane %v1938_v22, 2  ;;  %v545_v31 = vadd.f32 %v2508_v0, %v2701_v59  ;;  %v4745_v49 = vrot.slane %v3231_v32, 1  ;;  %v610_v29 = vmul.f32 %v2668_v39, %v465_v18 }
 0x12f   : > { %v952_v27 = vsel %vm938_vm1, %v4743_v28, %v2693_v55  ;;  %v1475_v21 = vsel %vm938_vm1, %v4744_v46, %v2715_v5  ;;  %v1894_v9 = vadd.f32 %v1800_v52, %v1686_v61  ;;  %v3382_v63 = vmul.f32 %v2670_v40, %v465_v18 }
 0x130   : > { %v1059_v12 = vadd.f32 %v952_v27, %v3176_v2  ;;  %v1802_v17 = vsel %vm730_vm2, %v1800_v52, %v4745_v49  ;;  %v4746_v2 = vrot.slane %v3234_v60, 2  ;;  %v3388_v20 = vmul.f32 %v2674_v44, %v465_v18 }
 0x131   : > { %v1895_v54 = vadd.f32 %v1802_v17, %v1687_v58  ;;  %v1108_v0 = vmul.f32 %v2695_v56, %v465_v18  ;;  %v2117_v36 = vadd.f32 %v2018_v11, %v1894_v9  ;;  %v641_v32 = vadd.f32 %v2679_v45, %v610_v29 }
 0x132   : > { %v2020_v35 = vsel %vm938_vm1, %v2018_v11, %v4746_v2  ;;  %v4657_v61 = vrot.slane %v3382_v63, 1  ;;  %v3394_v43 = vmul.f32 %v2710_v1, %v465_v18  ;;  %v3398_v60 = vmul.f32 %v2685_v51, %v465_v18 }
 0x133   : > { %v2118_v23 = vadd.f32 %v2020_v35, %v1895_v54  ;;  %v1144_v58 = vadd.f32 %v1108_v0, %v1059_v12  ;;  %v2232_v52 = vrot.slane %v2117_v36, 7  ;;  %v1584_v11 = vadd.f32 %v1475_v21, %v3185_v25 }
 0x134   : > { %v3402_v28 = vadd.f32 %v4657_v61, %v641_v32  ;;  %v4656_v27 = vrot.slane %v3394_v43, 1  ;;  %v1634_v17 = vmul.f32 %v2712_v3, %v465_v18  ;;  %v3409_v12 = vmul.f32 %v2718_v7, %v465_v18 }
 0x135   : > { %v2233_v46 = vrot.slane %v2118_v23, 7  ;;  %v3416_v29 = vmul.f32 %v2690_v53, %v465_v18  ;;  %v626_v54 = vmul.f32 %v2668_v39, %v545_v31  ;;  %v3420_v2 = vmul.f32 %v2670_v40, %v545_v31 }
 0x136   : > { %v3413_v9 = vadd.f32 %v4656_v27, %v1144_v58  ;;  %v1667_v35 = vadd.f32 %v1634_v17, %v1584_v11  ;;  %v4652_v0 = vrot.slane %v3409_v12, 1  ;;  %v3435_v23 = vmul.f32 %v2674_v44, %v545_v31 }
 0x137   : > { %v2234_v25 = vsel %vm2186_vm3, %v2232_v52, %v2233_v46  ;;  %v2236_v21 = vsel %vm2186_vm3, %v2233_v46, %v2235_v15  ;;  %v4653_v18 = vrot.slane %v3416_v29, 2  ;;  %v657_v36 = vadd.f32 %v2679_v45, %v626_v54 }
 0x138   : > { %2318 = vst.msk [vmem:[%s3090_s13 + $0x90] sm:$0xff] %vm2299_vm4, %v2234_v25  ;;  %2319 = vst.msk [vmem:[%s3090_s13 + $0x98] sm:$0xff] %vm2299_vm4, %v2236_v21  ;;  %v4655_v32 = vrot.slane %v3420_v2, 1  ;;  %v1875_v14 = vadd.f32 %v4652_v0, %v1667_v35  ;;  %v4747_v15 = vrot.slane %v3191_v41, 2  ;;  %v1124_v52 = vmul.f32 %v2695_v56, %v545_v31  ;;  %v4749_v25 = vld [vmem:[#allocation28_spill] sm:$0xff]  ;;  %v459_v35 = vpop.f32.mrf.mxu0 }
 0x139   : > { %v3445_v11 = vmul.f32 %v2710_v1, %v545_v31  ;;  %v1993_v46 = vsel %vm938_vm1, %v4653_v18, %v2720_v8  ;;  %v3461_v22 = vmul.f32 %v2685_v51, %v545_v31  ;;  %v4751_v0 = vrot.slane %v4750_v37, 2 }
 0x13a   : > { %v984_v58 = vsel %vm938_vm1, %v4747_v15, %v2693_v55  ;;  %v3453_v17 = vadd.f32 %v4655_v32, %v657_v36  ;;  %v3457_v15 = vadd.f32 %v1993_v46, %v1875_v14  ;;  %v4752_v36 = vld [vmem:[#allocation29_spill] sm:$0xff]  ;;  %v1650_v54 = vmul.f32 %v2712_v3, %v545_v31 }
 0x13b   : > { %v1083_v21 = vadd.f32 %v984_v58, %v4749_v25  ;;  %v4658_v49 = vrot.slane %v3445_v11, 1  ;;  %v1507_v18 = vsel %vm938_vm1, %v4751_v0, %v2715_v5  ;;  %v3470_v58 = vmul.f32 %v2718_v7, %v545_v31 }
 0x13c   : > { %4748 = vst [vmem:[#allocation30_spill] sm:$0xff] %v3453_v17  ;;  %v1608_v32 = vadd.f32 %v1507_v18, %v4752_v36  ;;  %v3475_v25 = vmul.f32 %v2690_v53, %v545_v31  ;;  %v460_v27 = vadd.f32 %v2701_v59, %v459_v35  ;;  %v4755_v36 = vrot.slane %v3253_v16, 2 }
 0x13d   : > { %v1168_v50 = vadd.f32 %v1124_v52, %v1083_v21  ;;  %v4659_v18 = vrot.slane %v3470_v58, 1  ;;  %v4754_v21 = vrot.slane %v3153_v42, 2  ;;  %v1142_v16 = vadd.f32 %v2705_v62, %v3286_v38 }
 0x13e   : > { %v1691_v52 = vadd.f32 %v1650_v54, %v1608_v32  ;;  %v4660_v46 = vrot.slane %v3475_v25, 2  ;;  %v609_v31 = vmul.f32 %v2668_v39, %v460_v27  ;;  %v675_v61 = vmul.f32 %v2670_v40, %v460_v27 }
 0x13f   : > { %v3480_v0 = vadd.f32 %v4658_v49, %v1168_v50  ;;  %v951_v14 = vsel %vm938_vm1, %v4755_v36, %v4754_v21  ;;  %v3492_v35 = vmul.f32 %v2674_v44, %v460_v27  ;;  %v1107_v42 = vmul.f32 %v2695_v56, %v460_v27 }
 0x140   : > { %v1899_v50 = vadd.f32 %v4659_v18, %v1691_v52  ;;  %v1058_v32 = vadd.f32 %v951_v14, %v3279_v13  ;;  %v2025_v54 = vsel %vm938_vm1, %v4660_v46, %v2720_v8  ;;  %v640_v21 = vadd.f32 %v2679_v45, %v609_v31 }
 0x141   : > { %4753 = vst [vmem:[#allocation28_spill] sm:$0xff] %v3480_v0  ;;  %v742_v36 = vrot.slane %v675_v61, 1  ;;  %v1191_v13 = vmul.f32 %v2710_v1, %v460_v27  ;;  %v3510_v14 = vmul.f32 %v2685_v51, %v460_v27  ;;  %v4756_v38 = vrot.slane %v3382_v63, 1 }
 0x142   : > { %v3506_v0 = vadd.f32 %v2025_v54, %v1899_v50  ;;  %v1143_v52 = vadd.f32 %v1107_v42, %v1058_v32  ;;  %v4757_v46 = vrot.slane %v3167_v33, 2  ;;  %v4758_v61 = vrot.slane %v3268_v26, 2  ;;  %v539_v32 = vpop.f32.mrf.mxu1 }
 0x143   : > { %v744_v18 = vsel %vm730_vm2, %v742_v36, %v4756_v38  ;;  %v836_v17 = vadd.f32 %v742_v36, %v2682_v47  ;;  %v1633_v50 = vmul.f32 %v2712_v3, %v460_v27  ;;  %v1258_v49 = vrot.slane %v1191_v13, 1 }
 0x144   : > { %v1474_v31 = vsel %vm938_vm1, %v4758_v61, %v4757_v46  ;;  %v3523_v54 = vadd.f32 %v744_v18, %v640_v21  ;;  %v4668_v63 = vrot.slane %v3510_v14, 2  ;;  %v4759_v38 = vrot.slane %v3492_v35, 2 }
 0x145   : > { %v1583_v33 = vadd.f32 %v1474_v31, %v3288_v48  ;;  %v1665_v26 = vadd.f32 %v2727_v10, %v3293_v6  ;;  %v1715_v46 = vmul.f32 %v2718_v7, %v460_v27  ;;  %v4760_v36 = vrot.slane %v3394_v43, 1 }
 0x146   : > { %v3528_v8 = vadd.f32 %v4759_v38, %v836_v17  ;;  %v1354_v18 = vadd.f32 %v1258_v49, %v1142_v16  ;;  %v1924_v21 = vmul.f32 %v2690_v53, %v460_v27  ;;  %v540_v13 = vadd.f32 %v2701_v59, %v539_v32 }
 0x147   : > { %v1260_v61 = vsel %vm730_vm2, %v1258_v49, %v4760_v36  ;;  %v1666_v17 = vadd.f32 %v1633_v50, %v1583_v33  ;;  %v1779_v38 = vrot.slane %v1715_v46, 1  ;;  %v4761_v48 = vrot.slane %v3191_v41, 2 }
 0x148   : > { %v3539_v42 = vadd.f32 %v1260_v61, %v1143_v52  ;;  %v4762_v31 = vrot.slane %v3317_v24, 2  ;;  %v3548_v43 = vadd.f32 %v4668_v63, %v1354_v18  ;;  %v1990_v36 = vrot.slane %v1924_v21, 2 }
 0x149   : > { %v625_v49 = vmul.f32 %v2668_v39, %v540_v13  ;;  %v691_v53 = vmul.f32 %v2670_v40, %v540_v13  ;;  %v4763_v59 = vrot.slane %v3409_v12, 1  ;;  %v1873_v16 = vadd.f32 %v1779_v38, %v1665_v26 }
 0x14a   : > { %v983_v6 = vsel %vm938_vm1, %v4762_v31, %v4761_v48  ;;  %v3556_v41 = vmul.f32 %v2674_v44, %v540_v13  ;;  %v4764_v50 = vrot.slane %v3416_v29, 2  ;;  %v1123_v12 = vmul.f32 %v2695_v56, %v540_v13 }
 0x14b   : > { %v1781_v27 = vsel %vm730_vm2, %v1779_v38, %v4763_v59  ;;  %v1082_v24 = vadd.f32 %v983_v6, %v3336_v30  ;;  %v656_v33 = vadd.f32 %v2679_v45, %v625_v49  ;;  %v766_v46 = vrot.slane %v691_v53, 1 }
 0x14c   : > { %v1874_v52 = vadd.f32 %v1781_v27, %v1666_v17  ;;  %v1992_v32 = vsel %vm938_vm1, %v1990_v36, %v4764_v50  ;;  %v2096_v61 = vadd.f32 %v1990_v36, %v1873_v16  ;;  %v4666_v18 = vrot.slane %v3556_v41, 2  ;;  %v2487_v50 = vpop.f32.mrf.mxu0 }
 0x14d   : > { %v1166_v26 = vadd.f32 %v2705_v62, %v3343_v19  ;;  %v4765_v38 = vrot.slane %v3420_v2, 1  ;;  %v860_v29 = vadd.f32 %v766_v46, %v2682_v47  ;;  %v1207_v17 = vmul.f32 %v2710_v1, %v540_v13 }
 0x14e   : > { %v2097_v21 = vadd.f32 %v1992_v32, %v1874_v52  ;;  %v2197_v48 = vrot.slane %v2096_v61, 7  ;;  %v1167_v31 = vadd.f32 %v1123_v12, %v1082_v24  ;;  %v3575_v6 = vmul.f32 %v2685_v51, %v540_v13 }
 0x14f   : > { %v768_v30 = vsel %vm730_vm2, %v766_v46, %v4765_v38  ;;  %v3579_v19 = vadd.f32 %v4666_v18, %v860_v29  ;;  %v1282_v2 = vrot.slane %v1207_v17, 1  ;;  %v4766_v49 = vrot.slane %v4750_v37, 2 }
 0x150   : > { %v3572_v45 = vadd.f32 %v768_v30, %v656_v33  ;;  %v2198_v36 = vrot.slane %v2097_v21, 7  ;;  %v4767_v53 = vrot.slane %v3334_v34, 2  ;;  %v4663_v27 = vrot.slane %v3575_v6, 2 }
 0x151   : > { %v1649_v24 = vmul.f32 %v2712_v3, %v540_v13  ;;  %v1689_v52 = vadd.f32 %v2727_v10, %v3359_v57  ;;  %v4768_v33 = vrot.slane %v3457_v15, 7  ;;  %v4769_v34 = vrot.slane %v3445_v11, 1  ;;  %v3608_v15 = vld [vmem:[%s4612_s3 + $0x8] ss:$0 sm:$0xff] }
 0x152   : > { %v1506_v59 = vsel %vm938_vm1, %v4767_v53, %v4766_v49  ;;  %v2199_v32 = vsel %vm2186_vm3, %v2197_v48, %v2198_v36  ;;  %v1378_v61 = vadd.f32 %v1282_v2, %v1166_v26  ;;  %v1731_v57 = vmul.f32 %v2718_v7, %v540_v13  ;;  %v3618_v26 = vld [vmem:[%s4611_s2] ss:$0 sm:$0xff] }
 0x153   : > { %v1607_v16 = vadd.f32 %v1506_v59, %v3345_v4  ;;  %v2201_v37 = vsel %vm2186_vm3, %v2198_v36, %v4768_v33  ;;  %v1284_v46 = vsel %vm730_vm2, %v1282_v2, %v4769_v34  ;;  %2304 = vst.msk [vmem:[%s3090_s13 + $0x20] sm:$0xff] %vm2299_vm4, %v2199_v32  ;;  %v1940_v21 = vmul.f32 %v3608_v15, %v540_v13  ;;  %v3651_v34 = vld [vmem:[%s4613_s4] ss:$0 sm:$0xff] }
 0x154   : > { %2305 = vst.msk [vmem:[%s3090_s13 + $0x28] sm:$0xff] %vm2299_vm4, %v2201_v37  ;;  %v3602_v4 = vadd.f32 %v1284_v46, %v1167_v31  ;;  %v3613_v11 = vadd.f32 %v4663_v27, %v1378_v61  ;;  %v475_v38 = vadd.f32 %v3618_v26, %v2487_v50  ;;  %v4770_v30 = vrot.slane %v3388_v20, 2 }
 0x155   : > { %v1690_v12 = vadd.f32 %v1649_v24, %v1607_v16  ;;  %v4771_v17 = vrot.slane %v3398_v60, 2  ;;  %v1803_v48 = vrot.slane %v1731_v57, 1  ;;  %v2022_v31 = vrot.slane %v1940_v21, 2 }
 0x156   : > { %v956_v29 = vsel %vm938_vm1, %v4770_v30, %v2693_v55  ;;  %v612_v49 = vmul.f32 %v2668_v39, %v475_v38  ;;  %v3633_v53 = vmul.f32 %v2670_v40, %v475_v38  ;;  %v3636_v59 = vmul.f32 %v2674_v44, %v475_v38  ;;  %v2511_v30 = vpop.f32.mrf.mxu1 }
 0x157   : > { %v1479_v13 = vsel %vm938_vm1, %v4771_v17, %v2715_v5  ;;  %v1062_v36 = vadd.f32 %v956_v29, %v3402_v28  ;;  %v1110_v16 = vmul.f32 %v2695_v56, %v475_v38  ;;  %v4772_v24 = vrot.slane %v3470_v58, 1 }
 0x158   : > { %v1587_v2 = vadd.f32 %v1479_v13, %v3413_v9  ;;  %v1897_v32 = vadd.f32 %v1803_v48, %v1689_v52  ;;  %v4773_v33 = vrot.slane %v3475_v25, 2  ;;  %v3646_v9 = vmul.f32 %v2710_v1, %v475_v38 }
 0x159   : > { %v1805_v50 = vsel %vm730_vm2, %v1803_v48, %v4772_v24  ;;  %v643_v46 = vadd.f32 %v3651_v34, %v612_v49  ;;  %v4671_v58 = vrot.slane %v3633_v53, 1  ;;  %v1147_v57 = vadd.f32 %v1110_v16, %v1062_v36  ;;  %v469_v48 = vpop.f32.mrf.mxu0 }
 0x15a   : > { %v2024_v28 = vsel %vm938_vm1, %v2022_v31, %v4773_v33  ;;  %v1898_v37 = vadd.f32 %v1805_v50, %v1690_v12  ;;  %v2120_v52 = vadd.f32 %v2022_v31, %v1897_v32  ;;  %v4667_v25 = vrot.slane %v3646_v9, 1 }
 0x15b   : > { %v3658_v21 = vmul.f32 %v2685_v51, %v475_v38  ;;  %v3662_v29 = vadd.f32 %v4671_v58, %v643_v46  ;;  %v1636_v17 = vmul.f32 %v2712_v3, %v475_v38  ;;  %v3666_v13 = vmul.f32 %v2718_v7, %v475_v38 }
 0x15c   : > { %v2121_v12 = vadd.f32 %v2024_v28, %v1898_v37  ;;  %v2237_v49 = vrot.slane %v2120_v52, 7  ;;  %v3670_v31 = vadd.f32 %v4667_v25, %v1147_v57  ;;  %v3674_v16 = vmul.f32 %v3608_v15, %v475_v38 }
 0x15d   : > { %v1670_v50 = vadd.f32 %v1636_v17, %v1587_v2  ;;  %v4665_v32 = vrot.slane %v3666_v13, 1  ;;  %v555_v33 = vadd.f32 %v3618_v26, %v2511_v30  ;;  %v4774_v37 = vrot.slane %v3435_v23, 2 }
 0x15e   : > { %v2238_v24 = vrot.slane %v2121_v12, 7  ;;  %v4664_v28 = vrot.slane %v3674_v16, 2  ;;  %v4775_v52 = vrot.slane %v3461_v22, 2  ;;  %v3688_v38 = vadd.f32 %v3618_v26, %v469_v48 }
 0x15f   : > { %v988_v46 = vsel %vm938_vm1, %v4774_v37, %v2693_v55  ;;  %v4776_v12 = vrot.slane %v3506_v0, 7  ;;  %v1878_v17 = vadd.f32 %v4665_v32, %v1670_v50  ;;  %v628_v36 = vmul.f32 %v2668_v39, %v555_v33  ;;  %v4777_v37 = vld [vmem:[#allocation2_spill] sm:$0xff]  ;;  %v4779_v32 = vld [vmem:[#allocation28_spill] sm:$0xff] }
 0x160   : > { %v1511_v57 = vsel %vm938_vm1, %v4775_v52, %v2715_v5  ;;  %v2239_v2 = vsel %vm2186_vm3, %v2237_v49, %v2238_v24  ;;  %v1997_v48 = vsel %vm938_vm1, %v4664_v28, %v4777_v37  ;;  %v3706_v49 = vmul.f32 %v2670_v40, %v555_v33 }
 0x161   : > { %v2241_v30 = vsel %vm2186_vm3, %v2238_v24, %v4776_v12  ;;  %2320 = vst.msk [vmem:[%s3090_s13 + $0xa0] sm:$0xff] %vm2299_vm4, %v2239_v2  ;;  %v3709_v0 = vmul.f32 %v2674_v44, %v555_v33  ;;  %v4778_v24 = vld [vmem:[#allocation30_spill] sm:$0xff]  ;;  %v3712_v50 = vadd.f32 %v1997_v48, %v1878_v17  ;;  %v659_v12 = vadd.f32 %v3651_v34, %v628_v36 }
 0x162   : > { %2321 = vst.msk [vmem:[%s3090_s13 + $0xa8] sm:$0xff] %vm2299_vm4, %v2241_v30  ;;  %v1086_v52 = vadd.f32 %v988_v46, %v4778_v24  ;;  %v1126_v2 = vmul.f32 %v2695_v56, %v555_v33  ;;  %v3717_v30 = vmul.f32 %v2710_v1, %v555_v33  ;;  %v4670_v61 = vrot.slane %v3706_v49, 1 }
 0x163   : > { %v3722_v28 = vmul.f32 %v2685_v51, %v555_v33  ;;  %v1611_v18 = vadd.f32 %v1511_v57, %v4779_v32  ;;  %v1652_v36 = vmul.f32 %v2712_v3, %v555_v33  ;;  %v3734_v27 = vmul.f32 %v2718_v7, %v555_v33 }
 0x164   : > { %v1171_v17 = vadd.f32 %v1126_v2, %v1086_v52  ;;  %v4669_v48 = vrot.slane %v3717_v30, 1  ;;  %v3730_v24 = vadd.f32 %v4670_v61, %v659_v12  ;;  %v3737_v63 = vmul.f32 %v3608_v15, %v555_v33 }
 0x165   : > { %v1694_v57 = vadd.f32 %v1652_v36, %v1611_v18  ;;  %v611_v52 = vmul.f32 %v2668_v39, %v3688_v38  ;;  %v677_v12 = vmul.f32 %v2670_v40, %v3688_v38  ;;  %v4672_v2 = vrot.slane %v3734_v27, 1 }
 0x166   : > { %v3741_v32 = vadd.f32 %v4669_v48, %v1171_v17  ;;  %v3751_v46 = vmul.f32 %v2674_v44, %v3688_v38  ;;  %v4781_v33 = vrot.slane %v3388_v20, 2  ;;  %v4782_v17 = vrot.slane %v3492_v35, 2 }
 0x167   : > { %v642_v36 = vadd.f32 %v3651_v34, %v611_v52  ;;  %v745_v48 = vrot.slane %v677_v12, 1  ;;  %v1109_v58 = vmul.f32 %v2695_v56, %v3688_v38  ;;  %v1902_v25 = vadd.f32 %v4672_v2, %v1694_v57 }
 0x168   : > { %4780 = vst [vmem:[#allocation27_spill] sm:$0xff] %v3741_v32  ;;  %v955_v18 = vsel %vm938_vm1, %v4782_v17, %v4781_v33  ;;  %v4783_v32 = vrot.slane %v3737_v63, 2  ;;  %v4673_v35 = vrot.slane %v3751_v46, 2  ;;  %v1145_v33 = vadd.f32 %v2705_v62, %v3528_v8 }
 0x169   : > { %v1061_v61 = vadd.f32 %v955_v18, %v3523_v54  ;;  %v4784_v52 = vrot.slane %v3633_v53, 1  ;;  %v839_v12 = vadd.f32 %v745_v48, %v2682_v47  ;;  %v1193_v57 = vmul.f32 %v2710_v1, %v3688_v38 }
 0x16a   : > { %v2029_v20 = vsel %vm938_vm1, %v4783_v32, %v4777_v37  ;;  %v3783_v32 = vmul.f32 %v2685_v51, %v3688_v38  ;;  %v4786_v8 = vrot.slane %v3398_v60, 2  ;;  %v4787_v53 = vrot.slane %v3510_v14, 2 }
 0x16b   : > { %v747_v54 = vsel %vm730_vm2, %v745_v48, %v4784_v52  ;;  %v1146_v17 = vadd.f32 %v1109_v58, %v1061_v61  ;;  %v3777_v18 = vadd.f32 %v2029_v20, %v1902_v25  ;;  %v3792_v58 = vadd.f32 %v4673_v35, %v839_v12 }
 0x16c   : > { %v3779_v2 = vadd.f32 %v747_v54, %v642_v36  ;;  %v1478_v52 = vsel %vm938_vm1, %v4787_v53, %v4786_v8  ;;  %v1261_v61 = vrot.slane %v1193_v57, 1  ;;  %v1635_v48 = vmul.f32 %v2712_v3, %v3688_v38  ;;  %v549_v36 = vpop.f32.mrf.mxu1 }
 0x16d   : > { %4788 = vst [vmem:[#allocation30_spill] sm:$0xff] %v3792_v58  ;;  %v1586_v25 = vadd.f32 %v1478_v52, %v3539_v42  ;;  %v1668_v60 = vadd.f32 %v2727_v10, %v3548_v43  ;;  %v1717_v14 = vmul.f32 %v2718_v7, %v3688_v38  ;;  %v4789_v12 = vrot.slane %v3646_v9, 1 }
 0x16e   : > { %4785 = vst [vmem:[#allocation29_spill] sm:$0xff] %v3779_v2  ;;  %v1357_v8 = vadd.f32 %v1261_v61, %v1145_v33  ;;  %v1926_v53 = vmul.f32 %v3608_v15, %v3688_v38  ;;  %v550_v20 = vadd.f32 %v3618_v26, %v549_v36  ;;  %v4790_v54 = vrot.slane %v3435_v23, 2 }
 0x16f   : > { %v1263_v57 = vsel %vm730_vm2, %v1261_v61, %v4789_v12  ;;  %v1669_v42 = vadd.f32 %v1635_v48, %v1586_v25  ;;  %v1782_v35 = vrot.slane %v1717_v14, 1  ;;  %v4791_v43 = vrot.slane %v3556_v41, 2 }
 0x170   : > { %v3808_v52 = vadd.f32 %v1263_v57, %v1146_v17  ;;  %v4792_v9 = vrot.slane %v3783_v32, 2  ;;  %v1994_v33 = vrot.slane %v1926_v53, 2  ;;  %v1169_v38 = vadd.f32 %v2705_v62, %v3579_v19 }
 0x171   : > { %v987_v58 = vsel %vm938_vm1, %v4791_v43, %v4790_v54  ;;  %v4793_v17 = vrot.slane %v3666_v13, 1  ;;  %v1876_v48 = vadd.f32 %v1782_v35, %v1668_v60  ;;  %v627_v23 = vmul.f32 %v2668_v39, %v550_v20 }
 0x172   : > { %v3818_v2 = vadd.f32 %v4792_v9, %v1357_v8  ;;  %v1085_v61 = vadd.f32 %v987_v58, %v3572_v45  ;;  %v693_v41 = vmul.f32 %v2670_v40, %v550_v20  ;;  %v4794_v54 = vrot.slane %v3674_v16, 2 }
 0x173   : > { %v1784_v25 = vsel %vm730_vm2, %v1782_v35, %v4793_v17  ;;  %v3832_v12 = vmul.f32 %v2674_v44, %v550_v20  ;;  %v1125_v45 = vmul.f32 %v2695_v56, %v550_v20  ;;  %v2099_v19 = vadd.f32 %v1994_v33, %v1876_v48 }
 0x174   : > { %v1877_v36 = vadd.f32 %v1784_v25, %v1669_v42  ;;  %v1996_v14 = vsel %vm938_vm1, %v1994_v33, %v4794_v54  ;;  %v658_v13 = vadd.f32 %v3651_v34, %v627_v23  ;;  %v769_v58 = vrot.slane %v693_v41, 1 }
 0x175   : > { %v1209_v35 = vmul.f32 %v2710_v1, %v550_v20  ;;  %v4678_v57 = vrot.slane %v3832_v12, 2  ;;  %v1170_v8 = vadd.f32 %v1125_v45, %v1085_v61  ;;  %v3839_v42 = vmul.f32 %v2685_v51, %v550_v20 }
 0x176   : > { %v2100_v60 = vadd.f32 %v1996_v14, %v1877_v36  ;;  %v2202_v16 = vrot.slane %v2099_v19, 7  ;;  %v4795_v53 = vrot.slane %v3706_v49, 1  ;;  %v863_v9 = vadd.f32 %v769_v58, %v2682_v47  ;;  %v2490_v19 = vpop.f32.mrf.mxu0 }
 0x177   : > { %v1285_v33 = vrot.slane %v1209_v35, 1  ;;  %v4796_v48 = vrot.slane %v3461_v22, 2  ;;  %v4797_v61 = vrot.slane %v3575_v6, 2  ;;  %v4674_v41 = vrot.slane %v3839_v42, 2 }
 0x178   : > { %v771_v43 = vsel %vm730_vm2, %v769_v58, %v4795_v53  ;;  %v2203_v17 = vrot.slane %v2100_v60, 7  ;;  %v3855_v49 = vadd.f32 %v4678_v57, %v863_v9  ;;  %v4798_v36 = vrot.slane %v3717_v30, 1 }
 0x179   : > { %v3845_v25 = vadd.f32 %v771_v43, %v658_v13  ;;  %v1510_v23 = vsel %vm938_vm1, %v4797_v61, %v4796_v48  ;;  %v1381_v14 = vadd.f32 %v1285_v33, %v1169_v38  ;;  %v4799_v6 = vrot.slane %v3712_v50, 7 }
 0x17a   : > { %v1287_v54 = vsel %vm730_vm2, %v1285_v33, %v4798_v36  ;;  %v1610_v45 = vadd.f32 %v1510_v23, %v3602_v4  ;;  %v2204_v22 = vsel %vm2186_vm3, %v2202_v16, %v2203_v17  ;;  %v1651_v35 = vmul.f32 %v2712_v3, %v550_v20 }
 0x17b   : > { %v2206_v13 = vsel %vm2186_vm3, %v2203_v17, %v4799_v6  ;;  %v3865_v58 = vadd.f32 %v1287_v54, %v1170_v8  ;;  %2306 = vst.msk [vmem:[%s3090_s13 + $0x30] sm:$0xff] %vm2299_vm4, %v2204_v22  ;;  %v3874_v30 = vadd.f32 %v4674_v41, %v1381_v14  ;;  %v1692_v4 = vadd.f32 %v2727_v10, %v3613_v11 }
 0x17c   : > { %2307 = vst.msk [vmem:[%s3090_s13 + $0x38] sm:$0xff] %vm2299_vm4, %v2206_v13  ;;  %v1733_v38 = vmul.f32 %v2718_v7, %v550_v20  ;;  %v1942_v50 = vmul.f32 %v3608_v15, %v550_v20  ;;  %v1693_v60 = vadd.f32 %v1651_v35, %v1610_v45  ;;  %v485_v8 = vadd.f32 %v3618_v26, %v2490_v19 }
 0x17d   : > { %v4800_v16 = vrot.slane %v3636_v59, 2  ;;  %v4801_v43 = vrot.slane %v3658_v21, 2  ;;  %v4802_v54 = vrot.slane %v3734_v27, 1  ;;  %v4803_v19 = vrot.slane %v3737_v63, 2  ;;  %v2514_v63 = vpop.f32.mrf.mxu1 }
 0x17e   : > { %v1806_v33 = vrot.slane %v1733_v38, 1  ;;  %v2026_v17 = vrot.slane %v1942_v50, 2  ;;  %v614_v20 = vmul.f32 %v2668_v39, %v485_v8  ;;  %v3893_v61 = vmul.f32 %v2670_v40, %v485_v8 }
 0x17f   : > { %v960_v53 = vsel %vm938_vm1, %v4800_v16, %v2693_v55  ;;  %v1483_v9 = vsel %vm938_vm1, %v4801_v43, %v2715_v5  ;;  %v3896_v23 = vmul.f32 %v2674_v44, %v485_v8  ;;  %v1112_v36 = vmul.f32 %v2695_v56, %v485_v8 }
 0x180   : > { %v1065_v11 = vadd.f32 %v960_v53, %v3662_v29  ;;  %v1590_v48 = vadd.f32 %v1483_v9, %v3670_v31  ;;  %v1808_v14 = vsel %vm730_vm2, %v1806_v33, %v4802_v54  ;;  %v1900_v45 = vadd.f32 %v1806_v33, %v1692_v4  ;;  %v479_v9 = vpop.f32.mrf.mxu0 }
 0x181   : > { %v2028_v29 = vsel %vm938_vm1, %v2026_v17, %v4803_v19  ;;  %v3906_v31 = vmul.f32 %v2710_v1, %v485_v8  ;;  %v1901_v22 = vadd.f32 %v1808_v14, %v1693_v60  ;;  %v645_v6 = vadd.f32 %v3651_v34, %v614_v20 }
 0x182   : > { %v749_v13 = vrot.slane %v3893_v61, 1  ;;  %v2123_v38 = vadd.f32 %v2026_v17, %v1900_v45  ;;  %v1150_v50 = vadd.f32 %v1112_v36, %v1065_v11  ;;  %v3913_v4 = vmul.f32 %v2685_v51, %v485_v8 }
 0x183   : > { %v4679_v27 = vrot.slane %v3906_v31, 1  ;;  %v2124_v16 = vadd.f32 %v2028_v29, %v1901_v22  ;;  %v1638_v60 = vmul.f32 %v2712_v3, %v485_v8  ;;  %v3921_v43 = vmul.f32 %v2718_v7, %v485_v8 }
 0x184   : > { %v3917_v53 = vadd.f32 %v749_v13, %v645_v6  ;;  %v2242_v33 = vrot.slane %v2123_v38, 7  ;;  %v3929_v20 = vmul.f32 %v3608_v15, %v485_v8  ;;  %v3933_v45 = vadd.f32 %v3618_v26, %v2514_v63 }
 0x185   : > { %v3925_v17 = vadd.f32 %v4679_v27, %v1150_v50  ;;  %v2243_v36 = vrot.slane %v2124_v16, 7  ;;  %v1673_v54 = vadd.f32 %v1638_v60, %v1590_v48  ;;  %v4677_v14 = vrot.slane %v3921_v43, 1  ;;  %v4811_v27 = vld [vmem:[#allocation29_spill] sm:$0xff] }
 0x186   : > { %4804 = vst [vmem:[#allocation28_spill] sm:$0xff] %v3933_v45  ;;  %v4675_v19 = vrot.slane %v3929_v20, 2  ;;  %v4805_v29 = vrot.slane %v3709_v0, 2  ;;  %v4806_v6 = vrot.slane %v3722_v28, 2  ;;  %v480_v38 = vadd.f32 %v3618_v26, %v479_v9 }
 0x187   : > { %v2244_v48 = vsel %vm2186_vm3, %v2242_v33, %v2243_v36  ;;  %v4807_v50 = vrot.slane %v3777_v18, 7  ;;  %v1881_v16 = vadd.f32 %v4677_v14, %v1673_v54  ;;  %v1128_v33 = vmul.f32 %v2695_v56, %v3933_v45  ;;  %v4808_v54 = vld [vmem:[#allocation27_spill] sm:$0xff] }
 0x188   : > { %v992_v22 = vsel %vm938_vm1, %v4805_v29, %v2693_v55  ;;  %v1515_v8 = vsel %vm938_vm1, %v4806_v6, %v2715_v5  ;;  %2322 = vst.msk [vmem:[%s3090_s13 + $0xb0] sm:$0xff] %vm2299_vm4, %v2244_v48  ;;  %v2001_v9 = vsel %vm938_vm1, %v4675_v19, %v4777_v37  ;;  %v3964_v18 = vmul.f32 %v2710_v1, %v3933_v45 }
 0x189   : > { %v2246_v63 = vsel %vm2186_vm3, %v2243_v36, %v4807_v50  ;;  %v1089_v60 = vadd.f32 %v992_v22, %v3730_v24  ;;  %v3968_v36 = vmul.f32 %v2685_v51, %v3933_v45  ;;  %v3970_v24 = vadd.f32 %v2001_v9, %v1881_v16 }
 0x18a   : > { %2323 = vst.msk [vmem:[%s3090_s13 + $0xb8] sm:$0xff] %vm2299_vm4, %v2246_v63  ;;  %v1614_v29 = vadd.f32 %v1515_v8, %v4808_v54  ;;  %v1654_v22 = vmul.f32 %v2712_v3, %v3933_v45  ;;  %v3977_v6 = vmul.f32 %v2718_v7, %v3933_v45  ;;  %v4676_v50 = vrot.slane %v3964_v18, 1 }
 0x18b   : > { %v1174_v48 = vadd.f32 %v1128_v33, %v1089_v60  ;;  %v3983_v11 = vmul.f32 %v3608_v15, %v3933_v45  ;;  %v613_v54 = vmul.f32 %v2668_v39, %v480_v38  ;;  %v679_v33 = vmul.f32 %v2670_v40, %v480_v38 }
 0x18c   : > { %v1697_v9 = vadd.f32 %v1654_v22, %v1614_v29  ;;  %v4680_v8 = vrot.slane %v3977_v6, 1  ;;  %v3995_v63 = vmul.f32 %v2674_v44, %v480_v38  ;;  %v4809_v22 = vrot.slane %v3636_v59, 2 }
 0x18d   : > { %v3990_v35 = vadd.f32 %v4676_v50, %v1174_v48  ;;  %v4681_v60 = vrot.slane %v3983_v11, 2  ;;  %v644_v29 = vadd.f32 %v3651_v34, %v613_v54  ;;  %v4810_v16 = vrot.slane %v3751_v46, 2  ;;  %v4812_v54 = vld [vmem:[#allocation30_spill] sm:$0xff] }
 0x18e   : > { %v1905_v41 = vadd.f32 %v4680_v8, %v1697_v9  ;;  %v1111_v48 = vmul.f32 %v2695_v56, %v480_v38  ;;  %v748_v14 = vrot.slane %v679_v33, 1  ;;  %v1148_v59 = vadd.f32 %v2705_v62, %v4812_v54 }
 0x18f   : > { %v959_v19 = vsel %vm938_vm1, %v4810_v16, %v4809_v22  ;;  %v2033_v50 = vsel %vm938_vm1, %v4681_v60, %v4777_v37  ;;  %v1195_v46 = vmul.f32 %v2710_v1, %v480_v38  ;;  %v4018_v16 = vmul.f32 %v2685_v51, %v480_v38  ;;  %v559_v37 = vpop.f32.mrf.mxu1 }
 0x190   : > { %v1064_v9 = vadd.f32 %v959_v19, %v4811_v27  ;;  %v4012_v8 = vadd.f32 %v2033_v50, %v1905_v41  ;;  %v750_v22 = vsel %vm730_vm2, %v748_v14, %v749_v13  ;;  %v842_v33 = vadd.f32 %v748_v14, %v2682_v47 }
 0x191   : > { %v4813_v57 = vrot.slane %v3658_v21, 2  ;;  %v4814_v41 = vrot.slane %v3783_v32, 2  ;;  %v4030_v50 = vadd.f32 %v750_v22, %v644_v29  ;;  %v1264_v54 = vrot.slane %v1195_v46, 1 }
 0x192   : > { %v1149_v60 = vadd.f32 %v1111_v48, %v1064_v9  ;;  %v2250_v19 = vrot.slane %v4012_v8, 7  ;;  %v1484_v45 = vrot.slane %v4018_v16, 2  ;;  %v4815_v61 = vrot.slane %v3995_v63, 2 }
 0x193   : > { %v1482_v27 = vsel %vm938_vm1, %v4814_v41, %v4813_v57  ;;  %v1637_v21 = vmul.f32 %v2712_v3, %v480_v38  ;;  %v1671_v32 = vadd.f32 %v2727_v10, %v3818_v2  ;;  %v4816_v57 = vrot.slane %v3906_v31, 1 }
 0x194   : > { %v4035_v13 = vadd.f32 %v4815_v61, %v842_v33  ;;  %v1589_v14 = vadd.f32 %v1482_v27, %v3808_v52  ;;  %v1360_v48 = vadd.f32 %v1264_v54, %v1148_v59  ;;  %v1719_v9 = vmul.f32 %v2718_v7, %v480_v38 }
 0x195   : > { %v1266_v29 = vsel %vm730_vm2, %v1264_v54, %v4816_v57  ;;  %v1928_v46 = vmul.f32 %v3608_v15, %v480_v38  ;;  %v4049_v41 = vadd.f32 %v3618_v26, %v559_v37  ;;  %v4817_v52 = vrot.slane %v3709_v0, 2 }
 0x196   : > { %v4046_v22 = vadd.f32 %v1266_v29, %v1149_v60  ;;  %v1672_v33 = vadd.f32 %v1637_v21, %v1589_v14  ;;  %v4818_v27 = vrot.slane %v3832_v12, 2  ;;  %v4058_v31 = vadd.f32 %v1484_v45, %v1360_v48 }
 0x197   : > { %v1785_v59 = vrot.slane %v1719_v9, 1  ;;  %v1998_v54 = vrot.slane %v1928_v46, 2  ;;  %v1127_v60 = vmul.f32 %v2695_v56, %v4049_v41  ;;  %v1172_v37 = vadd.f32 %v2705_v62, %v3855_v49 }
 0x198   : > { %v991_v2 = vsel %vm938_vm1, %v4818_v27, %v4817_v52  ;;  %v1211_v0 = vmul.f32 %v2710_v1, %v4049_v41  ;;  %v4069_v12 = vmul.f32 %v2685_v51, %v4049_v41  ;;  %v4819_v61 = vrot.slane %v3921_v43, 1 }
 0x199   : > { %v1088_v38 = vadd.f32 %v991_v2, %v3845_v25  ;;  %v1879_v21 = vadd.f32 %v1785_v59, %v1671_v32  ;;  %v4820_v25 = vrot.slane %v3929_v20, 2  ;;  %v4821_v29 = vrot.slane %v3722_v28, 2 }
 0x19a   : > { %v1787_v14 = vsel %vm730_vm2, %v1785_v59, %v4819_v61  ;;  %v4822_v49 = vrot.slane %v3839_v42, 2  ;;  %v1288_v52 = vrot.slane %v1211_v0, 1  ;;  %v1516_v27 = vrot.slane %v4069_v12, 2  ;;  %v2493_v59 = vpop.f32.mrf.mxu0 }
 0x19b   : > { %v2000_v57 = vsel %vm938_vm1, %v1998_v54, %v4820_v25  ;;  %v1880_v9 = vadd.f32 %v1787_v14, %v1672_v33  ;;  %v1173_v46 = vadd.f32 %v1127_v60, %v1088_v38  ;;  %v2102_v2 = vadd.f32 %v1998_v54, %v1879_v21  ;;  %v2517_v21 = vpop.f32.mrf.mxu1 }
 0x19c   : > { %v1514_v48 = vsel %vm938_vm1, %v4822_v49, %v4821_v29  ;;  %v1653_v32 = vmul.f32 %v2712_v3, %v4049_v41  ;;  %v1695_v20 = vadd.f32 %v2727_v10, %v3874_v30  ;;  %v4823_v42 = vrot.slane %v3964_v18, 1 }
 0x19d   : > { %v1613_v43 = vadd.f32 %v1514_v48, %v3865_v58  ;;  %v2103_v28 = vadd.f32 %v2000_v57, %v1880_v9  ;;  %v1384_v33 = vadd.f32 %v1288_v52, %v1172_v37  ;;  %v1735_v38 = vmul.f32 %v2718_v7, %v4049_v41 }
 0x19e   : > { %v1290_v61 = vsel %vm730_vm2, %v1288_v52, %v4823_v42  ;;  %v2207_v60 = vrot.slane %v2102_v2, 7  ;;  %v1944_v0 = vmul.f32 %v3608_v15, %v4049_v41  ;;  %v495_v37 = vadd.f32 %v3618_v26, %v2493_v59 }
 0x19f   : > { %v4093_v54 = vadd.f32 %v1290_v61, %v1173_v46  ;;  %v1696_v58 = vadd.f32 %v1653_v32, %v1613_v43  ;;  %v2208_v30 = vrot.slane %v2103_v28, 7  ;;  %v4099_v14 = vadd.f32 %v1516_v27, %v1384_v33 }
 0x1a0   : > { %v1809_v18 = vrot.slane %v1735_v38, 1  ;;  %v2030_v25 = vrot.slane %v1944_v0, 2  ;;  %v4824_v57 = vrot.slane %v3896_v23, 2  ;;  %v4825_v49 = vrot.slane %v3913_v4, 2 }
 0x1a1   : > { %v4111_v9 = vadd.f32 %v3618_v26, %v2517_v21  ;;  %v2209_v46 = vsel %vm2186_vm3, %v2207_v60, %v2208_v30  ;;  %v4826_v52 = vrot.slane %v3970_v24, 7  ;;  %v4827_v43 = vrot.slane %v3977_v6, 1 }
 0x1a2   : > { %v964_v29 = vsel %vm938_vm1, %v4824_v57, %v2693_v55  ;;  %v1487_v48 = vsel %vm938_vm1, %v4825_v49, %v2715_v5  ;;  %v1903_v59 = vadd.f32 %v1809_v18, %v1695_v20  ;;  %2308 = vst.msk [vmem:[%s3090_s13 + $0x40] sm:$0xff] %vm2299_vm4, %v2209_v46  ;;  %v4828_v42 = vrot.slane %v3983_v11, 2 }
 0x1a3   : > { %v2211_v2 = vsel %vm2186_vm3, %v2208_v30, %v4826_v52  ;;  %v1811_v32 = vsel %vm730_vm2, %v1809_v18, %v4827_v43  ;;  %v616_v33 = vmul.f32 %v2668_v39, %v495_v37  ;;  %v682_v24 = vmul.f32 %v2670_v40, %v495_v37 }
 0x1a4   : > { %2309 = vst.msk [vmem:[%s3090_s13 + $0x48] sm:$0xff] %vm2299_vm4, %v2211_v2  ;;  %v1904_v28 = vadd.f32 %v1811_v32, %v1696_v58  ;;  %v2032_v61 = vsel %vm938_vm1, %v2030_v25, %v4828_v42  ;;  %v2126_v38 = vadd.f32 %v2030_v25, %v1903_v59  ;;  %v4130_v60 = vmul.f32 %v2674_v44, %v495_v37  ;;  %v489_v59 = vpop.f32.mrf.mxu0 }
 0x1a5   : > { %v1068_v6 = vadd.f32 %v964_v29, %v3917_v53  ;;  %v1114_v20 = vmul.f32 %v2695_v56, %v495_v37  ;;  %v647_v30 = vadd.f32 %v3651_v34, %v616_v33  ;;  %v752_v58 = vrot.slane %v682_v24, 1 }
 0x1a6   : > { %v2127_v0 = vadd.f32 %v2032_v61, %v1904_v28  ;;  %v4136_v11 = vmul.f32 %v2710_v1, %v495_v37  ;;  %v2247_v18 = vrot.slane %v2126_v38, 7  ;;  %v966_v21 = vrot.slane %v4130_v60, 2  ;;  %v4841_v60 = vld [vmem:[#allocation7_spill] sm:$0xff] }
 0x1a7   : > { %v1153_v57 = vadd.f32 %v1114_v20, %v1068_v6  ;;  %v4140_v25 = vmul.f32 %v2685_v51, %v495_v37  ;;  %v4142_v53 = vadd.f32 %v752_v58, %v647_v30  ;;  %v1593_v46 = vadd.f32 %v1487_v48, %v3925_v17  ;;  %v4830_v30 = vld [vmem:[#allocation2_spill] sm:$0xff] }
 0x1a8   : > { %v2248_v49 = vrot.slane %v2127_v0, 7  ;;  %v1268_v29 = vrot.slane %v4136_v11, 1  ;;  %v1640_v2 = vmul.f32 %v2712_v3, %v495_v37  ;;  %v4149_v43 = vmul.f32 %v2718_v7, %v495_v37 }
 0x1a9   : > { %v4152_v32 = vmul.f32 %v3608_v15, %v495_v37  ;;  %v4829_v17 = vrot.slane %v3968_v36, 2  ;;  %v4175_v38 = vmul.f32 %v2718_v7, %v4111_v9  ;;  %v4179_v6 = vmul.f32 %v3608_v15, %v4111_v9 }
 0x1aa   : > { %v2249_v28 = vsel %vm2186_vm3, %v2247_v18, %v2248_v49  ;;  %v2251_v42 = vsel %vm2186_vm3, %v2248_v49, %v2250_v19  ;;  %v4158_v61 = vadd.f32 %v1268_v29, %v1153_v57  ;;  %v1676_v37 = vadd.f32 %v1640_v2, %v1593_v46 }
 0x1ab   : > { %v1519_v48 = vsel %vm938_vm1, %v4829_v17, %v2715_v5  ;;  %2324 = vst.msk [vmem:[%s3090_s13 + $0xc0] sm:$0xff] %vm2299_vm4, %v2249_v28  ;;  %2325 = vst.msk [vmem:[%s3090_s13 + $0xc8] sm:$0xff] %vm2299_vm4, %v2251_v42  ;;  %v1789_v33 = vrot.slane %v4149_v43, 1  ;;  %v2003_v24 = vrot.slane %v4152_v32, 2  ;;  %v1656_v19 = vmul.f32 %v2712_v3, %v4111_v9 }
 0x1ac   : > { %v1617_v8 = vadd.f32 %v1519_v48, %v3990_v35  ;;  %v490_v20 = vadd.f32 %v3618_v26, %v489_v59  ;;  %v4831_v35 = vrot.slane %v3896_v23, 2  ;;  %v4832_v18 = vrot.slane %v3995_v63, 2 }
 0x1ad   : > { %v1884_v0 = vadd.f32 %v1789_v33, %v1676_v37  ;;  %v2005_v11 = vsel %vm938_vm1, %v2003_v24, %v4830_v30  ;;  %v1151_v49 = vadd.f32 %v2705_v62, %v4035_v13  ;;  %v1813_v2 = vrot.slane %v4175_v38, 1 }
 0x1ae   : > { %v963_v57 = vsel %vm938_vm1, %v4832_v18, %v4831_v35  ;;  %v1700_v46 = vadd.f32 %v1656_v19, %v1617_v8  ;;  %v2035_v43 = vrot.slane %v4179_v6, 2  ;;  %v615_v59 = vmul.f32 %v2668_v39, %v490_v20 }
 0x1af   : > { %v4196_v28 = vadd.f32 %v2005_v11, %v1884_v0  ;;  %v681_v42 = vmul.f32 %v2670_v40, %v490_v20  ;;  %v4200_v23 = vmul.f32 %v2674_v44, %v490_v20  ;;  %v1067_v63 = vadd.f32 %v963_v57, %v4030_v50 }
 0x1b0   : > { %v1908_v17 = vadd.f32 %v1813_v2, %v1700_v46  ;;  %v2037_v13 = vsel %vm938_vm1, %v2035_v43, %v4830_v30  ;;  %v646_v48 = vadd.f32 %v3651_v34, %v615_v59  ;;  %v1113_v37 = vmul.f32 %v2695_v56, %v490_v20 }
 0x1b1   : > { %v751_v19 = vrot.slane %v681_v42, 1  ;;  %v4686_v0 = vrot.slane %v4200_v23, 2  ;;  %v1197_v11 = vmul.f32 %v2710_v1, %v490_v20  ;;  %v4217_v18 = vmul.f32 %v2685_v51, %v490_v20 }
 0x1b2   : > { %v4214_v50 = vadd.f32 %v2037_v13, %v1908_v17  ;;  %v1152_v35 = vadd.f32 %v1113_v37, %v1067_v63  ;;  %v4833_v57 = vrot.slane %v3913_v4, 2  ;;  %v1639_v37 = vmul.f32 %v2712_v3, %v490_v20  ;;  %v569_v4 = vpop.f32.mrf.mxu1 }
 0x1b3   : > { %v753_v59 = vsel %vm730_vm2, %v751_v19, %v752_v58  ;;  %v845_v42 = vadd.f32 %v751_v19, %v2682_v47  ;;  %v1267_v52 = vrot.slane %v1197_v11, 1  ;;  %v4685_v63 = vrot.slane %v4217_v18, 2 }
 0x1b4   : > { %v1486_v46 = vsel %vm938_vm1, %v1484_v45, %v4833_v57  ;;  %v2255_v17 = vrot.slane %v4214_v50, 7  ;;  %v4228_v13 = vadd.f32 %v753_v59, %v646_v48  ;;  %v1674_v19 = vadd.f32 %v2727_v10, %v4058_v31 }
 0x1b5   : > { %v1592_v8 = vadd.f32 %v1486_v46, %v4046_v22  ;;  %v4234_v16 = vadd.f32 %v4686_v0, %v845_v42  ;;  %v1269_v45 = vsel %vm730_vm2, %v1267_v52, %v1268_v29  ;;  %v1363_v58 = vadd.f32 %v1267_v52, %v1151_v49  ;;  %v2496_v22 = vpop.f32.mrf.mxu0 }
 0x1b6   : > { %v4239_v11 = vadd.f32 %v1269_v45, %v1152_v35  ;;  %v1721_v57 = vmul.f32 %v2718_v7, %v490_v20  ;;  %v1930_v46 = vmul.f32 %v3608_v15, %v490_v20  ;;  %v4248_v42 = vadd.f32 %v3618_v26, %v569_v4 }
 0x1b7   : > { %v1675_v48 = vadd.f32 %v1639_v37, %v1592_v8  ;;  %v4245_v59 = vadd.f32 %v4685_v63, %v1363_v58  ;;  %v4834_v29 = vrot.slane %v3968_v36, 2  ;;  %v1698_v52 = vadd.f32 %v2727_v10, %v4099_v14 }
 0x1b8   : > { %v1788_v49 = vrot.slane %v1721_v57, 1  ;;  %v2002_v8 = vrot.slane %v1930_v46, 2  ;;  %v505_v35 = vadd.f32 %v3618_v26, %v2496_v22  ;;  %v1655_v37 = vmul.f32 %v2712_v3, %v4248_v42 }
 0x1b9   : > { %v1518_v31 = vsel %vm938_vm1, %v1516_v27, %v4834_v29  ;;  %v1737_v4 = vmul.f32 %v2718_v7, %v4248_v42  ;;  %v1946_v36 = vmul.f32 %v3608_v15, %v4248_v42  ;;  %v968_v12 = vsel %vm938_vm1, %v966_v21, %v2693_v55 }
 0x1ba   : > { %v1616_v20 = vadd.f32 %v1518_v31, %v4093_v54  ;;  %v1790_v27 = vsel %vm730_vm2, %v1788_v49, %v1789_v33  ;;  %v1882_v14 = vadd.f32 %v1788_v49, %v1674_v19  ;;  %v2004_v54 = vsel %vm938_vm1, %v2002_v8, %v2003_v24 }
 0x1bb   : > { %v618_v45 = vmul.f32 %v2668_v39, %v505_v35  ;;  %v1883_v58 = vadd.f32 %v1790_v27, %v1675_v48  ;;  %v1812_v57 = vrot.slane %v1737_v4, 1  ;;  %v2034_v46 = vrot.slane %v1946_v36, 2 }
 0x1bc   : > { %v1699_v22 = vadd.f32 %v1655_v37, %v1616_v20  ;;  %v2105_v29 = vadd.f32 %v2002_v8, %v1882_v14  ;;  %v4276_v63 = vmul.f32 %v2670_v40, %v505_v35  ;;  %v4279_v0 = vmul.f32 %v2674_v44, %v505_v35 }
 0x1bd   : > { %v649_v31 = vadd.f32 %v3651_v34, %v618_v45  ;;  %v2106_v33 = vadd.f32 %v2004_v54, %v1883_v58  ;;  %v1814_v32 = vsel %vm730_vm2, %v1812_v57, %v1813_v2  ;;  %v1906_v24 = vadd.f32 %v1812_v57, %v1698_v52 }
 0x1be   : > { %v2036_v19 = vsel %vm938_vm1, %v2034_v46, %v2035_v43  ;;  %v2212_v48 = vrot.slane %v2105_v29, 7  ;;  %v1907_v49 = vadd.f32 %v1814_v32, %v1699_v22  ;;  %v755_v8 = vrot.slane %v4276_v63, 1 }
 0x1bf   : > { %v970_v20 = vrot.slane %v4279_v0, 2  ;;  %v2213_v37 = vrot.slane %v2106_v33, 7  ;;  %v2129_v4 = vadd.f32 %v2034_v46, %v1906_v24  ;;  %v1071_v36 = vadd.f32 %v968_v12, %v4142_v53  ;;  %v499_v33 = vpop.f32.mrf.mxu0 }
 0x1c0   : > { %v1116_v38 = vmul.f32 %v2695_v56, %v505_v35  ;;  %v2130_v2 = vadd.f32 %v2036_v19, %v1907_v49  ;;  %v850_v52 = vadd.f32 %v755_v8, %v649_v31  ;;  %v1200_v43 = vmul.f32 %v2710_v1, %v505_v35  ;;  %v4837_v19 = vld [vmem:[#allocation3_spill] sm:$0xff] }
 0x1c1   : > { %v972_v6 = vsel %vm938_vm1, %v970_v20, %v2693_v55  ;;  %v2214_v27 = vsel %vm2186_vm3, %v2212_v48, %v2213_v37  ;;  %v4835_v63 = vrot.slane %v4196_v28, 7  ;;  %v2252_v54 = vrot.slane %v2129_v4, 7 }
 0x1c2   : > { %v1156_v45 = vadd.f32 %v1116_v38, %v1071_v36  ;;  %2310 = vst.msk [vmem:[%s3090_s13 + $0x50] sm:$0xff] %vm2299_vm4, %v2214_v27  ;;  %v2253_v53 = vrot.slane %v2130_v2, 7  ;;  %v1074_v12 = vadd.f32 %v972_v6, %v850_v52  ;;  %v1271_v58 = vrot.slane %v1200_v43, 1  ;;  %v4838_v38 = vld [vmem:[#allocation4_spill] sm:$0xff] }
 0x1c3   : > { %v2216_v14 = vsel %vm2186_vm3, %v2213_v37, %v4835_v63  ;;  %v4305_v22 = vmul.f32 %v2685_v51, %v505_v35  ;;  %v4836_v57 = vrot.slane %v4140_v25, 2  ;;  %v1642_v46 = vmul.f32 %v2712_v3, %v505_v35 }
 0x1c4   : > { %2311 = vst.msk [vmem:[%s3090_s13 + $0x58] sm:$0xff] %vm2299_vm4, %v2216_v14  ;;  %v4313_v29 = vmul.f32 %v2718_v7, %v505_v35  ;;  %v4316_v31 = vmul.f32 %v3608_v15, %v505_v35  ;;  %v2254_v32 = vsel %vm2186_vm3, %v2252_v54, %v2253_v53  ;;  %v2256_v24 = vsel %vm2186_vm3, %v2253_v53, %v2255_v17 }
 0x1c5   : > { %v1491_v28 = vsel %vm938_vm1, %v4836_v57, %v2715_v5  ;;  %v1159_v48 = vadd.f32 %v4837_v19, %v1074_v12  ;;  %v1368_v49 = vadd.f32 %v1271_v58, %v1156_v45  ;;  %2326 = vst.msk [vmem:[%s3090_s13 + $0xd0] sm:$0xff] %vm2299_vm4, %v2254_v32  ;;  %2327 = vst.msk [vmem:[%s3090_s13 + $0xd8] sm:$0xff] %vm2299_vm4, %v2256_v24  ;;  %v1493_v37 = vrot.slane %v4305_v22, 2  ;;  %v4842_v57 = vld [vmem:[#allocation5_spill] sm:$0xff] }
 0x1c6   : > { %v1596_v4 = vadd.f32 %v1491_v28, %v4158_v61  ;;  %v1792_v35 = vrot.slane %v4313_v29, 1  ;;  %v2007_v36 = vrot.slane %v4316_v31, 2  ;;  %v4839_v2 = vrot.slane %v4838_v38, 1 }
 0x1c7   : > { %v500_v17 = vadd.f32 %v3618_v26, %v499_v33  ;;  %v4840_v52 = vrot.slane %v4200_v23, 2  ;;  %v1154_v43 = vadd.f32 %v2705_v62, %v4234_v16  ;;  %v1495_v61 = vsel %vm938_vm1, %v1493_v37, %v2715_v5 }
 0x1c8   : > { %v1371_v50 = vadd.f32 %v4839_v2, %v1159_v48  ;;  %v1679_v27 = vadd.f32 %v1642_v46, %v1596_v4  ;;  %v2009_v63 = vsel %vm938_vm1, %v2007_v36, %v4830_v30  ;;  %v1599_v54 = vadd.f32 %v1495_v61, %v1368_v49  ;;  %v4843_v46 = vld [vmem:[#allocation19_spill] sm:$0xff]  ;;  %v4844_v4 = vld [vmem:[#allocation6_spill] sm:$0xff] }
 0x1c9   : > { %v967_v6 = vsel %vm938_vm1, %v4840_v52, %v966_v21  ;;  %v617_v23 = vmul.f32 %v2668_v39, %v500_v17  ;;  %v683_v21 = vmul.f32 %v2670_v40, %v500_v17  ;;  %v891_v53 = vmul.f32 %v2674_v44, %v500_v17 }
 0x1ca   : > { %v1070_v14 = vadd.f32 %v967_v6, %v4228_v13  ;;  %v1602_v45 = vadd.f32 %v4841_v60, %v1371_v50  ;;  %v1887_v16 = vadd.f32 %v1792_v35, %v1679_v27  ;;  %v1115_v12 = vmul.f32 %v2695_v56, %v500_v17  ;;  %v4846_v50 = vld [vmem:[#allocation20_spill] sm:$0xff] }
 0x1cb   : > { %v1199_v22 = vmul.f32 %v2710_v1, %v500_v17  ;;  %v1682_v28 = vadd.f32 %v4842_v57, %v1599_v54  ;;  %v648_v33 = vadd.f32 %v3651_v34, %v617_v23  ;;  %v754_v32 = vrot.slane %v683_v21, 1  ;;  %v4849_v21 = vld [vmem:[#allocation21_spill] sm:$0xff] }
 0x1cc   : > { %v1685_v13 = vadd.f32 %v4843_v46, %v1602_v45  ;;  %v4359_v24 = vadd.f32 %v2009_v63, %v1887_v16  ;;  %v969_v19 = vrot.slane %v891_v53, 2  ;;  %v1155_v48 = vadd.f32 %v1115_v12, %v1070_v14  ;;  %v4848_v45 = vld [vmem:[#allocation8_spill] sm:$0xff] }
 0x1cd   : > { %v1270_v49 = vrot.slane %v1199_v22, 1  ;;  %v4845_v38 = vrot.slane %v4844_v4, 1  ;;  %v4847_v52 = vrot.slane %v4846_v50, 1  ;;  %v756_v61 = vsel %vm730_vm2, %v754_v32, %v755_v8 }
 0x1ce   : > { %v848_v27 = vadd.f32 %v754_v32, %v2682_v47  ;;  %v2220_v54 = vrot.slane %v4359_v24, 7  ;;  %v849_v60 = vadd.f32 %v756_v61, %v648_v33  ;;  %v971_v63 = vsel %vm938_vm1, %v969_v19, %v970_v20  ;;  %v4852_v32 = vld [vmem:[#allocation9_spill] sm:$0xff] }
 0x1cf   : > { %v1890_v2 = vadd.f32 %v4845_v38, %v1682_v28  ;;  %v1893_v6 = vadd.f32 %v4847_v52, %v1685_v13  ;;  %v1272_v14 = vsel %vm730_vm2, %v1270_v49, %v1271_v58  ;;  %v1366_v12 = vadd.f32 %v1270_v49, %v1154_v43  ;;  %v2520_v49 = vpop.f32.mrf.mxu1 }
 0x1d0   : > { %v1072_v53 = vadd.f32 %v969_v19, %v848_v27  ;;  %v1073_v8 = vadd.f32 %v971_v63, %v849_v60  ;;  %v1367_v22 = vadd.f32 %v1272_v14, %v1155_v48  ;;  %v1412_v57 = vmul.f32 %v2685_v51, %v500_v17  ;;  %v4856_v14 = vld [vmem:[#allocation11_spill] sm:$0xff] }
 0x1d1   : > { %v4373_v23 = vadd.f32 %v4848_v45, %v1890_v2  ;;  %v4376_v16 = vadd.f32 %v4849_v21, %v1893_v6  ;;  %v4850_v28 = vrot.slane %v4140_v25, 2  ;;  %v4851_v0 = vrot.slane %v4217_v18, 2  ;;  %v4853_v18 = vld [vmem:[#allocation10_spill] sm:$0xff] }
 0x1d2   : > { %v1157_v13 = vadd.f32 %v2705_v62, %v1072_v53  ;;  %v1158_v43 = vadd.f32 %v4852_v32, %v1073_v8  ;;  %v1492_v19 = vrot.slane %v1412_v57, 2  ;;  %v1641_v48 = vmul.f32 %v2712_v3, %v500_v17  ;;  %v4858_v53 = vld [vmem:[#allocation16_spill] sm:$0xff]  ;;  %v4862_v32 = vld [vmem:[#allocation13_spill] sm:$0xff] }
 0x1d3   : > { %v1490_v20 = vsel %vm938_vm1, %v4851_v0, %v4850_v28  ;;  %v2225_v58 = vrot.slane %v4373_v23, 7  ;;  %v2230_v46 = vrot.slane %v4376_v16, 7  ;;  %v1677_v25 = vadd.f32 %v2727_v10, %v4245_v59  ;;  %v4860_v28 = vld [vmem:[#allocation12_spill] sm:$0xff] }
 0x1d4   : > { %v1595_v33 = vadd.f32 %v1490_v20, %v4239_v11  ;;  %v4854_v4 = vrot.slane %v4853_v18, 1  ;;  %v1723_v2 = vmul.f32 %v2718_v7, %v500_v17  ;;  %v1932_v50 = vmul.f32 %v3608_v15, %v500_v17  ;;  %v4855_v11 = vld [vmem:[#allocation15_spill] sm:$0xff]  ;;  %v4859_v15 = vld [vmem:[#allocation28_spill] sm:$0xff]  ;;  %v4861_v20 = vld [vmem:[#allocation22_spill] sm:$0xff] }
 0x1d5   : > { %v4397_v52 = vadd.f32 %v3618_v26, %v2520_v49  ;;  %v1370_v6 = vadd.f32 %v4855_v11, %v1158_v43  ;;  %v1494_v61 = vsel %vm938_vm1, %v1492_v19, %v1493_v37  ;;  %v1597_v27 = vadd.f32 %v1492_v19, %v1366_v12  ;;  %v4864_v49 = vld [vmem:[#allocation17_spill] sm:$0xff] }
 0x1d6   : > { %v1369_v38 = vadd.f32 %v4854_v4, %v1157_v13  ;;  %v1678_v60 = vadd.f32 %v1641_v48, %v1595_v33  ;;  %v1598_v63 = vadd.f32 %v1494_v61, %v1367_v22  ;;  %v4857_v59 = vrot.slane %v4856_v14, 2  ;;  %v4865_v4 = vld [vmem:[#allocation23_spill] sm:$0xff]  ;;  %v4871_v14 = vld [vmem:[#allocation24_spill] sm:$0xff] }
 0x1d7   : > { %v1791_v23 = vrot.slane %v1723_v2, 1  ;;  %v2006_v21 = vrot.slane %v1932_v50, 2  ;;  %v1601_v8 = vadd.f32 %v4858_v53, %v1370_v6  ;;  %v1680_v57 = vadd.f32 %v2727_v10, %v1597_v27  ;;  %v4868_v6 = vld [vmem:[#allocation14_spill] sm:$0xff] }
 0x1d8   : > { %v1600_v45 = vadd.f32 %v4857_v59, %v1369_v38  ;;  %v630_v26 = vmul.f32 %v2668_v39, %v4859_v15  ;;  %v632_v17 = vmul.f32 %v2668_v39, %v4111_v9  ;;  %v1681_v37 = vadd.f32 %v4860_v28, %v1598_v63  ;;  %v4870_v63 = vld [vmem:[#allocation18_spill] sm:$0xff] }
 0x1d9   : > { %v1793_v22 = vsel %vm730_vm2, %v1791_v23, %v1792_v35  ;;  %v1885_v0 = vadd.f32 %v1791_v23, %v1677_v25  ;;  %v1684_v13 = vadd.f32 %v4861_v20, %v1601_v8  ;;  %v4863_v43 = vrot.slane %v4862_v32, 1  ;;  %v4867_v35 = vld [vmem:[#allocation25_spill] sm:$0xff] }
 0x1da   : > { %v1683_v12 = vadd.f32 %v2727_v10, %v1600_v45  ;;  %v1886_v33 = vadd.f32 %v1793_v22, %v1678_v60  ;;  %v2008_v48 = vsel %vm938_vm1, %v2006_v21, %v2007_v36  ;;  %v1889_v18 = vadd.f32 %v4864_v49, %v1681_v37 }
 0x1db   : > { %v1888_v19 = vadd.f32 %v4863_v43, %v1680_v57  ;;  %v4866_v38 = vrot.slane %v4865_v4, 1  ;;  %v2108_v50 = vadd.f32 %v2006_v21, %v1885_v0  ;;  %v661_v29 = vadd.f32 %v3651_v34, %v630_v26  ;;  %v4873_v21 = vld [vmem:[#allocation26_spill] sm:$0xff] }
 0x1dc   : > { %v1892_v25 = vadd.f32 %v4867_v35, %v1684_v13  ;;  %v2109_v11 = vadd.f32 %v2008_v48, %v1886_v33  ;;  %v4869_v61 = vrot.slane %v4868_v6, 2  ;;  %v663_v60 = vadd.f32 %v3651_v34, %v632_v17 }
 0x1dd   : > { %v1891_v2 = vadd.f32 %v4866_v38, %v1683_v12  ;;  %v2112_v31 = vadd.f32 %v4870_v63, %v1889_v18  ;;  %v4872_v36 = vrot.slane %v4871_v14, 2  ;;  %v2217_v45 = vrot.slane %v2108_v50, 7 }
 0x1de   : > { %v2111_v27 = vadd.f32 %v4869_v61, %v1888_v19  ;;  %v4433_v23 = vmul.f32 %v2670_v40, %v4859_v15  ;;  %v2115_v53 = vadd.f32 %v4873_v21, %v1892_v25  ;;  %v2218_v8 = vrot.slane %v2109_v11, 7 }
 0x1df   : > { %v2114_v59 = vadd.f32 %v4872_v36, %v1891_v2  ;;  %v4438_v26 = vmul.f32 %v2670_v40, %v4111_v9  ;;  %v2223_v34 = vrot.slane %v2112_v31, 7  ;;  %v4443_v37 = vmul.f32 %v2674_v44, %v4859_v15 }
 0x1e0   : > { %v2222_v57 = vrot.slane %v2111_v27, 7  ;;  %v773_v28 = vrot.slane %v4433_v23, 1  ;;  %v2219_v12 = vsel %vm2186_vm3, %v2217_v45, %v2218_v8  ;;  %v2221_v22 = vsel %vm2186_vm3, %v2218_v8, %v2220_v54  ;;  %v579_v27 = vpop.f32.mrf.mxu1 }
 0x1e1   : > { %v2227_v17 = vrot.slane %v2114_v59, 7  ;;  %v2228_v0 = vrot.slane %v2115_v53, 7  ;;  %v776_v20 = vrot.slane %v4438_v26, 1  ;;  %v2226_v33 = vsel %vm2186_vm3, %v2223_v34, %v2225_v58  ;;  %2312 = vst.msk [vmem:[%s3090_s13 + $0x60] sm:$0xff] %vm2299_vm4, %v2219_v12  ;;  %2313 = vst.msk [vmem:[%s3090_s13 + $0x68] sm:$0xff] %vm2299_vm4, %v2221_v22 }
 0x1e2   : > { %v2224_v13 = vsel %vm2186_vm3, %v2222_v57, %v2223_v34  ;;  %v868_v15 = vadd.f32 %v773_v28, %v661_v29  ;;  %v4460_v24 = vmul.f32 %v2674_v44, %v4111_v9  ;;  %2315 = vst.msk [vmem:[%s3090_s13 + $0x78] sm:$0xff] %vm2299_vm4, %v2226_v33  ;;  %v994_v43 = vrot.slane %v4443_v37, 2  ;;  %v2536_v53 = vld [vmem:[%s4611_s2] ss:$0 sm:$0xff] }
 0x1e3   : > { %v2229_v54 = vsel %vm2186_vm3, %v2227_v17, %v2228_v0  ;;  %v2231_v32 = vsel %vm2186_vm3, %v2228_v0, %v2230_v46  ;;  %2314 = vst.msk [vmem:[%s3090_s13 + $0x70] sm:$0xff] %vm2299_vm4, %v2224_v13  ;;  %v871_v58 = vadd.f32 %v776_v20, %v663_v60  ;;  %v1130_v48 = vmul.f32 %v2695_v56, %v4111_v9  ;;  %v2537_v34 = vld [vmem:[%s4613_s4] ss:$0 sm:$0xff] }
 0x1e4   : > { %2316 = vst.msk [vmem:[%s3090_s13 + $0x80] sm:$0xff] %vm2299_vm4, %v2229_v54  ;;  %2317 = vst.msk [vmem:[%s3090_s13 + $0x88] sm:$0xff] %vm2299_vm4, %v2231_v32  ;;  %v998_v19 = vrot.slane %v4460_v24, 2  ;;  %v1132_v16 = vmul.f32 %v2695_v56, %v4397_v52  ;;  %v4482_v46 = vmul.f32 %v2710_v1, %v4111_v9  ;;  %v996_v49 = vsel %vm938_vm1, %v994_v43, %v2693_v55 }
 0x1e5   : > { %v4488_v18 = vmul.f32 %v2710_v1, %v4397_v52  ;;  %v4492_v4 = vmul.f32 %v2685_v51, %v4111_v9  ;;  %v4496_v38 = vmul.f32 %v2685_v51, %v4397_v52  ;;  %v1092_v50 = vadd.f32 %v996_v49, %v868_v15 }
 0x1e6   : > { %v1000_v2 = vsel %vm938_vm1, %v998_v19, %v2693_v55  ;;  %v1292_v9 = vrot.slane %v4482_v46, 1  ;;  %v1658_v55 = vmul.f32 %v2712_v3, %v4397_v52  ;;  %v4512_v63 = vmul.f32 %v2718_v7, %v4397_v52 }
 0x1e7   : > { %v1095_v29 = vadd.f32 %v1000_v2, %v871_v58  ;;  %v1295_v35 = vrot.slane %v4488_v18, 1  ;;  %v1525_v25 = vrot.slane %v4496_v38, 2  ;;  %v1521_v11 = vrot.slane %v4492_v4, 2 }
 0x1e8   : > { %v1177_v6 = vadd.f32 %v1130_v48, %v1092_v50  ;;  %v1741_v31 = vmul.f32 0.0, %v2718_v7  ;;  %v629_v36 = vmul.f32 %v2668_v39, %v4049_v41  ;;  %v631_v59 = vmul.f32 %v2668_v39, %v4248_v42 }
 0x1e9   : > { %v1180_v61 = vadd.f32 %v1132_v16, %v1095_v29  ;;  %v1527_v60 = vsel %vm938_vm1, %v1525_v25, %v2715_v5  ;;  %v695_v45 = vmul.f32 %v2670_v40, %v4049_v41  ;;  %v1523_v21 = vsel %vm938_vm1, %v1521_v11, %v2715_v5 }
 0x1ea   : > { %v580_v8 = vadd.f32 %v2536_v53, %v579_v27  ;;  %v697_v57 = vmul.f32 %v2670_v40, %v4248_v42  ;;  %v903_v26 = vmul.f32 %v2674_v44, %v4049_v41  ;;  %v1389_v39 = vadd.f32 %v1292_v9, %v1177_v6  ;;  %v2538_v40 = vld [vmem:[%s4612_s3 + $0x8] ss:$0 sm:$0xff] }
 0x1eb   : > { %v1392_v14 = vadd.f32 %v1295_v35, %v1180_v61  ;;  %v660_v17 = vadd.f32 %v2537_v34, %v629_v36  ;;  %v662_v37 = vadd.f32 %v2537_v34, %v631_v59  ;;  %v772_v12 = vrot.slane %v695_v45, 1 }
 0x1ec   : > { %v775_v22 = vrot.slane %v697_v57, 1  ;;  %v905_v0 = vmul.f32 %v2674_v44, %v4248_v42  ;;  %v993_v13 = vrot.slane %v903_v26, 2  ;;  %v4539_v33 = vrot.slane %v1741_v31, 1 }
 0x1ed   : > { %v1623_v5 = vadd.f32 %v1527_v60, %v1392_v14  ;;  %v4545_v41 = vmul.f32 %v2538_v40, %v4397_v52  ;;  %v774_v15 = vsel %vm730_vm2, %v772_v12, %v773_v28  ;;  %v866_v24 = vadd.f32 %v772_v12, %v2682_v47 }
 0x1ee   : > { %v777_v54 = vsel %vm730_vm2, %v775_v22, %v776_v20  ;;  %v867_v32 = vadd.f32 %v774_v15, %v660_v17  ;;  %v869_v44 = vadd.f32 %v775_v22, %v2682_v47  ;;  %v1129_v58 = vmul.f32 %v2695_v56, %v4248_v42 }
 0x1ef   : > { %v1620_v48 = vadd.f32 %v1523_v21, %v1389_v39  ;;  %v870_v16 = vadd.f32 %v777_v54, %v662_v37  ;;  %v995_v46 = vsel %vm938_vm1, %v993_v13, %v994_v43  ;;  %v997_v52 = vrot.slane %v905_v0, 2 }
 0x1f0   : > { %v1706_v49 = vadd.f32 %v2727_v10, %v1623_v5  ;;  %v1090_v23 = vadd.f32 %v993_v13, %v866_v24  ;;  %v1091_v2 = vadd.f32 %v995_v46, %v867_v32  ;;  %v1131_v28 = vmul.f32 %v2695_v56, %v580_v8 }
 0x1f1   : > { %v1816_v50 = vrot.slane %v4512_v63, 1  ;;  %v999_v20 = vsel %vm938_vm1, %v997_v52, %v998_v19  ;;  %v1093_v29 = vadd.f32 %v997_v52, %v869_v44  ;;  %v1213_v47 = vmul.f32 %v2710_v1, %v4248_v42 }
 0x1f2   : > { %v2039_v6 = vrot.slane %v4545_v41, 2  ;;  %v1094_v61 = vadd.f32 %v999_v20, %v870_v16  ;;  %v1175_v43 = vadd.f32 %v2705_v62, %v1090_v23  ;;  %v1176_v27 = vadd.f32 %v1129_v58, %v1091_v2 }
 0x1f3   : > { %v1703_v60 = vadd.f32 %v1658_v55, %v1620_v48  ;;  %v1178_v31 = vadd.f32 %v2705_v62, %v1093_v29  ;;  %v1215_v14 = vmul.f32 %v2710_v1, %v580_v8  ;;  %v1291_v56 = vrot.slane %v1213_v47, 1 }
 0x1f4   : > { %v1914_v63 = vadd.f32 %v4539_v33, %v1706_v49  ;;  %v1179_v36 = vadd.f32 %v1131_v28, %v1094_v61  ;;  %v1426_v19 = vmul.f32 %v2685_v51, %v4248_v42  ;;  %v1428_v59 = vmul.f32 %v2685_v51, %v580_v8 }
 0x1f5   : > { %v1293_v45 = vsel %vm730_vm2, %v1291_v56, %v1292_v9  ;;  %v1294_v21 = vrot.slane %v1215_v14, 1  ;;  %v1387_v53 = vadd.f32 %v1291_v56, %v1175_v43  ;;  %v1739_v57 = vmul.f32 %v2718_v7, %v580_v8 }
 0x1f6   : > { %v1388_v55 = vadd.f32 %v1293_v45, %v1176_v27  ;;  %v1520_v26 = vrot.slane %v1426_v19, 2  ;;  %v1524_v62 = vrot.slane %v1428_v59, 2  ;;  %v1948_v39 = vmul.f32 %v2538_v40, %v580_v8 }
 0x1f7   : > { %v1296_v1 = vsel %vm730_vm2, %v1294_v21, %v1295_v35  ;;  %v1390_v34 = vadd.f32 %v1294_v21, %v1178_v31  ;;  %v1657_v17 = vmul.f32 %v2712_v3, %v580_v8  ;;  %v1815_v42 = vrot.slane %v1739_v57, 1 }
 0x1f8   : > { %v1391_v37 = vadd.f32 %v1296_v1, %v1179_v36  ;;  %v1522_v51 = vsel %vm938_vm1, %v1520_v26, %v1521_v11  ;;  %v1526_v7 = vsel %vm938_vm1, %v1524_v62, %v1525_v25  ;;  %v1618_v9 = vadd.f32 %v1520_v26, %v1387_v53 }
 0x1f9   : > { %v1911_v12 = vadd.f32 %v1816_v50, %v1703_v60  ;;  %v2041_v18 = vsel %vm938_vm1, %v2039_v6, %v4830_v30  ;;  %v1619_v5 = vadd.f32 %v1522_v51, %v1388_v55  ;;  %v1621_v35 = vadd.f32 %v1524_v62, %v1390_v34 }
 0x1fa   : > { %v1622_v22 = vadd.f32 %v1526_v7, %v1391_v37  ;;  %v1701_v3 = vadd.f32 %v2727_v10, %v1618_v9  ;;  %v1817_v8 = vsel %vm730_vm2, %v1815_v42, %v1816_v50  ;;  %v2038_v0 = vrot.slane %v1948_v39, 2 }
 0x1fb   : > { %v1702_v4 = vadd.f32 %v1657_v17, %v1619_v5  ;;  %v1704_v11 = vadd.f32 %v2727_v10, %v1621_v35  ;;  %v2137_v38 = vadd.f32 %v4830_v30, %v1914_v63  ;;  %v2134_v40 = vadd.f32 %v2041_v18, %v1911_v12 }
 0x1fc   : > { %v1705_v25 = vadd.f32 %v2727_v10, %v1622_v22  ;;  %v1909_v13 = vadd.f32 %v1815_v42, %v1701_v3  ;;  %v2040_v54 = vsel %vm938_vm1, %v2038_v0, %v2039_v6 }
 0x1fd   : > { %v1910_v41 = vadd.f32 %v1817_v8, %v1702_v4  ;;  %v1912_v15 = vadd.f32 %v4539_v33, %v1704_v11  ;;  %v2265_v48 = vrot.slane %v2137_v38, 7  ;;  %v2260_v46 = vrot.slane %v2134_v40, 7 }
 0x1fe   : > { %v1913_v24 = vadd.f32 %v4539_v33, %v1705_v25  ;;  %v2132_v32 = vadd.f32 %v2038_v0, %v1909_v13 }
 0x1ff   : > { %v2133_v44 = vadd.f32 %v2040_v54, %v1910_v41  ;;  %v2135_v58 = vadd.f32 %v4830_v30, %v1912_v15 }
 0x200   : > { %v2136_v10 = vadd.f32 %v4830_v30, %v1913_v24  ;;  %v2257_v16 = vrot.slane %v2132_v32, 7 }
 0x201   : > { %v2258_v52 = vrot.slane %v2133_v44, 7  ;;  %v2262_v49 = vrot.slane %v2135_v58, 7 }
 0x202   : > { %v2263_v23 = vrot.slane %v2136_v10, 7 }
 0x203   : > { %v2259_v33 = vsel %vm2186_vm3, %v2257_v16, %v2258_v52  ;;  %v2261_v2 = vsel %vm2186_vm3, %v2258_v52, %v2260_v46 }
 0x204   : > { %v2264_v28 = vsel %vm2186_vm3, %v2262_v49, %v2263_v23  ;;  %v2266_v50 = vsel %vm2186_vm3, %v2263_v23, %v2265_v48  ;;  %2328 = vst.msk [vmem:[%s3090_s13 + $0xe0] sm:$0xff] %vm2299_vm4, %v2259_v33  ;;  %2329 = vst.msk [vmem:[%s3090_s13 + $0xe8] sm:$0xff] %vm2299_vm4, %v2261_v2 }
 0x205   : > { %2330 = vst.msk [vmem:[%s3090_s13 + $0xf0] sm:$0xff] %vm2299_vm4, %v2264_v28  ;;  %2331 = vst.msk [vmem:[%s3090_s13 + $0xf8] sm:$0xff] %vm2299_vm4, %v2266_v50 }
 0x206 PF: > { %s15_s18 = sadd.s32 1, %s2545_s18  }
 0x207   : > { %p12_p4 = scmp.ge.s32.totalorder %s15_s18, 4  }
 0x209   :  { %14 = sbr.rel (!%p12_p4) target bundleno = 1 (0x1), region = 70 }

// kernel: mdta_forward.3
= control target key start
LH: loop header
LB: loop body
LE: loop exit
PB: predicated region body
PF: predicated region fallthrough
CT: control target
= control target key end

     0   :  { %9 = vsyncpa [#allocation3], 0  ;;  %s7300_s15 = smov 0   ;;  %s10598_s0 = inlined_call_operand.vmem [shape: f32[4], index: 0, kind: input, shape index: {}]   ;;  %s10599_s1 = inlined_call_operand.vmem [shape: f32[2,256,48], index: 1, kind: input, shape index: {}]   ;;  %s10600_s2 = inlined_call_operand.vmem [shape: f32[16,16], index: 2, kind: input, shape index: {}]   ;;  %s10601_s3 = inlined_call_operand.vmem [shape: f32[1,16], index: 3, kind: input, shape index: {}]   ;;  %s10602_s4 = inlined_call_operand.vmem [shape: f32[2,256,16], index: 4, kind: output, shape index: {}]  }
   0x1 LB: > { %s5588_s16 = sadd.s32 4294967295, %s7261_s15   ;;  %p5590_p0 = scmp.ge.s32.totalorder %s7261_s15, 1  ;;  %s7261_s15 = sphi %s7300_s15, %s15_s15  }
   0x2   : > { %p135_p1 = scmp.lt.s32.totalorder %s7261_s15, 3  ;;  %s148_s19 = sshll.u32 %s10598_s0, 4  ;;  %s149_s19 = int_to_ptr.vmem [resolvable:$true] %s148_s19 }
   0x3   : > { %p6685_p3 = scmp.eq.s32.totalorder %s5588_s16, 0  ;;  %s7236_s21 = scalar_lea.vmem %s149_s19, 16 }
   0x4   : > { %p7311_p2 = pnand %p5590_p0, %p135_p1  ;;  %p7237_p6 = scmp.ne.s32.totalorder %s149_s19, %s7236_s21 }
   0x5   : > { %p7244_p10 = scmp.lt.s32.totalorder %s149_s19, %s149_s19  ;;  %p7245_p11 = scmp.lt.s32.totalorder %s7236_s21, %s7236_s21 }
   0x6   : > { %p6681_p4 = pneg %p7311_p2 }
   0x7   : > { %p7246_p12 = por %p7245_p11, %p7244_p10 }
   0x8   : > { %p6682_p5 = pnand %p6685_p3, %p6681_p4 }
   0xa   : > { %p7238_p7 = pneg %p6682_p5 }
   0xc   : > { %p7239_p8 = pnand %p7238_p7, %p7237_p6 }
   0xe   : > { %p7240_p9 = pneg %p7239_p8 }
  0x10   : > { %p7247_p13 = pnand %p7246_p12, %p7240_p9 }
  0x12   : > { %7250 = shalt.err (!%p7247_p13)
}
  0x13   : > { %s7263_s22 = smov [#allocation2]   ;;  %175 = sbr.rel (%p7311_p2) target bundleno = 3057 (0xbf1), region = 36 }
  0x14   : > { %6684 = dma.vmem_to_smem (!%p6682_p5), %s149_s19, 16, %s7263_s22, [#allocation3]  }
  0x18   : > { %7256 = dma.done.wait (%p6685_p3), [#allocation3], 16  }
  0x19   : > { %7258 = vsyncadd (%p6685_p3), [#allocation3], 4294967280 }
  0x1a   : > { %181 = sfence }
  0x1b   : > { %p202_p0 = scmp.lt.s32.totalorder %s5588_s16, 1  ;;  %vm390_vm0 = vcmask 162944   ;;  %vm1516_vm1 = vcmask 64544   ;;  %s7264_s27 = smov 112   ;;  %vm286_vm2 = vcmask 31744   ;;  %vm1620_vm3 = vcmask 195744  }
  0x1c   : > { %s7265_s28 = smov 96   ;;  %s7266_s29 = smov 124   ;;  %vm759_vm4 = vcmask 27648   ;;  %vm2840_vm5 = vcmask 97344   ;;  %vm2944_vm6 = vcmask 228544   ;;  %vm1255_vm7 = vcmask 1043456  }
  0x1d   : > { %s11158_s16 = smov (!%p202_p0, %s5588_s16), 1  ;;  %s7267_s30 = smov 108   ;;  %vm4164_vm8 = vcmask 130144   ;;  %vm4268_vm9 = vcmask 261344   ;;  %vm5488_vm10 = vcmask 130048  }
  0x1e   : > { %s5869_s23 = sshll.u32 %s11158_s16, 8  ;;  %s756_s5 = sld [smem:[#allocation2]] }
  0x1f   : > { %s7330_s26 = scalar_lea.vmem %s10599_s1, %s5869_s23  ;;  %s7268_s6 = smov 92  }
  0x20   : > { %v7333_v0 = vld [vmem:[%s7330_s26] sm:$0xff]  ;;  %v7336_v1 = vld [vmem:[%s7330_s26 + $0x8] sm:$0xff]  ;;  %v7339_v2 = vld [vmem:[%s7330_s26 + $0x10] sm:$0xff]  ;;  %s7269_s7 = smov 120   ;;  %s7270_s8 = smov 104  }
  0x21   : > { %10762 = vst [vmem:[#allocation5_spill] sm:$0xff] %v7333_v0  ;;  %10763 = vst [vmem:[#allocation6_spill] sm:$0xff] %v7336_v1  ;;  %v7342_v3 = vld [vmem:[%s7330_s26 + $0x18] sm:$0xff]  ;;  %v7346_v4 = vmul.f32 %v7333_v0, %v7333_v0  ;;  %v7350_v5 = vmul.f32 %v7336_v1, %v7336_v1  ;;  %v7354_v6 = vmul.f32 %v7339_v2, %v7339_v2  ;;  %v7357_v7 = vld [vmem:[%s7330_s26 + $0x20] sm:$0xff]  ;;  %s5666_s11 = sld [smem:[#allocation2 + $0x1]]  ;;  %s7271_s12 = smov 88  }
  0x22   : > { %10764 = vst [vmem:[#allocation7_spill] sm:$0xff] %v7339_v2  ;;  %10765 = vst [vmem:[#allocation8_spill] sm:$0xff] %v7342_v3  ;;  %v7361_v8 = vmul.f32 %v7342_v3, %v7342_v3  ;;  %v7364_v9 = vld [vmem:[%s7330_s26 + $0x28] sm:$0xff]  ;;  %v7368_v10 = vmul.f32 %v7357_v7, %v7357_v7  ;;  %v7377_v14 = vld [vmem:[%s7330_s26 + $0x30] sm:$0xff]  ;;  %s7272_s13 = smov 116   ;;  %s7273_s14 = smov 100  }
  0x23   : > { %10766 = vst [vmem:[#allocation9_spill] sm:$0xff] %v7346_v4  ;;  %10767 = vst [vmem:[#allocation10_spill] sm:$0xff] %v7350_v5  ;;  %v391_v11 = vsel %vm390_vm0, %v7346_v4, 0.0  ;;  %v392_v12 = vsel %vm390_vm0, %v7350_v5, 0.0  ;;  %v394_v13 = vsel %vm390_vm0, %v7354_v6, 0.0  ;;  %v7381_v16 = vmul.f32 %v7364_v9, %v7364_v9  ;;  %v7386_v18 = vld [vmem:[%s7330_s26 + $0x38] sm:$0xff] }
  0x24   : > { %10768 = vst [vmem:[#allocation11_spill] sm:$0xff] %v7354_v6  ;;  %10769 = vst [vmem:[#allocation12_spill] sm:$0xff] %v7357_v7  ;;  %v393_v15 = vadd.f32 %v392_v12, %v391_v11  ;;  %v396_v17 = vsel %vm390_vm0, %v7361_v8, 0.0  ;;  %v7390_v20 = vmul.f32 %v7377_v14, %v7377_v14  ;;  %v398_v21 = vsel %vm390_vm0, %v7368_v10, 0.0  ;;  %v7395_v22 = vld [vmem:[%s7330_s26 + $0x40] sm:$0xff]  ;;  %v7404_v26 = vld [vmem:[%s7330_s26 + $0x48] sm:$0xff] }
  0x25   : > { %10770 = vst [vmem:[#allocation13_spill] sm:$0xff] %v7361_v8  ;;  %10771 = vst [vmem:[#allocation14_spill] sm:$0xff] %v7364_v9  ;;  %v7399_v24 = vmul.f32 %v7386_v18, %v7386_v18  ;;  %v400_v25 = vsel %vm390_vm0, %v7381_v16, 0.0  ;;  %v7408_v28 = vmul.f32 %v7395_v22, %v7395_v22  ;;  %v7413_v30 = vld [vmem:[%s7330_s26 + $0x50] sm:$0xff]  ;;  %v7417_v32 = vmul.f32 %v7404_v26, %v7404_v26  ;;  %v7422_v34 = vld [vmem:[%s7330_s26 + $0x58] sm:$0xff]  ;;  %s5733_s17 = sld [smem:[#allocation2 + $0x2]] }
  0x26   : > { %10772 = vst [vmem:[#allocation15_spill] sm:$0xff] %v7368_v10  ;;  %10773 = vst [vmem:[#allocation16_spill] sm:$0xff] %v7377_v14  ;;  %v395_v19 = vadd.f32 %v394_v13, %v393_v15  ;;  %v402_v29 = vsel %vm390_vm0, %v7390_v20, 0.0  ;;  %v7426_v36 = vmul.f32 %v7413_v30, %v7413_v30  ;;  %v7431_v38 = vld [vmem:[%s7330_s26 + $0x60] sm:$0xff]  ;;  %v7435_v40 = vmul.f32 %v7422_v34, %v7422_v34  ;;  %v7440_v42 = vld [vmem:[%s7330_s26 + $0x68] sm:$0xff]  ;;  %s7274_s22 = smov 84  }
  0x27   : > { %10774 = vst [vmem:[#allocation17_spill] sm:$0xff] %v7381_v16  ;;  %10775 = vst [vmem:[#allocation18_spill] sm:$0xff] %v7390_v20  ;;  %v404_v33 = vsel %vm390_vm0, %v7399_v24, 0.0  ;;  %v406_v37 = vsel %vm390_vm0, %v7408_v28, 0.0  ;;  %v408_v41 = vsel %vm390_vm0, %v7417_v32, 0.0  ;;  %v7444_v44 = vmul.f32 %v7431_v38, %v7431_v38  ;;  %v7449_v46 = vld [vmem:[%s7330_s26 + $0x70] sm:$0xff] }
  0x28   : > { %v397_v23 = vadd.f32 %v396_v17, %v395_v19  ;;  %10776 = vst [vmem:[#allocation19_spill] sm:$0xff] %v7399_v24  ;;  %10777 = vst [vmem:[#allocation20_spill] sm:$0xff] %v7408_v28  ;;  %v410_v45 = vsel %vm390_vm0, %v7426_v36, 0.0  ;;  %v7453_v48 = vmul.f32 %v7440_v42, %v7440_v42  ;;  %v412_v49 = vsel %vm390_vm0, %v7435_v40, 0.0  ;;  %v7458_v50 = vld [vmem:[%s7330_s26 + $0x78] sm:$0xff]  ;;  %v7467_v54 = vld [vmem:[%s7330_s26 + $0x80] sm:$0xff] }
  0x29   : > { %10778 = vst [vmem:[#allocation21_spill] sm:$0xff] %v7417_v32  ;;  %10779 = vst [vmem:[#allocation22_spill] sm:$0xff] %v7431_v38  ;;  %v7462_v52 = vmul.f32 %v7449_v46, %v7449_v46  ;;  %v414_v53 = vsel %vm390_vm0, %v7444_v44, 0.0  ;;  %v7471_v56 = vmul.f32 %v7458_v50, %v7458_v50  ;;  %v7476_v58 = vld [vmem:[%s7330_s26 + $0x88] sm:$0xff]  ;;  %v7480_v60 = vmul.f32 %v7467_v54, %v7467_v54  ;;  %v7485_v62 = vld [vmem:[%s7330_s26 + $0x90] sm:$0xff]  ;;  %s5800_s24 = sld [smem:[#allocation2 + $0x3]] }
  0x2a   : > { %v399_v27 = vadd.f32 %v398_v21, %v397_v23  ;;  %10780 = vst [vmem:[#allocation23_spill] sm:$0xff] %v7440_v42  ;;  %10781 = vst [vmem:[#allocation24_spill] sm:$0xff] %v7449_v46  ;;  %v416_v57 = vsel %vm390_vm0, %v7453_v48, 0.0  ;;  %v7489_v11 = vmul.f32 %v7476_v58, %v7476_v58  ;;  %v7494_v13 = vld [vmem:[%s7330_s26 + $0x98] sm:$0xff]  ;;  %v7498_v17 = vmul.f32 %v7485_v62, %v7485_v62  ;;  %v7503_v21 = vld [vmem:[%s7330_s26 + $0xa0] sm:$0xff] }
  0x2b   : > { %10782 = vst [vmem:[#allocation25_spill] sm:$0xff] %v7458_v50  ;;  %10783 = vst [vmem:[#allocation26_spill] sm:$0xff] %v7467_v54  ;;  %v418_v61 = vsel %vm390_vm0, %v7462_v52, 0.0  ;;  %v420_v12 = vsel %vm390_vm0, %v7471_v56, 0.0  ;;  %v422_v19 = vsel %vm390_vm0, %v7480_v60, 0.0  ;;  %v1520_v54 = vsel %vm1516_vm1, %v7354_v6, 0.0 }
  0x2c   : > { %v401_v31 = vadd.f32 %v400_v25, %v399_v27  ;;  %10784 = vst [vmem:[#allocation27_spill] sm:$0xff] %v7476_v58  ;;  %10785 = vst [vmem:[#allocation28_spill] sm:$0xff] %v7485_v62  ;;  %v7507_v25 = vmul.f32 %v7494_v13, %v7494_v13  ;;  %v424_v27 = vsel %vm390_vm0, %v7489_v11, 0.0  ;;  %v1522_v62 = vsel %vm1516_vm1, %v7361_v8, 0.0 }
  0x2d   : > { %10786 = vst [vmem:[#allocation29_spill] sm:$0xff] %v7494_v13  ;;  %10787 = vst [vmem:[#allocation30_spill] sm:$0xff] %v7503_v21  ;;  %v1528_v14 = vsel %vm1516_vm1, %v7390_v20, 0.0 }
  0x2e   : > { %v403_v35 = vadd.f32 %v402_v29, %v401_v31  ;;  %v7512_v29 = vld [vmem:[%s7330_s26 + $0xa8] sm:$0xff] }
  0x2f   : > { %10788 = vst [vmem:[#allocation31_spill] sm:$0xff] %v7512_v29 }
  0x30   : > { %v405_v39 = vadd.f32 %v404_v33, %v403_v35  ;;  %v7516_v33 = vmul.f32 %v7503_v21, %v7503_v21  ;;  %v426_v35 = vsel %vm390_vm0, %v7498_v17, 0.0 }
  0x32   : > { %v407_v43 = vadd.f32 %v406_v37, %v405_v39  ;;  %v7521_v37 = vld [vmem:[%s7330_s26 + $0xb0] sm:$0xff] }
  0x33   : > { %10789 = vst [vmem:[#allocation32_spill] sm:$0xff] %v7521_v37 }
  0x34   : > { %v409_v47 = vadd.f32 %v408_v41, %v407_v43  ;;  %v7525_v41 = vmul.f32 %v7512_v29, %v7512_v29  ;;  %v428_v43 = vsel %vm390_vm0, %v7507_v25, 0.0 }
  0x36   : > { %v411_v51 = vadd.f32 %v410_v45, %v409_v47  ;;  %v7530_v45 = vld [vmem:[%s7330_s26 + $0xb8] sm:$0xff] }
  0x38   : > { %v413_v55 = vadd.f32 %v412_v49, %v411_v51  ;;  %v7534_v49 = vmul.f32 %v7521_v37, %v7521_v37  ;;  %v430_v51 = vsel %vm390_vm0, %v7516_v33, 0.0 }
  0x3a   : > { %v415_v59 = vadd.f32 %v414_v53, %v413_v55  ;;  %v7539_v53 = vld [vmem:[%s7330_s26 + $0xc0] sm:$0xff] }
  0x3c   : > { %v417_v63 = vadd.f32 %v416_v57, %v415_v59  ;;  %v7543_v57 = vmul.f32 %v7530_v45, %v7530_v45  ;;  %v432_v59 = vsel %vm390_vm0, %v7525_v41, 0.0 }
  0x3e   : > { %v419_v15 = vadd.f32 %v418_v61, %v417_v63  ;;  %v7548_v61 = vld [vmem:[%s7330_s26 + $0xc8] sm:$0xff] }
  0x40   : > { %v421_v23 = vadd.f32 %v420_v12, %v419_v15  ;;  %v7552_v12 = vmul.f32 %v7539_v53, %v7539_v53  ;;  %v434_v15 = vsel %vm390_vm0, %v7534_v49, 0.0 }
  0x42   : > { %v423_v31 = vadd.f32 %v422_v19, %v421_v23  ;;  %v7557_v19 = vld [vmem:[%s7330_s26 + $0xd0] sm:$0xff] }
  0x44   : > { %v425_v39 = vadd.f32 %v424_v27, %v423_v31  ;;  %v1517_v27 = vsel %vm1516_vm1, %v7346_v4, 0.0  ;;  %v1518_v31 = vsel %vm1516_vm1, %v7350_v5, 0.0 }
  0x46   : > { %v427_v47 = vadd.f32 %v426_v35, %v425_v39  ;;  %v7565_v35 = vmul.f32 %v7548_v61, %v7548_v61  ;;  %v436_v39 = vsel %vm390_vm0, %v7543_v57, 0.0 }
  0x48   : > { %v429_v55 = vadd.f32 %v428_v43, %v427_v47  ;;  %v7570_v43 = vld [vmem:[%s7330_s26 + $0xd8] sm:$0xff] }
  0x49   : > { %10790 = vst [vmem:[#allocation33_spill] sm:$0xff] %v7570_v43  ;;  %v7585_v1 = vmul.f32 %v7570_v43, %v7570_v43 }
  0x4a   : > { %v431_v63 = vadd.f32 %v430_v51, %v429_v55  ;;  %v7574_v51 = vmul.f32 %v7557_v19, %v7557_v19  ;;  %v438_v55 = vsel %vm390_vm0, %v7552_v12, 0.0 }
  0x4b   : > { %10792 = vst [vmem:[#allocation35_spill] sm:$0xff] %v7585_v1 }
  0x4c   : > { %v433_v23 = vadd.f32 %v432_v59, %v431_v63  ;;  %v1519_v59 = vadd.f32 %v1518_v31, %v1517_v27  ;;  %v7579_v63 = vld [vmem:[%s7330_s26 + $0xe0] sm:$0xff]  ;;  %v442_v31 = vsel %vm390_vm0, %v7574_v51, 0.0 }
  0x4d   : > { %10791 = vst [vmem:[#allocation34_spill] sm:$0xff] %v7579_v63  ;;  %v7594_v27 = vmul.f32 %v7579_v63, %v7579_v63 }
  0x4e   : > { %v435_v47 = vadd.f32 %v434_v15, %v433_v23  ;;  %v440_v15 = vsel %vm390_vm0, %v7565_v35, 0.0  ;;  %v7590_v23 = vld [vmem:[%s7330_s26 + $0xe8] sm:$0xff] }
  0x4f   : > { %10793 = vst [vmem:[#allocation36_spill] sm:$0xff] %v7590_v23  ;;  %10794 = vst [vmem:[#allocation37_spill] sm:$0xff] %v7594_v27  ;;  %v7605_v3 = vmul.f32 %v7590_v23, %v7590_v23 }
  0x50   : > { %v437_v0 = vadd.f32 %v436_v39, %v435_v47  ;;  %v1521_v39 = vadd.f32 %v1520_v54, %v1519_v59  ;;  %v7599_v47 = vld [vmem:[%s7330_s26 + $0xf0] sm:$0xff]  ;;  %v446_v54 = vsel %vm390_vm0, %v7594_v27, 0.0 }
  0x51   : > { %10795 = vst [vmem:[#allocation38_spill] sm:$0xff] %v7599_v47  ;;  %10796 = vst [vmem:[#allocation39_spill] sm:$0xff] %v7605_v3  ;;  %v7614_v7 = vmul.f32 %v7599_v47, %v7599_v47  ;;  %v448_v9 = vsel %vm390_vm0, %v7605_v3, 0.0 }
  0x52   : > { %v439_v58 = vadd.f32 %v438_v55, %v437_v0  ;;  %v444_v0 = vsel %vm390_vm0, %v7585_v1, 0.0  ;;  %v7610_v55 = vld [vmem:[%s7330_s26 + $0xf8] sm:$0xff] }
  0x53   : > { %10797 = vst [vmem:[#allocation40_spill] sm:$0xff] %v7610_v55  ;;  %10798 = vst [vmem:[#allocation41_spill] sm:$0xff] %v7614_v7  ;;  %v7622_v21 = vmul.f32 %v7610_v55, %v7610_v55 }
  0x54   : > { %v441_v2 = vadd.f32 %v440_v15, %v439_v58  ;;  %v1523_v58 = vadd.f32 %v1522_v62, %v1521_v39  ;;  %v1524_v15 = vsel %vm1516_vm1, %v7368_v10, 0.0  ;;  %v1526_v62 = vsel %vm1516_vm1, %v7381_v16, 0.0 }
  0x55   : > { %10799 = vst [vmem:[#allocation42_spill] sm:$0xff] %v7622_v21 }
  0x56   : > { %v443_v13 = vadd.f32 %v442_v31, %v441_v2  ;;  %v450_v31 = vsel %vm390_vm0, %v7614_v7, 0.0  ;;  %v1525_v29 = vadd.f32 %v1524_v15, %v1523_v58 }
  0x58   : > { %v445_v59 = vadd.f32 %v444_v0, %v443_v13  ;;  %v452_v13 = vsel %vm390_vm0, %v7622_v21, 0.0  ;;  %v1527_v0 = vadd.f32 %v1526_v62, %v1525_v29  ;;  %v1534_v29 = vsel %vm1516_vm1, %v7417_v32, 0.0 }
  0x5a   : > { %v447_v2 = vadd.f32 %v446_v54, %v445_v59  ;;  %v1529_v3 = vadd.f32 %v1528_v14, %v1527_v0  ;;  %v1530_v59 = vsel %vm1516_vm1, %v7399_v24, 0.0  ;;  %v1536_v14 = vsel %vm1516_vm1, %v7426_v36, 0.0 }
  0x5c   : > { %v449_v1 = vadd.f32 %v448_v9, %v447_v2  ;;  %v1531_v9 = vadd.f32 %v1530_v59, %v1529_v3  ;;  %v1532_v2 = vsel %vm1516_vm1, %v7408_v28, 0.0  ;;  %v1538_v3 = vsel %vm1516_vm1, %v7435_v40, 0.0 }
  0x5d   : > { %v1544_v59 = vsel %vm1516_vm1, %v7462_v52, 0.0 }
  0x5e   : > { %v451_v39 = vadd.f32 %v450_v31, %v449_v1  ;;  %v1533_v21 = vadd.f32 %v1532_v2, %v1531_v9 }
  0x60   : > { %v453_v27 = vadd.f32 %v452_v13, %v451_v39  ;;  %v1535_v62 = vadd.f32 %v1534_v29, %v1533_v21  ;;  %v1540_v13 = vsel %vm1516_vm1, %v7444_v44, 0.0 }
  0x62   : > { %v454_v37 = vrot.slane %v453_v27, 4 }
  0x64   : > { %v455_v54 = vadd.f32 %v454_v37, %v453_v27  ;;  %v1537_v37 = vadd.f32 %v1536_v14, %v1535_v62  ;;  %v288_v62 = vsel %vm286_vm2, %v7350_v5, 0.0 }
  0x66   : > { %v456_v58 = vrot.slane %v455_v54, 2  ;;  %v1539_v27 = vadd.f32 %v1538_v3, %v1537_v37  ;;  %v287_v37 = vsel %vm286_vm2, %v7346_v4, 0.0  ;;  %v1552_v3 = vsel %vm1516_vm1, %v7498_v17, 0.0 }
  0x68   : > { %v457_v15 = vadd.f32 %v456_v58, %v455_v54  ;;  %v1541_v39 = vadd.f32 %v1540_v13, %v1539_v27  ;;  %v290_v27 = vsel %vm286_vm2, %v7354_v6, 0.0  ;;  %v289_v13 = vadd.f32 %v288_v62, %v287_v37 }
  0x69   : > { %v1556_v62 = vsel %vm1516_vm1, %v7516_v33, 0.0 }
  0x6a   : > { %v458_v7 = vrot.slane %v457_v15, 1 }
  0x6c   : > { %v459_v1 = vadd.f32 %v458_v7, %v457_v15  ;;  %v1542_v7 = vsel %vm1516_vm1, %v7453_v48, 0.0  ;;  %v1546_v15 = vsel %vm1516_vm1, %v7471_v56, 0.0 }
  0x6d   : > { %v1543_v54 = vadd.f32 %v1542_v7, %v1541_v39 }
  0x6e   : > { %v460_v31 = vmax.f32 %v459_v1, 1e-24  ;;  %v1548_v1 = vsel %vm1516_vm1, %v7480_v60, 0.0 }
  0x6f   : > { %v1545_v9 = vadd.f32 %v1544_v59, %v1543_v54  ;;  %v1554_v59 = vsel %vm1516_vm1, %v7507_v25, 0.0 }
  0x70   : > { %7095 = vrsqrt.f32 %v460_v31  ;;  %v1550_v31 = vsel %vm1516_vm1, %v7489_v11, 0.0 }
  0x71   : > { %v1547_v2 = vadd.f32 %v1546_v15, %v1545_v9 }
  0x73   : > { %v1549_v29 = vadd.f32 %v1548_v1, %v1547_v2  ;;  %v294_v2 = vsel %vm286_vm2, %v7368_v10, 0.0 }
  0x75   : > { %v1551_v14 = vadd.f32 %v1550_v31, %v1549_v29  ;;  %v296_v29 = vsel %vm286_vm2, %v7381_v16, 0.0 }
  0x77   : > { %v1553_v54 = vadd.f32 %v1552_v3, %v1551_v14 }
  0x79   : > { %v1555_v31 = vadd.f32 %v1554_v59, %v1553_v54 }
  0x7d   : > { %v7648_v0 = vpop.eup %7095 }
  0x7e   : > { %v493_v21 = vmul.f32 %v7648_v0, %v7610_v55  ;;  %v492_v58 = vmul.f32 %v7648_v0, %v7599_v47  ;;  %v477_v39 = vmul.f32 %v7648_v0, %v7458_v50  ;;  %v476_v7 = vmul.f32 %v7648_v0, %v7449_v46  ;;  %v10806_v55 = vld [vmem:[#allocation30_spill] sm:$0xff]  ;;  %v10809_v47 = vld [vmem:[#allocation29_spill] sm:$0xff] }
  0x7f   : > { %v491_v9 = vmul.f32 %v7648_v0, %v7590_v23  ;;  %v475_v15 = vmul.f32 %v7648_v0, %v7440_v42  ;;  %v490_v37 = vmul.f32 %v7648_v0, %v7579_v63  ;;  %v474_v3 = vmul.f32 %v7648_v0, %v7431_v38  ;;  %v10812_v23 = vld [vmem:[#allocation28_spill] sm:$0xff]  ;;  %v10815_v63 = vld [vmem:[#allocation27_spill] sm:$0xff] }
  0x80   : > { %652 = vrot.lane.b32.xlu0 %v493_v21, %s7264_s27  ;;  %650 = vrot.lane.b32.xlu1 %v492_v58, %s7264_s27  ;;  %v292_v21 = vsel %vm286_vm2, %v7361_v8, 0.0  ;;  %v291_v58 = vadd.f32 %v290_v27, %v289_v13  ;;  %v298_v27 = vsel %vm286_vm2, %v7390_v20, 0.0  ;;  %v489_v59 = vmul.f32 %v7648_v0, %v7570_v43  ;;  %v10818_v43 = vld [vmem:[#allocation5_spill] sm:$0xff] }
  0x81   : > { %v482_v50 = vmul.f32 %v7648_v0, %v10806_v55  ;;  %v481_v46 = vmul.f32 %v7648_v0, %v10809_v47  ;;  %v480_v42 = vmul.f32 %v7648_v0, %v10812_v23  ;;  %v479_v38 = vmul.f32 %v7648_v0, %v10815_v63 }
  0x82   : > { %v293_v1 = vadd.f32 %v292_v21, %v291_v58  ;;  %v1558_v21 = vsel %vm1516_vm1, %v7525_v41, 0.0  ;;  %v473_v58 = vmul.f32 %v7648_v0, %v7422_v34 }
  0x84   : > { %620 = vrot.lane.b32.xlu0 %v477_v39, %s7264_s27  ;;  %618 = vrot.lane.b32.xlu1 %v476_v7, %s7264_s27  ;;  %v295_v14 = vadd.f32 %v294_v2, %v293_v1  ;;  %v300_v39 = vsel %vm286_vm2, %v7399_v24, 0.0  ;;  %v1557_v7 = vadd.f32 %v1556_v62, %v1555_v31  ;;  %v304_v2 = vsel %vm286_vm2, %v7417_v32, 0.0 }
  0x85   : > { %v488_v62 = vmul.f32 %v7648_v0, %v7557_v19 }
  0x86   : > { %v297_v13 = vadd.f32 %v296_v29, %v295_v14  ;;  %v1559_v1 = vadd.f32 %v1558_v21, %v1557_v7  ;;  %v1560_v29 = vsel %vm1516_vm1, %v7534_v49, 0.0  ;;  %v472_v14 = vmul.f32 %v7648_v0, %v7413_v30 }
  0x87   : > { %v487_v21 = vmul.f32 %v7648_v0, %v7548_v61 }
  0x88   : > { %648 = vrot.lane.b32.xlu0 %v491_v9, %s7264_s27  ;;  %616 = vrot.lane.b32.xlu1 %v475_v15, %s7264_s27  ;;  %v299_v54 = vadd.f32 %v298_v27, %v297_v13  ;;  %v302_v9 = vsel %vm286_vm2, %v7408_v28, 0.0  ;;  %v308_v27 = vsel %vm286_vm2, %v7435_v40, 0.0  ;;  %v1561_v13 = vadd.f32 %v1560_v29, %v1559_v1 }
  0x89   : > { %v486_v29 = vmul.f32 %v7648_v0, %v7539_v53 }
  0x8a   : > { %v301_v15 = vadd.f32 %v300_v39, %v299_v54  ;;  %v1562_v39 = vsel %vm1516_vm1, %v7543_v57, 0.0  ;;  %v471_v54 = vmul.f32 %v7648_v0, %v7404_v26 }
  0x8c   : > { %646 = vrot.lane.b32.xlu0 %v490_v37, %s7264_s27  ;;  %614 = vrot.lane.b32.xlu1 %v474_v3, %s7264_s27  ;;  %v303_v31 = vadd.f32 %v302_v9, %v301_v15  ;;  %v306_v37 = vsel %vm286_vm2, %v7426_v36, 0.0  ;;  %v312_v9 = vsel %vm286_vm2, %v7453_v48, 0.0  ;;  %v1563_v15 = vadd.f32 %v1562_v39, %v1561_v13 }
  0x8d   : > { %v1622_v13 = vsel %vm1620_vm3, %v7350_v5, 0.0  ;;  %v1566_v39 = vsel %vm1516_vm1, %v7565_v35, 0.0  ;;  %v10803_v5 = vld [vmem:[#allocation31_spill] sm:$0xff] }
  0x8e   : > { %v305_v3 = vadd.f32 %v304_v2, %v303_v31  ;;  %v1564_v2 = vsel %vm1516_vm1, %v7552_v12, 0.0  ;;  %v470_v31 = vmul.f32 %v7648_v0, %v7395_v22 }
  0x90   : > { %644 = vrot.lane.b32.xlu0 %v489_v59, %s7264_s27  ;;  %612 = vrot.lane.b32.xlu1 %v473_v58, %s7264_s27  ;;  %v307_v7 = vadd.f32 %v306_v37, %v305_v3  ;;  %v310_v59 = vsel %vm286_vm2, %v7444_v44, 0.0  ;;  %v316_v37 = vsel %vm286_vm2, %v7471_v56, 0.0  ;;  %v1565_v3 = vadd.f32 %v1564_v2, %v1563_v15 }
  0x91   : > { %v320_v15 = vsel %vm286_vm2, %v7489_v11, 0.0 }
  0x92   : > { %v309_v58 = vadd.f32 %v308_v27, %v307_v7  ;;  %v1621_v27 = vsel %vm1620_vm3, %v7346_v4, 0.0  ;;  %v1567_v2 = vadd.f32 %v1566_v39, %v1565_v3  ;;  %v322_v3 = vsel %vm286_vm2, %v7498_v17, 0.0 }
  0x93   : > { %v483_v4 = vmul.f32 %v7648_v0, %v10803_v5 }
  0x94   : > { %642 = vrot.lane.b32.xlu0 %v488_v62, %s7264_s27  ;;  %610 = vrot.lane.b32.xlu1 %v472_v14, %s7264_s27  ;;  %v311_v1 = vadd.f32 %v310_v59, %v309_v58  ;;  %v314_v62 = vsel %vm286_vm2, %v7462_v52, 0.0  ;;  %v318_v59 = vsel %vm286_vm2, %v7480_v60, 0.0  ;;  %v1623_v58 = vadd.f32 %v1622_v13, %v1621_v27  ;;  %v10801_v27 = vld [vmem:[#allocation16_spill] sm:$0xff] }
  0x96   : > { %v313_v14 = vadd.f32 %v312_v9, %v311_v1  ;;  %v1624_v1 = vsel %vm1620_vm3, %v7354_v6, 0.0 }
  0x97   : > { %v1625_v13 = vadd.f32 %v1624_v1, %v1623_v58  ;;  %v10804_v58 = vld [vmem:[#allocation14_spill] sm:$0xff] }
  0x98   : > { %640 = vrot.lane.b32.xlu0 %v487_v21, %s7264_s27  ;;  %608 = vrot.lane.b32.xlu1 %v471_v54, %s7264_s27  ;;  %v315_v7 = vadd.f32 %v314_v62, %v313_v14  ;;  %v485_v21 = vmul.f32 %v7648_v0, %v7530_v45  ;;  %v469_v54 = vmul.f32 %v7648_v0, %v7386_v18  ;;  %v10800_v62 = vld [vmem:[#allocation32_spill] sm:$0xff] }
  0x99   : > { %v484_v14 = vmul.f32 %v7648_v0, %v10800_v62 }
  0x9a   : > { %v317_v9 = vadd.f32 %v316_v37, %v315_v7  ;;  %v468_v37 = vmul.f32 %v7648_v0, %v10801_v27  ;;  %v324_v7 = vsel %vm286_vm2, %v7507_v25, 0.0 }
  0x9c   : > { %638 = vrot.lane.b32.xlu0 %v486_v29, %s7264_s27  ;;  %606 = vrot.lane.b32.xlu1 %v470_v31, %s7264_s27  ;;  %v1568_v29 = vsel %vm1516_vm1, %v7574_v51, 0.0  ;;  %v319_v31 = vadd.f32 %v318_v59, %v317_v9  ;;  %v10802_v59 = vld [vmem:[#allocation35_spill] sm:$0xff] }
  0x9d   : > { %v1569_v6 = vadd.f32 %v1568_v29, %v1567_v2  ;;  %v326_v2 = vsel %vm286_vm2, %v7516_v33, 0.0 }
  0x9e   : > { %v321_v39 = vadd.f32 %v320_v15, %v319_v31  ;;  %v467_v15 = vmul.f32 %v7648_v0, %v10804_v58  ;;  %v328_v31 = vsel %vm286_vm2, %v7525_v41, 0.0 }
  0xa0   : > { %636 = vrot.lane.b32.xlu0 %v485_v21, %s7264_s27  ;;  %604 = vrot.lane.b32.xlu1 %v469_v54, %s7264_s27  ;;  %v1626_v21 = vsel %vm1620_vm3, %v7361_v8, 0.0  ;;  %v1570_v54 = vsel %vm1516_vm1, %v10802_v59, 0.0  ;;  %v323_v9 = vadd.f32 %v322_v3, %v321_v39  ;;  %v10805_v3 = vld [vmem:[#allocation37_spill] sm:$0xff] }
  0xa1   : > { %v1627_v1 = vadd.f32 %v1626_v21, %v1625_v13  ;;  %v1571_v8 = vadd.f32 %v1570_v54, %v1569_v6  ;;  %v10807_v13 = vld [vmem:[#allocation12_spill] sm:$0xff]  ;;  %v330_v6 = vsel %vm286_vm2, %v7534_v49, 0.0 }
  0xa2   : > { %v325_v29 = vadd.f32 %v324_v7, %v323_v9  ;;  %v466_v7 = vmul.f32 %v7648_v0, %v10807_v13  ;;  %v332_v9 = vsel %vm286_vm2, %v7543_v57, 0.0 }
  0xa4   : > { %634 = vrot.lane.b32.xlu0 %v484_v14, %s7264_s27  ;;  %602 = vrot.lane.b32.xlu1 %v468_v37, %s7264_s27  ;;  %v1628_v14 = vsel %vm1620_vm3, %v7368_v10, 0.0  ;;  %v1572_v37 = vsel %vm1516_vm1, %v10805_v3, 0.0  ;;  %v327_v39 = vadd.f32 %v326_v2, %v325_v29  ;;  %v10808_v2 = vld [vmem:[#allocation39_spill] sm:$0xff] }
  0xa5   : > { %v1629_v21 = vadd.f32 %v1628_v14, %v1627_v1  ;;  %v1573_v10 = vadd.f32 %v1572_v37, %v1571_v8  ;;  %v10810_v1 = vld [vmem:[#allocation8_spill] sm:$0xff]  ;;  %v334_v8 = vsel %vm286_vm2, %v7552_v12, 0.0 }
  0xa6   : > { %v329_v54 = vadd.f32 %v328_v31, %v327_v39  ;;  %v465_v31 = vmul.f32 %v7648_v0, %v10810_v1  ;;  %v336_v39 = vsel %vm286_vm2, %v7565_v35, 0.0 }
  0xa8   : > { %632 = vrot.lane.b32.xlu0 %v483_v4, %s7264_s27  ;;  %600 = vrot.lane.b32.xlu1 %v467_v15, %s7264_s27  ;;  %v1630_v4 = vsel %vm1620_vm3, %v7381_v16, 0.0  ;;  %v1574_v15 = vsel %vm1516_vm1, %v10808_v2, 0.0  ;;  %v331_v29 = vadd.f32 %v330_v6, %v329_v54  ;;  %v10811_v6 = vld [vmem:[#allocation41_spill] sm:$0xff] }
  0xa9   : > { %v1631_v14 = vadd.f32 %v1630_v4, %v1629_v21  ;;  %v1575_v16 = vadd.f32 %v1574_v15, %v1573_v10  ;;  %v10813_v21 = vld [vmem:[#allocation7_spill] sm:$0xff]  ;;  %v338_v10 = vsel %vm286_vm2, %v7574_v51, 0.0 }
  0xaa   : > { %v333_v37 = vadd.f32 %v332_v9, %v331_v29  ;;  %v464_v9 = vmul.f32 %v7648_v0, %v10813_v21  ;;  %v340_v29 = vsel %vm286_vm2, %v10802_v59, 0.0 }
  0xac   : > { %630 = vrot.lane.b32.xlu0 %v482_v50, %s7264_s27  ;;  %598 = vrot.lane.b32.xlu1 %v466_v7, %s7264_s27  ;;  %v1632_v50 = vsel %vm1620_vm3, %v7390_v20, 0.0  ;;  %v1576_v7 = vsel %vm1516_vm1, %v10811_v6, 0.0  ;;  %v335_v54 = vadd.f32 %v334_v8, %v333_v37  ;;  %v10814_v8 = vld [vmem:[#allocation42_spill] sm:$0xff] }
  0xad   : > { %v1633_v4 = vadd.f32 %v1632_v50, %v1631_v14  ;;  %v1577_v20 = vadd.f32 %v1576_v7, %v1575_v16  ;;  %v10816_v14 = vld [vmem:[#allocation6_spill] sm:$0xff]  ;;  %v342_v16 = vsel %vm286_vm2, %v10805_v3, 0.0  ;;  %v462_v3 = vmul.f32 %v7648_v0, %v10818_v43 }
  0xae   : > { %v337_v15 = vadd.f32 %v336_v39, %v335_v54  ;;  %v463_v39 = vmul.f32 %v7648_v0, %v10816_v14  ;;  %v344_v54 = vsel %vm286_vm2, %v10808_v2, 0.0 }
  0xb0   : > { %628 = vrot.lane.b32.xlu0 %v481_v46, %s7264_s27  ;;  %596 = vrot.lane.b32.xlu1 %v465_v31, %s7264_s27  ;;  %v1634_v46 = vsel %vm1620_vm3, %v7399_v24, 0.0  ;;  %v1578_v31 = vsel %vm1516_vm1, %v10814_v8, 0.0  ;;  %v339_v37 = vadd.f32 %v338_v10, %v337_v15 }
  0xb1   : > { %v1635_v50 = vadd.f32 %v1634_v46, %v1633_v4  ;;  %v1579_v24 = vadd.f32 %v1578_v31, %v1577_v20  ;;  %v346_v4 = vsel %vm286_vm2, %v10811_v6, 0.0  ;;  %v348_v20 = vsel %vm286_vm2, %v10814_v8, 0.0 }
  0xb2   : > { %v341_v7 = vadd.f32 %v340_v29, %v339_v37 }
  0xb3   : > { %v1580_v31 = vrot.slane %v1579_v24, 4 }
  0xb4   : > { %626 = vrot.lane.b32.xlu0 %v480_v42, %s7264_s27  ;;  %594 = vrot.lane.b32.xlu1 %v464_v9, %s7264_s27  ;;  %v1636_v42 = vsel %vm1620_vm3, %v7408_v28, 0.0  ;;  %v343_v10 = vadd.f32 %v342_v16, %v341_v7  ;;  %v10817_v9 = vld [vmem:[#allocation26_spill] sm:$0xff]  ;;  %v1640_v7 = vsel %vm1620_vm3, %v7426_v36, 0.0  ;;  %v1642_v28 = vsel %vm1620_vm3, %v7435_v40, 0.0 }
  0xb5   : > { %v478_v15 = vmul.f32 %v7648_v0, %v10817_v9  ;;  %v1637_v29 = vadd.f32 %v1636_v42, %v1635_v50  ;;  %v1581_v0 = vadd.f32 %v1580_v31, %v1579_v24  ;;  %v1646_v31 = vsel %vm1620_vm3, %v7453_v48, 0.0 }
  0xb6   : > { %v345_v46 = vadd.f32 %v344_v54, %v343_v10 }
  0xb7   : > { %v1582_v10 = vrot.slane %v1581_v0, 2 }
  0xb8   : > { %624 = vrot.lane.b32.xlu0 %v479_v38, %s7264_s27  ;;  %592 = vrot.lane.b32.xlu1 %v463_v39, %s7264_s27  ;;  %v1638_v38 = vsel %vm1620_vm3, %v7417_v32, 0.0  ;;  %v347_v37 = vadd.f32 %v346_v4, %v345_v46 }
  0xb9   : > { %v1639_v39 = vadd.f32 %v1638_v38, %v1637_v29  ;;  %v1583_v46 = vadd.f32 %v1582_v10, %v1581_v0  ;;  %v1650_v0 = vsel %vm1620_vm3, %v7471_v56, 0.0 }
  0xba   : > { %v349_v16 = vadd.f32 %v348_v20, %v347_v37 }
  0xbb   : > { %v1641_v54 = vadd.f32 %v1640_v7, %v1639_v39  ;;  %v1584_v20 = vrot.slane %v1583_v46, 1 }
  0xbc   : > { %622 = vrot.lane.b32.xlu0 %v478_v15, %s7264_s27  ;;  %590 = vrot.lane.b32.xlu1 %v462_v3, %s7264_s27  ;;  %v350_v50 = vrot.slane %v349_v16, 4  ;;  %v1644_v3 = vsel %vm1620_vm3, %v7444_v44, 0.0 }
  0xbd   : > { %v1643_v32 = vadd.f32 %v1642_v28, %v1641_v54  ;;  %v1585_v39 = vadd.f32 %v1584_v20, %v1583_v46 }
  0xbe   : > { %v351_v42 = vadd.f32 %v350_v50, %v349_v16  ;;  %v1648_v16 = vsel %vm1620_vm3, %v7462_v52, 0.0 }
  0xbf   : > { %v1645_v29 = vadd.f32 %v1644_v3, %v1643_v32  ;;  %v1652_v32 = vsel %vm1620_vm3, %v7480_v60, 0.0 }
  0xc0   : > { %v352_v8 = vrot.slane %v351_v42, 2  ;;  %803 = vrot.lane.b32.xlu1 %v10818_v43, %s7265_s28 }
  0xc1   : > { %v1647_v37 = vadd.f32 %v1646_v31, %v1645_v29 }
  0xc2   : > { %v353_v4 = vadd.f32 %v352_v8, %v351_v42  ;;  %v1586_v8 = vmax.f32 %v1585_v39, 1e-24  ;;  %v1654_v42 = vsel %vm1620_vm3, %v7489_v11, 0.0 }
  0xc3   : > { %v1649_v28 = vadd.f32 %v1648_v16, %v1647_v37  ;;  %v1658_v16 = vsel %vm1620_vm3, %v7507_v25, 0.0 }
  0xc4   : > { %v354_v15 = vrot.slane %v353_v4, 1  ;;  %805 = vrot.lane.b32.xlu1 %v10816_v14, %s7265_s28 }
  0xc5   : > { %v1651_v7 = vadd.f32 %v1650_v0, %v1649_v28 }
  0xc6   : > { %v355_v24 = vadd.f32 %v354_v15, %v353_v4 }
  0xc7   : > { %v1653_v50 = vadd.f32 %v1652_v32, %v1651_v7 }
  0xc8   : > { %v356_v38 = vmax.f32 %v355_v24, 1e-24  ;;  %v1656_v24 = vsel %vm1620_vm3, %v7498_v17, 0.0 }
  0xc9   : > { %v1655_v15 = vadd.f32 %v1654_v42, %v1653_v50  ;;  %v1660_v50 = vsel %vm1620_vm3, %v7516_v33, 0.0 }
  0xca   : > { %7097 = vrsqrt.f32 %v356_v38 }
  0xcb   : > { %7099 = vrsqrt.f32 %v1586_v8  ;;  %v1657_v37 = vadd.f32 %v1656_v24, %v1655_v15 }
  0xcd   : > { %v1659_v32 = vadd.f32 %v1658_v16, %v1657_v37 }
  0xd7   : > { %v7880_v54 = vpop.eup %7097 }
  0xd8   : > { %v358_v10 = vmul.f32 %v7880_v54, %v10818_v43  ;;  %v374_v4 = vmul.f32 %v7880_v54, %v10817_v9  ;;  %v359_v46 = vmul.f32 %v7880_v54, %v10816_v14  ;;  %v375_v3 = vmul.f32 %v7880_v54, %v10815_v63  ;;  %v7902_v28 = vpop.eup %7099 }
  0xd9   : > { %v360_v31 = vmul.f32 %v7880_v54, %v10813_v21  ;;  %v376_v38 = vmul.f32 %v7880_v54, %v10812_v23  ;;  %v361_v0 = vmul.f32 %v7880_v54, %v10810_v1  ;;  %v377_v7 = vmul.f32 %v7880_v54, %v10809_v47 }
  0xda   : > { %v6707_v29 = vpack.i.bf16 %v358_v10, %v374_v4  ;;  %v6709_v20 = vpack.i.bf16 %v359_v46, %v375_v3  ;;  %v362_v42 = vmul.f32 %v7880_v54, %v10807_v13  ;;  %v1588_v10 = vmul.f32 %v7902_v28, %v10818_v43 }
  0xdb   : > { %v6711_v8 = vpack.i.bf16 %v360_v31, %v376_v38  ;;  %v1604_v4 = vmul.f32 %v7902_v28, %v10817_v9  ;;  %v6713_v46 = vpack.i.bf16 %v361_v0, %v377_v7  ;;  %v378_v3 = vmul.f32 %v7880_v54, %v10806_v55 }
  0xdc   : > { %6708 = vxpose.xlu0.b32.start [1/16] (narrow) %v6707_v29, 8  ;;  %v1589_v15 = vmul.f32 %v7902_v28, %v10816_v14  ;;  %v1605_v29 = vmul.f32 %v7902_v28, %v10815_v63  ;;  %v1662_v31 = vsel %vm1620_vm3, %v7525_v41, 0.0  ;;  %v363_v55 = vmul.f32 %v7880_v54, %v10804_v58 }
  0xdd   : > { %v6744_v24 = vpack.i.bf16 %v1588_v10, %v1604_v4  ;;  %v6715_v9 = vpack.i.bf16 %v362_v42, %v378_v3  ;;  %v379_v14 = vmul.f32 %v7880_v54, %v10803_v5  ;;  %v1664_v63 = vsel %vm1620_vm3, %v7534_v49, 0.0 }
  0xde   : > { %v6749_v43 = vpack.i.bf16 %v1589_v15, %v1605_v29  ;;  %v380_v16 = vmul.f32 %v7880_v54, %v10800_v62  ;;  %v1666_v7 = vsel %vm1620_vm3, %v7543_v57, 0.0  ;;  %v365_v10 = vmul.f32 %v7880_v54, %v7386_v18 }
  0xdf   : > { %6745 = vrot.lane.b32.xlu1 %v6744_v24, %s7266_s29  ;;  %v6717_v37 = vpack.i.bf16 %v363_v55, %v379_v14  ;;  %v381_v4 = vmul.f32 %v7880_v54, %v7530_v45  ;;  %v1668_v29 = vsel %vm1620_vm3, %v7552_v12, 0.0  ;;  %v1607_v18 = vmul.f32 %v7902_v28, %v10809_v47 }
  0xe0   : > { %6710 = vxpose.xlu0.b32.cont [2/16] (narrow) %v6709_v20, 8  ;;  %v1661_v20 = vadd.f32 %v1660_v50, %v1659_v32  ;;  %v1590_v32 = vmul.f32 %v7902_v28, %v10813_v21  ;;  %v1606_v50 = vmul.f32 %v7902_v28, %v10812_v23  ;;  %v1591_v23 = vmul.f32 %v7902_v28, %v10810_v1 }
  0xe1   : > { %v6721_v24 = vpack.i.bf16 %v365_v10, %v381_v4  ;;  %v1670_v14 = vsel %vm1620_vm3, %v7565_v35, 0.0  ;;  %v1593_v10 = vmul.f32 %v7902_v28, %v10804_v58  ;;  %v1609_v4 = vmul.f32 %v7902_v28, %v10803_v5 }
  0xe2   : > { %v1663_v38 = vadd.f32 %v1662_v31, %v1661_v20  ;;  %v366_v20 = vmul.f32 %v7880_v54, %v7395_v22  ;;  %v382_v31 = vmul.f32 %v7880_v54, %v7539_v53  ;;  %v6759_v47 = vpack.i.bf16 %v1591_v23, %v1607_v18  ;;  %v10820_v18 = vld [vmem:[#allocation37_spill] sm:$0xff] }
  0xe3   : > { %6750 = vrot.lane.b32.xlu1 %v6749_v43, %s7266_s29  ;;  %v367_v22 = vmul.f32 %v7880_v54, %v7404_v26  ;;  %v384_v26 = vmul.f32 %v7880_v54, %v7557_v19  ;;  %v6769_v5 = vpack.i.bf16 %v1593_v10, %v1609_v4 }
  0xe4   : > { %6712 = vxpose.xlu0.b32.cont [3/16] (narrow) %v6711_v8, 8  ;;  %v1665_v0 = vadd.f32 %v1664_v63, %v1663_v38  ;;  %v383_v38 = vmul.f32 %v7880_v54, %v7548_v61 }
  0xe7   : > { %807 = vrot.lane.b32.xlu1 %v10813_v21, %s7265_s28  ;;  %v6754_v21 = vpack.i.bf16 %v1590_v32, %v1606_v50 }
  0xe8   : > { %6714 = vxpose.xlu0.b32.cont [4/16] (narrow) %v6713_v46, 8  ;;  %v1667_v46 = vadd.f32 %v1666_v7, %v1665_v0  ;;  %v368_v0 = vmul.f32 %v7880_v54, %v7413_v30 }
  0xea   : > { %v1669_v43 = vadd.f32 %v1668_v29, %v1667_v46  ;;  %v6727_v30 = vpack.i.bf16 %v368_v0, %v384_v26  ;;  %v369_v46 = vmul.f32 %v7880_v54, %v7422_v34  ;;  %v1594_v0 = vmul.f32 %v7902_v28, %v10801_v27 }
  0xeb   : > { %809 = vrot.lane.b32.xlu1 %v10810_v1, %s7265_s28  ;;  %v6723_v1 = vpack.i.bf16 %v366_v20, %v382_v31  ;;  %v10821_v20 = vld [vmem:[#allocation22_spill] sm:$0xff]  ;;  %v1610_v26 = vmul.f32 %v7902_v28, %v10800_v62 }
  0xec   : > { %6716 = vxpose.xlu0.b32.cont [5/16] (narrow) %v6715_v9, 8  ;;  %v1671_v63 = vadd.f32 %v1670_v14, %v1669_v43  ;;  %v370_v34 = vmul.f32 %v7880_v54, %v10821_v20  ;;  %v10822_v31 = vld [vmem:[#allocation34_spill] sm:$0xff] }
  0xed   : > { %v386_v43 = vmul.f32 %v7880_v54, %v10822_v31 }
  0xef   : > { %6755 = vrot.lane.b32.xlu1 %v6754_v21, %s7266_s29 }
  0xf0   : > { %6718 = vxpose.xlu0.b32.cont [6/16] (narrow) %v6717_v37, 8 }
  0xf2   : > { %v653_v39 = vpop.permute.xlu0 %652  ;;  %v651_v8 = vpop.permute.xlu1 %650 }
  0xf3   : > { %5871 = vmatprep.subr.mxu0 %v653_v39  ;;  %v364_v39 = vmul.f32 %v7880_v54, %v10801_v27  ;;  %6760 = vrot.lane.b32.xlu1 %v6759_v47, %s7266_s29  ;;  %v1678_v47 = vsel %vm1620_vm3, %v10808_v2, 0.0 }
  0xf5   : > { %v6719_v42 = vpack.i.bf16 %v364_v39, %v380_v16  ;;  %v1672_v16 = vsel %vm1620_vm3, %v7574_v51, 0.0 }
  0xf6   : > { %v621_v3 = vpop.permute.xlu0 %620  ;;  %v619_v15 = vpop.permute.xlu1 %618  ;;  %v1673_v7 = vadd.f32 %v1672_v16, %v1671_v63 }
  0xf7   : > { %5872 = vmatpush3.msra.mxu0 %v621_v3  ;;  %6720 = vxpose.xlu0.b32.cont [7/16] (narrow) %v6719_v42, 8  ;;  %v1674_v42 = vsel %vm1620_vm3, %v10802_v59, 0.0  ;;  %v10819_v3 = vld [vmem:[#allocation33_spill] sm:$0xff] }
  0xf8   : > { %5873 = vmatprep.subr.mxu0 %v651_v8  ;;  %v6725_v8 = vpack.i.bf16 %v367_v22, %v383_v38  ;;  %811 = vrot.lane.b32.xlu1 %v10807_v13, %s7265_s28  ;;  %v1675_v29 = vadd.f32 %v1674_v42, %v1673_v7  ;;  %v1676_v13 = vsel %vm1620_vm3, %v10820_v18, 0.0  ;;  %v10824_v38 = vld [vmem:[#allocation36_spill] sm:$0xff]  ;;  %v10826_v42 = vld [vmem:[#allocation38_spill] sm:$0xff] }
  0xf9   : > { %5874 = vmatpush3.msra.mxu0 %v619_v15  ;;  %v385_v15 = vmul.f32 %v7880_v54, %v10819_v3  ;;  %v387_v63 = vmul.f32 %v7880_v54, %v10824_v38  ;;  %v388_v10 = vmul.f32 %v7880_v54, %v10826_v42  ;;  %v8016_v3 = vld [vmem:[%s7330_s26 + $0x38] sm:$0xff] }
  0xfa   : > { %v649_v9 = vpop.permute.xlu0 %648  ;;  %v617_v55 = vpop.permute.xlu1 %616  ;;  %10827 = vst [vmem:[#allocation32_spill] sm:$0xff] %v8016_v3  ;;  %v1595_v62 = vmul.f32 %v8016_v3, %v7902_v28 }
  0xfb   : > { %5875 = vmatprep.subr.mxu0 %v649_v9  ;;  %6722 = vxpose.xlu0.b32.cont [8/16] (narrow) %v6721_v24, 8  ;;  %v6729_v24 = vpack.i.bf16 %v369_v46, %v385_v15  ;;  %v1677_v9 = vadd.f32 %v1676_v13, %v1675_v29  ;;  %v1611_v15 = vmul.f32 %v7902_v28, %v7530_v45  ;;  %v10828_v29 = vld [vmem:[#allocation42_spill] sm:$0xff]  ;;  %v10829_v13 = vld [vmem:[#allocation25_spill] sm:$0xff] }
  0xfc   : > { %5876 = vmatpush3.msra.mxu0 %v617_v55  ;;  %813 = vrot.lane.b32.xlu1 %v10804_v58, %s7265_s28  ;;  %v6731_v58 = vpack.i.bf16 %v370_v34, %v386_v43 }
  0xfd   : > { %v6779_v45 = vpack.i.bf16 %v1595_v62, %v1611_v15  ;;  %v8053_v15 = vld [vmem:[%s7330_s26 + $0x50] sm:$0xff] }
  0xfe   : > { %v647_v37 = vpop.permute.xlu0 %646  ;;  %v615_v39 = vpop.permute.xlu1 %614  ;;  %10833 = vst [vmem:[#allocation14_spill] sm:$0xff] %v8053_v15 }
  0xff   : > { %5877 = vmatprep.subr.mxu0 %v647_v37  ;;  %6724 = vxpose.xlu0.b32.cont [9/16] (narrow) %v6723_v1, 8  ;;  %v10823_v1 = vld [vmem:[#allocation23_spill] sm:$0xff]  ;;  %v1679_v37 = vadd.f32 %v1678_v47, %v1677_v9 }
 0x100   : > { %5878 = vmatpush3.msra.mxu0 %v615_v39  ;;  %6770 = vrot.lane.b32.xlu1 %v6769_v5, %s7266_s29  ;;  %v371_v22 = vmul.f32 %v7880_v54, %v10823_v1  ;;  %v373_v5 = vmul.f32 %v7880_v54, %v10829_v13 }
 0x102   : > { %v645_v32 = vpop.permute.xlu0 %644  ;;  %v613_v50 = vpop.permute.xlu1 %612  ;;  %v6733_v7 = vpack.i.bf16 %v371_v22, %v387_v63  ;;  %v8033_v63 = vld [vmem:[%s7330_s26 + $0x40] sm:$0xff] }
 0x103   : > { %5879 = vmatprep.subr.mxu0 %v645_v32  ;;  %6726 = vxpose.xlu0.b32.cont [10/16] (narrow) %v6725_v8, 8  ;;  %v1680_v8 = vsel %vm1620_vm3, %v10811_v6, 0.0  ;;  %v10825_v32 = vld [vmem:[#allocation24_spill] sm:$0xff]  ;;  %10831 = vst [vmem:[#allocation16_spill] sm:$0xff] %v8033_v63 }
 0x104   : > { %5880 = vmatpush3.msra.mxu0 %v613_v50  ;;  %815 = vrot.lane.b32.xlu1 %v10801_v27, %s7265_s28  ;;  %v372_v50 = vmul.f32 %v7880_v54, %v10825_v32  ;;  %v1681_v4 = vadd.f32 %v1680_v8, %v1679_v37  ;;  %v6774_v27 = vpack.i.bf16 %v1594_v0, %v1610_v26  ;;  %v8042_v26 = vld [vmem:[%s7330_s26 + $0x48] sm:$0xff] }
 0x105   : > { %v1596_v37 = vmul.f32 %v8033_v63, %v7902_v28  ;;  %10832 = vst [vmem:[#allocation31_spill] sm:$0xff] %v8042_v26  ;;  %v1597_v32 = vmul.f32 %v8042_v26, %v7902_v28 }
 0x106   : > { %v643_v21 = vpop.permute.xlu0 %642  ;;  %v611_v23 = vpop.permute.xlu1 %610 }
 0x107   : > { %5881 = vmatprep.subr.mxu0 %v643_v21  ;;  %6728 = vxpose.xlu0.b32.cont [11/16] (narrow) %v6727_v30, 8  ;;  %v1682_v21 = vsel %vm1620_vm3, %v10828_v29, 0.0 }
 0x108   : > { %5882 = vmatpush3.msra.mxu0 %v611_v23  ;;  %817 = vrot.lane.b32.xlu1 %v8016_v3, %s7265_s28  ;;  %v6735_v23 = vpack.i.bf16 %v372_v50, %v388_v10  ;;  %v1683_v9 = vadd.f32 %v1682_v21, %v1681_v4  ;;  %v1613_v50 = vmul.f32 %v7902_v28, %v7548_v61 }
 0x109   : > { %v1598_v61 = vmul.f32 %v8053_v15, %v7902_v28  ;;  %v1614_v21 = vmul.f32 %v7902_v28, %v7557_v19  ;;  %v1616_v19 = vmul.f32 %v7902_v28, %v10822_v31  ;;  %v8077_v31 = vld [vmem:[%s7330_s26 + $0x80] sm:$0xff] }
 0x10a   : > { %v641_v55 = vpop.permute.xlu0 %640  ;;  %v609_v14 = vpop.permute.xlu1 %608 }
 0x10b   : > { %5883 = vmatprep.subr.mxu0 %v641_v55  ;;  %6730 = vxpose.xlu0.b32.cont [12/16] (narrow) %v6729_v24, 8  ;;  %v10830_v24 = vld [vmem:[#allocation40_spill] sm:$0xff] }
 0x10c   : > { %5884 = vmatpush3.msra.mxu0 %v609_v14  ;;  %v389_v20 = vmul.f32 %v7880_v54, %v10830_v24  ;;  %6775 = vrot.lane.b32.xlu1 %v6774_v27, %s7266_s29 }
 0x10e   : > { %v639_v39 = vpop.permute.xlu0 %638  ;;  %v607_v16 = vpop.permute.xlu1 %606  ;;  %v6737_v55 = vpack.i.bf16 %v373_v5, %v389_v20  ;;  %v6794_v20 = vpack.i.bf16 %v1598_v61, %v1614_v21  ;;  %v8132_v21 = vld [vmem:[%s7330_s26 + $0xb8] sm:$0xff] }
 0x10f   : > { %5885 = vmatprep.subr.mxu0 %v639_v39  ;;  %6732 = vxpose.xlu0.b32.cont [13/16] (narrow) %v6731_v58, 8  ;;  %v1684_v58 = vrot.slane %v1683_v9, 4  ;;  %v1612_v39 = vmul.f32 %v7902_v28, %v7539_v53  ;;  %10838 = vst [vmem:[#allocation8_spill] sm:$0xff] %v8132_v21 }
 0x110   : > { %5886 = vmatpush3.msra.mxu0 %v607_v16  ;;  %6780 = vrot.lane.b32.xlu1 %v6779_v45, %s7266_s29 }
 0x111   : > { %v1685_v22 = vadd.f32 %v1684_v58, %v1683_v9 }
 0x112   : > { %v637_v30 = vpop.permute.xlu0 %636  ;;  %v605_v46 = vpop.permute.xlu1 %604 }
 0x113   : > { %5887 = vmatprep.subr.mxu0 %v637_v30  ;;  %6734 = vxpose.xlu0.b32.cont [14/16] (narrow) %v6733_v7, 8  ;;  %v1686_v0 = vrot.slane %v1685_v22, 2  ;;  %v6784_v7 = vpack.i.bf16 %v1596_v37, %v1612_v39  ;;  %v6789_v30 = vpack.i.bf16 %v1597_v32, %v1613_v50 }
 0x114   : > { %5888 = vmatpush3.msra.mxu0 %v605_v46  ;;  %819 = vrot.lane.b32.xlu1 %v8033_v63, %s7265_s28 }
 0x115   : > { %v1687_v4 = vadd.f32 %v1686_v0, %v1685_v22 }
 0x116   : > { %v635_v34 = vpop.permute.xlu0 %634  ;;  %v603_v43 = vpop.permute.xlu1 %602 }
 0x117   : > { %5889 = vmatprep.subr.mxu0 %v635_v34  ;;  %6736 = vxpose.xlu0.b32.cont [15/16] (narrow) %v6735_v23, 8  ;;  %v1688_v62 = vrot.slane %v1687_v4, 1 }
 0x118   : > { %5890 = vmatpush3.msra.mxu0 %v603_v43  ;;  %821 = vrot.lane.b32.xlu1 %v8042_v26, %s7265_s28  ;;  %v7131_v43 = vld [vmem:[%s7330_s26 + $0x60] sm:$0xff] }
 0x119   : > { %v1689_v5 = vadd.f32 %v1688_v62, %v1687_v4  ;;  %v1600_v9 = vmul.f32 %v7131_v43, %v7902_v28 }
 0x11a   : > { %v633_v14 = vpop.permute.xlu0 %632  ;;  %v601_v47 = vpop.permute.xlu1 %600 }
 0x11b   : > { %5891 = vmatprep.subr.mxu0 %v633_v14  ;;  %6738 = vxpose.xlu0.b32.end [16/16] (narrow) %v6737_v55, 8  ;;  %v1690_v34 = vmax.f32 %v1689_v5, 1e-24  ;;  %v6804_v45 = vpack.i.bf16 %v1600_v9, %v1616_v19  ;;  %v7132_v55 = vld [vmem:[%s7330_s26 + $0x70] sm:$0xff] }
 0x11c   : > { %5892 = vmatpush3.msra.mxu0 %v601_v47  ;;  %6785 = vrot.lane.b32.xlu1 %v6784_v7, %s7266_s29  ;;  %v1602_v14 = vmul.f32 %v7132_v55, %v7902_v28  ;;  %v1618_v47 = vmul.f32 %v7902_v28, %v10826_v42 }
 0x11d   : > { %7101 = vrsqrt.f32 %v1690_v34 }
 0x11e   : > { %v631_v54 = vpop.permute.xlu0 %630  ;;  %v599_v1 = vpop.permute.xlu1 %598  ;;  %v6814_v58 = vpack.i.bf16 %v1602_v14, %v1618_v47  ;;  %v8163_v14 = vld [vmem:[%s7330_s26 + $0xa0] sm:$0xff] }
 0x11f   : > { %5893 = vmatprep.subr.mxu0 %v631_v54  ;;  %10844 = vst [vmem:[#allocation5_spill] sm:$0xff] %v8163_v14  ;;  %v1608_v47 = vmul.f32 %v8163_v14, %v7902_v28 }
 0x120   : > { %5894 = vmatpush3.msra.mxu0 %v599_v1  ;;  %6790 = vrot.lane.b32.xlu1 %v6789_v30, %s7266_s29  ;;  %v8117_v30 = vld [vmem:[%s7330_s26 + $0xc8] sm:$0xff] }
 0x121   : > { %10836 = vst [vmem:[#allocation39_spill] sm:$0xff] %v8117_v30 }
 0x122   : > { %v629_v16 = vpop.permute.xlu0 %628  ;;  %v597_v8 = vpop.permute.xlu1 %596 }
 0x123   : > { %5895 = vmatprep.subr.mxu0 %v629_v16 }
 0x124   : > { %5896 = vmatpush3.msra.mxu0 %v597_v8  ;;  %823 = vrot.lane.b32.xlu1 %v8053_v15, %s7265_s28 }
 0x126   : > { %v627_v53 = vpop.permute.xlu0 %626  ;;  %v595_v10 = vpop.permute.xlu1 %594 }
 0x127   : > { %5897 = vmatprep.subr.mxu0 %v627_v53  ;;  %v8108_v53 = vld [vmem:[%s7330_s26 + $0xd0] sm:$0xff] }
 0x128   : > { %5898 = vmatpush3.msra.mxu0 %v595_v10  ;;  %6795 = vrot.lane.b32.xlu1 %v6794_v20, %s7266_s29  ;;  %10835 = vst [vmem:[#allocation12_spill] sm:$0xff] %v8108_v53  ;;  %v8144_v20 = vld [vmem:[%s7330_s26 + $0x30] sm:$0xff] }
 0x129   : > { %10840 = vst [vmem:[#allocation7_spill] sm:$0xff] %v8144_v20 }
 0x12a   : > { %v625_v46 = vpop.permute.xlu0 %624  ;;  %v593_v27 = vpop.permute.xlu1 %592 }
 0x12b   : > { %5899 = vmatprep.subr.mxu0 %v625_v46  ;;  %v8074_v54 = vpop.eup %7101 }
 0x12c   : > { %5900 = vmatpush3.msra.mxu0 %v593_v27  ;;  %827 = vrot.lane.b32.xlu1 %v7131_v43, %s7265_s28  ;;  %v1723_v1 = vmul.f32 %v8074_v54, %v10830_v24  ;;  %v1722_v22 = vmul.f32 %v8074_v54, %v10826_v42  ;;  %v1706_v37 = vmul.f32 %v7132_v55, %v8074_v54  ;;  %v8094_v24 = vld [vmem:[%s7330_s26 + $0xe0] sm:$0xff] }
 0x12d   : > { %v1721_v16 = vmul.f32 %v8074_v54, %v10824_v38  ;;  %10834 = vst [vmem:[#allocation30_spill] sm:$0xff] %v8094_v24  ;;  %v1720_v42 = vmul.f32 %v8094_v24, %v8074_v54  ;;  %v1704_v8 = vmul.f32 %v7131_v43, %v8074_v54  ;;  %v8102_v38 = vld [vmem:[%s7330_s26 + $0xd8] sm:$0xff]  ;;  %v1718_v10 = vmul.f32 %v8108_v53, %v8074_v54  ;;  %v8123_v27 = vld [vmem:[%s7330_s26 + $0xc0] sm:$0xff]  ;;  %v8150_v43 = vld [vmem:[%s7330_s26 + $0xa8] sm:$0xff] }
 0x12e   : > { %v623_v23 = vpop.permute.xlu0 %622  ;;  %v591_v13 = vpop.permute.xlu1 %590  ;;  %v1719_v50 = vmul.f32 %v8102_v38, %v8074_v54  ;;  %v1702_v4 = vmul.f32 %v8053_v15, %v8074_v54  ;;  %v1717_v46 = vmul.f32 %v8117_v30, %v8074_v54  ;;  %10837 = vst [vmem:[#allocation29_spill] sm:$0xff] %v8123_v27  ;;  %v1716_v62 = vmul.f32 %v8123_v27, %v8074_v54 }
 0x12f   : > { %5901 = vmatprep.subr.mxu0 %v623_v23  ;;  %v1700_v61 = vmul.f32 %v8033_v63, %v8074_v54  ;;  %v1715_v23 = vmul.f32 %v8132_v21, %v8074_v54  ;;  %v1698_v34 = vmul.f32 %v8144_v20, %v8074_v54  ;;  %10841 = vst [vmem:[#allocation27_spill] sm:$0xff] %v8150_v43  ;;  %v757_v15 = vstv %s756_s5  ;;  %v10875_v63 = vld [vmem:[#allocation13_spill] sm:$0xff] }
 0x130   : > { %5902 = vmatpush3.msra.mxu0 %v591_v13  ;;  %6805 = vrot.lane.b32.xlu1 %v6804_v45, %s7266_s29  ;;  %v8138_v13 = vld [vmem:[%s7330_s26 + $0xb0] sm:$0xff]  ;;  %v1713_v9 = vmul.f32 %v8150_v43, %v8074_v54  ;;  %v8158_v45 = vld [vmem:[%s7330_s26 + $0x20] sm:$0xff] }
 0x131   : > { %10839 = vst [vmem:[#allocation28_spill] sm:$0xff] %v8138_v13  ;;  %v1714_v5 = vmul.f32 %v8138_v13, %v8074_v54  ;;  %10843 = vst [vmem:[#allocation26_spill] sm:$0xff] %v8158_v45 }
 0x132   : > { %v804_v39 = vpop.permute.xlu1 %803 }
 0x133   : > { %6277 = vmatprep.mubr.msk.f32.mxu1 %vm286_vm2, %v804_v39 }
 0x134   : > { %831 = vrot.lane.b32.xlu1 %v7132_v55, %s7265_s28  ;;  %v1592_v55 = vmul.f32 %v8158_v45, %v7902_v28 }
 0x136   : > { %v8155_v19 = vpop.permute.xlu1 %805 }
 0x137   : > { %10842 = vst [vmem:[#allocation6_spill] sm:$0xff] %v8155_v19 }
 0x138   : > { %6815 = vrot.lane.b32.xlu1 %v6814_v58, %s7266_s29 }
 0x13c   : > { %835 = vrot.lane.b32.xlu1 %v8077_v31, %s7265_s28 }
 0x140   : > { %2010 = vrot.lane.b32.xlu1 %v1723_v1, %s7267_s30  ;;  %v6764_v1 = vpack.i.bf16 %v1592_v55, %v1608_v47  ;;  %v8209_v55 = vld [vmem:[%s7330_s26 + $0x88] sm:$0xff] }
 0x144   : > { %2008 = vrot.lane.b32.xlu1 %v1722_v22, %s7267_s30  ;;  %6765 = vrot.lane.b32.xlu0 %v6764_v1, %s7266_s29 }
 0x148   : > { %1976 = vrot.lane.b32.xlu1 %v1706_v37, %s7267_s30  ;;  %v8173_v37 = vld [vmem:[%s7330_s26 + $0x58] sm:$0xff] }
 0x149   : > { %10845 = vst [vmem:[#allocation33_spill] sm:$0xff] %v8173_v37  ;;  %825 = vrot.lane.b32.xlu0 %v8173_v37, %s7265_s28  ;;  %v1599_v39 = vmul.f32 %v8173_v37, %v7902_v28 }
 0x14c   : > { %2006 = vrot.lane.b32.xlu1 %v1721_v16, %s7267_s30  ;;  %v1615_v16 = vmul.f32 %v8102_v38, %v7902_v28 }
 0x150   : > { %2004 = vrot.lane.b32.xlu1 %v1720_v42, %s7267_s30  ;;  %v6799_v42 = vpack.i.bf16 %v1599_v39, %v1615_v16 }
 0x151   : > { %v8167_v58 = vpop.permute.xlu1 %6745 }
 0x152   : > { %6800 = vrot.lane.b32.xlu0 %v6799_v42, %s7266_s29 }
 0x154   : > { %1972 = vrot.lane.b32.xlu1 %v1704_v8, %s7267_s30  ;;  %v7146_v8 = vld [vmem:[%s7330_s26 + $0x68] sm:$0xff] }
 0x155   : > { %v8170_v22 = vpop.permute.xlu1 %6750 }
 0x156   : > { %829 = vrot.lane.b32.xlu0 %v7146_v8, %s7265_s28 }
 0x158   : > { %2002 = vrot.lane.b32.xlu1 %v1719_v50, %s7267_s30 }
 0x159   : > { %v8189_v50 = vpop.permute.xlu1 %807 }
 0x15a   : > { %10846 = vst [vmem:[#allocation22_spill] sm:$0xff] %v8189_v50  ;;  %v1712_v50 = vmul.f32 %v8163_v14, %v8074_v54 }
 0x15b   : > { %v6739_v0 = vpop.trf.xlu0 }
 0x15c   : > { %v6740_v7 = vunpack.i.l.bf16 %v6739_v0  ;;  %v6743_v32 = vunpack.i.h.bf16 %v6739_v0  ;;  %2000 = vrot.lane.b32.xlu1 %v1718_v10, %s7267_s30  ;;  %v1601_v0 = vmul.f32 %v7146_v8, %v7902_v28 }
 0x15e   : > { %750 = vmatprep.mubr.f32.mxu0 %v6740_v7  ;;  %v8185_v7 = vld [vmem:[%s7330_s26 + $0xe8] sm:$0xff] }
 0x15f   : > { %751 = vmatmul.mubr.f32.vlgmr.msra.gmra.mxu0 %v6743_v32  ;;  %v1617_v32 = vmul.f32 %v8185_v7, %v7902_v28 }
 0x160   : > { %1968 = vrot.lane.b32.xlu1 %v1702_v4, %s7267_s30  ;;  %v8192_v4 = vpop.permute.xlu1 %809 }
 0x161   : > { %v6809_v10 = vpack.i.bf16 %v1601_v0, %v1617_v32  ;;  %10847 = vst [vmem:[#allocation34_spill] sm:$0xff] %v8192_v4 }
 0x163   : > { %6810 = vrot.lane.b32.xlu0 %v6809_v10, %s7266_s29 }
 0x164   : > { %1998 = vrot.lane.b32.xlu1 %v1717_v46, %s7267_s30  ;;  %v7148_v46 = vld [vmem:[%s7330_s26 + $0x78] sm:$0xff] }
 0x165   : > { %v1707_v19 = vmul.f32 %v7148_v46, %v8074_v54 }
 0x167   : > { %833 = vrot.lane.b32.xlu0 %v7148_v46, %s7265_s28 }
 0x168   : > { %1996 = vrot.lane.b32.xlu1 %v1716_v62, %s7267_s30  ;;  %v1603_v62 = vmul.f32 %v7148_v46, %v7902_v28 }
 0x16c   : > { %1964 = vrot.lane.b32.xlu1 %v1700_v61, %s7267_s30  ;;  %v8198_v61 = vld [vmem:[%s7330_s26 + $0xf8] sm:$0xff] }
 0x16d   : > { %10848 = vst [vmem:[#allocation23_spill] sm:$0xff] %v8198_v61 }
 0x170   : > { %1994 = vrot.lane.b32.xlu1 %v1715_v23, %s7267_s30  ;;  %v1619_v23 = vmul.f32 %v8198_v61, %v7902_v28 }
 0x174   : > { %1992 = vrot.lane.b32.xlu1 %v1714_v5, %s7267_s30  ;;  %v6819_v5 = vpack.i.bf16 %v1603_v62, %v1619_v23 }
 0x176   : > { %6820 = vrot.lane.b32.xlu0 %v6819_v5, %s7266_s29  ;;  %s10463_s29 = scalar_lea.vmem %s10602_s4, %s5869_s23 }
 0x178   : > { %1960 = vrot.lane.b32.xlu1 %v1698_v34, %s7267_s30  ;;  %v8203_v34 = vpop.permute.xlu1 %6755 }
 0x17a   : > { %837 = vrot.lane.b32.xlu0 %v8209_v55, %s7265_s28 }
 0x17c   : > { %1990 = vrot.lane.b32.xlu1 %v1713_v9, %s7267_s30  ;;  %v8206_v9 = vpop.permute.xlu1 %6760 }
 0x17e   : > { %1978 = vrot.lane.b32.xlu0 %v1707_v19, %s7267_s30 }
 0x180   : > { %v8213_v47 = vpop.permute.xlu1 %811 }
 0x181   : > { %10849 = vst [vmem:[#allocation36_spill] sm:$0xff] %v8213_v47 }
 0x184   : > { %v8215_v1 = vpop.permute.xlu1 %813 }
 0x185   : > { %10850 = vst [vmem:[#allocation24_spill] sm:$0xff] %v8215_v1 }
 0x188   : > { %v8217_v39 = vpop.permute.xlu1 %6770 }
 0x18c   : > { %v8219_v28 = vpop.permute.xlu1 %815 }
 0x18d   : > { %10851 = vst [vmem:[#allocation38_spill] sm:$0xff] %v8219_v28 }
 0x190   : > { %v8221_v16 = vpop.permute.xlu1 %817 }
 0x191   : > { %10852 = vst [vmem:[#allocation42_spill] sm:$0xff] %v8221_v16 }
 0x194   : > { %v8223_v42 = vpop.permute.xlu1 %6775 }
 0x198   : > { %v8225_v0 = vpop.permute.xlu1 %6780 }
 0x19c   : > { %v8227_v32 = vpop.permute.xlu1 %819 }
 0x19d   : > { %10853 = vst [vmem:[#allocation25_spill] sm:$0xff] %v8227_v32 }
 0x1a0   : > { %v8229_v10 = vpop.permute.xlu1 %821 }
 0x1a1   : > { %10854 = vst [vmem:[#allocation40_spill] sm:$0xff] %v8229_v10 }
 0x1a4   : > { %v8231_v62 = vpop.permute.xlu1 %6785 }
 0x1a8   : > { %v8233_v1 = vpop.permute.xlu1 %6790 }
 0x1ac   : > { %v8239_v32 = vpop.permute.xlu1 %823 }
 0x1ad   : > { %10855 = vst [vmem:[#allocation43_spill] sm:$0xff] %v8239_v32 }
 0x1b0   : > { %v8241_v10 = vpop.permute.xlu1 %6795 }
 0x1b4   : > { %v8243_v4 = vpop.permute.xlu1 %827 }
 0x1b5   : > { %10856 = vst [vmem:[#allocation44_spill] sm:$0xff] %v8243_v4 }
 0x21f   : > { %v5903_v23 = vpop.f32.mrf.mxu0 }
 0x221   : > { %v5904_v5 = vpop.f32.mrf.mxu0 }
 0x222   : > { %v5905_v28 = vadd.f32 %v5904_v5, %v5903_v23  ;;  %v8261_v23 = vld [vmem:[%s7330_s26 + $0x98] sm:$0xff] }
 0x223   : > { %10858 = vst [vmem:[#allocation46_spill] sm:$0xff] %v8261_v23  ;;  %v1711_v19 = vmul.f32 %v8261_v23, %v8074_v54 }
 0x224   : > { %v8235_v16 = vmul.f32 %v5905_v28, %v757_v15  ;;  %v1696_v15 = vmul.f32 %v8158_v45, %v8074_v54  ;;  %v8255_v28 = vld [vmem:[%s7330_s26 + $0x90] sm:$0xff] }
 0x225   : > { %10857 = vst [vmem:[#allocation45_spill] sm:$0xff] %v8255_v28  ;;  %839 = vrot.lane.b32.xlu0 %v8255_v28, %s7265_s28  ;;  %v1710_v5 = vmul.f32 %v8255_v28, %v8074_v54 }
 0x226   : > { %v760_v47 = vsel %vm759_vm4, %v8235_v16, -inf }
 0x227   : > { %761 = vmax.xlane.f32.xlu1 %v760_v47  ;;  %v8252_v47 = vpop.permute.xlu1 %6805 }
 0x229   : > { %841 = vrot.lane.b32.xlu0 %v8261_v23, %s7265_s28 }
 0x22b   : > { %v8268_v46 = vpop.permute.xlu1 %831 }
 0x22c   : > { %10859 = vst [vmem:[#allocation47_spill] sm:$0xff] %v8268_v46 }
 0x22f   : > { %v8280_v32 = vpop.permute.xlu1 %6815 }
 0x230   : > { %10860 = vst [vmem:[#allocation48_spill] sm:$0xff] %v8280_v32  ;;  %v2872_v32 = vsel %vm2840_vm5, %v7480_v60, 0.0 }
 0x238   : > { %1988 = vrot.lane.b32.xlu1 %v1712_v50, %s7267_s30  ;;  %v1705_v50 = vmul.f32 %v7146_v8, %v8074_v54  ;;  %v1709_v8 = vmul.f32 %v8209_v55, %v8074_v54 }
 0x23a   : > { %1974 = vrot.lane.b32.xlu0 %v1705_v50, %s7267_s30  ;;  %v8291_v50 = vpop.permute.xlu1 %835 }
 0x23b   : > { %10861 = vst [vmem:[#allocation49_spill] sm:$0xff] %v8291_v50 }
 0x23c   : > { %1956 = vrot.lane.b32.xlu1 %v1696_v15, %s7267_s30  ;;  %v8276_v15 = vld [vmem:[%s7330_s26 + $0x10] sm:$0xff] }
 0x23d   : > { %v1694_v4 = vmul.f32 %v8276_v15, %v8074_v54 }
 0x23e   : > { %843 = vrot.lane.b32.xlu0 %v8163_v14, %s7265_s28 }
 0x240   : > { %1986 = vrot.lane.b32.xlu1 %v1711_v19, %s7267_s30  ;;  %v1703_v19 = vmul.f32 %v8173_v37, %v8074_v54  ;;  %v2846_v37 = vsel %vm2840_vm5, %v10875_v63, 0.0 }
 0x242   : > { %845 = vrot.lane.b32.xlu0 %v8150_v43, %s7265_s28 }
 0x244   : > { %1984 = vrot.lane.b32.xlu1 %v1710_v5, %s7267_s30  ;;  %v8295_v5 = vpop.permute.xlu1 %2010 }
 0x245   : > { %10862 = vst [vmem:[#allocation50_spill] sm:$0xff] %v8295_v5 }
 0x246   : > { %1970 = vrot.lane.b32.xlu0 %v1703_v19, %s7267_s30 }
 0x248   : > { %1952 = vrot.lane.b32.xlu1 %v1694_v4, %s7267_s30  ;;  %v1701_v4 = vmul.f32 %v8042_v26, %v8074_v54  ;;  %v8303_v46 = vpop.permute.xlu1 %2008 }
 0x249   : > { %10863 = vst [vmem:[#allocation51_spill] sm:$0xff] %v8303_v46 }
 0x24a   : > { %847 = vrot.lane.b32.xlu0 %v8138_v13, %s7265_s28  ;;  %v10879_v13 = vld [vmem:[#allocation17_spill] sm:$0xff] }
 0x24c   : > { %1982 = vrot.lane.b32.xlu1 %v1709_v8, %s7267_s30  ;;  %v8306_v50 = vpop.permute.xlu1 %1976  ;;  %v1699_v8 = vmul.f32 %v8016_v3, %v8074_v54  ;;  %v8358_v3 = vld [vmem:[%s7330_s26 + $0xf0] sm:$0xff] }
 0x24d   : > { %10864 = vst [vmem:[#allocation52_spill] sm:$0xff] %v8306_v50  ;;  %10878 = vst [vmem:[#allocation61_spill] sm:$0xff] %v8358_v3 }
 0x24e   : > { %849 = vrot.lane.b32.xlu0 %v8132_v21, %s7265_s28 }
 0x250   : > { %v8314_v19 = vpop.permute.xlu1 %2006 }
 0x251   : > { %10865 = vst [vmem:[#allocation53_spill] sm:$0xff] %v8314_v19 }
 0x252   : > { %1966 = vrot.lane.b32.xlu0 %v1701_v4, %s7267_s30  ;;  %v8324_v4 = vld [vmem:[%s7330_s26 + $0x28] sm:$0xff] }
 0x253   : > { %10867 = vst [vmem:[#allocation55_spill] sm:$0xff] %v8324_v4  ;;  %v1697_v50 = vmul.f32 %v8324_v4, %v8074_v54  ;;  %v10884_v4 = vld [vmem:[#allocation20_spill] sm:$0xff] }
 0x254   : > { %v8317_v26 = vpop.permute.xlu1 %2004 }
 0x255   : > { %10866 = vst [vmem:[#allocation54_spill] sm:$0xff] %v8317_v26 }
 0x256   : > { %851 = vrot.lane.b32.xlu0 %v8123_v27, %s7265_s28 }
 0x25a   : > { %853 = vrot.lane.b32.xlu0 %v8117_v30, %s7265_s28  ;;  %v8328_v30 = vpop.permute.xlu1 %1972 }
 0x25b   : > { %10868 = vst [vmem:[#allocation56_spill] sm:$0xff] %v8328_v30  ;;  %v10872_v30 = vld [vmem:[#allocation11_spill] sm:$0xff] }
 0x25e   : > { %1962 = vrot.lane.b32.xlu0 %v1699_v8, %s7267_s30  ;;  %v8331_v8 = vpop.permute.xlu1 %2002 }
 0x25f   : > { %10869 = vst [vmem:[#allocation57_spill] sm:$0xff] %v8331_v8  ;;  %v8346_v8 = vld [vmem:[%s7330_s26 + $0x18] sm:$0xff] }
 0x260   : > { %10874 = vst [vmem:[#allocation59_spill] sm:$0xff] %v8346_v8 }
 0x262   : > { %855 = vrot.lane.b32.xlu0 %v8108_v53, %s7265_s28  ;;  %v10870_v53 = vld [vmem:[#allocation9_spill] sm:$0xff]  ;;  %v8343_v27 = vpop.permute.xlu1 %2000 }
 0x263   : > { %v2841_v26 = vsel %vm2840_vm5, %v10870_v53, 0.0  ;;  %10873 = vst [vmem:[#allocation58_spill] sm:$0xff] %v8343_v27 }
 0x266   : > { %857 = vrot.lane.b32.xlu0 %v8102_v38, %s7265_s28  ;;  %v10871_v38 = vld [vmem:[#allocation10_spill] sm:$0xff] }
 0x267   : > { %v2842_v19 = vsel %vm2840_vm5, %v10871_v38, 0.0 }
 0x268   : > { %v2843_v46 = vadd.f32 %v2842_v19, %v2841_v26  ;;  %v8353_v26 = vpop.permute.xlu1 %1968  ;;  %v10877_v19 = vld [vmem:[#allocation15_spill] sm:$0xff] }
 0x269   : > { %10876 = vst [vmem:[#allocation60_spill] sm:$0xff] %v8353_v26  ;;  %v2848_v21 = vsel %vm2840_vm5, %v10877_v19, 0.0  ;;  %v10881_v26 = vld [vmem:[#allocation18_spill] sm:$0xff] }
 0x26a   : > { %1958 = vrot.lane.b32.xlu0 %v1697_v50, %s7267_s30  ;;  %v2844_v50 = vsel %vm2840_vm5, %v10872_v30, 0.0  ;;  %v2852_v20 = vsel %vm2840_vm5, %v10881_v26, 0.0 }
 0x26b   : > { %v2845_v5 = vadd.f32 %v2844_v50, %v2843_v46  ;;  %v2850_v46 = vsel %vm2840_vm5, %v10879_v13, 0.0 }
 0x26c   : > { %v8364_v50 = vpop.permute.xlu1 %1998 }
 0x26d   : > { %10880 = vst [vmem:[#allocation62_spill] sm:$0xff] %v8364_v50 }
 0x26e   : > { %859 = vrot.lane.b32.xlu0 %v8094_v24, %s7265_s28  ;;  %v1695_v24 = vmul.f32 %v8346_v8, %v8074_v54 }
 0x272   : > { %861 = vrot.lane.b32.xlu0 %v8185_v7, %s7265_s28  ;;  %v2847_v7 = vadd.f32 %v2846_v37, %v2845_v5 }
 0x274   : > { %v2849_v27 = vadd.f32 %v2848_v21, %v2847_v7  ;;  %v8376_v21 = vpop.permute.xlu1 %1996 }
 0x275   : > { %10882 = vst [vmem:[#allocation18_spill] sm:$0xff] %v8376_v21 }
 0x276   : > { %1954 = vrot.lane.b32.xlu0 %v1695_v24, %s7267_s30  ;;  %v8369_v24 = vld [vmem:[%s7330_s26 + $0x8] sm:$0xff]  ;;  %v2851_v5 = vadd.f32 %v2850_v46, %v2849_v27  ;;  %v10886_v27 = vld [vmem:[#allocation21_spill] sm:$0xff] }
 0x277   : > { %v1693_v37 = vmul.f32 %v8369_v24, %v8074_v54  ;;  %v2858_v46 = vsel %vm2840_vm5, %v10886_v27, 0.0 }
 0x278   : > { %v2853_v7 = vadd.f32 %v2852_v20, %v2851_v5  ;;  %v8382_v14 = vpop.permute.xlu1 %1964  ;;  %v2860_v20 = vsel %vm2840_vm5, %v7426_v36, 0.0 }
 0x27a   : > { %863 = vrot.lane.b32.xlu0 %v8358_v3, %s7265_s28  ;;  %v10883_v3 = vld [vmem:[#allocation19_spill] sm:$0xff] }
 0x27b   : > { %v2854_v50 = vsel %vm2840_vm5, %v10883_v3, 0.0  ;;  %10885 = vst [vmem:[#allocation19_spill] sm:$0xff] %v8382_v14  ;;  %v2864_v14 = vsel %vm2840_vm5, %v7444_v44, 0.0 }
 0x27c   : > { %v2855_v43 = vadd.f32 %v2854_v50, %v2853_v7  ;;  %v8386_v23 = vpop.permute.xlu1 %1994  ;;  %v2862_v50 = vsel %vm2840_vm5, %v7435_v40, 0.0 }
 0x27d   : > { %10887 = vst [vmem:[#allocation20_spill] sm:$0xff] %v8386_v23  ;;  %v2866_v23 = vsel %vm2840_vm5, %v7453_v48, 0.0 }
 0x27e   : > { %865 = vrot.lane.b32.xlu0 %v8198_v61, %s7265_s28  ;;  %v2856_v61 = vsel %vm2840_vm5, %v10884_v4, 0.0 }
 0x27f   : > { %v2857_v45 = vadd.f32 %v2856_v61, %v2855_v43 }
 0x280   : > { %v8392_v7 = vpop.permute.xlu1 %1992 }
 0x281   : > { %10888 = vst [vmem:[#allocation21_spill] sm:$0xff] %v8392_v7 }
 0x282   : > { %1950 = vrot.lane.b32.xlu0 %v1693_v37, %s7267_s30  ;;  %v2859_v37 = vadd.f32 %v2858_v46, %v2857_v45  ;;  %v8401_v45 = vld [vmem:[%s7330_s26] sm:$0xff] }
 0x283   : > { %v1692_v46 = vmul.f32 %v8401_v45, %v8074_v54 }
 0x284   : > { %v2861_v5 = vadd.f32 %v2860_v20, %v2859_v37  ;;  %v8396_v43 = vpop.permute.xlu1 %1960  ;;  %v2868_v20 = vsel %vm2840_vm5, %v7462_v52, 0.0 }
 0x285   : > { %10889 = vst [vmem:[#allocation63_spill] sm:$0xff] %v8396_v43 }
 0x286   : > { %v2863_v21 = vadd.f32 %v2862_v50, %v2861_v5  ;;  %1948 = vrot.lane.b32.xlu0 %v1692_v46, %s7267_s30  ;;  %v2876_v46 = vsel %vm2840_vm5, %v7498_v17, 0.0 }
 0x288   : > { %v2865_v61 = vadd.f32 %v2864_v14, %v2863_v21  ;;  %v8407_v7 = vpop.permute.xlu1 %1990  ;;  %v2870_v14 = vsel %vm2840_vm5, %v7471_v56, 0.0 }
 0x289   : > { %10890 = vst [vmem:[#allocation64_spill] sm:$0xff] %v8407_v7 }
 0x28a   : > { %v2867_v37 = vadd.f32 %v2866_v23, %v2865_v61  ;;  %v2874_v61 = vsel %vm2840_vm5, %v7489_v11, 0.0  ;;  %2128 = vrot.lane.b32.xlu0 %v8401_v45, %s7268_s6 }
 0x28c   : > { %v2869_v5 = vadd.f32 %v2868_v20, %v2867_v37  ;;  %v2878_v20 = vsel %vm2840_vm5, %v7507_v25, 0.0 }
 0x28e   : > { %v2871_v43 = vadd.f32 %v2870_v14, %v2869_v5  ;;  %2130 = vrot.lane.b32.xlu0 %v8369_v24, %s7268_s6 }
 0x290   : > { %v2873_v23 = vadd.f32 %v2872_v32, %v2871_v43  ;;  %v2880_v32 = vsel %vm2840_vm5, %v7516_v33, 0.0  ;;  %v2882_v43 = vsel %vm2840_vm5, %v7525_v41, 0.0 }
 0x292   : > { %v2875_v7 = vadd.f32 %v2874_v61, %v2873_v23  ;;  %v2886_v23 = vsel %vm2840_vm5, %v7543_v57, 0.0  ;;  %v1708_v61 = vmul.f32 %v8077_v31, %v8074_v54  ;;  %v2945_v54 = vsel %vm2944_vm6, %v10870_v53, 0.0 }
 0x294   : > { %v2877_v37 = vadd.f32 %v2876_v46, %v2875_v7  ;;  %v2884_v7 = vsel %vm2840_vm5, %v7534_v49, 0.0 }
 0x2b0   : > { %v762_v21 = vpop.xlane.xlu1 %761 }
 0x2b1   : > { %v763_v50 = vsub.f32 %v8235_v16, %v762_v21  ;;  %v2879_v16 = vadd.f32 %v2878_v20, %v2877_v37  ;;  %v8431_v21 = vpop.permute.xlu0 %6765  ;;  %v2888_v20 = vsel %vm2840_vm5, %v7552_v12, 0.0 }
 0x2b3   : > { %v764_v8 = vmul.f32 1.442695, %v763_v50 }
 0x2b5   : > { %7103 = vpow2.f32 %v764_v8  ;;  %v2881_v8 = vadd.f32 %v2880_v32, %v2879_v16  ;;  %v8437_v46 = vpop.permute.xlu0 %825 }
 0x2b6   : > { %10891 = vst [vmem:[#allocation65_spill] sm:$0xff] %v8437_v46 }
 0x2b7   : > { %v2883_v14 = vadd.f32 %v2882_v43, %v2881_v8  ;;  %v2892_v43 = vsel %vm2840_vm5, %v7574_v51, 0.0 }
 0x2b9   : > { %v2885_v50 = vadd.f32 %v2884_v7, %v2883_v14  ;;  %v8444_v32 = vpop.permute.xlu0 %6800  ;;  %v2946_v14 = vsel %vm2944_vm6, %v10871_v38, 0.0  ;;  %v2950_v38 = vsel %vm2944_vm6, %v10875_v63, 0.0 }
 0x2bb   : > { %v2887_v37 = vadd.f32 %v2886_v23, %v2885_v50  ;;  %v2894_v23 = vsel %vm2840_vm5, %v10802_v59, 0.0 }
 0x2bd   : > { %v2889_v16 = vadd.f32 %v2888_v20, %v2887_v37  ;;  %v8452_v7 = vpop.permute.xlu0 %829  ;;  %v2948_v37 = vsel %vm2944_vm6, %v10872_v30, 0.0 }
 0x2c1   : > { %v8460_v46 = vpop.permute.xlu0 %6810 }
 0x2c2   : > { %v8421_v28 = vpop.eup %7103 }
 0x2c3   : > { %v766_v5 = vsel %vm759_vm4, %v8421_v28, 0.0 }
 0x2c4   : > { %767 = vadd.xlane.f32.xlu1 %v766_v5  ;;  %v2890_v5 = vsel %vm2840_vm5, %v7565_v35, 0.0 }
 0x2c5   : > { %v2891_v8 = vadd.f32 %v2890_v5, %v2889_v16  ;;  %v2896_v16 = vsel %vm2840_vm5, %v10820_v18, 0.0 }
 0x2c7   : > { %v2893_v50 = vadd.f32 %v2892_v43, %v2891_v8  ;;  %v2898_v8 = vsel %vm2840_vm5, %v10808_v2, 0.0 }
 0x2c9   : > { %v2895_v20 = vadd.f32 %v2894_v23, %v2893_v50  ;;  %v2900_v23 = vsel %vm2840_vm5, %v10811_v6, 0.0 }
 0x2cb   : > { %v2897_v53 = vadd.f32 %v2896_v16, %v2895_v20  ;;  %v2902_v20 = vsel %vm2840_vm5, %v10828_v29, 0.0 }
 0x2cd   : > { %v2899_v50 = vadd.f32 %v2898_v8, %v2897_v53  ;;  %v2958_v53 = vsel %vm2944_vm6, %v10883_v3, 0.0 }
 0x2cf   : > { %v2901_v30 = vadd.f32 %v2900_v23, %v2899_v50  ;;  %v2960_v50 = vsel %vm2944_vm6, %v10884_v4, 0.0 }
 0x2d5   : > { %1980 = vrot.lane.b32.xlu1 %v1708_v61, %s7267_s30  ;;  %v2947_v61 = vadd.f32 %v2946_v14, %v2945_v54  ;;  %v2952_v54 = vsel %vm2944_vm6, %v10877_v19, 0.0  ;;  %v8468_v14 = vpop.permute.xlu0 %833 }
 0x2d7   : > { %v2949_v5 = vadd.f32 %v2948_v37, %v2947_v61  ;;  %v2954_v37 = vsel %vm2944_vm6, %v10879_v13, 0.0 }
 0x2d9   : > { %v2951_v43 = vadd.f32 %v2950_v38, %v2949_v5  ;;  %v8476_v63 = vpop.permute.xlu0 %6820  ;;  %v2956_v38 = vsel %vm2944_vm6, %v10881_v26, 0.0  ;;  %v2903_v5 = vadd.f32 %v2902_v20, %v2901_v30 }
 0x2db   : > { %v2953_v61 = vadd.f32 %v2952_v54, %v2951_v43  ;;  %v2904_v43 = vrot.slane %v2903_v5, 4 }
 0x2dd   : > { %v2955_v16 = vadd.f32 %v2954_v37, %v2953_v61  ;;  %v8482_v8 = vpop.permute.xlu0 %837  ;;  %v2905_v23 = vadd.f32 %v2904_v43, %v2903_v5  ;;  %v2962_v37 = vsel %vm2944_vm6, %v10886_v27, 0.0  ;;  %v2966_v5 = vsel %vm2944_vm6, %v7435_v40, 0.0 }
 0x2df   : > { %v2957_v19 = vadd.f32 %v2956_v38, %v2955_v16  ;;  %v2906_v30 = vrot.slane %v2905_v23, 2  ;;  %v2964_v16 = vsel %vm2944_vm6, %v7426_v36, 0.0 }
 0x2e1   : > { %v2959_v54 = vadd.f32 %v2958_v53, %v2957_v19  ;;  %v8486_v61 = vpop.permute.xlu0 %1978  ;;  %v2907_v38 = vadd.f32 %v2906_v30, %v2905_v23  ;;  %v2970_v23 = vsel %vm2944_vm6, %v7453_v48, 0.0 }
 0x2e3   : > { %v2961_v13 = vadd.f32 %v2960_v50, %v2959_v54  ;;  %v2908_v43 = vrot.slane %v2907_v38, 1 }
 0x2e5   : > { %v2963_v20 = vadd.f32 %v2962_v37, %v2961_v13  ;;  %v8494_v19 = vpop.permute.xlu0 %839  ;;  %v2968_v13 = vsel %vm2944_vm6, %v7444_v44, 0.0 }
 0x2e7   : > { %v2965_v53 = vadd.f32 %v2964_v16, %v2963_v20  ;;  %v2972_v20 = vsel %vm2944_vm6, %v7462_v52, 0.0 }
 0x2e9   : > { %v2967_v54 = vadd.f32 %v2966_v5, %v2965_v53  ;;  %v8499_v50 = vpop.permute.xlu0 %841 }
 0x2ed   : > { %v8507_v37 = vpop.permute.xlu0 %1974 }
 0x2f1   : > { %v8512_v53 = vpop.permute.xlu0 %843 }
 0x2f5   : > { %v8520_v5 = vpop.permute.xlu0 %845 }
 0x2fe   : > { %6825 = vxpose.xlu1.b32.start [1/16] (narrow) %v8167_v58, 8  ;;  %v2909_v58 = vadd.f32 %v2908_v43, %v2907_v38 }
 0x300   : > { %v2910_v30 = vmax.f32 %v2909_v58, 1e-24  ;;  %v8527_v58 = vpop.permute.xlu0 %1970 }
 0x302   : > { %6827 = vxpose.xlu1.b32.cont [2/16] (narrow) %v8170_v22, 8  ;;  %v2969_v22 = vadd.f32 %v2968_v13, %v2967_v54  ;;  %7105 = vrsqrt.f32 %v2910_v30 }
 0x304   : > { %v8541_v30 = vpop.permute.xlu0 %847 }
 0x306   : > { %6829 = vxpose.xlu1.b32.cont [3/16] (narrow) %v8203_v34, 8  ;;  %v2971_v34 = vadd.f32 %v2970_v23, %v2969_v22  ;;  %v2982_v23 = vsel %vm2944_vm6, %v7507_v25, 0.0 }
 0x308   : > { %v2973_v16 = vadd.f32 %v2972_v20, %v2971_v34 }
 0x30a   : > { %6831 = vxpose.xlu1.b32.cont [4/16] (narrow) %v8206_v9, 8  ;;  %v2974_v9 = vsel %vm2944_vm6, %v7471_v56, 0.0 }
 0x30b   : > { %v2975_v38 = vadd.f32 %v2974_v9, %v2973_v16  ;;  %v8552_v16 = vpop.permute.xlu1 %1988 }
 0x30e   : > { %6833 = vxpose.xlu1.b32.cont [5/16] (narrow) %v8431_v21, 8  ;;  %v2976_v21 = vsel %vm2944_vm6, %v7480_v60, 0.0 }
 0x30f   : > { %v2977_v43 = vadd.f32 %v2976_v21, %v2975_v38  ;;  %v8525_v54 = vpop.eup %7105  ;;  %v8555_v38 = vpop.permute.xlu0 %849 }
 0x310   : > { %v2913_v34 = vmul.f32 %v8369_v24, %v8525_v54  ;;  %v2986_v24 = vsel %vm2944_vm6, %v7525_v41, 0.0  ;;  %v8563_v21 = vpop.permute.xlu1 %1956 }
 0x312   : > { %6835 = vxpose.xlu1.b32.cont [6/16] (narrow) %v8217_v39, 8  ;;  %v2978_v39 = vsel %vm2944_vm6, %v7489_v11, 0.0 }
 0x313   : > { %v2979_v13 = vadd.f32 %v2978_v39, %v2977_v43  ;;  %v8566_v43 = vpop.permute.xlu0 %1966  ;;  %v2914_v39 = vmul.f32 %v8276_v15, %v8525_v54 }
 0x316   : > { %6837 = vxpose.xlu1.b32.cont [7/16] (narrow) %v8223_v42, 8  ;;  %v2980_v42 = vsel %vm2944_vm6, %v7498_v17, 0.0 }
 0x317   : > { %v2981_v22 = vadd.f32 %v2980_v42, %v2979_v13 }
 0x319   : > { %v2983_v20 = vadd.f32 %v2982_v23, %v2981_v22  ;;  %v8577_v22 = vpop.permute.xlu1 %1986 }
 0x31a   : > { %6839 = vxpose.xlu1.b32.cont [8/16] (narrow) %v8225_v0, 8  ;;  %v2912_v0 = vmul.f32 %v8401_v45, %v8525_v54  ;;  %v2929_v45 = vmul.f32 %v8209_v55, %v8525_v54 }
 0x31e   : > { %6841 = vxpose.xlu1.b32.cont [9/16] (narrow) %v8231_v62, 8  ;;  %v2928_v62 = vmul.f32 %v8077_v31, %v8525_v54  ;;  %v2984_v31 = vsel %vm2944_vm6, %v7516_v33, 0.0 }
 0x31f   : > { %v2985_v9 = vadd.f32 %v2984_v31, %v2983_v20  ;;  %v8585_v20 = vpop.permute.xlu0 %851  ;;  %v2992_v31 = vsel %vm2944_vm6, %v7552_v12, 0.0 }
 0x321   : > { %v2987_v55 = vadd.f32 %v2986_v24, %v2985_v9  ;;  %v2994_v24 = vsel %vm2944_vm6, %v7565_v35, 0.0 }
 0x322   : > { %6843 = vxpose.xlu1.b32.cont [10/16] (narrow) %v8233_v1, 8  ;;  %v6861_v1 = vpack.i.bf16 %v2912_v0, %v2928_v62  ;;  %v2990_v0 = vsel %vm2944_vm6, %v7543_v57, 0.0  ;;  %v10893_v62 = vld [vmem:[#allocation48_spill] sm:$0xff] }
 0x324   : > { %6862 = vrot.lane.b32.xlu0 %v6861_v1, %s7269_s7 }
 0x326   : > { %6845 = vxpose.xlu1.b32.cont [11/16] (narrow) %v8241_v10, 8  ;;  %v6866_v10 = vpack.i.bf16 %v2913_v34, %v2929_v45 }
 0x328   : > { %6867 = vrot.lane.b32.xlu0 %v6866_v10, %s7269_s7 }
 0x32a   : > { %6847 = vxpose.xlu1.b32.cont [12/16] (narrow) %v8444_v32, 8  ;;  %v2988_v32 = vsel %vm2944_vm6, %v7534_v49, 0.0 }
 0x32b   : > { %v2989_v42 = vadd.f32 %v2988_v32, %v2987_v55  ;;  %v8593_v55 = vpop.permute.xlu1 %1984  ;;  %v8595_v32 = vpop.permute.xlu0 %853 }
 0x32c   : > { %2132 = vrot.lane.b32.xlu0 %v8276_v15, %s7268_s6  ;;  %v10895_v15 = vld [vmem:[#allocation46_spill] sm:$0xff] }
 0x32d   : > { %v2931_v34 = vmul.f32 %v10895_v15, %v8525_v54  ;;  %v2991_v45 = vadd.f32 %v2990_v0, %v2989_v42  ;;  %v10897_v0 = vld [vmem:[#allocation5_spill] sm:$0xff]  ;;  %v10898_v15 = vld [vmem:[#allocation55_spill] sm:$0xff] }
 0x32e   : > { %6849 = vxpose.xlu1.b32.cont [13/16] (narrow) %v8252_v47, 8  ;;  %v10892_v47 = vld [vmem:[#allocation45_spill] sm:$0xff] }
 0x32f   : > { %v2930_v13 = vmul.f32 %v10892_v47, %v8525_v54  ;;  %v2993_v9 = vadd.f32 %v2992_v31, %v2991_v45  ;;  %v2996_v47 = vsel %vm2944_vm6, %v7574_v51, 0.0  ;;  %v2917_v45 = vmul.f32 %v10898_v15, %v8525_v54  ;;  %v10899_v31 = vld [vmem:[#allocation27_spill] sm:$0xff] }
 0x331   : > { %v6871_v23 = vpack.i.bf16 %v2914_v39, %v2930_v13  ;;  %v2995_v39 = vadd.f32 %v2994_v24, %v2993_v9  ;;  %v8600_v13 = vpop.permute.xlu1 %1952  ;;  %v3000_v24 = vsel %vm2944_vm6, %v10820_v18, 0.0 }
 0x332   : > { %6851 = vxpose.xlu1.b32.cont [14/16] (narrow) %v8460_v46, 8  ;;  %v10894_v46 = vld [vmem:[#allocation59_spill] sm:$0xff] }
 0x333   : > { %2134 = vrot.lane.b32.xlu0 %v10894_v46, %s7268_s6  ;;  %v2915_v1 = vmul.f32 %v10894_v46, %v8525_v54  ;;  %v2997_v46 = vadd.f32 %v2996_v47, %v2995_v39 }
 0x335   : > { %v6876_v10 = vpack.i.bf16 %v2915_v1, %v2931_v34  ;;  %v2998_v1 = vsel %vm2944_vm6, %v10802_v59, 0.0  ;;  %v8620_v39 = vpop.permute.xlu1 %1982 }
 0x336   : > { %6853 = vxpose.xlu1.b32.cont [15/16] (narrow) %v10893_v62, 8  ;;  %v2932_v62 = vmul.f32 %v10897_v0, %v8525_v54  ;;  %v2999_v9 = vadd.f32 %v2998_v1, %v2997_v46  ;;  %v10900_v46 = vld [vmem:[#allocation7_spill] sm:$0xff] }
 0x337   : > { %6872 = vrot.lane.b32.xlu0 %v6871_v23, %s7269_s7  ;;  %v8608_v23 = vpop.permute.xlu0 %1962  ;;  %v2918_v1 = vmul.f32 %v10900_v46, %v8525_v54 }
 0x338   : > { %v3001_v0 = vadd.f32 %v3000_v24, %v2999_v9  ;;  %v10903_v24 = vld [vmem:[#allocation8_spill] sm:$0xff] }
 0x33a   : > { %6855 = vxpose.xlu1.b32.end [16/16] (narrow) %v8476_v63, 8  ;;  %v10896_v63 = vld [vmem:[#allocation26_spill] sm:$0xff] }
 0x33b   : > { %6877 = vrot.lane.b32.xlu0 %v6876_v10, %s7269_s7  ;;  %v2916_v42 = vmul.f32 %v10896_v63, %v8525_v54  ;;  %v2933_v10 = vmul.f32 %v10899_v31, %v8525_v54  ;;  %v8622_v47 = vpop.permute.xlu0 %855 }
 0x33d   : > { %v6881_v34 = vpack.i.bf16 %v2916_v42, %v2932_v62  ;;  %v3002_v42 = vsel %vm2944_vm6, %v10808_v2, 0.0 }
 0x33e   : > { %v3003_v18 = vadd.f32 %v3002_v42, %v3001_v0 }
 0x33f   : > { %2136 = vrot.lane.b32.xlu0 %v10896_v63, %s7268_s6  ;;  %v6886_v63 = vpack.i.bf16 %v2917_v45, %v2933_v10  ;;  %v8632_v59 = vpop.permute.xlu0 %857  ;;  %v10902_v45 = vld [vmem:[#allocation32_spill] sm:$0xff] }
 0x340   : > { %v2919_v9 = vmul.f32 %v10902_v45, %v8525_v54 }
 0x343   : > { %2138 = vrot.lane.b32.xlu0 %v10898_v15, %s7268_s6  ;;  %v10901_v15 = vld [vmem:[#allocation28_spill] sm:$0xff]  ;;  %v8644_v0 = vpop.permute.xlu0 %1958 }
 0x344   : > { %v2934_v31 = vmul.f32 %v10901_v15, %v8525_v54  ;;  %v3006_v15 = vsel %vm2944_vm6, %v10828_v29, 0.0 }
 0x346   : > { %v6891_v10 = vpack.i.bf16 %v2918_v1, %v2934_v31 }
 0x347   : > { %6882 = vrot.lane.b32.xlu0 %v6881_v34, %s7269_s7  ;;  %v3004_v34 = vsel %vm2944_vm6, %v10811_v6, 0.0 }
 0x34b   : > { %6887 = vrot.lane.b32.xlu0 %v6886_v63, %s7269_s7  ;;  %v2935_v63 = vmul.f32 %v10903_v24, %v8525_v54  ;;  %v8651_v24 = vpop.permute.xlu0 %859 }
 0x34d   : > { %v768_v62 = vpop.xlane.xlu1 %767  ;;  %v6896_v42 = vpack.i.bf16 %v2919_v9, %v2935_v63 }
 0x34e   : > { %7107 = vrcp.f32 %v768_v62  ;;  %v3005_v62 = vadd.f32 %v3004_v34, %v3003_v18  ;;  %v10904_v18 = vld [vmem:[#allocation33_spill] sm:$0xff]  ;;  %v10905_v34 = vld [vmem:[#allocation16_spill] sm:$0xff] }
 0x34f   : > { %2142 = vrot.lane.b32.xlu0 %v10902_v45, %s7268_s6  ;;  %v2920_v9 = vmul.f32 %v10905_v34, %v8525_v54 }
 0x350   : > { %v3007_v6 = vadd.f32 %v3006_v15, %v3005_v62  ;;  %v10908_v62 = vld [vmem:[#allocation6_spill] sm:$0xff]  ;;  %v8666_v15 = vpop.permute.xlu0 %861 }
 0x352   : > { %v3008_v31 = vrot.slane %v3007_v6, 4 }
 0x353   : > { %6892 = vrot.lane.b32.xlu0 %v6891_v10, %s7269_s7 }
 0x354   : > { %v3009_v10 = vadd.f32 %v3008_v31, %v3007_v6  ;;  %v10910_v6 = vld [vmem:[#allocation51_spill] sm:$0xff] }
 0x355   : > { %v10911_v31 = vld [vmem:[#allocation31_spill] sm:$0xff] }
 0x357   : > { %6897 = vrot.lane.b32.xlu0 %v6896_v42, %s7269_s7  ;;  %v10909_v42 = vld [vmem:[#allocation22_spill] sm:$0xff] }
 0x358   : > { %2140 = vrot.lane.b32.xlu1 %v10900_v46, %s7268_s6  ;;  %v10906_v46 = vld [vmem:[#allocation50_spill] sm:$0xff] }
 0x35b   : > { %v7108_v1 = vpop.eup %7107  ;;  %2144 = vrot.lane.b32.xlu0 %v10905_v34, %s7268_s6  ;;  %v10912_v34 = vld [vmem:[#allocation39_spill] sm:$0xff] }
 0x35c   : > { %v770_v45 = vmul.f32 %v7108_v1, %v8421_v28  ;;  %2150 = vrot.lane.b32.xlu1 %v10904_v18, %s7268_s6  ;;  %v10907_v28 = vld [vmem:[#allocation29_spill] sm:$0xff]  ;;  %v3010_v1 = vrot.slane %v3009_v10, 2  ;;  %v2921_v18 = vmul.f32 %v10911_v31, %v8525_v54 }
 0x35d   : > { %v2936_v63 = vmul.f32 %v10907_v28, %v8525_v54  ;;  %v10913_v28 = vld [vmem:[#allocation52_spill] sm:$0xff] }
 0x35e   : > { %6275 = vmatprep.subr.msk.mxu1 %vm286_vm2, %v770_v45 }
 0x35f   : > { %6276 = vmatpush3.xpose.msk.msra.mxu1 %vm286_vm2, %v770_v45  ;;  %2146 = vrot.lane.b32.xlu0 %v10911_v31, %s7268_s6  ;;  %v6901_v45 = vpack.i.bf16 %v2920_v9, %v2936_v63  ;;  %v10917_v9 = vld [vmem:[#allocation54_spill] sm:$0xff]  ;;  %v1955_v63 = vpop.permute.xlu0 %1954 }
 0x360   : > { %5972 = vmatprep.subr.mxu1 %v10906_v46  ;;  %v2937_v46 = vmul.f32 %v10912_v34, %v8525_v54  ;;  %v10918_v34 = vld [vmem:[#allocation56_spill] sm:$0xff] }
 0x362   : > { %6278 = vmatmul.mubr.msk.f32.vlgmr.msra.gmra.mxu1 %vm286_vm2, %v10908_v62  ;;  %v10914_v62 = vld [vmem:[#allocation34_spill] sm:$0xff]  ;;  %v6906_v31 = vpack.i.bf16 %v2921_v18, %v2937_v46  ;;  %v10924_v18 = vld [vmem:[#allocation12_spill] sm:$0xff] }
 0x363   : > { %6280 = vmatprep.mubr.msk.f32.mxu1 %vm286_vm2, %v10909_v42  ;;  %5973 = vmatpush3.msra.mxu1 %v8486_v61  ;;  %v10915_v42 = vld [vmem:[#allocation53_spill] sm:$0xff]  ;;  %v10916_v61 = vld [vmem:[#allocation36_spill] sm:$0xff]  ;;  %v2938_v46 = vmul.f32 %v10924_v18, %v8525_v54 }
 0x364   : > { %5974 = vmatprep.subr.mxu1 %v10910_v6  ;;  %v3011_v6 = vadd.f32 %v3010_v1, %v3009_v10  ;;  %6902 = vrot.lane.b32.xlu0 %v6901_v45, %s7269_s7  ;;  %v10922_v10 = vld [vmem:[#allocation58_spill] sm:$0xff]  ;;  %v10931_v18 = vld [vmem:[#allocation40_spill] sm:$0xff] }
 0x365   : > { %5975 = vmatpush3.msra.mxu1 %v10913_v28  ;;  %v10919_v28 = vld [vmem:[#allocation24_spill] sm:$0xff]  ;;  %v10923_v1 = vld [vmem:[#allocation14_spill] sm:$0xff] }
 0x366   : > { %6281 = vmatmul.mubr.msk.f32.gmra.mxu1 %vm286_vm2, %v10914_v62  ;;  %5976 = vmatprep.subr.mxu1 %v10915_v42  ;;  %v10920_v62 = vld [vmem:[#allocation57_spill] sm:$0xff]  ;;  %v10921_v42 = vld [vmem:[#allocation38_spill] sm:$0xff]  ;;  %v2922_v45 = vmul.f32 %v10923_v1, %v8525_v54  ;;  %v10930_v1 = vld [vmem:[#allocation19_spill] sm:$0xff] }
 0x367   : > { %6283 = vmatprep.mubr.msk.f32.mxu1 %vm286_vm2, %v10916_v61  ;;  %5977 = vmatpush3.msra.mxu1 %v8507_v37  ;;  %v3012_v37 = vrot.slane %v3011_v6, 1  ;;  %v10925_v61 = vld [vmem:[#allocation60_spill] sm:$0xff] }
 0x368   : > { %5978 = vmatprep.subr.mxu1 %v10917_v9  ;;  %6907 = vrot.lane.b32.xlu0 %v6906_v31, %s7269_s7  ;;  %v10926_v9 = vld [vmem:[#allocation42_spill] sm:$0xff] }
 0x369   : > { %5979 = vmatpush3.msra.mxu1 %v10918_v34  ;;  %v10927_v34 = vld [vmem:[#allocation62_spill] sm:$0xff]  ;;  %v3013_v31 = vadd.f32 %v3012_v37, %v3011_v6  ;;  %v10934_v6 = vld [vmem:[#allocation21_spill] sm:$0xff] }
 0x36a   : > { %6284 = vmatmul.mubr.msk.f32.gmra.mxu1 %vm286_vm2, %v10919_v28  ;;  %5980 = vmatprep.subr.mxu1 %v10920_v62  ;;  %v8704_v28 = vpop.permute.xlu0 %863  ;;  %v10929_v62 = vld [vmem:[#allocation18_spill] sm:$0xff] }
 0x36b   : > { %6286 = vmatprep.mubr.msk.f32.mxu1 %vm286_vm2, %v10921_v42  ;;  %5981 = vmatpush3.msra.mxu1 %v8527_v58  ;;  %v10928_v58 = vld [vmem:[#allocation25_spill] sm:$0xff]  ;;  %v8711_v42 = vld [vmem:[%s7330_s26 + $0x50] sm:$0xff] }
 0x36c   : > { %5982 = vmatprep.subr.mxu1 %v10922_v10  ;;  %2148 = vrot.lane.b32.xlu0 %v8711_v42, %s7268_s6  ;;  %v6911_v10 = vpack.i.bf16 %v2922_v45, %v2938_v46  ;;  %v10935_v46 = vld [vmem:[#allocation30_spill] sm:$0xff] }
 0x36d   : > { %5983 = vmatpush3.msra.mxu1 %v10925_v61  ;;  %v10932_v61 = vld [vmem:[#allocation20_spill] sm:$0xff] }
 0x36e   : > { %6287 = vmatmul.mubr.msk.f32.gmra.mxu1 %vm286_vm2, %v10926_v9  ;;  %5984 = vmatprep.subr.mxu1 %v10927_v34  ;;  %v10933_v9 = vld [vmem:[#allocation43_spill] sm:$0xff]  ;;  %v866_v37 = vpop.permute.xlu0 %865  ;;  %v8725_v34 = vld [vmem:[%s7330_s26 + $0x60] sm:$0xff] }
 0x36f   : > { %6289 = vmatprep.mubr.msk.f32.mxu1 %vm286_vm2, %v10928_v58  ;;  %5985 = vmatpush3.msra.mxu1 %v8566_v43  ;;  %v3014_v43 = vmax.f32 %v3013_v31, 1e-24  ;;  %v2924_v45 = vmul.f32 %v8725_v34, %v8525_v54  ;;  %v2940_v58 = vmul.f32 %v10935_v46, %v8525_v54  ;;  %v10939_v31 = vld [vmem:[#allocation44_spill] sm:$0xff]  ;;  %v8843_v46 = vld [vmem:[%s7330_s26 + $0xc8] sm:$0xff] }
 0x370   : > { %5986 = vmatprep.subr.mxu1 %v10929_v62  ;;  %6912 = vrot.lane.b32.xlu0 %v6911_v10, %s7269_s7  ;;  %v10936_v62 = vld [vmem:[#allocation63_spill] sm:$0xff]  ;;  %10945 = vst [vmem:[#allocation48_spill] sm:$0xff] %v8843_v46 }
 0x371   : > { %5987 = vmatpush3.msra.mxu1 %v10930_v1  ;;  %v1981_v1 = vpop.permute.xlu1 %1980  ;;  %7109 = vrsqrt.f32 %v3014_v43  ;;  %v6921_v10 = vpack.i.bf16 %v2924_v45, %v2940_v58 }
 0x372   : > { %6290 = vmatmul.mubr.msk.f32.gmra.mxu1 %vm286_vm2, %v10931_v18  ;;  %5988 = vmatprep.subr.mxu1 %v10932_v61  ;;  %v10937_v18 = vld [vmem:[#allocation65_spill] sm:$0xff]  ;;  %v1951_v61 = vpop.permute.xlu0 %1950 }
 0x373   : > { %6292 = vmatprep.mubr.msk.f32.mxu1 %vm286_vm2, %v10933_v9  ;;  %5989 = vmatpush3.msra.mxu1 %v8608_v23  ;;  %v10938_v23 = vld [vmem:[#allocation64_spill] sm:$0xff] }
 0x374   : > { %5990 = vmatprep.subr.mxu1 %v10934_v6  ;;  %2152 = vrot.lane.b32.xlu0 %v8725_v34, %s7268_s6  ;;  %v10940_v6 = vld [vmem:[#allocation47_spill] sm:$0xff] }
 0x375   : > { %5991 = vmatpush3.msra.mxu1 %v10936_v62  ;;  %v8849_v62 = vld [vmem:[%s7330_s26 + $0xc0] sm:$0xff] }
 0x376   : > { %6293 = vmatmul.mubr.msk.f32.gmra.mxu1 %vm286_vm2, %v10937_v18  ;;  %5992 = vmatprep.subr.mxu1 %v10938_v23  ;;  %10946 = vst [vmem:[#allocation59_spill] sm:$0xff] %v8849_v62  ;;  %v8855_v18 = vld [vmem:[%s7330_s26 + $0x40] sm:$0xff] }
 0x377   : > { %6295 = vmatprep.mubr.msk.f32.mxu1 %vm286_vm2, %v10939_v31  ;;  %5993 = vmatpush3.msra.mxu1 %v8644_v0  ;;  %10947 = vst [vmem:[#allocation46_spill] sm:$0xff] %v8855_v18  ;;  %v8863_v31 = vld [vmem:[%s7330_s26 + $0x58] sm:$0xff] }
 0x378   : > { %5994 = vmatprep.subr.mxu1 %v8552_v16  ;;  %6922 = vrot.lane.b32.xlu0 %v6921_v10, %s7269_s7  ;;  %v7161_v16 = vld [vmem:[%s7330_s26 + $0x70] sm:$0xff]  ;;  %v2923_v10 = vmul.f32 %v8863_v31, %v8525_v54 }
 0x379   : > { %5995 = vmatpush3.msra.mxu1 %v8563_v21  ;;  %v2926_v0 = vmul.f32 %v7161_v16, %v8525_v54  ;;  %v10941_v21 = vld [vmem:[#allocation61_spill] sm:$0xff] }
 0x37a   : > { %6296 = vmatmul.mubr.msk.f32.gmra.mxu1 %vm286_vm2, %v8452_v7  ;;  %5996 = vmatprep.subr.mxu1 %v8577_v22  ;;  %v6856_v9 = vpop.trf.xlu1  ;;  %v2942_v43 = vmul.f32 %v10941_v21, %v8525_v54  ;;  %v1949_v7 = vpop.permute.xlu0 %1948  ;;  %v10942_v22 = vld [vmem:[#allocation49_spill] sm:$0xff] }
 0x37b   : > { %6298 = vmatprep.mubr.msk.f32.mxu1 %vm286_vm2, %v10940_v6  ;;  %5997 = vmatpush3.msra.mxu1 %v1955_v63  ;;  %v8828_v63 = vld [vmem:[%s7330_s26 + $0xd8] sm:$0xff] }
 0x37c   : > { %5998 = vmatprep.subr.mxu1 %v8593_v55  ;;  %2156 = vrot.lane.b32.xlu0 %v7161_v16, %s7268_s6  ;;  %v6931_v55 = vpack.i.bf16 %v2926_v0, %v2942_v43  ;;  %v8875_v43 = vld [vmem:[%s7330_s26 + $0x68] sm:$0xff] }
 0x37d   : > { %5999 = vmatpush3.msra.mxu1 %v8600_v13  ;;  %v8772_v13 = vld [vmem:[%s7330_s26 + $0x80] sm:$0xff] }
 0x37e   : > { %6299 = vmatmul.mubr.msk.f32.gmra.mxu1 %vm286_vm2, %v8468_v14  ;;  %6000 = vmatprep.subr.mxu1 %v8620_v39  ;;  %v8765_v14 = vpop.eup %7109 }
 0x37f   : > { %6301 = vmatprep.mubr.msk.f32.mxu1 %vm286_vm2, %v10942_v22  ;;  %6001 = vmatpush3.msra.mxu1 %v1951_v61  ;;  %v3041_v58 = vmul.f32 %v8843_v46, %v8765_v14  ;;  %v2939_v61 = vmul.f32 %v8828_v63, %v8525_v54 }
 0x380   : > { %6002 = vmatprep.subr.mxu1 %v1981_v1  ;;  %6932 = vrot.lane.b32.xlu0 %v6931_v55, %s7269_s7  ;;  %v3040_v1 = vmul.f32 %v8849_v62, %v8765_v14 }
 0x381   : > { %6003 = vmatpush3.msra.mxu1 %v1949_v7  ;;  %v6916_v6 = vpack.i.bf16 %v2923_v10, %v2939_v61 }
 0x382   : > { %6302 = vmatmul.mubr.msk.f32.gmra.mxu1 %vm286_vm2, %v8482_v8  ;;  %v10943_v8 = vld [vmem:[#allocation23_spill] sm:$0xff] }
 0x383   : > { %6304 = vmatprep.mubr.msk.f32.mxu1 %vm286_vm2, %v8494_v19  ;;  %v3047_v39 = vmul.f32 %v10943_v8, %v8765_v14  ;;  %v6857_v19 = vunpack.i.l.bf16 %v6856_v9  ;;  %6917 = vrot.lane.b32.xlu1 %v6916_v6, %s7269_s7 }
 0x384   : > { %2160 = vrot.lane.b32.xlu0 %v8772_v13, %s7268_s6 }
 0x386   : > { %6305 = vmatmul.mubr.msk.f32.gmra.mxu1 %vm286_vm2, %v8499_v50  ;;  %v6860_v50 = vunpack.i.h.bf16 %v6856_v9 }
 0x387   : > { %6307 = vmatprep.mubr.msk.f32.mxu1 %vm286_vm2, %v8512_v53  ;;  %v3046_v53 = vmul.f32 %v10941_v21, %v8765_v14  ;;  %2154 = vrot.lane.b32.xlu1 %v8875_v43, %s7268_s6 }
 0x388   : > { %3334 = vrot.lane.b32.xlu0 %v3047_v39, %s7270_s8 }
 0x38a   : > { %6308 = vmatmul.mubr.msk.f32.gmra.mxu1 %vm286_vm2, %v8520_v5 }
 0x38b   : > { %6310 = vmatprep.mubr.msk.f32.mxu1 %vm286_vm2, %v8541_v30  ;;  %v3030_v30 = vmul.f32 %v7161_v16, %v8765_v14 }
 0x38c   : > { %3332 = vrot.lane.b32.xlu0 %v3046_v53, %s7270_s8 }
 0x38e   : > { %6311 = vmatmul.mubr.msk.f32.gmra.mxu1 %vm286_vm2, %v8555_v38  ;;  %v2129_v38 = vpop.permute.xlu0 %2128 }
 0x38f   : > { %6313 = vmatprep.mubr.msk.f32.mxu1 %vm286_vm2, %v8585_v20  ;;  %v8813_v20 = vld [vmem:[%s7330_s26 + $0xe8] sm:$0xff] }
 0x390   : > { %3300 = vrot.lane.b32.xlu0 %v3030_v30, %s7270_s8 }
 0x392   : > { %6314 = vmatmul.mubr.msk.f32.gmra.mxu1 %vm286_vm2, %v8595_v32  ;;  %v3045_v32 = vmul.f32 %v8813_v20, %v8765_v14  ;;  %v8860_v23 = vpop.permute.xlu0 %2130 }
 0x393   : > { %6316 = vmatprep.mubr.msk.f32.mxu1 %vm286_vm2, %v8622_v47  ;;  %v8819_v47 = vld [vmem:[%s7330_s26 + $0xe0] sm:$0xff]  ;;  %10948 = vst [vmem:[#allocation26_spill] sm:$0xff] %v8860_v23 }
 0x394   : > { %3330 = vrot.lane.b32.xlu0 %v3045_v32, %s7270_s8  ;;  %v10974_v23 = vld [vmem:[#allocation9_spill] sm:$0xff] }
 0x396   : > { %6317 = vmatmul.mubr.msk.f32.gmra.mxu1 %vm286_vm2, %v8632_v59  ;;  %v244_v59 = vld [vmem:[%s10600_s2] sm:$0xff]  ;;  %v8869_v9 = vpop.permute.xlu0 %6862 }
 0x397   : > { %6319 = vmatprep.mubr.msk.f32.mxu1 %vm286_vm2, %v8651_v24  ;;  %6325 = vmatprep.subr.msk.mxu0 %vm1255_vm7, %v244_v59  ;;  %v2484_v5 = vrot.slane %v244_v59, 4  ;;  %v3044_v24 = vmul.f32 %v8819_v47, %v8765_v14 }
 0x398   : > { %6326 = vmatpush3.msk.msra.mxu0 %vm1255_vm7, %v244_v59 }
 0x399   : > { %6425 = vmatprep.subr.msk.mxu0 %vm1255_vm7, %v2484_v5  ;;  %3328 = vrot.lane.b32.xlu0 %v3044_v24, %s7270_s8 }
 0x39a   : > { %6320 = vmatmul.mubr.msk.f32.gmra.mxu1 %vm286_vm2, %v8666_v15  ;;  %v3028_v15 = vmul.f32 %v8725_v34, %v8765_v14  ;;  %v3026_v34 = vmul.f32 %v8711_v42, %v8765_v14  ;;  %v3024_v42 = vmul.f32 %v8855_v18, %v8765_v14  ;;  %v8872_v0 = vpop.permute.xlu0 %6867 }
 0x39b   : > { %6322 = vmatprep.mubr.msk.f32.mxu1 %vm286_vm2, %v8704_v28  ;;  %v3043_v28 = vmul.f32 %v8828_v63, %v8765_v14 }
 0x39d   : > { %3296 = vrot.lane.b32.xlu0 %v3028_v15, %s7270_s8 }
 0x39e   : > { %6323 = vmatmul.mubr.msk.f32.gmra.mxu1 %vm286_vm2, %v866_v37  ;;  %v8834_v37 = vld [vmem:[%s7330_s26 + $0xd0] sm:$0xff]  ;;  %v8883_v55 = vpop.permute.xlu0 %2132 }
 0x39f   : > { %2108 = vmatprep.mubr.f32.mxu1 %v6857_v19  ;;  %10944 = vst [vmem:[#allocation45_spill] sm:$0xff] %v8834_v37  ;;  %v3042_v45 = vmul.f32 %v8834_v37, %v8765_v14  ;;  %10949 = vst [vmem:[#allocation5_spill] sm:$0xff] %v8883_v55 }
 0x3a1   : > { %3326 = vrot.lane.b32.xlu0 %v3043_v28, %s7270_s8 }
 0x3a2   : > { %2109 = vmatmul.mubr.f32.vlgmr.msra.gmra.mxu1 %v6860_v50 }
 0x3a3   : > { %6377 = vmatprep.mubr.msk.f32.mxu1 %vm286_vm2, %v2129_v38 }
 0x3a5   : > { %3324 = vrot.lane.b32.xlu0 %v3042_v45, %s7270_s8  ;;  %v8888_v50 = vpop.permute.xlu0 %2134 }
 0x3a6   : > { %10950 = vst [vmem:[#allocation55_spill] sm:$0xff] %v8888_v50  ;;  %v9067_v50 = vld [vmem:[%s7330_s26 + $0x38] sm:$0xff] }
 0x3a7   : > { %10969 = vst [vmem:[#allocation54_spill] sm:$0xff] %v9067_v50 }
 0x3a9   : > { %3292 = vrot.lane.b32.xlu0 %v3026_v34, %s7270_s8  ;;  %v8893_v30 = vpop.permute.xlu0 %6872 }
 0x3ad   : > { %3322 = vrot.lane.b32.xlu0 %v3041_v58, %s7270_s8  ;;  %v8898_v15 = vpop.permute.xlu0 %6877 }
 0x3b1   : > { %3320 = vrot.lane.b32.xlu0 %v3040_v1, %s7270_s8  ;;  %v8903_v58 = vpop.permute.xlu0 %2136 }
 0x3b2   : > { %10951 = vst [vmem:[#allocation27_spill] sm:$0xff] %v8903_v58 }
 0x3b5   : > { %3288 = vrot.lane.b32.xlu0 %v3024_v42, %s7270_s8  ;;  %v8908_v61 = vpop.permute.xlu0 %2138 }
 0x3b6   : > { %10952 = vst [vmem:[#allocation7_spill] sm:$0xff] %v8908_v61 }
 0x422   : > { %v6279_v16 = vpop.f32.mrf.mxu1 }
 0x424   : > { %v1000_v21 = vpop.f32.mrf.mxu1 }
 0x425   : > { %6327 = vmatprep.mubr.msk.f32.mxu0 %vm286_vm2, %v1000_v21 }
 0x426   : > { %v6282_v7 = vpop.f32.mrf.mxu1  ;;  %6328 = vmatmul.mubr.msk.f32.vlgmr.msra.gmra.mxu0 %vm286_vm2, %v6279_v16 }
 0x427   : > { %6426 = vmatpush3.msk.msra.mxu0 %vm1255_vm7, %v2484_v5 }
 0x428   : > { %v1010_v22 = vpop.f32.mrf.mxu1 }
 0x429   : > { %6330 = vmatprep.mubr.msk.f32.mxu0 %vm286_vm2, %v1010_v22 }
 0x42a   : > { %v6285_v8 = vpop.f32.mrf.mxu1  ;;  %6331 = vmatmul.mubr.msk.f32.gmra.mxu0 %vm286_vm2, %v6282_v7  ;;  %v8913_v7 = vpop.permute.xlu0 %6882 }
 0x42c   : > { %v1020_v39 = vpop.f32.mrf.mxu1 }
 0x42d   : > { %6333 = vmatprep.mubr.msk.f32.mxu0 %vm286_vm2, %v1020_v39 }
 0x42e   : > { %v6288_v19 = vpop.f32.mrf.mxu1  ;;  %6334 = vmatmul.mubr.msk.f32.gmra.mxu0 %vm286_vm2, %v6285_v8 }
 0x430   : > { %v1030_v53 = vpop.f32.mrf.mxu1 }
 0x431   : > { %6336 = vmatprep.mubr.msk.f32.mxu0 %vm286_vm2, %v1030_v53 }
 0x432   : > { %v6291_v59 = vpop.f32.mrf.mxu1  ;;  %6337 = vmatmul.mubr.msk.f32.gmra.mxu0 %vm286_vm2, %v6288_v19  ;;  %v8918_v19 = vpop.permute.xlu0 %6887 }
 0x434   : > { %v1040_v5 = vpop.f32.mrf.mxu1 }
 0x435   : > { %6339 = vmatprep.mubr.msk.f32.mxu0 %vm286_vm2, %v1040_v5 }
 0x436   : > { %v6294_v38 = vpop.f32.mrf.mxu1  ;;  %6340 = vmatmul.mubr.msk.f32.gmra.mxu0 %vm286_vm2, %v6291_v59 }
 0x438   : > { %v1050_v32 = vpop.f32.mrf.mxu1 }
 0x439   : > { %6342 = vmatprep.mubr.msk.f32.mxu0 %vm286_vm2, %v1050_v32 }
 0x43a   : > { %v6297_v24 = vpop.f32.mrf.mxu1  ;;  %6343 = vmatmul.mubr.msk.f32.gmra.mxu0 %vm286_vm2, %v6294_v38  ;;  %v8922_v38 = vpop.permute.xlu0 %2142 }
 0x43b   : > { %10953 = vst [vmem:[#allocation28_spill] sm:$0xff] %v8922_v38 }
 0x43c   : > { %v1060_v28 = vpop.f32.mrf.mxu1 }
 0x43d   : > { %6345 = vmatprep.mubr.msk.f32.mxu0 %vm286_vm2, %v1060_v28 }
 0x43e   : > { %v6300_v45 = vpop.f32.mrf.mxu1  ;;  %6346 = vmatmul.mubr.msk.f32.gmra.mxu0 %vm286_vm2, %v6297_v24 }
 0x440   : > { %v1070_v34 = vpop.f32.mrf.mxu1 }
 0x441   : > { %6348 = vmatprep.mubr.msk.f32.mxu0 %vm286_vm2, %v1070_v34 }
 0x442   : > { %v6303_v1 = vpop.f32.mrf.mxu1  ;;  %6349 = vmatmul.mubr.msk.f32.gmra.mxu0 %vm286_vm2, %v6300_v45  ;;  %v8928_v45 = vpop.permute.xlu0 %6892 }
 0x444   : > { %v1080_v42 = vpop.f32.mrf.mxu1 }
 0x445   : > { %6351 = vmatprep.mubr.msk.f32.mxu0 %vm286_vm2, %v1080_v42 }
 0x446   : > { %v6306_v10 = vpop.f32.mrf.mxu1  ;;  %6352 = vmatmul.mubr.msk.f32.gmra.mxu0 %vm286_vm2, %v6303_v1 }
 0x448   : > { %v1090_v6 = vpop.f32.mrf.mxu1 }
 0x449   : > { %6354 = vmatprep.mubr.msk.f32.mxu0 %vm286_vm2, %v1090_v6  ;;  %v8932_v6 = vpop.permute.xlu0 %6897 }
 0x44a   : > { %v6309_v16 = vpop.f32.mrf.mxu1  ;;  %6355 = vmatmul.mubr.msk.f32.gmra.mxu0 %vm286_vm2, %v6306_v10  ;;  %v2115_v10 = vstv %s5666_s11 }
 0x44c   : > { %v1100_v21 = vpop.f32.mrf.mxu1 }
 0x44d   : > { %6357 = vmatprep.mubr.msk.f32.mxu0 %vm286_vm2, %v1100_v21 }
 0x44e   : > { %v6312_v22 = vpop.f32.mrf.mxu1  ;;  %6358 = vmatmul.mubr.msk.f32.gmra.mxu0 %vm286_vm2, %v6309_v16 }
 0x450   : > { %v1110_v8 = vpop.f32.mrf.mxu1 }
 0x451   : > { %6360 = vmatprep.mubr.msk.f32.mxu0 %vm286_vm2, %v1110_v8  ;;  %v2941_v8 = vmul.f32 %v8813_v20, %v8525_v54 }
 0x452   : > { %v6315_v39 = vpop.f32.mrf.mxu1  ;;  %6361 = vmatmul.mubr.msk.f32.gmra.mxu0 %vm286_vm2, %v6312_v22  ;;  %v2925_v22 = vmul.f32 %v8875_v43, %v8525_v54 }
 0x454   : > { %v1120_v53 = vpop.f32.mrf.mxu1 }
 0x455   : > { %6363 = vmatprep.mubr.msk.f32.mxu0 %vm286_vm2, %v1120_v53  ;;  %v6926_v53 = vpack.i.bf16 %v2925_v22, %v2941_v8  ;;  %v8966_v22 = vld [vmem:[%s7330_s26 + $0xb8] sm:$0xff] }
 0x456   : > { %v6318_v59 = vpop.f32.mrf.mxu1  ;;  %6364 = vmatmul.mubr.msk.f32.gmra.mxu0 %vm286_vm2, %v6315_v39  ;;  %10957 = vst [vmem:[#allocation16_spill] sm:$0xff] %v8966_v22 }
 0x457   : > { %6927 = vrot.lane.b32.xlu1 %v6926_v53, %s7269_s7  ;;  %v8979_v53 = vld [vmem:[%s7330_s26 + $0xb0] sm:$0xff] }
 0x458   : > { %v1130_v5 = vpop.f32.mrf.mxu1  ;;  %10958 = vst [vmem:[#allocation50_spill] sm:$0xff] %v8979_v53 }
 0x459   : > { %6366 = vmatprep.mubr.msk.f32.mxu0 %vm286_vm2, %v1130_v5  ;;  %v7172_v5 = vld [vmem:[%s7330_s26 + $0x78] sm:$0xff] }
 0x45a   : > { %v6321_v32 = vpop.f32.mrf.mxu1  ;;  %6367 = vmatmul.mubr.msk.f32.gmra.mxu0 %vm286_vm2, %v6318_v59  ;;  %v8942_v59 = vpop.permute.xlu0 %2144 }
 0x45b   : > { %10954 = vst [vmem:[#allocation32_spill] sm:$0xff] %v8942_v59  ;;  %2158 = vrot.lane.b32.xlu1 %v7172_v5, %s7268_s6 }
 0x45c   : > { %v1140_v24 = vpop.f32.mrf.mxu1 }
 0x45d   : > { %6369 = vmatprep.mubr.msk.f32.mxu0 %vm286_vm2, %v1140_v24  ;;  %v8949_v24 = vld [vmem:[%s7330_s26 + $0xf8] sm:$0xff] }
 0x45e   : > { %v6324_v28 = vpop.f32.mrf.mxu1  ;;  %6370 = vmatmul.mubr.msk.f32.gmra.mxu0 %vm286_vm2, %v6321_v32  ;;  %v2927_v32 = vmul.f32 %v7172_v5, %v8525_v54  ;;  %10955 = vst [vmem:[#allocation8_spill] sm:$0xff] %v8949_v24 }
 0x460   : > { %v1150_v34 = vpop.f32.mrf.mxu1 }
 0x461   : > { %6372 = vmatprep.mubr.msk.f32.mxu0 %vm286_vm2, %v1150_v34  ;;  %v8953_v34 = vpop.permute.xlu0 %2146 }
 0x462   : > { %6373 = vmatmul.mubr.msk.f32.gmra.mxu0 %vm286_vm2, %v6324_v28  ;;  %v6004_v1 = vpop.f32.mrf.mxu1  ;;  %v2943_v28 = vmul.f32 %v8949_v24, %v8525_v54  ;;  %10956 = vst [vmem:[#allocation33_spill] sm:$0xff] %v8953_v34  ;;  %v3039_v54 = vmul.f32 %v8966_v22, %v8765_v14 }
 0x464   : > { %v6005_v42 = vpop.f32.mrf.mxu1 }
 0x465   : > { %v6006_v16 = vadd.f32 %v6005_v42, %v6004_v1  ;;  %v6936_v1 = vpack.i.bf16 %v2927_v32, %v2943_v28  ;;  %v8956_v42 = vpop.permute.xlu0 %6902  ;;  %v8986_v28 = vld [vmem:[%s7330_s26 + $0x98] sm:$0xff] }
 0x466   : > { %10960 = vst [vmem:[#allocation6_spill] sm:$0xff] %v8986_v28 }
 0x467   : > { %v8934_v21 = vmul.f32 %v6006_v16, %v2115_v10  ;;  %6937 = vrot.lane.b32.xlu1 %v6936_v1, %s7269_s7  ;;  %v8959_v10 = vld [vmem:[%s7330_s26 + $0x88] sm:$0xff]  ;;  %v3031_v16 = vmul.f32 %v7172_v5, %v8765_v14  ;;  %v3038_v5 = vmul.f32 %v8979_v53, %v8765_v14  ;;  %v8992_v1 = vld [vmem:[%s7330_s26 + $0x30] sm:$0xff] }
 0x468   : > { %10961 = vst [vmem:[#allocation22_spill] sm:$0xff] %v8992_v1 }
 0x469   : > { %v2117_v39 = vsel %vm759_vm4, %v8934_v21, -inf  ;;  %v8970_v8 = vpop.permute.xlu0 %6907 }
 0x46a   : > { %2118 = vmax.xlane.f32.xlu0 %v2117_v39  ;;  %v8973_v39 = vld [vmem:[%s7330_s26 + $0x90] sm:$0xff] }
 0x46b   : > { %2162 = vrot.lane.b32.xlu1 %v8959_v10, %s7268_s6 }
 0x46d   : > { %v8983_v32 = vpop.permute.xlu0 %2148 }
 0x46e   : > { %10959 = vst [vmem:[#allocation29_spill] sm:$0xff] %v8983_v32  ;;  %v9001_v32 = vld [vmem:[%s7330_s26 + $0xa8] sm:$0xff] }
 0x46f   : > { %3302 = vrot.lane.b32.xlu1 %v3031_v16, %s7270_s8  ;;  %v3022_v16 = vmul.f32 %v8992_v1, %v8765_v14  ;;  %10962 = vst [vmem:[#allocation51_spill] sm:$0xff] %v9001_v32  ;;  %v3037_v34 = vmul.f32 %v9001_v32, %v8765_v14  ;;  %v10983_v1 = vld [vmem:[#allocation17_spill] sm:$0xff] }
 0x471   : > { %v9005_v59 = vpop.permute.xlu0 %6912 }
 0x473   : > { %2164 = vrot.lane.b32.xlu1 %v8973_v39, %s7268_s6 }
 0x477   : > { %2166 = vrot.lane.b32.xlu1 %v8986_v28, %s7268_s6 }
 0x480   : > { %3318 = vrot.lane.b32.xlu0 %v3039_v54, %s7270_s8  ;;  %v3029_v54 = vmul.f32 %v8875_v43, %v8765_v14 }
 0x482   : > { %3298 = vrot.lane.b32.xlu1 %v3029_v54, %s7270_s8  ;;  %v9015_v54 = vpop.permute.xlu0 %2152 }
 0x483   : > { %10964 = vst [vmem:[#allocation39_spill] sm:$0xff] %v9015_v54 }
 0x484   : > { %3316 = vrot.lane.b32.xlu0 %v3038_v5, %s7270_s8  ;;  %v9008_v5 = vld [vmem:[%s7330_s26 + $0xa0] sm:$0xff] }
 0x485   : > { %10963 = vst [vmem:[#allocation31_spill] sm:$0xff] %v9008_v5  ;;  %v3036_v43 = vmul.f32 %v9008_v5, %v8765_v14 }
 0x486   : > { %2168 = vrot.lane.b32.xlu1 %v9008_v5, %s7268_s6  ;;  %v3035_v5 = vmul.f32 %v8986_v28, %v8765_v14  ;;  %v9031_v54 = vpop.permute.xlu0 %6922 }
 0x488   : > { %3284 = vrot.lane.b32.xlu0 %v3022_v16, %s7270_s8  ;;  %v9021_v16 = vld [vmem:[%s7330_s26 + $0x20] sm:$0xff] }
 0x489   : > { %10965 = vst [vmem:[#allocation52_spill] sm:$0xff] %v9021_v16  ;;  %v3020_v38 = vmul.f32 %v9021_v16, %v8765_v14 }
 0x48a   : > { %2170 = vrot.lane.b32.xlu1 %v9001_v32, %s7268_s6  ;;  %v9038_v61 = vpop.permute.xlu0 %2156 }
 0x48b   : > { %10966 = vst [vmem:[#allocation34_spill] sm:$0xff] %v9038_v61  ;;  %v3033_v61 = vmul.f32 %v8959_v10, %v8765_v14 }
 0x48c   : > { %3314 = vrot.lane.b32.xlu0 %v3037_v34, %s7270_s8  ;;  %v3027_v34 = vmul.f32 %v8863_v31, %v8765_v14  ;;  %v9044_v31 = vld [vmem:[%s7330_s26 + $0x10] sm:$0xff] }
 0x48e   : > { %3294 = vrot.lane.b32.xlu1 %v3027_v34, %s7270_s8  ;;  %v9049_v34 = vld [vmem:[%s7330_s26 + $0x48] sm:$0xff]  ;;  %v9057_v58 = vpop.permute.xlu0 %6932 }
 0x48f   : > { %10967 = vst [vmem:[#allocation53_spill] sm:$0xff] %v9049_v34 }
 0x490   : > { %3312 = vrot.lane.b32.xlu0 %v3036_v43, %s7270_s8  ;;  %v3034_v43 = vmul.f32 %v8973_v39, %v8765_v14 }
 0x492   : > { %2172 = vrot.lane.b32.xlu1 %v8979_v53, %s7268_s6  ;;  %v9113_v53 = vld [vmem:[%s7330_s26 + $0xf0] sm:$0xff] }
 0x493   : > { %10982 = vst [vmem:[#allocation60_spill] sm:$0xff] %v9113_v53 }
 0x494   : > { %3280 = vrot.lane.b32.xlu0 %v3020_v38, %s7270_s8  ;;  %v3018_v38 = vmul.f32 %v9044_v31, %v8765_v14 }
 0x496   : > { %2174 = vrot.lane.b32.xlu1 %v8966_v22, %s7268_s6  ;;  %v10979_v22 = vld [vmem:[#allocation13_spill] sm:$0xff] }
 0x498   : > { %3310 = vrot.lane.b32.xlu0 %v3035_v5, %s7270_s8  ;;  %v3025_v5 = vmul.f32 %v9049_v34, %v8765_v14  ;;  %v10976_v34 = vld [vmem:[#allocation11_spill] sm:$0xff] }
 0x49a   : > { %3290 = vrot.lane.b32.xlu1 %v3025_v5, %s7270_s8 }
 0x49c   : > { %3308 = vrot.lane.b32.xlu0 %v3034_v43, %s7270_s8  ;;  %v9062_v43 = vpop.permute.xlu0 %2160 }
 0x49d   : > { %10968 = vst [vmem:[#allocation36_spill] sm:$0xff] %v9062_v43 }
 0x49e   : > { %2176 = vrot.lane.b32.xlu1 %v8849_v62, %s7268_s6 }
 0x4a0   : > { %3276 = vrot.lane.b32.xlu0 %v3018_v38, %s7270_s8  ;;  %v3023_v38 = vmul.f32 %v9067_v50, %v8765_v14  ;;  %v9072_v5 = vpop.permute.xlu0 %3334  ;;  %v4170_v50 = vsel %vm4164_vm8, %v10979_v22, 0.0 }
 0x4a1   : > { %10970 = vst [vmem:[#allocation56_spill] sm:$0xff] %v9072_v5  ;;  %v4168_v5 = vsel %vm4164_vm8, %v10976_v34, 0.0 }
 0x4a2   : > { %2178 = vrot.lane.b32.xlu1 %v8843_v46, %s7268_s6  ;;  %v4165_v46 = vsel %vm4164_vm8, %v10974_v23, 0.0 }
 0x4a4   : > { %3306 = vrot.lane.b32.xlu0 %v3033_v61, %s7270_s8  ;;  %v9076_v55 = vpop.permute.xlu0 %3332  ;;  %v9081_v61 = vld [vmem:[%s7330_s26 + $0x28] sm:$0xff] }
 0x4a5   : > { %10971 = vst [vmem:[#allocation24_spill] sm:$0xff] %v9076_v55  ;;  %10972 = vst [vmem:[#allocation57_spill] sm:$0xff] %v9081_v61  ;;  %v3021_v43 = vmul.f32 %v9081_v61, %v8765_v14 }
 0x4a6   : > { %3286 = vrot.lane.b32.xlu1 %v3023_v38, %s7270_s8 }
 0x4a8   : > { %v9086_v38 = vpop.permute.xlu0 %3300 }
 0x4a9   : > { %10973 = vst [vmem:[#allocation38_spill] sm:$0xff] %v9086_v38 }
 0x4aa   : > { %2180 = vrot.lane.b32.xlu1 %v8834_v37, %s7268_s6  ;;  %v10975_v37 = vld [vmem:[#allocation10_spill] sm:$0xff] }
 0x4ab   : > { %v4166_v55 = vsel %vm4164_vm8, %v10975_v37, 0.0 }
 0x4ac   : > { %v9096_v62 = vpop.permute.xlu0 %3330 }
 0x4ad   : > { %10977 = vst [vmem:[#allocation58_spill] sm:$0xff] %v9096_v62 }
 0x4ae   : > { %2182 = vrot.lane.b32.xlu1 %v8828_v63, %s7268_s6  ;;  %v4167_v63 = vadd.f32 %v4166_v55, %v4165_v46  ;;  %v10981_v55 = vld [vmem:[#allocation15_spill] sm:$0xff] }
 0x4af   : > { %v4172_v62 = vsel %vm4164_vm8, %v10981_v55, 0.0 }
 0x4b0   : > { %v4169_v18 = vadd.f32 %v4168_v5, %v4167_v63  ;;  %v9108_v46 = vpop.permute.xlu0 %3328  ;;  %v4174_v5 = vsel %vm4164_vm8, %v10983_v1, 0.0 }
 0x4b1   : > { %10980 = vst [vmem:[#allocation12_spill] sm:$0xff] %v9108_v46  ;;  %v4176_v46 = vsel %vm4164_vm8, %v10881_v26, 0.0 }
 0x4b2   : > { %3282 = vrot.lane.b32.xlu1 %v3021_v43, %s7270_s8  ;;  %v9101_v43 = vld [vmem:[%s7330_s26 + $0x18] sm:$0xff] }
 0x4b3   : > { %10978 = vst [vmem:[#allocation14_spill] sm:$0xff] %v9101_v43  ;;  %v3019_v38 = vmul.f32 %v9101_v43, %v8765_v14 }
 0x4b4   : > { %v9119_v63 = vpop.permute.xlu0 %3296 }
 0x4b5   : > { %10984 = vst [vmem:[#allocation42_spill] sm:$0xff] %v9119_v63 }
 0x4b6   : > { %2184 = vrot.lane.b32.xlu1 %v8819_v47, %s7268_s6  ;;  %v4171_v47 = vadd.f32 %v4170_v50, %v4169_v18  ;;  %v9124_v18 = vld [vmem:[%s7330_s26 + $0x8] sm:$0xff] }
 0x4b7   : > { %v3017_v50 = vmul.f32 %v9124_v18, %v8765_v14 }
 0x4ba   : > { %2186 = vrot.lane.b32.xlu1 %v8813_v20, %s7268_s6  ;;  %v4173_v20 = vadd.f32 %v4172_v62, %v4171_v47  ;;  %v9131_v47 = vpop.permute.xlu0 %3326 }
 0x4bb   : > { %10985 = vst [vmem:[#allocation62_spill] sm:$0xff] %v9131_v47  ;;  %v4196_v47 = vsel %vm4164_vm8, %v7480_v60, 0.0 }
 0x4be   : > { %3278 = vrot.lane.b32.xlu1 %v3019_v38, %s7270_s8  ;;  %v4175_v38 = vadd.f32 %v4174_v5, %v4173_v20  ;;  %v9137_v32 = vpop.permute.xlu0 %3324  ;;  %v4182_v20 = vsel %vm4164_vm8, %v10886_v27, 0.0 }
 0x4bf   : > { %10986 = vst [vmem:[#allocation25_spill] sm:$0xff] %v9137_v32  ;;  %v4188_v32 = vsel %vm4164_vm8, %v7444_v44, 0.0 }
 0x4c0   : > { %v4177_v62 = vadd.f32 %v4176_v46, %v4175_v38  ;;  %v4184_v46 = vsel %vm4164_vm8, %v7426_v36, 0.0 }
 0x4c2   : > { %2188 = vrot.lane.b32.xlu1 %v9113_v53, %s7268_s6  ;;  %v4178_v53 = vsel %vm4164_vm8, %v10883_v3, 0.0  ;;  %v9141_v16 = vpop.permute.xlu0 %3292 }
 0x4c3   : > { %v4179_v63 = vadd.f32 %v4178_v53, %v4177_v62  ;;  %10987 = vst [vmem:[#allocation18_spill] sm:$0xff] %v9141_v16  ;;  %v4186_v53 = vsel %vm4164_vm8, %v7435_v40, 0.0 }
 0x4c6   : > { %2190 = vrot.lane.b32.xlu1 %v8949_v24, %s7268_s6  ;;  %v4180_v24 = vsel %vm4164_vm8, %v10884_v4, 0.0  ;;  %v9147_v38 = vpop.permute.xlu0 %3322 }
 0x4c7   : > { %v4181_v61 = vadd.f32 %v4180_v24, %v4179_v63  ;;  %10988 = vst [vmem:[#allocation19_spill] sm:$0xff] %v9147_v38 }
 0x4c9   : > { %v4183_v5 = vadd.f32 %v4182_v20, %v4181_v61  ;;  %v4190_v61 = vsel %vm4164_vm8, %v7453_v48, 0.0  ;;  %v9156_v20 = vld [vmem:[%s7330_s26] sm:$0xff] }
 0x4ca   : > { %3274 = vrot.lane.b32.xlu1 %v3017_v50, %s7270_s8  ;;  %v9151_v63 = vpop.permute.xlu0 %3320 }
 0x4cb   : > { %v4185_v50 = vadd.f32 %v4184_v46, %v4183_v5  ;;  %10989 = vst [vmem:[#allocation40_spill] sm:$0xff] %v9151_v63  ;;  %v3016_v5 = vmul.f32 %v9156_v20, %v8765_v14 }
 0x4cd   : > { %v4187_v62 = vadd.f32 %v4186_v53, %v4185_v50  ;;  %v4192_v50 = vsel %vm4164_vm8, %v7462_v52, 0.0 }
 0x4ce   : > { %3272 = vrot.lane.b32.xlu1 %v3016_v5, %s7270_s8  ;;  %v9163_v53 = vpop.permute.xlu0 %3288 }
 0x4cf   : > { %v4189_v24 = vadd.f32 %v4188_v32, %v4187_v62  ;;  %10990 = vst [vmem:[#allocation20_spill] sm:$0xff] %v9163_v53  ;;  %v4194_v32 = vsel %vm4164_vm8, %v7471_v56, 0.0  ;;  %v4202_v53 = vsel %vm4164_vm8, %v7507_v25, 0.0 }
 0x4d1   : > { %v4191_v46 = vadd.f32 %v4190_v61, %v4189_v24  ;;  %v4198_v61 = vsel %vm4164_vm8, %v7489_v11, 0.0 }
 0x4d2   : > { %3452 = vrot.lane.b32.xlu1 %v9156_v20, %s7271_s12 }
 0x4d3   : > { %v4193_v38 = vadd.f32 %v4192_v50, %v4191_v46  ;;  %v4200_v46 = vsel %vm4164_vm8, %v7498_v17, 0.0 }
 0x4d5   : > { %v4195_v16 = vadd.f32 %v4194_v32, %v4193_v38  ;;  %v4204_v38 = vsel %vm4164_vm8, %v7516_v33, 0.0  ;;  %v4208_v32 = vsel %vm4164_vm8, %v7534_v49, 0.0 }
 0x4d6   : > { %3454 = vrot.lane.b32.xlu1 %v9124_v18, %s7271_s12 }
 0x4d7   : > { %v4197_v24 = vadd.f32 %v4196_v47, %v4195_v16  ;;  %v4206_v47 = vsel %vm4164_vm8, %v7525_v41, 0.0 }
 0x4d9   : > { %v4199_v5 = vadd.f32 %v4198_v61, %v4197_v24 }
 0x4db   : > { %v4201_v50 = vadd.f32 %v4200_v46, %v4199_v5  ;;  %v4212_v46 = vsel %vm4164_vm8, %v7552_v12, 0.0 }
 0x4f3   : > { %v2119_v62 = vpop.xlane.xlu0 %2118 }
 0x4f4   : > { %v2120_v63 = vsub.f32 %v8934_v21, %v2119_v62  ;;  %v4203_v21 = vadd.f32 %v4202_v53, %v4201_v50  ;;  %v9186_v62 = vpop.permute.xlu1 %2140  ;;  %v4210_v53 = vsel %vm4164_vm8, %v7543_v57, 0.0 }
 0x4f5   : > { %10991 = vst [vmem:[#allocation43_spill] sm:$0xff] %v9186_v62 }
 0x4f6   : > { %v2121_v28 = vmul.f32 1.442695, %v2120_v63  ;;  %v4205_v16 = vadd.f32 %v4204_v38, %v4203_v21  ;;  %v3032_v21 = vmul.f32 %v8772_v13, %v8765_v14  ;;  %v4214_v38 = vsel %vm4164_vm8, %v7565_v35, 0.0 }
 0x4f7   : > { %v4272_v14 = vsel %vm4268_vm9, %v10976_v34, 0.0 }
 0x4f8   : > { %7111 = vpow2.f32 %v2121_v28  ;;  %v4207_v63 = vadd.f32 %v4206_v47, %v4205_v16  ;;  %v9190_v5 = vpop.permute.xlu1 %2150  ;;  %v4270_v16 = vsel %vm4268_vm9, %v10975_v37, 0.0  ;;  %v4274_v37 = vsel %vm4268_vm9, %v10979_v22, 0.0 }
 0x4f9   : > { %10992 = vst [vmem:[#allocation21_spill] sm:$0xff] %v9190_v5 }
 0x4fa   : > { %v4209_v24 = vadd.f32 %v4208_v32, %v4207_v63  ;;  %v4216_v32 = vsel %vm4164_vm8, %v7574_v51, 0.0 }
 0x4fc   : > { %v4211_v61 = vadd.f32 %v4210_v53, %v4209_v24  ;;  %v9202_v47 = vpop.permute.xlu1 %6917 }
 0x4fe   : > { %v4213_v50 = vadd.f32 %v4212_v46, %v4211_v61  ;;  %v10993_v46 = vld [vmem:[#allocation35_spill] sm:$0xff] }
 0x500   : > { %v4215_v63 = vadd.f32 %v4214_v38, %v4213_v50  ;;  %v9209_v61 = vpop.permute.xlu1 %2154  ;;  %v10994_v38 = vld [vmem:[#allocation37_spill] sm:$0xff] }
 0x502   : > { %v4217_v53 = vadd.f32 %v4216_v32, %v4215_v63  ;;  %v4222_v63 = vsel %vm4164_vm8, %v10808_v2, 0.0 }
 0x505   : > { %v9176_v43 = vpop.eup %7111 }
 0x506   : > { %v2123_v28 = vsel %vm759_vm4, %v9176_v43, 0.0 }
 0x507   : > { %2124 = vadd.xlane.f32.xlu0 %v2123_v28  ;;  %v4269_v28 = vsel %vm4268_vm9, %v10974_v23, 0.0  ;;  %v4218_v23 = vsel %vm4164_vm8, %v10993_v46, 0.0 }
 0x508   : > { %v4271_v24 = vadd.f32 %v4270_v16, %v4269_v28  ;;  %v4219_v50 = vadd.f32 %v4218_v23, %v4217_v53  ;;  %v4276_v28 = vsel %vm4268_vm9, %v10981_v55, 0.0  ;;  %v9219_v16 = vpop.permute.xlu1 %6927  ;;  %v10996_v53 = vld [vmem:[#allocation41_spill] sm:$0xff]  ;;  %v4280_v55 = vsel %vm4268_vm9, %v10881_v26, 0.0 }
 0x509   : > { %v4224_v23 = vsel %vm4164_vm8, %v10996_v53, 0.0  ;;  %v4286_v26 = vsel %vm4268_vm9, %v10886_v27, 0.0 }
 0x50a   : > { %v4273_v5 = vadd.f32 %v4272_v14, %v4271_v24  ;;  %v4278_v24 = vsel %vm4268_vm9, %v10983_v1, 0.0 }
 0x50c   : > { %v4275_v62 = vadd.f32 %v4274_v37, %v4273_v5  ;;  %v9225_v22 = vpop.permute.xlu1 %2158 }
 0x50d   : > { %10995 = vst [vmem:[#allocation30_spill] sm:$0xff] %v9225_v22 }
 0x50e   : > { %v4277_v32 = vadd.f32 %v4276_v28, %v4275_v62  ;;  %v4282_v62 = vsel %vm4268_vm9, %v10883_v3, 0.0  ;;  %v4288_v3 = vsel %vm4268_vm9, %v7426_v36, 0.0 }
 0x510   : > { %v4279_v5 = vadd.f32 %v4278_v24, %v4277_v32  ;;  %v9235_v28 = vpop.permute.xlu1 %6937 }
 0x514   : > { %v9239_v32 = vpop.permute.xlu1 %2162 }
 0x51d   : > { %3304 = vrot.lane.b32.xlu0 %v3032_v21, %s7270_s8  ;;  %v4220_v21 = vsel %vm4164_vm8, %v10994_v38, 0.0 }
 0x51e   : > { %v4221_v34 = vadd.f32 %v4220_v21, %v4219_v50  ;;  %v4226_v50 = vsel %vm4164_vm8, %v10828_v29, 0.0  ;;  %v4281_v21 = vadd.f32 %v4280_v55, %v4279_v5  ;;  %v9247_v5 = vpop.permute.xlu1 %3302 }
 0x520   : > { %v4223_v14 = vadd.f32 %v4222_v63, %v4221_v34  ;;  %v4283_v34 = vadd.f32 %v4282_v62, %v4281_v21  ;;  %v4284_v63 = vsel %vm4268_vm9, %v10884_v4, 0.0  ;;  %v4294_v21 = vsel %vm4268_vm9, %v7453_v48, 0.0 }
 0x522   : > { %v4225_v37 = vadd.f32 %v4224_v23, %v4223_v14  ;;  %v4285_v24 = vadd.f32 %v4284_v63, %v4283_v34  ;;  %v9252_v27 = vpop.permute.xlu1 %2164  ;;  %v4298_v63 = vsel %vm4268_vm9, %v7471_v56, 0.0 }
 0x524   : > { %v4227_v1 = vadd.f32 %v4226_v50, %v4225_v37  ;;  %v4287_v23 = vadd.f32 %v4286_v26, %v4285_v24  ;;  %v4290_v37 = vsel %vm4268_vm9, %v7435_v40, 0.0  ;;  %v4300_v24 = vsel %vm4268_vm9, %v7480_v60, 0.0 }
 0x525   : > { %v4302_v26 = vsel %vm4268_vm9, %v7489_v11, 0.0  ;;  %v4306_v11 = vsel %vm4268_vm9, %v7507_v25, 0.0 }
 0x526   : > { %v4228_v22 = vrot.slane %v4227_v1, 4  ;;  %v4289_v4 = vadd.f32 %v4288_v3, %v4287_v23  ;;  %v9260_v62 = vpop.permute.xlu1 %2166  ;;  %v4304_v23 = vsel %vm4268_vm9, %v7498_v17, 0.0 }
 0x528   : > { %v4229_v14 = vadd.f32 %v4228_v22, %v4227_v1  ;;  %v4292_v22 = vsel %vm4268_vm9, %v7444_v44, 0.0  ;;  %v4296_v1 = vsel %vm4268_vm9, %v7462_v52, 0.0 }
 0x52a   : > { %v4230_v55 = vrot.slane %v4229_v14, 2  ;;  %v9265_v44 = vpop.permute.xlu1 %3298 }
 0x52c   : > { %v4231_v50 = vadd.f32 %v4230_v55, %v4229_v14 }
 0x52e   : > { %v4232_v36 = vrot.slane %v4231_v50, 1  ;;  %v9275_v52 = vpop.permute.xlu1 %2168 }
 0x530   : > { %v4233_v40 = vadd.f32 %v4232_v36, %v4231_v50 }
 0x532   : > { %v4234_v34 = vmax.f32 %v4233_v40, 1e-24 }
 0x534   : > { %7113 = vrsqrt.f32 %v4234_v34 }
 0x53b   : > { %6942 = vxpose.xlu0.b32.start [1/16] (narrow) %v8869_v9, 8  ;;  %v4291_v9 = vadd.f32 %v4290_v37, %v4289_v4  ;;  %v4308_v4 = vsel %vm4268_vm9, %v7516_v33, 0.0  ;;  %v4310_v33 = vsel %vm4268_vm9, %v7525_v41, 0.0  ;;  %v4314_v41 = vsel %vm4268_vm9, %v7543_v57, 0.0  ;;  %v10997_v57 = vld [vmem:[#allocation14_spill] sm:$0xff] }
 0x53f   : > { %6944 = vxpose.xlu0.b32.cont [2/16] (narrow) %v8872_v0, 8  ;;  %v4293_v0 = vadd.f32 %v4292_v22, %v4291_v9 }
 0x541   : > { %v9287_v60 = vpop.eup %7113 }
 0x542   : > { %v4236_v17 = vmul.f32 %v9156_v20, %v9287_v60  ;;  %v4253_v37 = vmul.f32 %v8959_v10, %v9287_v60  ;;  %v4312_v10 = vsel %vm4268_vm9, %v7534_v49, 0.0  ;;  %v4254_v49 = vmul.f32 %v8973_v39, %v9287_v60 }
 0x543   : > { %6946 = vxpose.xlu0.b32.cont [3/16] (narrow) %v8893_v30, 8  ;;  %v4295_v30 = vadd.f32 %v4294_v21, %v4293_v0  ;;  %v4239_v40 = vmul.f32 %v10997_v57, %v9287_v60  ;;  %v4316_v39 = vsel %vm4268_vm9, %v7552_v12, 0.0 }
 0x547   : > { %6948 = vxpose.xlu0.b32.cont [4/16] (narrow) %v8898_v15, 8  ;;  %v4297_v15 = vadd.f32 %v4296_v1, %v4295_v30  ;;  %v10998_v30 = vld [vmem:[#allocation6_spill] sm:$0xff] }
 0x549   : > { %v4299_v48 = vadd.f32 %v4298_v63, %v4297_v15  ;;  %v4318_v63 = vsel %vm4268_vm9, %v7565_v35, 0.0 }
 0x54b   : > { %6950 = vxpose.xlu0.b32.cont [5/16] (narrow) %v8913_v7, 8  ;;  %v9270_v7 = vpop.permute.xlu0 %3318 }
 0x54f   : > { %6952 = vxpose.xlu0.b32.cont [6/16] (narrow) %v8918_v19, 8  ;;  %v4301_v19 = vadd.f32 %v4300_v24, %v4299_v48  ;;  %v9280_v56 = vpop.permute.xlu0 %3316  ;;  %v4320_v24 = vsel %vm4268_vm9, %v7574_v51, 0.0 }
 0x551   : > { %v4303_v14 = vadd.f32 %v4302_v26, %v4301_v19 }
 0x553   : > { %6954 = vxpose.xlu0.b32.cont [7/16] (narrow) %v8928_v45, 8  ;;  %v9282_v45 = vpop.permute.xlu1 %2170  ;;  %v9289_v3 = vpop.permute.xlu0 %3284 }
 0x557   : > { %6956 = vxpose.xlu0.b32.cont [8/16] (narrow) %v8932_v6, 8  ;;  %v4305_v6 = vadd.f32 %v4304_v23, %v4303_v14  ;;  %v9311_v20 = vpop.permute.xlu0 %3314  ;;  %v10999_v14 = vld [vmem:[#allocation52_spill] sm:$0xff]  ;;  %v11000_v23 = vld [vmem:[#allocation57_spill] sm:$0xff] }
 0x559   : > { %v4307_v55 = vadd.f32 %v4306_v11, %v4305_v6  ;;  %v4241_v6 = vmul.f32 %v11000_v23, %v9287_v60  ;;  %v11001_v11 = vld [vmem:[#allocation51_spill] sm:$0xff] }
 0x55a   : > { %v4257_v35 = vmul.f32 %v11001_v11, %v9287_v60 }
 0x55b   : > { %6958 = vxpose.xlu0.b32.cont [9/16] (narrow) %v8956_v42, 8  ;;  %v9294_v42 = vpop.permute.xlu1 %3294  ;;  %v9319_v22 = vpop.permute.xlu0 %3312 }
 0x55f   : > { %6960 = vxpose.xlu0.b32.cont [10/16] (narrow) %v8970_v8, 8  ;;  %v4252_v8 = vmul.f32 %v8772_v13, %v9287_v60  ;;  %v9313_v50 = vpop.permute.xlu1 %2172  ;;  %v4309_v13 = vadd.f32 %v4308_v4, %v4307_v55  ;;  %v7003_v4 = vpack.i.bf16 %v4241_v6, %v4257_v35 }
 0x561   : > { %v6978_v25 = vpack.i.bf16 %v4236_v17, %v4252_v8  ;;  %v4311_v9 = vadd.f32 %v4310_v33, %v4309_v13  ;;  %v4322_v17 = vsel %vm4268_vm9, %v10993_v46, 0.0 }
 0x563   : > { %6962 = vxpose.xlu0.b32.cont [11/16] (narrow) %v9005_v59, 8  ;;  %v4237_v59 = vmul.f32 %v9124_v18, %v9287_v60  ;;  %6979 = vrot.lane.b32.xlu1 %v6978_v25, %s7272_s13  ;;  %v9324_v18 = vpop.permute.xlu1 %2174  ;;  %v4313_v36 = vadd.f32 %v4312_v10, %v4311_v9  ;;  %v4324_v25 = vsel %vm4268_vm9, %v10994_v38, 0.0  ;;  %v11003_v10 = vld [vmem:[#allocation50_spill] sm:$0xff] }
 0x564   : > { %v4258_v38 = vmul.f32 %v11003_v10, %v9287_v60 }
 0x565   : > { %v4315_v21 = vadd.f32 %v4314_v41, %v4313_v36  ;;  %v4328_v36 = vsel %vm4268_vm9, %v10996_v53, 0.0 }
 0x567   : > { %6964 = vxpose.xlu0.b32.cont [12/16] (narrow) %v9202_v47, 8  ;;  %v6983_v47 = vpack.i.bf16 %v4237_v59, %v4253_v37  ;;  %v9338_v0 = vpop.permute.xlu1 %3290  ;;  %v4317_v34 = vadd.f32 %v4316_v39, %v4315_v21  ;;  %v4326_v37 = vsel %vm4268_vm9, %v10808_v2, 0.0 }
 0x569   : > { %6984 = vrot.lane.b32.xlu1 %v6983_v47, %s7272_s13  ;;  %v4319_v48 = vadd.f32 %v4318_v63, %v4317_v34  ;;  %v11002_v47 = vld [vmem:[#allocation22_spill] sm:$0xff] }
 0x56a   : > { %v4242_v9 = vmul.f32 %v11002_v47, %v9287_v60 }
 0x56b   : > { %6966 = vxpose.xlu0.b32.cont [13/16] (narrow) %v9031_v54, 8  ;;  %v4238_v54 = vmul.f32 %v9044_v31, %v9287_v60  ;;  %v9351_v15 = vpop.permute.xlu1 %2176  ;;  %v4321_v26 = vadd.f32 %v4320_v24, %v4319_v48 }
 0x56c   : > { %v7008_v21 = vpack.i.bf16 %v4242_v9, %v4258_v38  ;;  %v11012_v9 = vld [vmem:[#allocation5_spill] sm:$0xff] }
 0x56d   : > { %3456 = vrot.lane.b32.xlu1 %v9044_v31, %s7271_s12  ;;  %v4255_v31 = vmul.f32 %v10998_v30, %v9287_v60  ;;  %v4323_v51 = vadd.f32 %v4322_v17, %v4321_v26  ;;  %v4330_v30 = vsel %vm4268_vm9, %v10828_v29, 0.0  ;;  %v11006_v26 = vld [vmem:[#allocation46_spill] sm:$0xff]  ;;  %v11008_v17 = vld [vmem:[#allocation56_spill] sm:$0xff] }
 0x56e   : > { %v4244_v29 = vmul.f32 %v11006_v26, %v9287_v60 }
 0x56f   : > { %6968 = vxpose.xlu0.b32.cont [14/16] (narrow) %v9219_v16, 8  ;;  %v9336_v16 = vpop.permute.xlu0 %3280  ;;  %v9361_v12 = vpop.permute.xlu1 %2178  ;;  %v4325_v59 = vadd.f32 %v4324_v25, %v4323_v51  ;;  %v11010_v25 = vld [vmem:[#allocation48_spill] sm:$0xff] }
 0x571   : > { %3458 = vrot.lane.b32.xlu1 %v10997_v57, %s7271_s12  ;;  %v4327_v33 = vadd.f32 %v4326_v37, %v4325_v59  ;;  %v4261_v59 = vmul.f32 %v11010_v25, %v9287_v60  ;;  %v11011_v37 = vld [vmem:[#allocation26_spill] sm:$0xff]  ;;  %v11029_v25 = vld [vmem:[#allocation40_spill] sm:$0xff] }
 0x573   : > { %6970 = vxpose.xlu0.b32.cont [15/16] (narrow) %v9057_v58, 8  ;;  %v6988_v58 = vpack.i.bf16 %v4238_v54, %v4254_v49  ;;  %v9349_v1 = vpop.permute.xlu0 %3310  ;;  %v9373_v55 = vpop.permute.xlu1 %3286  ;;  %v4329_v2 = vadd.f32 %v4328_v36, %v4327_v33  ;;  %v11004_v49 = vld [vmem:[#allocation54_spill] sm:$0xff]  ;;  %v11013_v36 = vld [vmem:[#allocation24_spill] sm:$0xff] }
 0x574   : > { %v4243_v57 = vmul.f32 %v11004_v49, %v9287_v60 }
 0x575   : > { %6989 = vrot.lane.b32.xlu1 %v6988_v58, %s7272_s13  ;;  %v11005_v58 = vld [vmem:[#allocation16_spill] sm:$0xff] }
 0x577   : > { %6972 = vxpose.xlu0.b32.end [16/16] (narrow) %v9235_v28, 8  ;;  %v6993_v28 = vpack.i.bf16 %v4239_v40, %v4255_v31  ;;  %v9359_v19 = vpop.permute.xlu0 %3308  ;;  %v9384_v46 = vpop.permute.xlu1 %2180  ;;  %v4259_v40 = vmul.f32 %v11005_v58, %v9287_v60  ;;  %v4331_v31 = vadd.f32 %v4330_v30, %v4329_v2  ;;  %v11014_v2 = vld [vmem:[#allocation38_spill] sm:$0xff] }
 0x579   : > { %6994 = vrot.lane.b32.xlu1 %v6993_v28, %s7272_s13  ;;  %v7013_v53 = vpack.i.bf16 %v4243_v57, %v4259_v40  ;;  %v4332_v34 = vrot.slane %v4331_v31, 4  ;;  %v11017_v57 = vld [vmem:[#allocation27_spill] sm:$0xff] }
 0x57b   : > { %v9371_v8 = vpop.permute.xlu0 %3276  ;;  %v9394_v54 = vpop.permute.xlu1 %2182  ;;  %v4333_v63 = vadd.f32 %v4332_v34, %v4331_v31  ;;  %v9445_v31 = vld [vmem:[%s7330_s26 + $0x50] sm:$0xff]  ;;  %v11019_v34 = vld [vmem:[#allocation45_spill] sm:$0xff] }
 0x57d   : > { %3460 = vrot.lane.b32.xlu1 %v10999_v14, %s7271_s12  ;;  %v4334_v35 = vrot.slane %v4333_v63, 2 }
 0x57f   : > { %v9382_v13 = vpop.permute.xlu0 %3306  ;;  %v9405_v39 = vpop.permute.xlu1 %3282  ;;  %v4335_v38 = vadd.f32 %v4334_v35, %v4333_v63  ;;  %v11020_v63 = vld [vmem:[#allocation42_spill] sm:$0xff] }
 0x580   : > { %v11025_v35 = vld [vmem:[#allocation18_spill] sm:$0xff] }
 0x581   : > { %3462 = vrot.lane.b32.xlu1 %v11000_v23, %s7271_s12  ;;  %v11007_v23 = vld [vmem:[#allocation59_spill] sm:$0xff]  ;;  %v4336_v40 = vrot.slane %v4335_v38, 1 }
 0x582   : > { %v4260_v6 = vmul.f32 %v11007_v23, %v9287_v60  ;;  %v11024_v23 = vld [vmem:[#allocation25_spill] sm:$0xff] }
 0x583   : > { %v9409_v24 = vpop.permute.xlu1 %2184 }
 0x584   : > { %v7018_v51 = vpack.i.bf16 %v4244_v29, %v4260_v6  ;;  %v4337_v29 = vadd.f32 %v4336_v40, %v4335_v38  ;;  %v9478_v38 = vld [vmem:[%s7330_s26 + $0xe0] sm:$0xff]  ;;  %v11034_v40 = vld [vmem:[#allocation39_spill] sm:$0xff] }
 0x585   : > { %7004 = vrot.lane.b32.xlu1 %v7003_v4, %s7272_s13 }
 0x587   : > { %v9428_v33 = vpop.permute.xlu1 %2186 }
 0x589   : > { %3464 = vrot.lane.b32.xlu1 %v11002_v47, %s7271_s12 }
 0x58b   : > { %v3279_v30 = vpop.permute.xlu1 %3278 }
 0x58d   : > { %3466 = vrot.lane.b32.xlu1 %v11004_v49, %s7271_s12  ;;  %v11015_v49 = vld [vmem:[#allocation55_spill] sm:$0xff] }
 0x590   : > { %v2125_v41 = vpop.xlane.xlu0 %2124 }
 0x591   : > { %7115 = vrcp.f32 %v2125_v41  ;;  %7009 = vrot.lane.b32.xlu1 %v7008_v21, %s7272_s13  ;;  %v11016_v21 = vld [vmem:[#allocation58_spill] sm:$0xff] }
 0x595   : > { %7014 = vrot.lane.b32.xlu1 %v7013_v53, %s7272_s13  ;;  %v4246_v53 = vmul.f32 %v9445_v31, %v9287_v60 }
 0x599   : > { %3468 = vrot.lane.b32.xlu1 %v11006_v26, %s7271_s12  ;;  %v11023_v26 = vld [vmem:[#allocation43_spill] sm:$0xff] }
 0x59e   : > { %v7116_v28 = vpop.eup %7115 }
 0x59f   : > { %v2127_v48 = vmul.f32 %v7116_v28, %v9176_v43  ;;  %v11009_v43 = vld [vmem:[#allocation53_spill] sm:$0xff]  ;;  %v4262_v28 = vmul.f32 %v11019_v34, %v9287_v60  ;;  %v9600_v34 = vld [vmem:[%s7330_s26 + $0xc8] sm:$0xff] }
 0x5a0   : > { %3470 = vrot.lane.b32.xlu1 %v11009_v43, %s7271_s12  ;;  %v4245_v4 = vmul.f32 %v11009_v43, %v9287_v60  ;;  %v11027_v43 = vld [vmem:[#allocation19_spill] sm:$0xff]  ;;  %11040 = vst [vmem:[#allocation63_spill] sm:$0xff] %v9600_v34 }
 0x5a1   : > { %6375 = vmatprep.subr.msk.mxu1 %vm286_vm2, %v2127_v48  ;;  %v7028_v6 = vpack.i.bf16 %v4246_v53, %v4262_v28  ;;  %v11036_v53 = vld [vmem:[#allocation34_spill] sm:$0xff] }
 0x5a2   : > { %6376 = vmatpush3.xpose.msk.msra.mxu1 %vm286_vm2, %v2127_v48  ;;  %v7023_v41 = vpack.i.bf16 %v4245_v4, %v4261_v59  ;;  %v11021_v48 = vld [vmem:[#allocation7_spill] sm:$0xff]  ;;  %v11028_v4 = vld [vmem:[#allocation32_spill] sm:$0xff]  ;;  %v3305_v59 = vpop.permute.xlu0 %3304 }
 0x5a3   : > { %6073 = vmatprep.subr.mxu1 %v11008_v17  ;;  %v11026_v17 = vld [vmem:[#allocation28_spill] sm:$0xff] }
 0x5a4   : > { %7019 = vrot.lane.b32.xlu1 %v7018_v51, %s7272_s13  ;;  %v9465_v51 = vpop.permute.xlu1 %2188 }
 0x5a5   : > { %6378 = vmatmul.mubr.msk.f32.vlgmr.msra.gmra.mxu1 %vm286_vm2, %v11011_v37  ;;  %v9473_v37 = vld [vmem:[%s7330_s26 + $0x60] sm:$0xff] }
 0x5a6   : > { %6380 = vmatprep.mubr.msk.f32.mxu1 %vm286_vm2, %v11012_v9  ;;  %6074 = vmatpush3.msra.mxu1 %v9247_v5  ;;  %v11018_v5 = vld [vmem:[#allocation12_spill] sm:$0xff]  ;;  %v4248_v9 = vmul.f32 %v9473_v37, %v9287_v60 }
 0x5a7   : > { %6075 = vmatprep.subr.mxu1 %v11013_v36  ;;  %v4264_v36 = vmul.f32 %v9478_v38, %v9287_v60 }
 0x5a8   : > { %6076 = vmatpush3.msra.mxu1 %v11014_v2  ;;  %7024 = vrot.lane.b32.xlu1 %v7023_v41, %s7272_s13  ;;  %v11030_v41 = vld [vmem:[#allocation20_spill] sm:$0xff]  ;;  %v11031_v2 = vld [vmem:[#allocation33_spill] sm:$0xff] }
 0x5a9   : > { %6381 = vmatmul.mubr.msk.f32.gmra.mxu1 %vm286_vm2, %v11015_v49  ;;  %6077 = vmatprep.subr.mxu1 %v11016_v21  ;;  %v9490_v49 = vpop.permute.xlu1 %2190 }
 0x5aa   : > { %6383 = vmatprep.mubr.msk.f32.mxu1 %vm286_vm2, %v11017_v57  ;;  %6078 = vmatpush3.msra.mxu1 %v9265_v44  ;;  %v11022_v44 = vld [vmem:[#allocation62_spill] sm:$0xff]  ;;  %v7038_v57 = vpack.i.bf16 %v4248_v9, %v4264_v36 }
 0x5ab   : > { %6079 = vmatprep.subr.mxu1 %v11018_v5  ;;  %v11035_v5 = vld [vmem:[#allocation60_spill] sm:$0xff] }
 0x5ac   : > { %6080 = vmatpush3.msra.mxu1 %v11020_v63  ;;  %3472 = vrot.lane.b32.xlu1 %v9445_v31, %s7271_s12  ;;  %v9606_v63 = vld [vmem:[%s7330_s26 + $0xc0] sm:$0xff] }
 0x5ad   : > { %6384 = vmatmul.mubr.msk.f32.gmra.mxu1 %vm286_vm2, %v11021_v48  ;;  %6081 = vmatprep.subr.mxu1 %v11022_v44  ;;  %v7201_v44 = vld [vmem:[%s7330_s26 + $0x40] sm:$0xff] }
 0x5ae   : > { %6386 = vmatprep.mubr.msk.f32.mxu1 %vm286_vm2, %v11023_v26  ;;  %6082 = vmatpush3.msra.mxu1 %v9294_v42  ;;  %v4338_v42 = vmax.f32 %v4337_v29, 1e-24 }
 0x5af   : > { %6083 = vmatprep.subr.mxu1 %v11024_v23 }
 0x5b0   : > { %6084 = vmatpush3.msra.mxu1 %v11025_v35  ;;  %7029 = vrot.lane.b32.xlu1 %v7028_v6, %s7272_s13  ;;  %7117 = vrsqrt.f32 %v4338_v42 }
 0x5b1   : > { %6387 = vmatmul.mubr.msk.f32.gmra.mxu1 %vm286_vm2, %v11026_v17  ;;  %6085 = vmatprep.subr.mxu1 %v11027_v43 }
 0x5b2   : > { %6389 = vmatprep.mubr.msk.f32.mxu1 %vm286_vm2, %v11028_v4  ;;  %6086 = vmatpush3.msra.mxu1 %v9338_v0  ;;  %v11032_v0 = vld [vmem:[#allocation29_spill] sm:$0xff]  ;;  %v9638_v4 = vld [vmem:[%s7330_s26 + $0x58] sm:$0xff] }
 0x5b3   : > { %6087 = vmatprep.subr.mxu1 %v11029_v25 }
 0x5b4   : > { %6088 = vmatpush3.msra.mxu1 %v11030_v41  ;;  %3476 = vrot.lane.b32.xlu1 %v9473_v37, %s7271_s12 }
 0x5b5   : > { %6390 = vmatmul.mubr.msk.f32.gmra.mxu1 %vm286_vm2, %v11031_v2  ;;  %6089 = vmatprep.subr.mxu1 %v9270_v7  ;;  %v11033_v7 = vld [vmem:[#allocation21_spill] sm:$0xff] }
 0x5b6   : > { %6392 = vmatprep.mubr.msk.f32.mxu1 %vm286_vm2, %v11032_v0  ;;  %6090 = vmatpush3.msra.mxu1 %v9373_v55 }
 0x5b7   : > { %6091 = vmatprep.subr.mxu1 %v9280_v56  ;;  %v9492_v21 = vpop.trf.xlu0  ;;  %v7194_v56 = vld [vmem:[%s7330_s26 + $0x70] sm:$0xff] }
 0x5b8   : > { %6092 = vmatpush3.msra.mxu1 %v9289_v3  ;;  %7039 = vrot.lane.b32.xlu1 %v7038_v57, %s7272_s13  ;;  %v4250_v55 = vmul.f32 %v7194_v56, %v9287_v60  ;;  %v4266_v3 = vmul.f32 %v11035_v5, %v9287_v60 }
 0x5b9   : > { %6393 = vmatmul.mubr.msk.f32.gmra.mxu1 %vm286_vm2, %v11033_v7  ;;  %6093 = vmatprep.subr.mxu1 %v9311_v20  ;;  %v3275_v20 = vpop.permute.xlu1 %3274 }
 0x5ba   : > { %6395 = vmatprep.mubr.msk.f32.mxu1 %vm286_vm2, %v11034_v40  ;;  %6094 = vmatpush3.msra.mxu1 %v9405_v39  ;;  %v11037_v39 = vld [vmem:[#allocation30_spill] sm:$0xff] }
 0x5bb   : > { %6095 = vmatprep.subr.mxu1 %v9319_v22  ;;  %v7048_v22 = vpack.i.bf16 %v4250_v55, %v4266_v3 }
 0x5bc   : > { %6096 = vmatpush3.msra.mxu1 %v9336_v16  ;;  %3480 = vrot.lane.b32.xlu1 %v7194_v56, %s7271_s12  ;;  %v11038_v16 = vld [vmem:[#allocation36_spill] sm:$0xff] }
 0x5bd   : > { %6396 = vmatmul.mubr.msk.f32.gmra.mxu1 %vm286_vm2, %v9209_v61  ;;  %6097 = vmatprep.subr.mxu1 %v9349_v1  ;;  %v3273_v61 = vpop.permute.xlu1 %3272  ;;  %v9524_v1 = vpop.eup %7117 }
 0x5be   : > { %6398 = vmatprep.mubr.msk.f32.mxu1 %vm286_vm2, %v11036_v53  ;;  %6098 = vmatpush3.msra.mxu1 %v3279_v30  ;;  %v4350_v30 = vmul.f32 %v9445_v31, %v9524_v1  ;;  %v4365_v28 = vmul.f32 %v9600_v34, %v9524_v1  ;;  %v4364_v48 = vmul.f32 %v9606_v63, %v9524_v1 }
 0x5bf   : > { %6099 = vmatprep.subr.mxu1 %v9359_v19  ;;  %v9531_v19 = vld [vmem:[%s7330_s26 + $0x80] sm:$0xff]  ;;  %v4348_v26 = vmul.f32 %v7201_v44, %v9524_v1  ;;  %v4363_v31 = vmul.f32 %v11005_v58, %v9524_v1  ;;  %v4362_v29 = vmul.f32 %v11003_v10, %v9524_v1  ;;  %v4346_v23 = vmul.f32 %v11002_v47, %v9524_v1  ;;  %v11041_v10 = vld [vmem:[#allocation31_spill] sm:$0xff] }
 0x5c0   : > { %6100 = vmatpush3.msra.mxu1 %v9371_v8  ;;  %7049 = vrot.lane.b32.xlu1 %v7048_v22, %s7272_s13  ;;  %v11039_v8 = vld [vmem:[#allocation8_spill] sm:$0xff]  ;;  %v4361_v6 = vmul.f32 %v11001_v11, %v9524_v1  ;;  %v4240_v58 = vmul.f32 %v10999_v14, %v9287_v60  ;;  %v4256_v17 = vmul.f32 %v11041_v10, %v9287_v60 }
 0x5c1   : > { %6399 = vmatmul.mubr.msk.f32.gmra.mxu1 %vm286_vm2, %v11037_v39  ;;  %6101 = vmatprep.subr.mxu1 %v9382_v13  ;;  %v4371_v13 = vmul.f32 %v11039_v8, %v9524_v1  ;;  %v4247_v11 = vmul.f32 %v9638_v4, %v9287_v60 }
 0x5c2   : > { %6401 = vmatprep.mubr.msk.f32.mxu1 %vm286_vm2, %v11038_v16  ;;  %6102 = vmatpush3.msra.mxu1 %v3275_v20 }
 0x5c3   : > { %6103 = vmatprep.subr.mxu1 %v3305_v59  ;;  %v9650_v59 = vld [vmem:[%s7330_s26 + $0x68] sm:$0xff] }
 0x5c4   : > { %6104 = vmatpush3.msra.mxu1 %v3273_v61  ;;  %3484 = vrot.lane.b32.xlu1 %v9531_v19, %s7271_s12 }
 0x5c5   : > { %6402 = vmatmul.mubr.msk.f32.gmra.mxu1 %vm286_vm2, %v9239_v32  ;;  %v4370_v32 = vmul.f32 %v11035_v5, %v9524_v1 }
 0x5c6   : > { %6404 = vmatprep.mubr.msk.f32.mxu1 %vm286_vm2, %v9252_v27  ;;  %v4354_v27 = vmul.f32 %v7194_v56, %v9524_v1 }
 0x5c8   : > { %4658 = vrot.lane.b32.xlu1 %v4371_v13, %s7273_s14 }
 0x5c9   : > { %6405 = vmatmul.mubr.msk.f32.gmra.mxu1 %vm286_vm2, %v9260_v62  ;;  %v9556_v62 = vld [vmem:[%s7330_s26 + $0xe8] sm:$0xff] }
 0x5ca   : > { %6407 = vmatprep.mubr.msk.f32.mxu1 %vm286_vm2, %v9275_v52  ;;  %v4369_v52 = vmul.f32 %v9556_v62, %v9524_v1 }
 0x5cc   : > { %4656 = vrot.lane.b32.xlu1 %v4370_v32, %s7273_s14 }
 0x5cd   : > { %6408 = vmatmul.mubr.msk.f32.gmra.mxu1 %vm286_vm2, %v9282_v45  ;;  %v4368_v45 = vmul.f32 %v9478_v38, %v9524_v1 }
 0x5ce   : > { %6410 = vmatprep.mubr.msk.f32.mxu1 %vm286_vm2, %v9313_v50  ;;  %v4352_v50 = vmul.f32 %v9473_v37, %v9524_v1 }
 0x5d0   : > { %4624 = vrot.lane.b32.xlu1 %v4354_v27, %s7273_s14 }
 0x5d1   : > { %6411 = vmatmul.mubr.msk.f32.gmra.mxu1 %vm286_vm2, %v9324_v18  ;;  %v6974_v18 = vunpack.i.l.bf16 %v9492_v21 }
 0x5d2   : > { %6413 = vmatprep.mubr.msk.f32.mxu1 %vm286_vm2, %v9351_v15  ;;  %v9581_v15 = vld [vmem:[%s7330_s26 + $0xd8] sm:$0xff] }
 0x5d3   : > { %v4263_v14 = vmul.f32 %v9581_v15, %v9287_v60 }
 0x5d4   : > { %4654 = vrot.lane.b32.xlu1 %v4369_v52, %s7273_s14 }
 0x5d5   : > { %6414 = vmatmul.mubr.msk.f32.gmra.mxu1 %vm286_vm2, %v9361_v12  ;;  %v4367_v12 = vmul.f32 %v9581_v15, %v9524_v1  ;;  %v7033_v42 = vpack.i.bf16 %v4247_v11, %v4263_v14  ;;  %v3439_v14 = vstv %s5733_s17 }
 0x5d6   : > { %6416 = vmatprep.mubr.msk.f32.mxu1 %vm286_vm2, %v9384_v46  ;;  %v6977_v46 = vunpack.i.h.bf16 %v9492_v21 }
 0x5d8   : > { %4652 = vrot.lane.b32.xlu1 %v4368_v45, %s7273_s14 }
 0x5d9   : > { %6417 = vmatmul.mubr.msk.f32.gmra.mxu1 %vm286_vm2, %v9394_v54  ;;  %v3453_v54 = vpop.permute.xlu1 %3452 }
 0x5da   : > { %6419 = vmatprep.mubr.msk.f32.mxu1 %vm286_vm2, %v9409_v24  ;;  %v9591_v24 = vld [vmem:[%s7330_s26 + $0xd0] sm:$0xff] }
 0x5dc   : > { %4620 = vrot.lane.b32.xlu1 %v4352_v50, %s7273_s14 }
 0x5dd   : > { %6420 = vmatmul.mubr.msk.f32.gmra.mxu1 %vm286_vm2, %v9428_v33  ;;  %v4366_v33 = vmul.f32 %v9591_v24, %v9524_v1  ;;  %v9626_v35 = vpop.permute.xlu1 %3454 }
 0x5de   : > { %6422 = vmatprep.mubr.msk.f32.mxu1 %vm286_vm2, %v9465_v51  ;;  %v6998_v51 = vpack.i.bf16 %v4240_v58, %v4256_v17 }
 0x5e0   : > { %4650 = vrot.lane.b32.xlu1 %v4367_v12, %s7273_s14  ;;  %6999 = vrot.lane.b32.xlu0 %v6998_v51, %s7272_s13 }
 0x5e1   : > { %6423 = vmatmul.mubr.msk.f32.gmra.mxu1 %vm286_vm2, %v9490_v49  ;;  %v9632_v43 = vpop.permute.xlu1 %6979 }
 0x5e2   : > { %3432 = vmatprep.mubr.f32.mxu1 %v6974_v18 }
 0x5e4   : > { %4648 = vrot.lane.b32.xlu1 %v4366_v33, %s7273_s14  ;;  %3474 = vrot.lane.b32.xlu0 %v9638_v4, %s7271_s12 }
 0x5e5   : > { %3433 = vmatmul.mubr.f32.vlgmr.msra.gmra.mxu1 %v6977_v46  ;;  %v9635_v47 = vpop.permute.xlu1 %6984 }
 0x5e6   : > { %6477 = vmatprep.mubr.msk.f32.mxu1 %vm286_vm2, %v3453_v54 }
 0x5e8   : > { %4616 = vrot.lane.b32.xlu1 %v4350_v30, %s7273_s14  ;;  %7034 = vrot.lane.b32.xlu0 %v7033_v42, %s7272_s13 }
 0x5e9   : > { %v9647_v25 = vpop.permute.xlu1 %3456 }
 0x5ec   : > { %4646 = vrot.lane.b32.xlu1 %v4365_v28, %s7273_s14  ;;  %3478 = vrot.lane.b32.xlu0 %v9650_v59, %s7271_s12 }
 0x5ed   : > { %v9654_v37 = vpop.permute.xlu1 %3458 }
 0x5f0   : > { %4644 = vrot.lane.b32.xlu1 %v4364_v48, %s7273_s14 }
 0x5f1   : > { %v9656_v9 = vpop.permute.xlu1 %6989 }
 0x5f4   : > { %4612 = vrot.lane.b32.xlu1 %v4348_v26, %s7273_s14 }
 0x5f5   : > { %v9658_v41 = vpop.permute.xlu1 %6994 }
 0x5f8   : > { %4642 = vrot.lane.b32.xlu1 %v4363_v31, %s7273_s14 }
 0x5f9   : > { %v9663_v21 = vpop.permute.xlu1 %3460 }
 0x5fc   : > { %4640 = vrot.lane.b32.xlu1 %v4362_v29, %s7273_s14 }
 0x5fd   : > { %v9668_v56 = vpop.permute.xlu1 %3462 }
 0x600   : > { %4608 = vrot.lane.b32.xlu1 %v4346_v23, %s7273_s14 }
 0x601   : > { %v9673_v20 = vpop.permute.xlu1 %7004 }
 0x604   : > { %4638 = vrot.lane.b32.xlu1 %v4361_v6, %s7273_s14 }
 0x605   : > { %v9678_v61 = vpop.permute.xlu1 %3464 }
 0x606   : > { %11042 = vst [vmem:[#allocation65_spill] sm:$0xff] %v9678_v61 }
 0x609   : > { %v9683_v32 = vpop.permute.xlu1 %3466 }
 0x60a   : > { %11043 = vst [vmem:[#allocation64_spill] sm:$0xff] %v9683_v32 }
 0x60d   : > { %v9688_v50 = vpop.permute.xlu1 %7009 }
 0x611   : > { %v9692_v54 = vpop.permute.xlu1 %7014 }
 0x615   : > { %v9698_v48 = vpop.permute.xlu1 %3468 }
 0x616   : > { %11044 = vst [vmem:[#allocation44_spill] sm:$0xff] %v9698_v48 }
 0x619   : > { %v9702_v29 = vpop.permute.xlu1 %3470 }
 0x61a   : > { %11045 = vst [vmem:[#allocation47_spill] sm:$0xff] %v9702_v29 }
 0x61d   : > { %v9708_v10 = vpop.permute.xlu1 %7019 }
 0x621   : > { %v9712_v42 = vpop.permute.xlu1 %7024 }
 0x665   : > { %v6379_v36 = vpop.f32.mrf.mxu1 }
 0x667   : > { %v2325_v2 = vpop.f32.mrf.mxu1 }
 0x668   : > { %6427 = vmatprep.mubr.msk.f32.mxu0 %vm286_vm2, %v2325_v2 }
 0x669   : > { %v6382_v0 = vpop.f32.mrf.mxu1  ;;  %6428 = vmatmul.mubr.msk.f32.vlgmr.msra.gmra.mxu0 %vm286_vm2, %v6379_v36 }
 0x66b   : > { %v2335_v49 = vpop.f32.mrf.mxu1 }
 0x66c   : > { %6430 = vmatprep.mubr.msk.f32.mxu0 %vm286_vm2, %v2335_v49  ;;  %v4265_v49 = vmul.f32 %v9556_v62, %v9287_v60 }
 0x66d   : > { %v6385_v57 = vpop.f32.mrf.mxu1  ;;  %6431 = vmatmul.mubr.msk.f32.gmra.mxu0 %vm286_vm2, %v6382_v0  ;;  %v4249_v0 = vmul.f32 %v9650_v59, %v9287_v60 }
 0x66f   : > { %v2345_v7 = vpop.f32.mrf.mxu1 }
 0x670   : > { %6433 = vmatprep.mubr.msk.f32.mxu0 %vm286_vm2, %v2345_v7 }
 0x671   : > { %v6388_v40 = vpop.f32.mrf.mxu1  ;;  %6434 = vmatmul.mubr.msk.f32.gmra.mxu0 %vm286_vm2, %v6385_v57  ;;  %v9720_v57 = vpop.f32.mrf.mxu0 }
 0x673   : > { %v2355_v55 = vpop.f32.mrf.mxu1 }
 0x674   : > { %6436 = vmatprep.mubr.msk.f32.mxu0 %vm286_vm2, %v2355_v55  ;;  %v9724_v55 = vpop.permute.xlu1 %3472 }
 0x675   : > { %v6391_v5 = vpop.f32.mrf.mxu1  ;;  %6437 = vmatmul.mubr.msk.f32.gmra.mxu0 %vm286_vm2, %v6388_v40  ;;  %v7043_v40 = vpack.i.bf16 %v4249_v0, %v4265_v49  ;;  %11046 = vst [vmem:[#allocation61_spill] sm:$0xff] %v9724_v55 }
 0x677   : > { %v2365_v3 = vpop.f32.mrf.mxu1  ;;  %7044 = vrot.lane.b32.xlu0 %v7043_v40, %s7272_s13 }
 0x678   : > { %6439 = vmatprep.mubr.msk.f32.mxu0 %vm286_vm2, %v2365_v3  ;;  %v9730_v3 = vld [vmem:[%s7330_s26 + $0x78] sm:$0xff] }
 0x679   : > { %v6394_v53 = vpop.f32.mrf.mxu1  ;;  %6440 = vmatmul.mubr.msk.f32.gmra.mxu0 %vm286_vm2, %v6391_v5  ;;  %v9727_v5 = vpop.f32.mrf.mxu0  ;;  %11048 = vst [vmem:[#allocation23_spill] sm:$0xff] %v9730_v3 }
 0x67a   : > { %11047 = vst [vmem:[#allocation49_spill] sm:$0xff] %v9727_v5 }
 0x67b   : > { %v2375_v22 = vpop.f32.mrf.mxu1  ;;  %3482 = vrot.lane.b32.xlu0 %v9730_v3, %s7271_s12 }
 0x67c   : > { %6442 = vmatprep.mubr.msk.f32.mxu0 %vm286_vm2, %v2375_v22  ;;  %v9737_v22 = vld [vmem:[%s7330_s26 + $0xf8] sm:$0xff] }
 0x67d   : > { %v6397_v39 = vpop.f32.mrf.mxu1  ;;  %6443 = vmatmul.mubr.msk.f32.gmra.mxu0 %vm286_vm2, %v6394_v53  ;;  %v4251_v53 = vmul.f32 %v9730_v3, %v9287_v60  ;;  %11049 = vst [vmem:[#allocation9_spill] sm:$0xff] %v9737_v22 }
 0x67f   : > { %v2385_v16 = vpop.f32.mrf.mxu1 }
 0x680   : > { %6445 = vmatprep.mubr.msk.f32.mxu0 %vm286_vm2, %v2385_v16  ;;  %v9741_v16 = vpop.f32.mrf.mxu0 }
 0x681   : > { %v6400_v8 = vpop.f32.mrf.mxu1  ;;  %6446 = vmatmul.mubr.msk.f32.gmra.mxu0 %vm286_vm2, %v6397_v39  ;;  %v4267_v39 = vmul.f32 %v9737_v22, %v9287_v60 }
 0x683   : > { %v2395_v13 = vpop.f32.mrf.mxu1 }
 0x684   : > { %6448 = vmatprep.mubr.msk.f32.mxu0 %vm286_vm2, %v2395_v13  ;;  %v7053_v13 = vpack.i.bf16 %v4251_v53, %v4267_v39  ;;  %v9821_v53 = vld [vmem:[%s7330_s26 + $0xa8] sm:$0xff] }
 0x685   : > { %v6403_v27 = vpop.f32.mrf.mxu1  ;;  %6449 = vmatmul.mubr.msk.f32.gmra.mxu0 %vm286_vm2, %v6400_v8  ;;  %v9743_v8 = vpop.permute.xlu1 %7029  ;;  %11063 = vst [vmem:[#allocation22_spill] sm:$0xff] %v9821_v53 }
 0x686   : > { %7054 = vrot.lane.b32.xlu0 %v7053_v13, %s7272_s13  ;;  %v4351_v13 = vmul.f32 %v9638_v4, %v9524_v1 }
 0x687   : > { %v2405_v52 = vpop.f32.mrf.mxu1 }
 0x688   : > { %6451 = vmatprep.mubr.msk.f32.mxu0 %vm286_vm2, %v2405_v52 }
 0x689   : > { %v6406_v45 = vpop.f32.mrf.mxu1  ;;  %6452 = vmatmul.mubr.msk.f32.gmra.mxu0 %vm286_vm2, %v6403_v27  ;;  %v9746_v27 = vpop.f32.mrf.mxu0 }
 0x68a   : > { %11050 = vst [vmem:[#allocation10_spill] sm:$0xff] %v9746_v27  ;;  %v9748_v52 = vpop.permute.xlu1 %3476 }
 0x68b   : > { %v2415_v18 = vpop.f32.mrf.mxu1  ;;  %11051 = vst [vmem:[#allocation11_spill] sm:$0xff] %v9748_v52  ;;  %v9760_v60 = vpop.f32.mrf.mxu0 }
 0x68c   : > { %6454 = vmatprep.mubr.msk.f32.mxu0 %vm286_vm2, %v2415_v18 }
 0x68d   : > { %v6409_v12 = vpop.f32.mrf.mxu1  ;;  %6455 = vmatmul.mubr.msk.f32.gmra.mxu0 %vm286_vm2, %v6406_v45  ;;  %v9751_v45 = vld [vmem:[%s7330_s26 + $0xa0] sm:$0xff] }
 0x68e   : > { %11052 = vst [vmem:[#allocation13_spill] sm:$0xff] %v9751_v45  ;;  %v4360_v18 = vmul.f32 %v9751_v45, %v9524_v1 }
 0x68f   : > { %v2425_v46 = vpop.f32.mrf.mxu1 }
 0x690   : > { %6457 = vmatprep.mubr.msk.f32.mxu0 %vm286_vm2, %v2425_v46  ;;  %v4355_v46 = vmul.f32 %v9730_v3, %v9524_v1 }
 0x691   : > { %v6412_v33 = vpop.f32.mrf.mxu1  ;;  %6458 = vmatmul.mubr.msk.f32.gmra.mxu0 %vm286_vm2, %v6409_v12  ;;  %v9756_v12 = vld [vmem:[%s7330_s26 + $0x88] sm:$0xff] }
 0x692   : > { %11053 = vst [vmem:[#allocation15_spill] sm:$0xff] %v9756_v12  ;;  %3486 = vrot.lane.b32.xlu0 %v9756_v12, %s7271_s12 }
 0x693   : > { %v2435_v30 = vpop.f32.mrf.mxu1 }
 0x694   : > { %6460 = vmatprep.mubr.msk.f32.mxu0 %vm286_vm2, %v2435_v30 }
 0x695   : > { %v6415_v28 = vpop.f32.mrf.mxu1  ;;  %6461 = vmatmul.mubr.msk.f32.gmra.mxu0 %vm286_vm2, %v6412_v33  ;;  %v9766_v33 = vld [vmem:[%s7330_s26 + $0x20] sm:$0xff] }
 0x696   : > { %11054 = vst [vmem:[#allocation17_spill] sm:$0xff] %v9766_v33  ;;  %v4344_v30 = vmul.f32 %v9766_v33, %v9524_v1  ;;  %4626 = vrot.lane.b32.xlu0 %v4355_v46, %s7273_s14  ;;  %v9921_v33 = vld [vmem:[%s7330_s26 + $0xf0] sm:$0xff] }
 0x697   : > { %v2445_v44 = vpop.f32.mrf.mxu1  ;;  %11073 = vst [vmem:[#allocation5_spill] sm:$0xff] %v9921_v33 }
 0x698   : > { %6463 = vmatprep.mubr.msk.f32.mxu0 %vm286_vm2, %v2445_v44  ;;  %v9773_v44 = vpop.permute.xlu1 %7039 }
 0x699   : > { %v6418_v26 = vpop.f32.mrf.mxu1  ;;  %6464 = vmatmul.mubr.msk.f32.gmra.mxu0 %vm286_vm2, %v6415_v28  ;;  %v9771_v28 = vpop.f32.mrf.mxu0 }
 0x69a   : > { %11055 = vst [vmem:[#allocation35_spill] sm:$0xff] %v9771_v28  ;;  %v9869_v28 = vld [vmem:[%s7330_s26 + $0x38] sm:$0xff] }
 0x69b   : > { %v2455_v31 = vpop.f32.mrf.mxu1  ;;  %11068 = vst [vmem:[#allocation59_spill] sm:$0xff] %v9869_v28 }
 0x69c   : > { %6466 = vmatprep.mubr.msk.f32.mxu0 %vm286_vm2, %v2455_v31 }
 0x69d   : > { %v6421_v23 = vpop.f32.mrf.mxu1  ;;  %6467 = vmatmul.mubr.msk.f32.gmra.mxu0 %vm286_vm2, %v6418_v26  ;;  %v9777_v26 = vld [vmem:[%s7330_s26 + $0x98] sm:$0xff] }
 0x69e   : > { %11056 = vst [vmem:[#allocation37_spill] sm:$0xff] %v9777_v26  ;;  %v4359_v31 = vmul.f32 %v9777_v26, %v9524_v1 }
 0x69f   : > { %v2465_v6 = vpop.f32.mrf.mxu1 }
 0x6a0   : > { %6469 = vmatprep.mubr.msk.f32.mxu0 %vm286_vm2, %v2465_v6  ;;  %v9786_v6 = vpop.f32.mrf.mxu0 }
 0x6a1   : > { %v6424_v58 = vpop.f32.mrf.mxu1  ;;  %6470 = vmatmul.mubr.msk.f32.gmra.mxu0 %vm286_vm2, %v6421_v23  ;;  %v9782_v23 = vld [vmem:[%s7330_s26 + $0x90] sm:$0xff] }
 0x6a2   : > { %11057 = vst [vmem:[#allocation41_spill] sm:$0xff] %v9782_v23  ;;  %3488 = vrot.lane.b32.xlu0 %v9782_v23, %s7271_s12 }
 0x6a3   : > { %v2475_v17 = vpop.f32.mrf.mxu1 }
 0x6a4   : > { %6472 = vmatprep.mubr.msk.f32.mxu0 %vm286_vm2, %v2475_v17  ;;  %v4358_v17 = vmul.f32 %v9782_v23, %v9524_v1 }
 0x6a5   : > { %6473 = vmatmul.mubr.msk.f32.gmra.mxu0 %vm286_vm2, %v6424_v58  ;;  %v6105_v51 = vpop.f32.mrf.mxu1  ;;  %v9788_v58 = vpop.permute.xlu1 %3480 }
 0x6a6   : > { %11058 = vst [vmem:[#allocation14_spill] sm:$0xff] %v9788_v58  ;;  %3490 = vrot.lane.b32.xlu0 %v9777_v26, %s7271_s12  ;;  %v9889_v26 = vld [vmem:[%s7330_s26 + $0x28] sm:$0xff] }
 0x6a7   : > { %v6106_v11 = vpop.f32.mrf.mxu1  ;;  %11069 = vst [vmem:[#allocation56_spill] sm:$0xff] %v9889_v26 }
 0x6a8   : > { %v6107_v36 = vadd.f32 %v6106_v11, %v6105_v51  ;;  %v9795_v51 = vpop.f32.mrf.mxu0  ;;  %v4353_v11 = vmul.f32 %v9650_v59, %v9524_v1 }
 0x6a9   : > { %11059 = vst [vmem:[#allocation6_spill] sm:$0xff] %v9795_v51  ;;  %v9808_v49 = vpop.permute.xlu1 %7049 }
 0x6aa   : > { %v9714_v2 = vmul.f32 %v6107_v36, %v3439_v14  ;;  %v9801_v14 = vld [vmem:[%s7330_s26 + $0x10] sm:$0xff]  ;;  %4622 = vrot.lane.b32.xlu0 %v4353_v11, %s7273_s14  ;;  %v9806_v0 = vpop.f32.mrf.mxu0  ;;  %v9844_v11 = vld [vmem:[%s7330_s26 + $0xb8] sm:$0xff] }
 0x6ab   : > { %11060 = vst [vmem:[#allocation52_spill] sm:$0xff] %v9801_v14  ;;  %v4342_v36 = vmul.f32 %v9801_v14, %v9524_v1  ;;  %11066 = vst [vmem:[#allocation16_spill] sm:$0xff] %v9844_v11 }
 0x6ac   : > { %v3441_v7 = vsel %vm759_vm4, %v9714_v2, -inf  ;;  %v9815_v59 = vpop.f32.mrf.mxu0 }
 0x6ad   : > { %3442 = vmax.xlane.f32.xlu1 %v3441_v7  ;;  %v4357_v7 = vmul.f32 %v9756_v12, %v9524_v1  ;;  %11061 = vst [vmem:[#allocation57_spill] sm:$0xff] %v9815_v59  ;;  %v9817_v40 = vpop.permute.xlu1 %3484 }
 0x6ae   : > { %3492 = vrot.lane.b32.xlu0 %v9751_v45, %s7271_s12  ;;  %11062 = vst [vmem:[#allocation51_spill] sm:$0xff] %v9817_v40  ;;  %v9825_v39 = vpop.f32.mrf.mxu0 }
 0x6b1   : > { %v9832_v46 = vpop.permute.xlu1 %4658 }
 0x6b2   : > { %3494 = vrot.lane.b32.xlu0 %v9821_v53, %s7271_s12 }
 0x6b6   : > { %4618 = vrot.lane.b32.xlu0 %v4351_v13, %s7273_s14 }
 0x6be   : > { %4636 = vrot.lane.b32.xlu1 %v4360_v18, %s7273_s14  ;;  %v9830_v18 = vpop.f32.mrf.mxu0 }
 0x6bf   : > { %11064 = vst [vmem:[#allocation50_spill] sm:$0xff] %v9830_v18 }
 0x6c2   : > { %4604 = vrot.lane.b32.xlu1 %v4344_v30, %s7273_s14  ;;  %v9835_v30 = vld [vmem:[%s7330_s26 + $0xb0] sm:$0xff] }
 0x6c3   : > { %11065 = vst [vmem:[#allocation54_spill] sm:$0xff] %v9835_v30  ;;  %3496 = vrot.lane.b32.xlu0 %v9835_v30, %s7271_s12 }
 0x6c6   : > { %4634 = vrot.lane.b32.xlu1 %v4359_v31, %s7273_s14  ;;  %v9839_v31 = vpop.f32.mrf.mxu0 }
 0x6c7   : > { %3498 = vrot.lane.b32.xlu0 %v9844_v11, %s7271_s12 }
 0x6c8   : > { %v9848_v4 = vpop.f32.mrf.mxu0 }
 0x6ca   : > { %4632 = vrot.lane.b32.xlu1 %v4358_v17, %s7273_s14  ;;  %v9841_v17 = vpop.permute.xlu1 %4656  ;;  %v9856_v13 = vpop.f32.mrf.mxu0 }
 0x6cc   : > { %v9862_v59 = vpop.f32.mrf.mxu0 }
 0x6ce   : > { %4600 = vrot.lane.b32.xlu1 %v4342_v36, %s7273_s14  ;;  %v9851_v36 = vld [vmem:[%s7330_s26 + $0x48] sm:$0xff]  ;;  %v9858_v18 = vpop.permute.xlu1 %4624  ;;  %v9873_v27 = vpop.f32.mrf.mxu0 }
 0x6cf   : > { %11067 = vst [vmem:[#allocation46_spill] sm:$0xff] %v9851_v36 }
 0x6d0   : > { %v9876_v5 = vpop.f32.mrf.mxu0 }
 0x6d2   : > { %4630 = vrot.lane.b32.xlu1 %v4357_v7, %s7273_s14  ;;  %v4349_v7 = vmul.f32 %v9851_v36, %v9524_v1  ;;  %v9864_v51 = vpop.permute.xlu1 %4654 }
 0x6d4   : > { %4614 = vrot.lane.b32.xlu0 %v4349_v7, %s7273_s14  ;;  %v4347_v7 = vmul.f32 %v9869_v28, %v9524_v1  ;;  %v9911_v28 = vld [vmem:[%s7330_s26 + $0x18] sm:$0xff] }
 0x6d5   : > { %11071 = vst [vmem:[#allocation48_spill] sm:$0xff] %v9911_v28 }
 0x6d6   : > { %v9878_v30 = vpop.permute.xlu1 %4652 }
 0x6d8   : > { %3500 = vrot.lane.b32.xlu0 %v9606_v63, %s7271_s12  ;;  %v9882_v63 = vpop.f32.mrf.mxu0 }
 0x6da   : > { %v9884_v45 = vpop.permute.xlu1 %4620  ;;  %v9893_v23 = vpop.f32.mrf.mxu0 }
 0x6dc   : > { %3502 = vrot.lane.b32.xlu0 %v9600_v34, %s7271_s12  ;;  %v9896_v12 = vpop.f32.mrf.mxu0 }
 0x6de   : > { %v9902_v3 = vpop.f32.mrf.mxu0 }
 0x6e0   : > { %4610 = vrot.lane.b32.xlu0 %v4347_v7, %s7273_s14  ;;  %v4345_v7 = vmul.f32 %v9889_v26, %v9524_v1  ;;  %v9908_v36 = vpop.f32.mrf.mxu0 }
 0x6e2   : > { %v9916_v26 = vpop.f32.mrf.mxu0 }
 0x6e4   : > { %3504 = vrot.lane.b32.xlu0 %v9591_v24, %s7271_s12  ;;  %v9898_v24 = vpop.permute.xlu1 %4650  ;;  %v9925_v14 = vpop.f32.mrf.mxu0 }
 0x6e6   : > { %v9931_v34 = vpop.f32.mrf.mxu0 }
 0x6e8   : > { %3506 = vrot.lane.b32.xlu0 %v9581_v15, %s7271_s12  ;;  %v9904_v15 = vpop.permute.xlu1 %4648  ;;  %v9939_v11 = vpop.f32.mrf.mxu0 }
 0x6e9   : > { %11070 = vst [vmem:[#allocation53_spill] sm:$0xff] %v9904_v15 }
 0x6ec   : > { %4606 = vrot.lane.b32.xlu0 %v4345_v7, %s7273_s14  ;;  %v4343_v7 = vmul.f32 %v9911_v28, %v9524_v1  ;;  %v9934_v28 = vld [vmem:[%s7330_s26 + $0x8] sm:$0xff] }
 0x6ed   : > { %11075 = vst [vmem:[#allocation38_spill] sm:$0xff] %v9934_v28 }
 0x6f0   : > { %3508 = vrot.lane.b32.xlu0 %v9478_v38, %s7271_s12  ;;  %v9918_v38 = vpop.permute.xlu1 %4616 }
 0x6f1   : > { %11072 = vst [vmem:[#allocation26_spill] sm:$0xff] %v9918_v38 }
 0x6f4   : > { %3510 = vrot.lane.b32.xlu0 %v9556_v62, %s7271_s12  ;;  %v9927_v62 = vpop.permute.xlu1 %4646 }
 0x6f5   : > { %11074 = vst [vmem:[#allocation24_spill] sm:$0xff] %v9927_v62 }
 0x6f8   : > { %4602 = vrot.lane.b32.xlu0 %v4343_v7, %s7273_s14  ;;  %v4341_v7 = vmul.f32 %v9934_v28, %v9524_v1  ;;  %v9941_v53 = vpop.permute.xlu1 %4644 }
 0x6f9   : > { %11076 = vst [vmem:[#allocation55_spill] sm:$0xff] %v9941_v53 }
 0x6fc   : > { %3512 = vrot.lane.b32.xlu0 %v9921_v33, %s7271_s12  ;;  %v9943_v33 = vpop.f32.mrf.mxu0  ;;  %v9945_v40 = vpop.permute.xlu1 %4612 }
 0x6fd   : > { %11077 = vst [vmem:[#allocation58_spill] sm:$0xff] %v9945_v40 }
 0x6fe   : > { %v9947_v58 = vpop.f32.mrf.mxu0 }
 0x700   : > { %3514 = vrot.lane.b32.xlu0 %v9737_v22, %s7271_s12  ;;  %v9949_v22 = vpop.f32.mrf.mxu0  ;;  %v9951_v52 = vpop.permute.xlu1 %4642 }
 0x701   : > { %11078 = vst [vmem:[#allocation27_spill] sm:$0xff] %v9951_v52 }
 0x702   : > { %v9953_v55 = vpop.f32.mrf.mxu0 }
 0x704   : > { %4598 = vrot.lane.b32.xlu0 %v4341_v7, %s7273_s14  ;;  %v9958_v7 = vld [vmem:[%s10601_s3] ss:$0 sm:$0xff]  ;;  %v9960_v28 = vpop.permute.xlu1 %4640  ;;  %v9962_v29 = vpop.f32.mrf.mxu0 }
 0x705   : > { %11079 = vst [vmem:[#allocation12_spill] sm:$0xff] %v9960_v28  ;;  %11080 = vst [vmem:[#allocation45_spill] sm:$0xff] %v9962_v29  ;;  %v1485_v40 = vadd.f32 %v9720_v57, %v9958_v7  ;;  %v1487_v52 = vadd.f32 %v9741_v16, %v9958_v7  ;;  %v1489_v29 = vadd.f32 %v9760_v60, %v9958_v7  ;;  %v9981_v28 = vld [vmem:[%s7330_s26] sm:$0xff] }
 0x706   : > { %11085 = vst [vmem:[#allocation25_spill] sm:$0xff] %v9981_v28  ;;  %v4340_v57 = vmul.f32 %v9981_v28, %v9524_v1  ;;  %v1493_v28 = vadd.f32 %v9806_v0, %v9958_v7 }
 0x708   : > { %v9972_v32 = vpop.permute.xlu1 %4608  ;;  %4596 = vrot.lane.b32.xlu0 %v4340_v57, %s7273_s14 }
 0x729   : > { %v6429_v53 = vpop.f32.mrf.mxu0 }
 0x72a   : > { %v9966_v48 = vadd.f32 %v6429_v53, %v1485_v40  ;;  %v9985_v53 = vpop.permute.xlu1 %4638 }
 0x72b   : > { %v9968_v62 = vpop.f32.mrf.mxu0 }
 0x72c   : > { %11081 = vst [vmem:[#allocation42_spill] sm:$0xff] %v9966_v48  ;;  %11082 = vst [vmem:[#allocation7_spill] sm:$0xff] %v9968_v62 }
 0x72d   : > { %v6432_v38 = vpop.f32.mrf.mxu0 }
 0x72e   : > { %v9974_v15 = vadd.f32 %v6432_v38, %v1487_v52  ;;  %v1491_v52 = vadd.f32 %v9786_v6, %v9958_v7  ;;  %v1495_v6 = vadd.f32 %v9825_v39, %v9958_v7 }
 0x72f   : > { %v9976_v61 = vpop.f32.mrf.mxu0 }
 0x730   : > { %11083 = vst [vmem:[#allocation62_spill] sm:$0xff] %v9974_v15  ;;  %11084 = vst [vmem:[#allocation43_spill] sm:$0xff] %v9976_v61 }
 0x731   : > { %v6435_v40 = vpop.f32.mrf.mxu0 }
 0x732   : > { %v9987_v48 = vadd.f32 %v6435_v40, %v1489_v29 }
 0x733   : > { %v9990_v16 = vpop.f32.mrf.mxu0 }
 0x734   : > { %11086 = vst [vmem:[#allocation18_spill] sm:$0xff] %v9987_v48 }
 0x735   : > { %v6438_v38 = vpop.f32.mrf.mxu0 }
 0x736   : > { %v9994_v15 = vadd.f32 %v6438_v38, %v1491_v52  ;;  %v3443_v60 = vpop.xlane.xlu1 %3442 }
 0x737   : > { %v3444_v61 = vsub.f32 %v9714_v2, %v3443_v60  ;;  %v9997_v62 = vpop.f32.mrf.mxu0  ;;  %v1497_v2 = vadd.f32 %v9839_v31, %v9958_v7 }
 0x738   : > { %11087 = vst [vmem:[#allocation28_spill] sm:$0xff] %v9994_v15 }
 0x739   : > { %v3445_v29 = vmul.f32 1.442695, %v3444_v61  ;;  %v6441_v40 = vpop.f32.mrf.mxu0  ;;  %v1496_v61 = vadd.f32 %v9958_v7, %v9848_v4  ;;  %v1501_v4 = vadd.f32 %v9873_v27, %v9958_v7  ;;  %v1502_v27 = vadd.f32 %v9958_v7, %v9893_v23 }
 0x73a   : > { %v10001_v48 = vadd.f32 %v6441_v40, %v1493_v28 }
 0x73b   : > { %7119 = vpow2.f32 %v3445_v29  ;;  %v10003_v57 = vpop.f32.mrf.mxu0  ;;  %v1499_v29 = vadd.f32 %v9856_v13, %v9958_v7 }
 0x73d   : > { %v6444_v52 = vpop.f32.mrf.mxu0 }
 0x73e   : > { %v10007_v38 = vadd.f32 %v6444_v52, %v1495_v6  ;;  %v1498_v6 = vadd.f32 %v9958_v7, %v9862_v59 }
 0x73f   : > { %v10009_v15 = vpop.f32.mrf.mxu0 }
 0x740   : > { %11088 = vst [vmem:[#allocation19_spill] sm:$0xff] %v10007_v38 }
 0x741   : > { %v6447_v60 = vpop.f32.mrf.mxu0 }
 0x742   : > { %v10015_v28 = vadd.f32 %v6447_v60, %v1497_v2 }
 0x743   : > { %v2709_v0 = vpop.f32.mrf.mxu0 }
 0x744   : > { %v10019_v40 = vadd.f32 %v2709_v0, %v1496_v61  ;;  %v1500_v61 = vadd.f32 %v9958_v7, %v9876_v5 }
 0x745   : > { %v6450_v39 = vpop.f32.mrf.mxu0 }
 0x746   : > { %v10023_v52 = vadd.f32 %v6450_v39, %v1499_v29  ;;  %v1503_v29 = vadd.f32 %v9882_v63, %v9958_v7  ;;  %v7000_v63 = vpop.permute.xlu0 %6999 }
 0x747   : > { %v2719_v38 = vpop.f32.mrf.mxu0 }
 0x748   : > { %11089 = vst [vmem:[#allocation32_spill] sm:$0xff] %v10023_v52  ;;  %v10025_v31 = vpop.eup %7119  ;;  %v10029_v2 = vadd.f32 %v2719_v38, %v1498_v6 }
 0x749   : > { %v6453_v60 = vpop.f32.mrf.mxu0  ;;  %v3447_v13 = vsel %vm759_vm4, %v10025_v31, 0.0 }
 0x74a   : > { %11090 = vst [vmem:[#allocation40_spill] sm:$0xff] %v10029_v2  ;;  %v10035_v0 = vadd.f32 %v6453_v60, %v1501_v4  ;;  %3448 = vadd.xlane.f32.xlu1 %v3447_v13  ;;  %v1505_v2 = vadd.f32 %v9896_v12, %v9958_v7  ;;  %v1504_v60 = vadd.f32 %v9958_v7, %v9902_v3 }
 0x74b   : > { %v2729_v59 = vpop.f32.mrf.mxu0  ;;  %v1509_v3 = vadd.f32 %v9925_v14, %v9958_v7  ;;  %v1510_v14 = vadd.f32 %v9958_v7, %v9943_v33 }
 0x74c   : > { %v10039_v39 = vadd.f32 %v2729_v59, %v1500_v61  ;;  %v1507_v59 = vadd.f32 %v9908_v36, %v9958_v7 }
 0x74d   : > { %v6456_v52 = vpop.f32.mrf.mxu0 }
 0x74e   : > { %v10043_v38 = vadd.f32 %v6456_v52, %v1503_v29  ;;  %v1506_v29 = vadd.f32 %v9958_v7, %v9916_v26 }
 0x74f   : > { %v2739_v6 = vpop.f32.mrf.mxu0 }
 0x750   : > { %v10047_v5 = vadd.f32 %v2739_v6, %v1502_v27  ;;  %v4356_v6 = vmul.f32 %v9531_v19, %v9524_v1 }
 0x751   : > { %v6459_v4 = vpop.f32.mrf.mxu0 }
 0x752   : > { %v10051_v13 = vadd.f32 %v6459_v4, %v1505_v2  ;;  %v10067_v4 = vpop.permute.xlu0 %3474 }
 0x753   : > { %v2749_v61 = vpop.f32.mrf.mxu0 }
 0x754   : > { %v10055_v23 = vadd.f32 %v2749_v61, %v1504_v60  ;;  %v1508_v60 = vadd.f32 %v9958_v7, %v9931_v34  ;;  %v1513_v34 = vadd.f32 %v9947_v58, %v9958_v7 }
 0x755   : > { %v6462_v52 = vpop.f32.mrf.mxu0 }
 0x756   : > { %v10059_v12 = vadd.f32 %v6462_v52, %v1507_v59  ;;  %v1511_v59 = vadd.f32 %v9939_v11, %v9958_v7 }
 0x757   : > { %v2759_v27 = vpop.f32.mrf.mxu0 }
 0x758   : > { %v10065_v2 = vadd.f32 %v2759_v27, %v1506_v29  ;;  %v7035_v29 = vpop.permute.xlu0 %7034 }
 0x759   : > { %v6465_v36 = vpop.f32.mrf.mxu0 }
 0x75a   : > { %v10071_v61 = vadd.f32 %v6465_v36, %v1509_v3 }
 0x75b   : > { %v2769_v26 = vpop.f32.mrf.mxu0  ;;  %4628 = vrot.lane.b32.xlu1 %v4356_v6, %s7273_s14  ;;  %v1512_v6 = vadd.f32 %v9958_v7, %v9949_v22 }
 0x75c   : > { %v10076_v1 = vadd.f32 %v2769_v26, %v1508_v60  ;;  %v1515_v26 = vadd.f32 %v9953_v55, %v9958_v7 }
 0x75d   : > { %v6468_v19 = vpop.f32.mrf.mxu0 }
 0x75e   : > { %v10080_v52 = vadd.f32 %v6468_v19, %v1511_v59  ;;  %v10094_v59 = vpop.permute.xlu0 %3478 }
 0x75f   : > { %v2779_v27 = vpop.f32.mrf.mxu0 }
 0x760   : > { %11091 = vst [vmem:[#allocation20_spill] sm:$0xff] %v10080_v52  ;;  %v10084_v3 = vadd.f32 %v2779_v27, %v1510_v14 }
 0x761   : > { %v6471_v36 = vpop.f32.mrf.mxu0 }
 0x762   : > { %11092 = vst [vmem:[#allocation33_spill] sm:$0xff] %v10084_v3  ;;  %v10088_v11 = vadd.f32 %v6471_v36, %v1513_v34  ;;  %v7045_v58 = vpop.permute.xlu0 %7044 }
 0x763   : > { %v2789_v60 = vpop.f32.mrf.mxu0 }
 0x764   : > { %v10092_v33 = vadd.f32 %v2789_v60, %v1512_v6 }
 0x765   : > { %v6474_v19 = vpop.f32.mrf.mxu0 }
 0x766   : > { %11093 = vst [vmem:[#allocation29_spill] sm:$0xff] %v10092_v33  ;;  %v10096_v52 = vadd.f32 %v6474_v19, %v1515_v26  ;;  %v10098_v14 = vpop.permute.xlu0 %3482 }
 0x768   : > { %11094 = vst [vmem:[#allocation21_spill] sm:$0xff] %v10096_v52 }
 0x76a   : > { %v7055_v27 = vpop.permute.xlu0 %7054 }
 0x76e   : > { %v10100_v3 = vpop.permute.xlu0 %3486 }
 0x772   : > { %v4627_v22 = vpop.permute.xlu0 %4626 }
 0x776   : > { %v10104_v34 = vpop.permute.xlu0 %3488 }
 0x77a   : > { %v10107_v55 = vpop.permute.xlu0 %3490 }
 0x77e   : > { %v4623_v7 = vpop.permute.xlu0 %4622 }
 0x782   : > { %v10111_v36 = vpop.permute.xlu0 %3492 }
 0x784   : > { %7059 = vxpose.xlu1.b32.start [1/16] (narrow) %v9632_v43, 8 }
 0x786   : > { %v10115_v43 = vpop.permute.xlu0 %3494 }
 0x788   : > { %7061 = vxpose.xlu1.b32.cont [2/16] (narrow) %v9635_v47, 8 }
 0x78a   : > { %v4619_v47 = vpop.permute.xlu0 %4618 }
 0x78c   : > { %7063 = vxpose.xlu1.b32.cont [3/16] (narrow) %v9656_v9, 8 }
 0x78e   : > { %v10120_v9 = vpop.permute.xlu0 %3496 }
 0x790   : > { %7065 = vxpose.xlu1.b32.cont [4/16] (narrow) %v9658_v41, 8  ;;  %v10122_v41 = vpop.permute.xlu1 %4636 }
 0x794   : > { %7067 = vxpose.xlu1.b32.cont [5/16] (narrow) %v7000_v63, 8 }
 0x798   : > { %7069 = vxpose.xlu1.b32.cont [6/16] (narrow) %v9673_v20, 8  ;;  %v10124_v20 = vpop.permute.xlu0 %3498 }
 0x79c   : > { %7071 = vxpose.xlu1.b32.cont [7/16] (narrow) %v9688_v50, 8  ;;  %v4605_v50 = vpop.permute.xlu1 %4604 }
 0x7a0   : > { %7073 = vxpose.xlu1.b32.cont [8/16] (narrow) %v9692_v54, 8  ;;  %v4615_v54 = vpop.permute.xlu0 %4614 }
 0x7a4   : > { %7075 = vxpose.xlu1.b32.cont [9/16] (narrow) %v9708_v10, 8  ;;  %v4635_v10 = vpop.permute.xlu1 %4634  ;;  %v10128_v63 = vpop.permute.xlu0 %3500 }
 0x7a8   : > { %7077 = vxpose.xlu1.b32.cont [10/16] (narrow) %v9712_v42, 8  ;;  %v4633_v42 = vpop.permute.xlu1 %4632 }
 0x7ac   : > { %7079 = vxpose.xlu1.b32.cont [11/16] (narrow) %v9743_v8, 8  ;;  %v10130_v8 = vpop.permute.xlu0 %3502  ;;  %v4601_v6 = vpop.permute.xlu1 %4600 }
 0x7b0   : > { %7081 = vxpose.xlu1.b32.cont [12/16] (narrow) %v7035_v29, 8  ;;  %v4611_v29 = vpop.permute.xlu0 %4610  ;;  %v4631_v60 = vpop.permute.xlu1 %4630 }
 0x7b4   : > { %7083 = vxpose.xlu1.b32.cont [13/16] (narrow) %v9773_v44, 8  ;;  %v10132_v26 = vpop.permute.xlu0 %3504 }
 0x7b8   : > { %7085 = vxpose.xlu1.b32.cont [14/16] (narrow) %v7045_v58, 8  ;;  %v10134_v44 = vpop.permute.xlu0 %3506 }
 0x7bc   : > { %7087 = vxpose.xlu1.b32.cont [15/16] (narrow) %v9808_v49, 8  ;;  %v4607_v58 = vpop.permute.xlu0 %4606 }
 0x7c0   : > { %7089 = vxpose.xlu1.b32.end [16/16] (narrow) %v7055_v27, 8  ;;  %v10137_v33 = vpop.permute.xlu0 %3508 }
 0x7c4   : > { %v10144_v27 = vpop.permute.xlu0 %3510 }
 0x7d3   : > { %v3449_v19 = vpop.xlane.xlu1 %3448 }
 0x7d4   : > { %7121 = vrcp.f32 %v3449_v19 }
 0x7e1   : > { %v7122_v52 = vpop.eup %7121 }
 0x7e2   : > { %v3451_v49 = vmul.f32 %v7122_v52, %v10025_v31  ;;  %v11105_v31 = vld [vmem:[#allocation61_spill] sm:$0xff]  ;;  %v11106_v52 = vld [vmem:[#allocation12_spill] sm:$0xff] }
 0x7e4   : > { %6475 = vmatprep.subr.msk.mxu1 %vm286_vm2, %v3451_v49 }
 0x7e5   : > { %6476 = vmatpush3.xpose.msk.msra.mxu1 %vm286_vm2, %v3451_v49 }
 0x7e6   : > { %6174 = vmatprep.subr.mxu1 %v9832_v46 }
 0x7e8   : > { %6478 = vmatmul.mubr.msk.f32.vlgmr.msra.gmra.mxu1 %vm286_vm2, %v9626_v35  ;;  %v4603_v35 = vpop.permute.xlu0 %4602 }
 0x7e9   : > { %6480 = vmatprep.mubr.msk.f32.mxu1 %vm286_vm2, %v9647_v25  ;;  %6175 = vmatpush3.msra.mxu1 %v4627_v22  ;;  %v11095_v25 = vld [vmem:[#allocation65_spill] sm:$0xff] }
 0x7ea   : > { %6176 = vmatprep.subr.mxu1 %v9841_v17  ;;  %v11103_v17 = vld [vmem:[#allocation47_spill] sm:$0xff] }
 0x7eb   : > { %6177 = vmatpush3.msra.mxu1 %v9858_v18  ;;  %v11099_v18 = vld [vmem:[#allocation24_spill] sm:$0xff] }
 0x7ec   : > { %6481 = vmatmul.mubr.msk.f32.gmra.mxu1 %vm286_vm2, %v9654_v37  ;;  %6178 = vmatprep.subr.mxu1 %v9864_v51  ;;  %v11096_v37 = vld [vmem:[#allocation53_spill] sm:$0xff]  ;;  %v11097_v51 = vld [vmem:[#allocation26_spill] sm:$0xff]  ;;  %v3513_v46 = vpop.permute.xlu0 %3512 }
 0x7ed   : > { %6483 = vmatprep.mubr.msk.f32.mxu1 %vm286_vm2, %v9663_v21  ;;  %6179 = vmatpush3.msra.mxu1 %v4623_v7  ;;  %v11098_v21 = vld [vmem:[#allocation64_spill] sm:$0xff]  ;;  %v4629_v7 = vpop.permute.xlu1 %4628 }
 0x7ee   : > { %6180 = vmatprep.subr.mxu1 %v9878_v30  ;;  %v11102_v30 = vld [vmem:[#allocation58_spill] sm:$0xff] }
 0x7ef   : > { %6181 = vmatpush3.msra.mxu1 %v9884_v45  ;;  %v11100_v45 = vld [vmem:[#allocation44_spill] sm:$0xff] }
 0x7f0   : > { %6484 = vmatmul.mubr.msk.f32.gmra.mxu1 %vm286_vm2, %v9668_v56  ;;  %6182 = vmatprep.subr.mxu1 %v9898_v24  ;;  %v11101_v56 = vld [vmem:[#allocation55_spill] sm:$0xff]  ;;  %v3515_v22 = vpop.permute.xlu0 %3514 }
 0x7f1   : > { %6486 = vmatprep.mubr.msk.f32.mxu1 %vm286_vm2, %v11095_v25  ;;  %6183 = vmatpush3.msra.mxu1 %v4619_v47  ;;  %v11104_v24 = vld [vmem:[#allocation27_spill] sm:$0xff] }
 0x7f2   : > { %6184 = vmatprep.subr.mxu1 %v11096_v37  ;;  %v11107_v47 = vld [vmem:[#allocation11_spill] sm:$0xff] }
 0x7f3   : > { %6185 = vmatpush3.msra.mxu1 %v11097_v51 }
 0x7f4   : > { %6487 = vmatmul.mubr.msk.f32.gmra.mxu1 %vm286_vm2, %v11098_v21  ;;  %6186 = vmatprep.subr.mxu1 %v11099_v18 }
 0x7f5   : > { %6489 = vmatprep.mubr.msk.f32.mxu1 %vm286_vm2, %v11100_v45  ;;  %6187 = vmatpush3.msra.mxu1 %v4615_v54  ;;  %v4599_v54 = vpop.permute.xlu0 %4598 }
 0x7f6   : > { %6188 = vmatprep.subr.mxu1 %v11101_v56 }
 0x7f7   : > { %6189 = vmatpush3.msra.mxu1 %v11102_v30 }
 0x7f8   : > { %6490 = vmatmul.mubr.msk.f32.gmra.mxu1 %vm286_vm2, %v11103_v17  ;;  %6190 = vmatprep.subr.mxu1 %v11104_v24 }
 0x7f9   : > { %6492 = vmatprep.mubr.msk.f32.mxu1 %vm286_vm2, %v11105_v31  ;;  %6191 = vmatpush3.msra.mxu1 %v4611_v29 }
 0x7fa   : > { %6192 = vmatprep.subr.mxu1 %v11106_v52 }
 0x7fb   : > { %6193 = vmatpush3.msra.mxu1 %v9972_v32  ;;  %v11108_v32 = vld [vmem:[#allocation14_spill] sm:$0xff] }
 0x7fc   : > { %6493 = vmatmul.mubr.msk.f32.gmra.mxu1 %vm286_vm2, %v10067_v4  ;;  %6194 = vmatprep.subr.mxu1 %v9985_v53  ;;  %v4597_v53 = vpop.permute.xlu0 %4596  ;;  %v11109_v4 = vld [vmem:[#allocation51_spill] sm:$0xff] }
 0x7fd   : > { %6495 = vmatprep.mubr.msk.f32.mxu1 %vm286_vm2, %v11107_v47  ;;  %6195 = vmatpush3.msra.mxu1 %v4607_v58 }
 0x7fe   : > { %6196 = vmatprep.subr.mxu1 %v10122_v41  ;;  %v7224_v41 = vld [vmem:[%s7330_s26 + $0xe8] sm:$0xff] }
 0x7ff   : > { %6197 = vmatpush3.msra.mxu1 %v4605_v50 }
 0x800   : > { %6496 = vmatmul.mubr.msk.f32.gmra.mxu1 %vm286_vm2, %v10094_v59  ;;  %6198 = vmatprep.subr.mxu1 %v4635_v10  ;;  %v7090_v29 = vpop.trf.xlu1 }
 0x801   : > { %6498 = vmatprep.mubr.msk.f32.mxu1 %vm286_vm2, %v11108_v32  ;;  %6199 = vmatpush3.msra.mxu1 %v4603_v35  ;;  %v7094_v59 = vunpack.i.h.bf16 %v7090_v29 }
 0x802   : > { %6200 = vmatprep.subr.mxu1 %v4633_v42 }
 0x803   : > { %6201 = vmatpush3.msra.mxu1 %v4601_v6 }
 0x804   : > { %6499 = vmatmul.mubr.msk.f32.gmra.mxu1 %vm286_vm2, %v10098_v14  ;;  %6202 = vmatprep.subr.mxu1 %v4631_v60  ;;  %v245_v14 = vld [vmem:[%s10600_s2 + $0x8] sm:$0xff] }
 0x805   : > { %6501 = vmatprep.mubr.msk.f32.mxu1 %vm286_vm2, %v11109_v4  ;;  %6203 = vmatpush3.msra.mxu1 %v4599_v54  ;;  %v4763_v4 = vstv %s5800_s24 }
 0x806   : > { %6204 = vmatprep.subr.mxu1 %v4629_v7  ;;  %6525 = vmatprep.subr.msk.mxu0 %vm1255_vm7, %v245_v14 }
 0x807   : > { %6205 = vmatpush3.msra.mxu1 %v4597_v53  ;;  %6526 = vmatpush3.msk.msra.mxu0 %vm1255_vm7, %v245_v14 }
 0x808   : > { %6502 = vmatmul.mubr.msk.f32.gmra.mxu1 %vm286_vm2, %v10100_v3  ;;  %v7091_v3 = vunpack.i.l.bf16 %v7090_v29 }
 0x809   : > { %6504 = vmatprep.mubr.msk.f32.mxu1 %vm286_vm2, %v10104_v34  ;;  %v7222_v34 = vld [vmem:[%s7330_s26 + $0x60] sm:$0xff] }
 0x80a   : > { %4800 = vrot.lane.b32.xlu1 %v7222_v34, %s7274_s22  ;;  %v11114_v34 = vld [vmem:[#allocation25_spill] sm:$0xff] }
 0x80c   : > { %6505 = vmatmul.mubr.msk.f32.gmra.mxu1 %vm286_vm2, %v10107_v55  ;;  %v11110_v55 = vld [vmem:[#allocation22_spill] sm:$0xff] }
 0x80d   : > { %6507 = vmatprep.mubr.msk.f32.mxu1 %vm286_vm2, %v10111_v36  ;;  %v11111_v36 = vld [vmem:[#allocation16_spill] sm:$0xff] }
 0x80e   : > { %4818 = vrot.lane.b32.xlu1 %v11110_v55, %s7274_s22  ;;  %v11115_v55 = vld [vmem:[#allocation38_spill] sm:$0xff] }
 0x810   : > { %6508 = vmatmul.mubr.msk.f32.gmra.mxu1 %vm286_vm2, %v10115_v43  ;;  %v11112_v43 = vld [vmem:[#allocation63_spill] sm:$0xff] }
 0x811   : > { %6510 = vmatprep.mubr.msk.f32.mxu1 %vm286_vm2, %v10120_v9  ;;  %v7223_v9 = vld [vmem:[%s7330_s26 + $0xd8] sm:$0xff] }
 0x812   : > { %4822 = vrot.lane.b32.xlu1 %v11111_v36, %s7274_s22  ;;  %v11116_v36 = vld [vmem:[#allocation52_spill] sm:$0xff] }
 0x814   : > { %6511 = vmatmul.mubr.msk.f32.gmra.mxu1 %vm286_vm2, %v10124_v20  ;;  %v11113_v20 = vld [vmem:[#allocation9_spill] sm:$0xff] }
 0x815   : > { %6513 = vmatprep.mubr.msk.f32.mxu1 %vm286_vm2, %v10128_v63 }
 0x816   : > { %4826 = vrot.lane.b32.xlu1 %v11112_v43, %s7274_s22  ;;  %v11117_v43 = vld [vmem:[#allocation48_spill] sm:$0xff] }
 0x818   : > { %6514 = vmatmul.mubr.msk.f32.gmra.mxu1 %vm286_vm2, %v10130_v8 }
 0x819   : > { %6516 = vmatprep.mubr.msk.f32.mxu1 %vm286_vm2, %v10132_v26 }
 0x81a   : > { %4830 = vrot.lane.b32.xlu1 %v7223_v9, %s7274_s22  ;;  %v11118_v9 = vld [vmem:[#allocation17_spill] sm:$0xff] }
 0x81c   : > { %6517 = vmatmul.mubr.msk.f32.gmra.mxu1 %vm286_vm2, %v10134_v44 }
 0x81d   : > { %6519 = vmatprep.mubr.msk.f32.mxu1 %vm286_vm2, %v10137_v33  ;;  %v10224_v33 = vrot.slane %v245_v14, 4 }
 0x81e   : > { %4834 = vrot.lane.b32.xlu1 %v7224_v41, %s7274_s22  ;;  %v11119_v41 = vld [vmem:[#allocation56_spill] sm:$0xff] }
 0x81f   : > { %6625 = vmatprep.subr.msk.mxu0 %vm1255_vm7, %v10224_v33 }
 0x820   : > { %6520 = vmatmul.mubr.msk.f32.gmra.mxu1 %vm286_vm2, %v10144_v27 }
 0x821   : > { %6522 = vmatprep.mubr.msk.f32.mxu1 %vm286_vm2, %v3513_v46 }
 0x822   : > { %4838 = vrot.lane.b32.xlu1 %v11113_v20, %s7274_s22  ;;  %v7225_v20 = vld [vmem:[%s7330_s26 + $0x30] sm:$0xff] }
 0x824   : > { %6523 = vmatmul.mubr.msk.f32.gmra.mxu1 %vm286_vm2, %v3515_v22 }
 0x825   : > { %4756 = vmatprep.mubr.f32.mxu1 %v7091_v3 }
 0x828   : > { %4757 = vmatmul.mubr.f32.vlgmr.msra.gmra.mxu1 %v7094_v59 }
 0x8a8   : > { %v6479_v50 = vpop.f32.mrf.mxu1 }
 0x8aa   : > { %v3649_v10 = vpop.f32.mrf.mxu1 }
 0x8ab   : > { %6527 = vmatprep.mubr.msk.f32.mxu0 %vm286_vm2, %v3649_v10  ;;  %v7226_v10 = vld [vmem:[%s7330_s26 + $0x40] sm:$0xff] }
 0x8ac   : > { %v6482_v63 = vpop.f32.mrf.mxu1  ;;  %6528 = vmatmul.mubr.msk.f32.vlgmr.msra.gmra.mxu0 %vm286_vm2, %v6479_v50  ;;  %v11120_v50 = vld [vmem:[#allocation59_spill] sm:$0xff] }
 0x8ad   : > { %6626 = vmatpush3.msk.msra.mxu0 %vm1255_vm7, %v10224_v33 }
 0x8ae   : > { %v3659_v42 = vpop.f32.mrf.mxu1 }
 0x8af   : > { %6530 = vmatprep.mubr.msk.f32.mxu0 %vm286_vm2, %v3659_v42 }
 0x8b0   : > { %v6485_v8 = vpop.f32.mrf.mxu1  ;;  %6531 = vmatmul.mubr.msk.f32.gmra.mxu0 %vm286_vm2, %v6482_v63 }
 0x8b2   : > { %v3669_v6 = vpop.f32.mrf.mxu1 }
 0x8b3   : > { %6533 = vmatprep.mubr.msk.f32.mxu0 %vm286_vm2, %v3669_v6 }
 0x8b4   : > { %v6488_v60 = vpop.f32.mrf.mxu1  ;;  %6534 = vmatmul.mubr.msk.f32.gmra.mxu0 %vm286_vm2, %v6485_v8 }
 0x8b6   : > { %v3679_v26 = vpop.f32.mrf.mxu1 }
 0x8b7   : > { %6536 = vmatprep.mubr.msk.f32.mxu0 %vm286_vm2, %v3679_v26 }
 0x8b8   : > { %v6491_v19 = vpop.f32.mrf.mxu1  ;;  %6537 = vmatmul.mubr.msk.f32.gmra.mxu0 %vm286_vm2, %v6488_v60 }
 0x8ba   : > { %v3689_v44 = vpop.f32.mrf.mxu1 }
 0x8bb   : > { %6539 = vmatprep.mubr.msk.f32.mxu0 %vm286_vm2, %v3689_v44  ;;  %v7227_v44 = vld [vmem:[%s7330_s26 + $0x50] sm:$0xff] }
 0x8bc   : > { %v6494_v58 = vpop.f32.mrf.mxu1  ;;  %6540 = vmatmul.mubr.msk.f32.gmra.mxu0 %vm286_vm2, %v6491_v19  ;;  %v11121_v19 = vld [vmem:[#allocation46_spill] sm:$0xff] }
 0x8be   : > { %v3699_v49 = vpop.f32.mrf.mxu1 }
 0x8bf   : > { %6542 = vmatprep.mubr.msk.f32.mxu0 %vm286_vm2, %v3699_v49  ;;  %v7229_v49 = vld [vmem:[%s7330_s26 + $0x68] sm:$0xff] }
 0x8c0   : > { %v6497_v27 = vpop.f32.mrf.mxu1  ;;  %6543 = vmatmul.mubr.msk.f32.gmra.mxu0 %vm286_vm2, %v6494_v58  ;;  %v7228_v58 = vld [vmem:[%s7330_s26 + $0x58] sm:$0xff] }
 0x8c2   : > { %v3709_v35 = vpop.f32.mrf.mxu1 }
 0x8c3   : > { %6545 = vmatprep.mubr.msk.f32.mxu0 %vm286_vm2, %v3709_v35  ;;  %v11122_v35 = vld [vmem:[#allocation23_spill] sm:$0xff] }
 0x8c4   : > { %v6500_v25 = vpop.f32.mrf.mxu1  ;;  %6546 = vmatmul.mubr.msk.f32.gmra.mxu0 %vm286_vm2, %v6497_v27  ;;  %v7230_v27 = vld [vmem:[%s7330_s26 + $0x70] sm:$0xff] }
 0x8c6   : > { %v3719_v37 = vpop.f32.mrf.mxu1 }
 0x8c7   : > { %6548 = vmatprep.mubr.msk.f32.mxu0 %vm286_vm2, %v3719_v37  ;;  %v11123_v37 = vld [vmem:[#allocation15_spill] sm:$0xff] }
 0x8c8   : > { %v6503_v51 = vpop.f32.mrf.mxu1  ;;  %6549 = vmatmul.mubr.msk.f32.gmra.mxu0 %vm286_vm2, %v6500_v25  ;;  %v7231_v25 = vld [vmem:[%s7330_s26 + $0x80] sm:$0xff] }
 0x8ca   : > { %v3729_v21 = vpop.f32.mrf.mxu1 }
 0x8cb   : > { %6551 = vmatprep.mubr.msk.f32.mxu0 %vm286_vm2, %v3729_v21  ;;  %v11125_v21 = vld [vmem:[#allocation37_spill] sm:$0xff] }
 0x8cc   : > { %v6506_v18 = vpop.f32.mrf.mxu1  ;;  %6552 = vmatmul.mubr.msk.f32.gmra.mxu0 %vm286_vm2, %v6503_v51  ;;  %v11124_v51 = vld [vmem:[#allocation41_spill] sm:$0xff] }
 0x8ce   : > { %v3739_v46 = vpop.f32.mrf.mxu1 }
 0x8cf   : > { %6554 = vmatprep.mubr.msk.f32.mxu0 %vm286_vm2, %v3739_v46  ;;  %v11127_v46 = vld [vmem:[#allocation54_spill] sm:$0xff] }
 0x8d0   : > { %v6509_v45 = vpop.f32.mrf.mxu1  ;;  %6555 = vmatmul.mubr.msk.f32.gmra.mxu0 %vm286_vm2, %v6506_v18  ;;  %v11126_v18 = vld [vmem:[#allocation13_spill] sm:$0xff] }
 0x8d2   : > { %v3749_v56 = vpop.f32.mrf.mxu1 }
 0x8d3   : > { %6557 = vmatprep.mubr.msk.f32.mxu0 %vm286_vm2, %v3749_v56  ;;  %v7233_v56 = vld [vmem:[%s7330_s26 + $0xd0] sm:$0xff] }
 0x8d4   : > { %v6512_v30 = vpop.f32.mrf.mxu1  ;;  %6558 = vmatmul.mubr.msk.f32.gmra.mxu0 %vm286_vm2, %v6509_v45  ;;  %v7232_v45 = vld [vmem:[%s7330_s26 + $0xc0] sm:$0xff] }
 0x8d6   : > { %v3759_v17 = vpop.f32.mrf.mxu1 }
 0x8d7   : > { %6560 = vmatprep.mubr.msk.f32.mxu0 %vm286_vm2, %v3759_v17  ;;  %v11128_v17 = vld [vmem:[#allocation5_spill] sm:$0xff] }
 0x8d8   : > { %v6515_v24 = vpop.f32.mrf.mxu1  ;;  %6561 = vmatmul.mubr.msk.f32.gmra.mxu0 %vm286_vm2, %v6512_v30  ;;  %v7234_v30 = vld [vmem:[%s7330_s26 + $0xe0] sm:$0xff] }
 0x8da   : > { %v3769_v31 = vpop.f32.mrf.mxu1 }
 0x8db   : > { %6563 = vmatprep.mubr.msk.f32.mxu0 %vm286_vm2, %v3769_v31 }
 0x8dc   : > { %v6518_v52 = vpop.f32.mrf.mxu1  ;;  %6564 = vmatmul.mubr.msk.f32.gmra.mxu0 %vm286_vm2, %v6515_v24 }
 0x8de   : > { %v3779_v22 = vpop.f32.mrf.mxu1 }
 0x8df   : > { %6566 = vmatprep.mubr.msk.f32.mxu0 %vm286_vm2, %v3779_v22 }
 0x8e0   : > { %v6521_v7 = vpop.f32.mrf.mxu1  ;;  %6567 = vmatmul.mubr.msk.f32.gmra.mxu0 %vm286_vm2, %v6518_v52 }
 0x8e2   : > { %v3789_v47 = vpop.f32.mrf.mxu1 }
 0x8e3   : > { %6569 = vmatprep.mubr.msk.f32.mxu0 %vm286_vm2, %v3789_v47 }
 0x8e4   : > { %v6524_v54 = vpop.f32.mrf.mxu1  ;;  %6570 = vmatmul.mubr.msk.f32.gmra.mxu0 %vm286_vm2, %v6521_v7 }
 0x8e6   : > { %v3799_v29 = vpop.f32.mrf.mxu1 }
 0x8e7   : > { %6572 = vmatprep.mubr.msk.f32.mxu0 %vm286_vm2, %v3799_v29 }
 0x8e8   : > { %6573 = vmatmul.mubr.msk.f32.gmra.mxu0 %vm286_vm2, %v6524_v54  ;;  %v6206_v32 = vpop.f32.mrf.mxu1 }
 0x8ea   : > { %v6207_v53 = vpop.f32.mrf.mxu1 }
 0x8eb   : > { %v6208_v3 = vadd.f32 %v6207_v53, %v6206_v32 }
 0x8ed   : > { %v4764_v59 = vmul.f32 %v6208_v3, %v4763_v4 }
 0x8ef   : > { %v4765_v14 = vsel %vm759_vm4, %v4764_v59, -inf }
 0x8f0   : > { %4766 = vmax.xlane.f32.xlu0 %v4765_v14 }
 0x906   : > { %4776 = vrot.lane.b32.xlu0 %v11114_v34, %s7274_s22 }
 0x90a   : > { %4778 = vrot.lane.b32.xlu0 %v11115_v55, %s7274_s22 }
 0x90e   : > { %4780 = vrot.lane.b32.xlu0 %v11116_v36, %s7274_s22 }
 0x912   : > { %4782 = vrot.lane.b32.xlu0 %v11117_v43, %s7274_s22 }
 0x916   : > { %4784 = vrot.lane.b32.xlu0 %v11118_v9, %s7274_s22 }
 0x91a   : > { %4786 = vrot.lane.b32.xlu0 %v11119_v41, %s7274_s22 }
 0x91e   : > { %4788 = vrot.lane.b32.xlu0 %v7225_v20, %s7274_s22 }
 0x922   : > { %4790 = vrot.lane.b32.xlu0 %v11120_v50, %s7274_s22 }
 0x926   : > { %4792 = vrot.lane.b32.xlu0 %v7226_v10, %s7274_s22 }
 0x979   : > { %v4767_v63 = vpop.xlane.xlu0 %4766 }
 0x97a   : > { %v4768_v42 = vsub.f32 %v4764_v59, %v4767_v63 }
 0x97c   : > { %v4769_v8 = vmul.f32 1.442695, %v4768_v42 }
 0x97d   : > { %v4777_v6 = vpop.permute.xlu0 %4776 }
 0x97e   : > { %7123 = vpow2.f32 %v4769_v8  ;;  %6577 = vmatprep.mubr.msk.f32.mxu1 %vm286_vm2, %v4777_v6 }
 0x981   : > { %v4779_v24 = vpop.permute.xlu0 %4778 }
 0x985   : > { %v4781_v31 = vpop.permute.xlu0 %4780 }
 0x989   : > { %v4783_v52 = vpop.permute.xlu0 %4782 }
 0x98b   : > { %v7124_v60 = vpop.eup %7123 }
 0x98c   : > { %v4771_v26 = vsel %vm759_vm4, %v7124_v60, 0.0 }
 0x98d   : > { %4772 = vadd.xlane.f32.xlu0 %v4771_v26  ;;  %v4785_v22 = vpop.permute.xlu0 %4784 }
 0x991   : > { %v4787_v7 = vpop.permute.xlu0 %4786 }
 0x995   : > { %v4789_v47 = vpop.permute.xlu0 %4788 }
 0x999   : > { %v4791_v54 = vpop.permute.xlu0 %4790 }
 0x99d   : > { %v4793_v29 = vpop.permute.xlu0 %4792 }
 0x9a3   : > { %4794 = vrot.lane.b32.xlu0 %v11121_v19, %s7274_s22 }
 0x9a7   : > { %4796 = vrot.lane.b32.xlu0 %v7227_v44, %s7274_s22 }
 0x9ab   : > { %4798 = vrot.lane.b32.xlu0 %v7228_v58, %s7274_s22 }
 0x9af   : > { %4802 = vrot.lane.b32.xlu0 %v7229_v49, %s7274_s22 }
 0x9b3   : > { %4804 = vrot.lane.b32.xlu0 %v7230_v27, %s7274_s22 }
 0x9b7   : > { %4806 = vrot.lane.b32.xlu0 %v11122_v35, %s7274_s22 }
 0x9bb   : > { %4808 = vrot.lane.b32.xlu0 %v7231_v25, %s7274_s22 }
 0x9bf   : > { %4810 = vrot.lane.b32.xlu0 %v11123_v37, %s7274_s22 }
 0x9c3   : > { %4812 = vrot.lane.b32.xlu0 %v11124_v51, %s7274_s22 }
 0x9c7   : > { %4814 = vrot.lane.b32.xlu0 %v11125_v21, %s7274_s22 }
 0x9cb   : > { %4816 = vrot.lane.b32.xlu0 %v11126_v18, %s7274_s22 }
 0x9cf   : > { %4820 = vrot.lane.b32.xlu0 %v11127_v46, %s7274_s22 }
 0x9d3   : > { %4824 = vrot.lane.b32.xlu0 %v7232_v45, %s7274_s22 }
 0x9d7   : > { %4828 = vrot.lane.b32.xlu0 %v7233_v56, %s7274_s22 }
 0x9db   : > { %4832 = vrot.lane.b32.xlu0 %v7234_v30, %s7274_s22 }
 0x9df   : > { %4836 = vrot.lane.b32.xlu0 %v11128_v17, %s7274_s22 }
 0xa16   : > { %v4773_v32 = vpop.xlane.xlu0 %4772 }
 0xa17   : > { %7125 = vrcp.f32 %v4773_v32 }
 0xa1a   : > { %v4795_v53 = vpop.permute.xlu0 %4794 }
 0xa1e   : > { %v4797_v4 = vpop.permute.xlu0 %4796 }
 0xa22   : > { %v4799_v3 = vpop.permute.xlu0 %4798 }
 0xa24   : > { %v7126_v59 = vpop.eup %7125 }
 0xa25   : > { %v4775_v14 = vmul.f32 %v7126_v59, %v7124_v60 }
 0xa26   : > { %v4803_v34 = vpop.permute.xlu0 %4802 }
 0xa27   : > { %6575 = vmatprep.subr.msk.mxu1 %vm286_vm2, %v4775_v14 }
 0xa28   : > { %6576 = vmatpush3.xpose.msk.msra.mxu1 %vm286_vm2, %v4775_v14 }
 0xa29   : > { %6675 = vmatprep.subr.msk.mxu1 %vm1255_vm7, %v10224_v33 }
 0xa2a   : > { %v4805_v55 = vpop.permute.xlu0 %4804 }
 0xa2b   : > { %6578 = vmatmul.mubr.msk.f32.vlgmr.msra.gmra.mxu1 %vm286_vm2, %v4779_v24 }
 0xa2c   : > { %6580 = vmatprep.mubr.msk.f32.mxu1 %vm286_vm2, %v4781_v31  ;;  %6676 = vmatpush3.msk.msra.mxu1 %vm1255_vm7, %v10224_v33  ;;  %v4801_v33 = vpop.permute.xlu1 %4800 }
 0xa2e   : > { %v4807_v36 = vpop.permute.xlu0 %4806 }
 0xa2f   : > { %6581 = vmatmul.mubr.msk.f32.gmra.mxu1 %vm286_vm2, %v4783_v52 }
 0xa30   : > { %6583 = vmatprep.mubr.msk.f32.mxu1 %vm286_vm2, %v4785_v22  ;;  %v4819_v10 = vpop.permute.xlu1 %4818 }
 0xa32   : > { %v4809_v43 = vpop.permute.xlu0 %4808 }
 0xa33   : > { %6584 = vmatmul.mubr.msk.f32.gmra.mxu1 %vm286_vm2, %v4787_v7 }
 0xa34   : > { %6586 = vmatprep.mubr.msk.f32.mxu1 %vm286_vm2, %v4789_v47  ;;  %v4823_v42 = vpop.permute.xlu1 %4822 }
 0xa36   : > { %v4811_v9 = vpop.permute.xlu0 %4810 }
 0xa37   : > { %6587 = vmatmul.mubr.msk.f32.gmra.mxu1 %vm286_vm2, %v4791_v54 }
 0xa38   : > { %6589 = vmatprep.mubr.msk.f32.mxu1 %vm286_vm2, %v4793_v29  ;;  %v4827_v6 = vpop.permute.xlu1 %4826 }
 0xa3a   : > { %v4813_v41 = vpop.permute.xlu0 %4812 }
 0xa3b   : > { %6590 = vmatmul.mubr.msk.f32.gmra.mxu1 %vm286_vm2, %v4795_v53 }
 0xa3c   : > { %6592 = vmatprep.mubr.msk.f32.mxu1 %vm286_vm2, %v4797_v4  ;;  %v4831_v26 = vpop.permute.xlu1 %4830 }
 0xa3e   : > { %v4815_v20 = vpop.permute.xlu0 %4814 }
 0xa3f   : > { %6593 = vmatmul.mubr.msk.f32.gmra.mxu1 %vm286_vm2, %v4799_v3 }
 0xa40   : > { %6595 = vmatprep.mubr.msk.f32.mxu1 %vm286_vm2, %v4801_v33  ;;  %v4835_v44 = vpop.permute.xlu1 %4834  ;;  %v10399_v33 = vpop.f32.mrf.mxu0 }
 0xa41   : > { %11129 = vst [vmem:[#allocation39_spill] sm:$0xff] %v10399_v33 }
 0xa42   : > { %v4817_v50 = vpop.permute.xlu0 %4816 }
 0xa43   : > { %6596 = vmatmul.mubr.msk.f32.gmra.mxu1 %vm286_vm2, %v4803_v34 }
 0xa44   : > { %6598 = vmatprep.mubr.msk.f32.mxu1 %vm286_vm2, %v4805_v55  ;;  %v4839_v49 = vpop.permute.xlu1 %4838 }
 0xa46   : > { %v4821_v63 = vpop.permute.xlu0 %4820 }
 0xa47   : > { %6599 = vmatmul.mubr.msk.f32.gmra.mxu1 %vm286_vm2, %v4807_v36 }
 0xa48   : > { %6601 = vmatprep.mubr.msk.f32.mxu1 %vm286_vm2, %v4809_v43 }
 0xa4a   : > { %v4825_v8 = vpop.permute.xlu0 %4824 }
 0xa4b   : > { %6602 = vmatmul.mubr.msk.f32.gmra.mxu1 %vm286_vm2, %v4811_v9 }
 0xa4c   : > { %6604 = vmatprep.mubr.msk.f32.mxu1 %vm286_vm2, %v4813_v41 }
 0xa4e   : > { %v4829_v60 = vpop.permute.xlu0 %4828 }
 0xa4f   : > { %6605 = vmatmul.mubr.msk.f32.gmra.mxu1 %vm286_vm2, %v4815_v20  ;;  %v6529_v20 = vpop.f32.mrf.mxu0 }
 0xa50   : > { %6607 = vmatprep.mubr.msk.f32.mxu1 %vm286_vm2, %v4817_v50 }
 0xa51   : > { %v3973_v50 = vpop.f32.mrf.mxu0 }
 0xa52   : > { %v4833_v19 = vpop.permute.xlu0 %4832 }
 0xa53   : > { %6608 = vmatmul.mubr.msk.f32.gmra.mxu1 %vm286_vm2, %v4819_v10  ;;  %v6532_v10 = vpop.f32.mrf.mxu0 }
 0xa54   : > { %6610 = vmatprep.mubr.msk.f32.mxu1 %vm286_vm2, %v4821_v63 }
 0xa55   : > { %v3983_v63 = vpop.f32.mrf.mxu0 }
 0xa56   : > { %v4837_v58 = vpop.permute.xlu0 %4836 }
 0xa57   : > { %6611 = vmatmul.mubr.msk.f32.gmra.mxu1 %vm286_vm2, %v4823_v42  ;;  %v6535_v42 = vpop.f32.mrf.mxu0 }
 0xa58   : > { %6613 = vmatprep.mubr.msk.f32.mxu1 %vm286_vm2, %v4825_v8 }
 0xa59   : > { %v3993_v8 = vpop.f32.mrf.mxu0 }
 0xa5b   : > { %6614 = vmatmul.mubr.msk.f32.gmra.mxu1 %vm286_vm2, %v4827_v6  ;;  %v6538_v6 = vpop.f32.mrf.mxu0 }
 0xa5c   : > { %6616 = vmatprep.mubr.msk.f32.mxu1 %vm286_vm2, %v4829_v60 }
 0xa5d   : > { %v4003_v60 = vpop.f32.mrf.mxu0 }
 0xa5f   : > { %6617 = vmatmul.mubr.msk.f32.gmra.mxu1 %vm286_vm2, %v4831_v26  ;;  %v10401_v26 = vpop.f32.mrf.mxu0 }
 0xa60   : > { %6619 = vmatprep.mubr.msk.f32.mxu1 %vm286_vm2, %v4833_v19 }
 0xa61   : > { %v10403_v19 = vpop.f32.mrf.mxu0 }
 0xa63   : > { %6620 = vmatmul.mubr.msk.f32.gmra.mxu1 %vm286_vm2, %v4835_v44  ;;  %v10405_v44 = vpop.f32.mrf.mxu0 }
 0xa64   : > { %6622 = vmatprep.mubr.msk.f32.mxu1 %vm286_vm2, %v4837_v58 }
 0xa65   : > { %v10407_v58 = vpop.f32.mrf.mxu0 }
 0xa67   : > { %6623 = vmatmul.mubr.msk.f32.gmra.mxu1 %vm286_vm2, %v4839_v49  ;;  %v10409_v49 = vpop.f32.mrf.mxu0 }
 0xaeb   : > { %v6579_v27 = vpop.f32.mrf.mxu1 }
 0xaed   : > { %v4973_v35 = vpop.f32.mrf.mxu1 }
 0xaee   : > { %6627 = vmatprep.mubr.msk.f32.mxu0 %vm286_vm2, %v4973_v35 }
 0xaef   : > { %v6582_v25 = vpop.f32.mrf.mxu1  ;;  %6628 = vmatmul.mubr.msk.f32.vlgmr.msra.gmra.mxu0 %vm286_vm2, %v6579_v27  ;;  %v10411_v27 = vpop.f32.mrf.mxu0 }
 0xaf1   : > { %v4983_v37 = vpop.f32.mrf.mxu1  ;;  %v10413_v35 = vpop.f32.mrf.mxu0 }
 0xaf2   : > { %6630 = vmatprep.mubr.msk.f32.mxu0 %vm286_vm2, %v4983_v37 }
 0xaf3   : > { %v6585_v51 = vpop.f32.mrf.mxu1  ;;  %6631 = vmatmul.mubr.msk.f32.gmra.mxu0 %vm286_vm2, %v6582_v25  ;;  %v10415_v25 = vpop.f32.mrf.mxu0 }
 0xaf5   : > { %v4993_v21 = vpop.f32.mrf.mxu1  ;;  %v10417_v37 = vpop.f32.mrf.mxu0 }
 0xaf6   : > { %6633 = vmatprep.mubr.msk.f32.mxu0 %vm286_vm2, %v4993_v21 }
 0xaf7   : > { %v6588_v18 = vpop.f32.mrf.mxu1  ;;  %6634 = vmatmul.mubr.msk.f32.gmra.mxu0 %vm286_vm2, %v6585_v51  ;;  %v10419_v51 = vpop.f32.mrf.mxu0 }
 0xaf9   : > { %v5003_v46 = vpop.f32.mrf.mxu1  ;;  %v10421_v21 = vpop.f32.mrf.mxu0 }
 0xafa   : > { %6636 = vmatprep.mubr.msk.f32.mxu0 %vm286_vm2, %v5003_v46 }
 0xafb   : > { %v6591_v45 = vpop.f32.mrf.mxu1  ;;  %6637 = vmatmul.mubr.msk.f32.gmra.mxu0 %vm286_vm2, %v6588_v18  ;;  %v10423_v18 = vpop.f32.mrf.mxu0 }
 0xafd   : > { %v5013_v56 = vpop.f32.mrf.mxu1  ;;  %v10425_v46 = vpop.f32.mrf.mxu0 }
 0xafe   : > { %6639 = vmatprep.mubr.msk.f32.mxu0 %vm286_vm2, %v5013_v56 }
 0xaff   : > { %v6594_v30 = vpop.f32.mrf.mxu1  ;;  %6640 = vmatmul.mubr.msk.f32.gmra.mxu0 %vm286_vm2, %v6591_v45  ;;  %v10427_v45 = vpop.f32.mrf.mxu0 }
 0xb01   : > { %v5023_v17 = vpop.f32.mrf.mxu1  ;;  %v10429_v56 = vpop.f32.mrf.mxu0 }
 0xb02   : > { %6642 = vmatprep.mubr.msk.f32.mxu0 %vm286_vm2, %v5023_v17 }
 0xb03   : > { %v6597_v24 = vpop.f32.mrf.mxu1  ;;  %6643 = vmatmul.mubr.msk.f32.gmra.mxu0 %vm286_vm2, %v6594_v30  ;;  %v10431_v30 = vpop.f32.mrf.mxu0 }
 0xb05   : > { %v5033_v31 = vpop.f32.mrf.mxu1  ;;  %v10433_v17 = vpop.f32.mrf.mxu0 }
 0xb06   : > { %6645 = vmatprep.mubr.msk.f32.mxu0 %vm286_vm2, %v5033_v31 }
 0xb07   : > { %v6600_v52 = vpop.f32.mrf.mxu1  ;;  %6646 = vmatmul.mubr.msk.f32.gmra.mxu0 %vm286_vm2, %v6597_v24  ;;  %v10435_v24 = vpop.f32.mrf.mxu0 }
 0xb09   : > { %v5043_v22 = vpop.f32.mrf.mxu1  ;;  %v10437_v31 = vpop.f32.mrf.mxu0 }
 0xb0a   : > { %6648 = vmatprep.mubr.msk.f32.mxu0 %vm286_vm2, %v5043_v22 }
 0xb0b   : > { %v6603_v7 = vpop.f32.mrf.mxu1  ;;  %6649 = vmatmul.mubr.msk.f32.gmra.mxu0 %vm286_vm2, %v6600_v52  ;;  %v10439_v52 = vpop.f32.mrf.mxu0 }
 0xb0d   : > { %v5053_v47 = vpop.f32.mrf.mxu1  ;;  %v10441_v22 = vpop.f32.mrf.mxu0 }
 0xb0e   : > { %6651 = vmatprep.mubr.msk.f32.mxu0 %vm286_vm2, %v5053_v47 }
 0xb0f   : > { %v6606_v54 = vpop.f32.mrf.mxu1  ;;  %6652 = vmatmul.mubr.msk.f32.gmra.mxu0 %vm286_vm2, %v6603_v7  ;;  %v10443_v7 = vpop.f32.mrf.mxu0 }
 0xb10   : > { %11130 = vst [vmem:[#allocation60_spill] sm:$0xff] %v10443_v7 }
 0xb11   : > { %v5063_v29 = vpop.f32.mrf.mxu1  ;;  %v10445_v47 = vpop.f32.mrf.mxu0 }
 0xb12   : > { %6654 = vmatprep.mubr.msk.f32.mxu0 %vm286_vm2, %v5063_v29  ;;  %11131 = vst [vmem:[#allocation34_spill] sm:$0xff] %v10445_v47  ;;  %v11132_v29 = vld [vmem:[#allocation49_spill] sm:$0xff]  ;;  %v11139_v47 = vld [vmem:[#allocation35_spill] sm:$0xff] }
 0xb13   : > { %v6609_v32 = vpop.f32.mrf.mxu1  ;;  %6655 = vmatmul.mubr.msk.f32.gmra.mxu0 %vm286_vm2, %v6606_v54  ;;  %v10450_v54 = vld [vmem:[%s10601_s3] ss:$0 sm:$0xff] }
 0xb14   : > { %v1488_v33 = vadd.f32 %v10450_v54, %v11139_v47 }
 0xb15   : > { %v5073_v53 = vpop.f32.mrf.mxu1 }
 0xb16   : > { %6657 = vmatprep.mubr.msk.f32.mxu0 %vm286_vm2, %v5073_v53  ;;  %v10454_v53 = vpop.f32.mrf.mxu0 }
 0xb17   : > { %v6612_v4 = vpop.f32.mrf.mxu1  ;;  %6658 = vmatmul.mubr.msk.f32.gmra.mxu0 %vm286_vm2, %v6609_v32  ;;  %v1484_v32 = vadd.f32 %v10450_v54, %v11132_v29  ;;  %11133 = vst [vmem:[#allocation30_spill] sm:$0xff] %v10454_v53  ;;  %v11137_v29 = vld [vmem:[#allocation43_spill] sm:$0xff] }
 0xb19   : > { %v5083_v3 = vpop.f32.mrf.mxu1 }
 0xb1a   : > { %6660 = vmatprep.mubr.msk.f32.mxu0 %vm286_vm2, %v5083_v3 }
 0xb1b   : > { %v6615_v59 = vpop.f32.mrf.mxu1  ;;  %6661 = vmatmul.mubr.msk.f32.gmra.mxu0 %vm286_vm2, %v6612_v4  ;;  %v11134_v4 = vld [vmem:[#allocation7_spill] sm:$0xff] }
 0xb1c   : > { %v2808_v3 = vadd.f32 %v11134_v4, %v1484_v32 }
 0xb1d   : > { %v5093_v14 = vpop.f32.mrf.mxu1 }
 0xb1e   : > { %6663 = vmatprep.mubr.msk.f32.mxu0 %vm286_vm2, %v5093_v14 }
 0xb1f   : > { %v6618_v34 = vpop.f32.mrf.mxu1  ;;  %6664 = vmatmul.mubr.msk.f32.gmra.mxu0 %vm286_vm2, %v6615_v59  ;;  %v11135_v59 = vld [vmem:[#allocation42_spill] sm:$0xff] }
 0xb20   : > { %v4133_v14 = vadd.f32 %v6529_v20, %v11135_v59  ;;  %v11138_v20 = vld [vmem:[#allocation62_spill] sm:$0xff] }
 0xb21   : > { %v5103_v55 = vpop.f32.mrf.mxu1  ;;  %v4135_v4 = vadd.f32 %v6532_v10, %v11138_v20 }
 0xb22   : > { %6666 = vmatprep.mubr.msk.f32.mxu0 %vm286_vm2, %v5103_v55  ;;  %v11136_v55 = vld [vmem:[#allocation10_spill] sm:$0xff] }
 0xb23   : > { %v6621_v36 = vpop.f32.mrf.mxu1  ;;  %6667 = vmatmul.mubr.msk.f32.gmra.mxu0 %vm286_vm2, %v6618_v34 }
 0xb25   : > { %v5113_v43 = vpop.f32.mrf.mxu1 }
 0xb26   : > { %6669 = vmatprep.mubr.msk.f32.mxu1 %vm286_vm2, %v5113_v43  ;;  %v4132_v43 = vadd.f32 %v3973_v50, %v2808_v3  ;;  %v2812_v3 = vadd.f32 %v9990_v16, %v1488_v33 }
 0xb27   : > { %v6624_v9 = vpop.f32.mrf.mxu1  ;;  %6670 = vmatmul.mubr.msk.f32.vlgmr.msra.gmra.mxu1 %vm286_vm2, %v6621_v36  ;;  %v1486_v36 = vadd.f32 %v10450_v54, %v11136_v55 }
 0xb29   : > { %v5123_v41 = vpop.f32.mrf.mxu1  ;;  %v2810_v32 = vadd.f32 %v11137_v29, %v1486_v36  ;;  %v11142_v29 = vld [vmem:[#allocation28_spill] sm:$0xff] }
 0xb2a   : > { %6672 = vmatprep.mubr.msk.f32.mxu1 %vm286_vm2, %v5123_v41  ;;  %v4139_v16 = vadd.f32 %v6538_v6, %v11142_v29 }
 0xb2b   : > { %6673 = vmatmul.mubr.msk.f32.gmra.mxu1 %vm286_vm2, %v6624_v9  ;;  %v4134_v7 = vadd.f32 %v3983_v63, %v2810_v32 }
 0xbaf   : > { %v6629_v34 = vpop.f32.mrf.mxu0 }
 0xbb0   : > { %v5457_v9 = vadd.f32 %v6629_v34, %v4133_v14  ;;  %v11140_v14 = vld [vmem:[#allocation18_spill] sm:$0xff] }
 0xbb1   : > { %v5297_v41 = vpop.f32.mrf.mxu0  ;;  %v4137_v34 = vadd.f32 %v6535_v42, %v11140_v14 }
 0xbb2   : > { %5490 = vst.msk [vmem:[%s10463_s29 + $0x8] sm:$0xff] %vm5488_vm10, %v5457_v9  ;;  %v5456_v59 = vadd.f32 %v5297_v41, %v4132_v43  ;;  %v11141_v43 = vld [vmem:[#allocation6_spill] sm:$0xff]  ;;  %v4136_v41 = vadd.f32 %v3993_v8, %v2812_v3 }
 0xbb3   : > { %v6632_v53 = vpop.f32.mrf.mxu0  ;;  %v1490_v9 = vadd.f32 %v10450_v54, %v11141_v43 }
 0xbb4   : > { %5489 = vst.msk [vmem:[%s10463_s29] sm:$0xff] %vm5488_vm10, %v5456_v59  ;;  %v5459_v55 = vadd.f32 %v6632_v53, %v4135_v4 }
 0xbb5   : > { %v5307_v50 = vpop.f32.mrf.mxu0  ;;  %v2814_v53 = vadd.f32 %v9997_v62, %v1490_v9  ;;  %v4141_v62 = vadd.f32 %v10401_v26, %v10001_v48 }
 0xbb6   : > { %5492 = vst.msk [vmem:[%s10463_s29 + $0x18] sm:$0xff] %vm5488_vm10, %v5459_v55  ;;  %v5458_v10 = vadd.f32 %v5307_v50, %v4134_v7  ;;  %v11143_v7 = vld [vmem:[#allocation57_spill] sm:$0xff]  ;;  %v11144_v50 = vld [vmem:[#allocation50_spill] sm:$0xff] }
 0xbb7   : > { %v6635_v36 = vpop.f32.mrf.mxu0  ;;  %v1492_v32 = vadd.f32 %v10450_v54, %v11143_v7  ;;  %v4138_v20 = vadd.f32 %v4003_v60, %v2814_v53  ;;  %v1494_v3 = vadd.f32 %v10450_v54, %v11144_v50  ;;  %v11146_v53 = vld [vmem:[#allocation32_spill] sm:$0xff]  ;;  %v4157_v50 = vadd.f32 %v10433_v17, %v10071_v61  ;;  %v11149_v17 = vld [vmem:[#allocation33_spill] sm:$0xff] }
 0xbb8   : > { %5491 = vst.msk [vmem:[%s10463_s29 + $0x10] sm:$0xff] %vm5488_vm10, %v5458_v10  ;;  %v5461_v63 = vadd.f32 %v6635_v36, %v4137_v34  ;;  %v11145_v10 = vld [vmem:[#allocation19_spill] sm:$0xff]  ;;  %v4147_v29 = vadd.f32 %v10413_v35, %v11146_v53  ;;  %v11156_v53 = vld [vmem:[#allocation30_spill] sm:$0xff] }
 0xbb9   : > { %v5317_v47 = vpop.f32.mrf.mxu0  ;;  %v2816_v59 = vadd.f32 %v10003_v57, %v1492_v32  ;;  %v2818_v57 = vadd.f32 %v10009_v15, %v1494_v3  ;;  %v4143_v48 = vadd.f32 %v10405_v44, %v11145_v10  ;;  %v4148_v32 = vadd.f32 %v10419_v51, %v10039_v39 }
 0xbba   : > { %5494 = vst.msk [vmem:[%s10463_s29 + $0x28] sm:$0xff] %vm5488_vm10, %v5461_v63  ;;  %v5460_v33 = vadd.f32 %v5317_v47, %v4136_v41  ;;  %v4145_v41 = vadd.f32 %v10409_v49, %v10015_v28  ;;  %v4144_v63 = vadd.f32 %v10411_v27, %v10019_v40  ;;  %v4156_v3 = vadd.f32 %v10435_v24, %v10076_v1 }
 0xbbb   : > { %v6638_v42 = vpop.f32.mrf.mxu0  ;;  %v4140_v60 = vadd.f32 %v10403_v19, %v2816_v59  ;;  %v4142_v43 = vadd.f32 %v10407_v58, %v2818_v57  ;;  %v4153_v59 = vadd.f32 %v10425_v46, %v10051_v13  ;;  %v4158_v57 = vadd.f32 %v10439_v52, %v11149_v17 }
 0xbbc   : > { %5493 = vst.msk [vmem:[%s10463_s29 + $0x20] sm:$0xff] %vm5488_vm10, %v5460_v33  ;;  %v5463_v8 = vadd.f32 %v6638_v42, %v4139_v16  ;;  %v11147_v16 = vld [vmem:[#allocation40_spill] sm:$0xff]  ;;  %v4149_v42 = vadd.f32 %v10417_v37, %v10035_v0  ;;  %v4161_v24 = vadd.f32 %v10441_v22, %v10088_v11  ;;  %v11155_v11 = vld [vmem:[#allocation34_spill] sm:$0xff] }
 0xbbd   : > { %v5327_v4 = vpop.f32.mrf.mxu0  ;;  %v4146_v33 = vadd.f32 %v10415_v25, %v11147_v16 }
 0xbbe   : > { %5496 = vst.msk [vmem:[%s10463_s29 + $0x38] sm:$0xff] %vm5488_vm10, %v5463_v8  ;;  %v5462_v6 = vadd.f32 %v5327_v4, %v4138_v20  ;;  %v4151_v8 = vadd.f32 %v10421_v21, %v10043_v38  ;;  %v4150_v4 = vadd.f32 %v10423_v18, %v10047_v5 }
 0xbbf   : > { %v6641_v55 = vpop.f32.mrf.mxu0 }
 0xbc0   : > { %5495 = vst.msk [vmem:[%s10463_s29 + $0x30] sm:$0xff] %vm5488_vm10, %v5462_v6  ;;  %v5465_v14 = vadd.f32 %v6641_v55, %v4141_v62  ;;  %v4152_v62 = vadd.f32 %v10427_v45, %v10055_v23  ;;  %v4155_v6 = vadd.f32 %v10429_v56, %v10059_v12  ;;  %v4154_v55 = vadd.f32 %v10431_v30, %v10065_v2  ;;  %v11148_v30 = vld [vmem:[#allocation20_spill] sm:$0xff] }
 0xbc1   : > { %v5337_v34 = vpop.f32.mrf.mxu0 }
 0xbc2   : > { %5498 = vst.msk [vmem:[%s10463_s29 + $0x48] sm:$0xff] %vm5488_vm10, %v5465_v14  ;;  %v5464_v26 = vadd.f32 %v5337_v34, %v4140_v60  ;;  %v4159_v14 = vadd.f32 %v10437_v31, %v11148_v30 }
 0xbc3   : > { %v6644_v36 = vpop.f32.mrf.mxu0 }
 0xbc4   : > { %5497 = vst.msk [vmem:[%s10463_s29 + $0x40] sm:$0xff] %vm5488_vm10, %v5464_v26  ;;  %v5467_v19 = vadd.f32 %v6644_v36, %v4143_v48  ;;  %v11150_v26 = vld [vmem:[#allocation45_spill] sm:$0xff] }
 0xbc5   : > { %v5347_v9 = vpop.f32.mrf.mxu0  ;;  %v1514_v36 = vadd.f32 %v10450_v54, %v11150_v26 }
 0xbc6   : > { %5500 = vst.msk [vmem:[%s10463_s29 + $0x58] sm:$0xff] %vm5488_vm10, %v5467_v19  ;;  %v5466_v15 = vadd.f32 %v5347_v9, %v4142_v43  ;;  %v11151_v43 = vld [vmem:[#allocation29_spill] sm:$0xff]  ;;  %v11152_v19 = vld [vmem:[#allocation60_spill] sm:$0xff] }
 0xbc7   : > { %v6647_v44 = vpop.f32.mrf.mxu0  ;;  %v4160_v52 = vadd.f32 %v11152_v19, %v11151_v43 }
 0xbc8   : > { %5499 = vst.msk [vmem:[%s10463_s29 + $0x50] sm:$0xff] %vm5488_vm10, %v5466_v15  ;;  %v5469_v58 = vadd.f32 %v6647_v44, %v4145_v41  ;;  %v11153_v15 = vld [vmem:[#allocation39_spill] sm:$0xff] }
 0xbc9   : > { %v5357_v47 = vpop.f32.mrf.mxu0  ;;  %v2838_v44 = vadd.f32 %v11153_v15, %v1514_v36 }
 0xbca   : > { %5502 = vst.msk [vmem:[%s10463_s29 + $0x68] sm:$0xff] %vm5488_vm10, %v5469_v58  ;;  %v5468_v28 = vadd.f32 %v5357_v47, %v4144_v63  ;;  %v11154_v63 = vld [vmem:[#allocation21_spill] sm:$0xff] }
 0xbcb   : > { %v6650_v49 = vpop.f32.mrf.mxu0  ;;  %v4163_v22 = vadd.f32 %v11155_v11, %v11154_v63 }
 0xbcc   : > { %5501 = vst.msk [vmem:[%s10463_s29 + $0x60] sm:$0xff] %vm5488_vm10, %v5468_v28  ;;  %v5471_v40 = vadd.f32 %v6650_v49, %v4147_v29  ;;  %v4162_v29 = vadd.f32 %v11156_v53, %v2838_v44 }
 0xbcd   : > { %v5367_v27 = vpop.f32.mrf.mxu0 }
 0xbce   : > { %5504 = vst.msk [vmem:[%s10463_s29 + $0x78] sm:$0xff] %vm5488_vm10, %v5471_v40  ;;  %v5470_v35 = vadd.f32 %v5367_v27, %v4146_v33 }
 0xbcf   : > { %v6653_v7 = vpop.f32.mrf.mxu0 }
 0xbd0   : > { %5503 = vst.msk [vmem:[%s10463_s29 + $0x70] sm:$0xff] %vm5488_vm10, %v5470_v35  ;;  %v5473_v25 = vadd.f32 %v6653_v7, %v4149_v42 }
 0xbd1   : > { %v5377_v20 = vpop.f32.mrf.mxu0 }
 0xbd2   : > { %5506 = vst.msk [vmem:[%s10463_s29 + $0x88] sm:$0xff] %vm5488_vm10, %v5473_v25  ;;  %v5472_v0 = vadd.f32 %v5377_v20, %v4148_v32 }
 0xbd3   : > { %v6656_v37 = vpop.f32.mrf.mxu0 }
 0xbd4   : > { %5505 = vst.msk [vmem:[%s10463_s29 + $0x80] sm:$0xff] %vm5488_vm10, %v5472_v0  ;;  %v5475_v39 = vadd.f32 %v6656_v37, %v4151_v8 }
 0xbd5   : > { %v5387_v51 = vpop.f32.mrf.mxu0 }
 0xbd6   : > { %5508 = vst.msk [vmem:[%s10463_s29 + $0x98] sm:$0xff] %vm5488_vm10, %v5475_v39  ;;  %v5474_v38 = vadd.f32 %v5387_v51, %v4150_v4 }
 0xbd7   : > { %v6659_v21 = vpop.f32.mrf.mxu0 }
 0xbd8   : > { %5507 = vst.msk [vmem:[%s10463_s29 + $0x90] sm:$0xff] %vm5488_vm10, %v5474_v38  ;;  %v5477_v5 = vadd.f32 %v6659_v21, %v4153_v59 }
 0xbd9   : > { %v5397_v18 = vpop.f32.mrf.mxu0 }
 0xbda   : > { %5510 = vst.msk [vmem:[%s10463_s29 + $0xa8] sm:$0xff] %vm5488_vm10, %v5477_v5  ;;  %v5476_v13 = vadd.f32 %v5397_v18, %v4152_v62 }
 0xbdb   : > { %v6662_v46 = vpop.f32.mrf.mxu0 }
 0xbdc   : > { %5509 = vst.msk [vmem:[%s10463_s29 + $0xa0] sm:$0xff] %vm5488_vm10, %v5476_v13  ;;  %v5479_v23 = vadd.f32 %v6662_v46, %v4155_v6 }
 0xbdd   : > { %v5407_v45 = vpop.f32.mrf.mxu0 }
 0xbde   : > { %5512 = vst.msk [vmem:[%s10463_s29 + $0xb8] sm:$0xff] %vm5488_vm10, %v5479_v23  ;;  %v5478_v12 = vadd.f32 %v5407_v45, %v4154_v55 }
 0xbdf   : > { %v6665_v56 = vpop.f32.mrf.mxu0 }
 0xbe0   : > { %5511 = vst.msk [vmem:[%s10463_s29 + $0xb0] sm:$0xff] %vm5488_vm10, %v5478_v12  ;;  %v5481_v60 = vadd.f32 %v6665_v56, %v4157_v50 }
 0xbe1   : > { %v5417_v2 = vpop.f32.mrf.mxu0 }
 0xbe2   : > { %5514 = vst.msk [vmem:[%s10463_s29 + $0xc8] sm:$0xff] %vm5488_vm10, %v5481_v60  ;;  %v5480_v34 = vadd.f32 %v5417_v2, %v4156_v3 }
 0xbe3   : > { %v6668_v61 = vpop.f32.mrf.mxu0 }
 0xbe4   : > { %5513 = vst.msk [vmem:[%s10463_s29 + $0xc0] sm:$0xff] %vm5488_vm10, %v5480_v34  ;;  %v5483_v10 = vadd.f32 %v6668_v61, %v4159_v14 }
 0xbe5   : > { %v5427_v1 = vpop.f32.mrf.mxu0 }
 0xbe6   : > { %5516 = vst.msk [vmem:[%s10463_s29 + $0xd8] sm:$0xff] %vm5488_vm10, %v5483_v10  ;;  %v5482_v48 = vadd.f32 %v5427_v1, %v4158_v57 }
 0xbe7   : > { %v6671_v31 = vpop.f32.mrf.mxu1 }
 0xbe8   : > { %5515 = vst.msk [vmem:[%s10463_s29 + $0xd0] sm:$0xff] %vm5488_vm10, %v5482_v48  ;;  %v5485_v9 = vadd.f32 %v6671_v31, %v4161_v24 }
 0xbe9   : > { %v5437_v41 = vpop.f32.mrf.mxu1 }
 0xbea   : > { %5518 = vst.msk [vmem:[%s10463_s29 + $0xe8] sm:$0xff] %vm5488_vm10, %v5485_v9  ;;  %v5484_v58 = vadd.f32 %v5437_v41, %v4160_v52 }
 0xbeb   : > { %v6674_v47 = vpop.f32.mrf.mxu1 }
 0xbec   : > { %5517 = vst.msk [vmem:[%s10463_s29 + $0xe0] sm:$0xff] %vm5488_vm10, %v5484_v58  ;;  %v5487_v54 = vadd.f32 %v6674_v47, %v4163_v22 }
 0xbed   : > { %v5447_v28 = vpop.f32.mrf.mxu1 }
 0xbee   : > { %5520 = vst.msk [vmem:[%s10463_s29 + $0xf8] sm:$0xff] %vm5488_vm10, %v5487_v54  ;;  %v5486_v49 = vadd.f32 %v5447_v28, %v4162_v29 }
 0xbf0   : > { %5519 = vst.msk [vmem:[%s10463_s29 + $0xf0] sm:$0xff] %vm5488_vm10, %v5486_v49 }
 0xbf1 PF: > { %s15_s15 = sadd.s32 1, %s7261_s15  }
 0xbf2   : > { %p12_p1 = scmp.ge.s32.totalorder %s15_s15, 4  }
 0xbf4   :  { %14 = sbr.rel (!%p12_p1) target bundleno = 1 (0x1), region = 71 }
 0xbf9   :  { %5542 = vsyncpa [#allocation3], 1 }
 0xbfa   :  { %5544 = vsyncpa [#allocation3 + $0x1], 1 }

</bundles_post_ra>
